<compile_context>
chip_gen: v7x
topology: tpu7x:2x2x1
jax: 0.10.0
libtpu: 0.0.40
codegen_flags: <defaults>
</compile_context>

<pallas_src>
import functools

import jax
import jax.numpy as jnp
from jax import lax
from jax.experimental import pallas as pl
from jax.experimental.pallas import tpu as pltpu


# ---------------------------------------------------------------------------
# Small helpers
# ---------------------------------------------------------------------------

def _round_up(x, m):
    return (x + m - 1) // m * m


def _vmem_limit(need_bytes):
    # Generous but explicit scoped-VMEM limit; stays <= v7x's 64 MiB physical.
    return int(min(max(2 * need_bytes, 32 * 1024 * 1024), 64 * 1024 * 1024))


def _pick_tile_m(M, *, max_tile=512, align=128, sublane=16):
    """Choose (tm, padded_M).

    Prefers MXU-aligned (multiple-of-128) divisors of M that give >= 2 grid
    steps (keeps both v7x TensorCores busy); otherwise pads M with zero rows.
    Small M falls back to sublane-aligned (16, bf16 packing) tiles.
    """
    if M >= 2 * align:
        t = (min(max_tile, M // 2) // align) * align
        while t >= align:
            if M % t == 0:
                return t, M
            t -= align
        return align, _round_up(M, align)
    Mp = _round_up(M, sublane)
    half = Mp // 2
    if half >= sublane and half % sublane == 0:
        return half, Mp          # two tiles -> megacore still gets 2 steps
    return Mp, Mp


# ---------------------------------------------------------------------------
# Kernel 1: flattened-M matmul, K untiled, weight VMEM-resident, fused epilogue
# ---------------------------------------------------------------------------

def _mm_bias_act_kernel(a_ref, w_ref, b_ref, o_ref, *, relu):
    """a: (tm, K) bf16, w: (K, N) bf16 (resident), b: (1, N) f32, o: (tm, N)."""
    acc = jnp.dot(a_ref[...], w_ref[...], preferred_element_type=jnp.float32)
    acc = acc + b_ref[...]
    if relu:
        acc = jnp.maximum(acc, 0.0)
    o_ref[...] = acc.astype(o_ref.dtype)


def matmul_bias_act(a, w, bias, *, relu, out_dtype, tile_m_max=512):
    """(M, K) x (K, N) + bias (+ ReLU).  K is NOT tiled: the whole weight stays
    VMEM-resident across the (single, parallel) M grid axis, so there is no
    per-k weight re-DMA and no f32 accumulator RMW."""
    M, K = a.shape
    Kw, N = w.shape
    assert Kw == K and bias.shape == (1, N) and N % 128 == 0

    tm, Mp = _pick_tile_m(M, max_tile=tile_m_max)
    if Mp != M:
        a = jnp.pad(a, ((0, Mp - M), (0, 0)))
    grid = (Mp // tm,)
    assert Mp % tm == 0

    out_isz = jnp.dtype(out_dtype).itemsize
    vmem_need = (2 * tm * K * a.dtype.itemsize      # A tile (double-buffered)
                 + 2 * K * N * w.dtype.itemsize     # resident weight
                 + 2 * tm * N * out_isz             # output tile
                 + tm * N * 4 + 2 * N * 4)          # f32 epilogue value + bias

    out = pl.pallas_call(
        functools.partial(_mm_bias_act_kernel, relu=relu),
        out_shape=jax.ShapeDtypeStruct((Mp, N), out_dtype),
        grid=grid,
        in_specs=[
            pl.BlockSpec((tm, K), lambda m: (m, 0)),   # A tile
            pl.BlockSpec((K, N), lambda m: (0, 0)),    # weight: resident, K untiled
            pl.BlockSpec((1, N), lambda m: (0, 0)),    # bias: resident
        ],
        out_specs=pl.BlockSpec((tm, N), lambda m: (m, 0)),
        compiler_params=pltpu.CompilerParams(
            dimension_semantics=("parallel",),
            vmem_limit_bytes=_vmem_limit(vmem_need)),
    )(a, w, bias)
    return out[:M] if Mp != M else out


# ---------------------------------------------------------------------------
# Kernel 2: fused 3x3 / stride-2 / pad-1 conv + bias + ReLU (no im2col in HBM)
# ---------------------------------------------------------------------------

def _conv3x3_s2_relu_kernel(x00_ref, x01_ref, x10_ref, x11_ref,
                            w_ref, b_ref, o_ref):
    """Parity planes x_pq: (OH+1, OW+1, C) bf16 where
    x_pq[i, j] = x_padded[2i+p, 2j+q].  Tap (ki, kj) of the 3x3 window reads
    plane (ki%2, kj%2) at offset (ki//2, kj//2) -- contiguous slices only.
    w: (9, C, N) bf16 tap-major, b: (1, N) f32, o: (OH, OW, N)."""
    oh, ow, n = o_ref.shape
    planes = ((x00_ref, x01_ref), (x10_ref, x11_ref))

    acc = jnp.zeros((oh * ow, n), jnp.float32)
    for ki in range(3):
        for kj in range(3):
            p_ref = planes[ki % 2][kj % 2]
            qi, qj = ki // 2, kj // 2
            a = p_ref[qi:qi + oh, qj:qj + ow, :].reshape(oh * ow, -1)
            acc = acc + jnp.dot(a, w_ref[ki * 3 + kj],
                                preferred_element_type=jnp.float32)

    y = jnp.maximum(acc + b_ref[...], 0.0)
    o_ref[...] = y.reshape(oh, ow, n).astype(o_ref.dtype)


def fused_conv3x3_s2(x_nhwc, w_taps, bias):
    """3x3 / stride-2 / pad-1 conv + bias + ReLU, fully fused.

    x_nhwc : (B, H, W, C) bf16 (H, W even)
    w_taps : (9, C, N) bf16, tap-major (t = ki*3 + kj), BN folded in
    bias   : (1, N) f32
    Returns (B, H//2, W//2, N) bf16.
    """
    B, H, W, C = x_nhwc.shape
    _, Cw, N = w_taps.shape
    assert Cw == C and bias.shape == (1, N) and N % 128 == 0
    assert H % 2 == 0 and W % 2 == 0
    OH, OW = H // 2, W // 2

    # One cheap layout pass instead of a 9x im2col: zero-pad spatially and
    # split into the four (row, col) parity planes.
    xp = jnp.pad(x_nhwc, ((0, 0), (1, 1), (1, 1), (0, 0)))
    xp = xp.reshape(B, OH + 1, 2, OW + 1, 2, C)
    planes = [xp[:, :, pi, :, pj, :] for pi in (0, 1) for pj in (0, 1)]

    plane_spec = pl.BlockSpec((None, OH + 1, OW + 1, C), lambda b: (b, 0, 0, 0))
    vmem_need = (2 * 4 * (OH + 1) * (OW + 1) * C * 2   # parity planes (dbl-buf)
                 + 2 * 9 * C * N * 2                   # resident tap weights
                 + 2 * OH * OW * N * 2                 # output (dbl-buf)
                 + OH * OW * (8 * N + 2 * C))          # f32 acc + tap slab values

    return pl.pallas_call(
        _conv3x3_s2_relu_kernel,
        out_shape=jax.ShapeDtypeStruct((B, OH, OW, N), jnp.bfloat16),
        grid=(B,),
        in_specs=[plane_spec] * 4 + [
            pl.BlockSpec((9, C, N), lambda b: (0, 0, 0)),   # resident weights
            pl.BlockSpec((1, N), lambda b: (0, 0)),         # resident bias
        ],
        out_specs=pl.BlockSpec((None, OH, OW, N), lambda b: (b, 0, 0, 0)),
        compiler_params=pltpu.CompilerParams(
            dimension_semantics=("parallel",),
            vmem_limit_bytes=_vmem_limit(vmem_need)),
    )(*planes, w_taps, bias)


# ---------------------------------------------------------------------------
# Glue: im2col (conv3 + fallback), weight layout, BN folding, lane padding
# ---------------------------------------------------------------------------

def _im2col(x_nhwc, kh, kw, stride, pad):
    """Returns (patches (B, oh*ow, kh*kw*C), oh, ow); K ordered (ki, kj, c)."""
    if pad > 0:
        x_nhwc = jnp.pad(x_nhwc, ((0, 0), (pad, pad), (pad, pad), (0, 0)))
    B, H, W, C = x_nhwc.shape
    out_h = (H - kh) // stride + 1
    out_w = (W - kw) // stride + 1
    cols = []
    for i in range(kh):
        for j in range(kw):
            cols.append(
                x_nhwc[:, i:i + stride * out_h:stride, j:j + stride * out_w:stride, :])
    patches = jnp.stack(cols, axis=-2)          # (B, oh, ow, kh*kw, C)
    return patches.reshape(B, out_h * out_w, kh * kw * C), out_h, out_w


def _conv_weight_to_mat(w_oihw):
    # (O, I, kh, kw) -> (kh*kw*I, O); K ordered (ki, kj, c) to match _im2col.
    O, I, kh, kw = w_oihw.shape
    return jnp.transpose(w_oihw, (2, 3, 1, 0)).reshape(kh * kw * I, O)


def _conv_w_to_taps(w_oihw):
    # (O, I, 3, 3) -> (9, I, O), tap-major t = ki*3 + kj.
    O, I, kh, kw = w_oihw.shape
    return jnp.transpose(w_oihw, (2, 3, 1, 0)).reshape(kh * kw, I, O)


def conv_im2col(x_nhwc, w_mat, bias, k, stride, pad):
    """Fallback conv: XLA im2col + flattened-M Pallas matmul (K padded to the
    weight-matrix rows, e.g. conv1's 9*C -> 128 for lane-dense A loads)."""
    B = x_nhwc.shape[0]
    a, oh, ow = _im2col(x_nhwc, k, k, stride, pad)
    K = a.shape[-1]
    Kp = w_mat.shape[0]
    if Kp != K:
        a = jnp.pad(a, ((0, 0), (0, 0), (0, Kp - K)))
    y = matmul_bias_act(a.reshape(B * oh * ow, Kp), w_mat, bias,
                        relu=True, out_dtype=jnp.bfloat16)
    return y.reshape(B, oh, ow, -1)


def fold_and_pad_params(p, eps=1e-5):
    """Fold eval-mode BN into conv weights/biases and zero-pad the embedding
    (output-channel) dim to a multiple of 128 for lane-dense kernels."""
    emb = p["w1"].shape[0]
    n = max(_round_up(emb, 128), 128)
    po = n - emb

    def fold(w, b, g, be, m, v):
        s = g / jnp.sqrt(v + eps)
        return w * s[:, None, None, None], (b - m) * s + be

    w1, b1 = fold(p["w1"], p["b1"], p["g1"], p["be1"], p["m1"], p["v1"])
    w2, b2 = fold(p["w2"], p["b2"], p["g2"], p["be2"], p["m2"], p["v2"])
    w3, b3 = p["w3"], p["b3"]

    w1 = jnp.pad(w1, ((0, po), (0, 0), (0, 0), (0, 0)))
    w2 = jnp.pad(w2, ((0, po), (0, po), (0, 0), (0, 0)))
    w3 = jnp.pad(w3, ((0, po), (0, po), (0, 0), (0, 0)))
    b1 = jnp.pad(b1, (0, po))
    b2 = jnp.pad(b2, (0, po))
    b3 = jnp.pad(b3, (0, po))
    pos = jnp.pad(p["pos"], ((0, 0), (0, po)))
    return dict(w1=w1, b1=b1, w2=w2, b2=b2, w3=w3, b3=b3, pos=pos)


def prepare_kernel_params(fp):
    """bf16 weights (tap + matrix layouts) and f32 biases/positions."""
    bf = lambda a: a.astype(jnp.bfloat16)
    q = {}
    # fused conv1/conv2: tap-major weights
    q["w1t"] = bf(_conv_w_to_taps(fp["w1"]))
    q["w2t"] = bf(_conv_w_to_taps(fp["w2"]))
    # im2col fallback matrices (conv1 K padded up to a full 128-lane group)
    w1m = _conv_weight_to_mat(fp["w1"])
    k1p = max(_round_up(w1m.shape[0], 128), 128)
    q["w1m"] = bf(jnp.pad(w1m, ((0, k1p - w1m.shape[0]), (0, 0))))
    q["w2m"] = bf(_conv_weight_to_mat(fp["w2"]))
    # conv3 (kernel == stride: plain reshape + matmul, no duplication)
    q["w3m"] = bf(_conv_weight_to_mat(fp["w3"]))
    q["b1"] = fp["b1"][None, :].astype(jnp.float32)
    q["b2"] = fp["b2"][None, :].astype(jnp.float32)
    q["b3"] = fp["b3"][None, :].astype(jnp.float32)
    q["pos"] = fp["pos"].astype(jnp.float32)
    return q


def init_params(key, in_channels, patch_size, emb_size, img_size):
    ks = jax.random.split(key, 16)
    p = {}
    p["w1"] = jax.random.normal(ks[0], (emb_size, in_channels, 3, 3), jnp.float32) * 0.1
    p["b1"] = jax.random.normal(ks[1], (emb_size,), jnp.float32) * 0.1
    p["g1"] = jax.random.uniform(ks[2], (emb_size,), jnp.float32, 0.5, 1.5)
    p["be1"] = jax.random.normal(ks[3], (emb_size,), jnp.float32) * 0.1
    p["m1"] = jax.random.normal(ks[4], (emb_size,), jnp.float32) * 0.1
    p["v1"] = jax.random.uniform(ks[5], (emb_size,), jnp.float32, 0.5, 1.5)
    p["w2"] = jax.random.normal(ks[6], (emb_size, emb_size, 3, 3), jnp.float32) * 0.05
    p["b2"] = jax.random.normal(ks[7], (emb_size,), jnp.float32) * 0.1
    p["g2"] = jax.random.uniform(ks[8], (emb_size,), jnp.float32, 0.5, 1.5)
    p["be2"] = jax.random.normal(ks[9], (emb_size,), jnp.float32) * 0.1
    p["m2"] = jax.random.normal(ks[10], (emb_size,), jnp.float32) * 0.1
    p["v2"] = jax.random.uniform(ks[11], (emb_size,), jnp.float32, 0.5, 1.5)
    p["w3"] = jax.random.normal(
        ks[12], (emb_size, emb_size, patch_size, patch_size), jnp.float32) * 0.05
    p["b3"] = jax.random.normal(ks[13], (emb_size,), jnp.float32) * 0.1
    n_pos = (img_size // 4 // patch_size) ** 2
    p["pos"] = jax.random.normal(ks[14], (n_pos, emb_size), jnp.float32)
    return p


# ---------------------------------------------------------------------------
# Forward pass
# ---------------------------------------------------------------------------

def patch_embedding_forward(x_nchw, q, patch_size, emb_size, *, fuse_convs=True):
    """PatchEmbedding forward (eval-mode BN). x: (B, C, H, W) f32.
    Returns (B, num_patches, emb_size) f32."""
    B = x_nchw.shape[0]
    x = jnp.transpose(x_nchw, (0, 2, 3, 1)).astype(jnp.bfloat16)   # NHWC bf16

    if fuse_convs:
        y1 = fused_conv3x3_s2(x, q["w1t"], q["b1"])                # (B, H/2, W/2, 128)
        y2 = fused_conv3x3_s2(y1, q["w2t"], q["b2"])               # (B, H/4, W/4, 128)
    else:
        y1 = conv_im2col(x, q["w1m"], q["b1"], 3, 2, 1)
        y2 = conv_im2col(y1, q["w2m"], q["b2"], 3, 2, 1)

    # conv3: kernel == stride == patch -> non-overlapping patches (pure reshape)
    assert y2.shape[1] % patch_size == 0 and y2.shape[2] % patch_size == 0
    a3, oh3, ow3 = _im2col(y2, patch_size, patch_size, patch_size, 0)
    K3 = a3.shape[-1]
    y3 = matmul_bias_act(a3.reshape(B * oh3 * ow3, K3), q["w3m"], q["b3"],
                         relu=False, out_dtype=jnp.float32)
    y3 = y3.reshape(B, oh3 * ow3, -1)

    # Positional add + strip the 128-lane padding in one fused XLA pass.
    # TODO(synk): a downstream consumer that accepts the 128-padded embedding
    #             would avoid re-reading this (small) final tensor.
    return (y3 + q["pos"][None])[:, :, :emb_size]


# ---------------------------------------------------------------------------
# References for correctness checking
# ---------------------------------------------------------------------------

def _reference_matched(x_nchw, fp, patch_size, emb_size):
    """Same math path (folded BN, padded channels, bf16 operands, f32 accum,
    bf16 intermediate activations) via lax.conv."""
    def conv(x_bf16, w_oihw, b, stride, pad):
        y = lax.conv_general_dilated(
            x_bf16, w_oihw.astype(jnp.bfloat16), (stride, stride),
            [(pad, pad), (pad, pad)],
            dimension_numbers=("NCHW", "OIHW", "NCHW"),
            preferred_element_type=jnp.float32)
        return y + b[None, :, None, None]

    x = x_nchw.astype(jnp.bfloat16)
    y = jax.nn.relu(conv(x, fp["w1"], fp["b1"], 2, 1)).astype(jnp.bfloat16)
    y = jax.nn.relu(conv(y, fp["w2"], fp["b2"], 2, 1)).astype(jnp.bfloat16)
    y = conv(y, fp["w3"], fp["b3"], patch_size, 0)                 # (B, N, h, w) f32
    B, N, h, w = y.shape
    y = jnp.transpose(y, (0, 2, 3, 1)).reshape(B, h * w, N) + fp["pos"][None]
    return y[:, :, :emb_size]


def _reference_f32(x_nchw, p, patch_size, eps=1e-5):
    """Full-precision reference of the original module semantics."""
    def conv(x, w, b, stride, pad):
        y = lax.conv_general_dilated(
            x, w, (stride, stride), [(pad, pad), (pad, pad)],
            dimension_numbers=("NCHW", "OIHW", "NCHW"))
        return y + b[None, :, None, None]

    def bn(y, g, be, m, v):
        return (y - m[None, :, None, None]) / jnp.sqrt(v + eps)[None, :, None, None] \
            * g[None, :, None, None] + be[None, :, None, None]

    y = jax.nn.relu(bn(conv(x_nchw, p["w1"], p["b1"], 2, 1),
                       p["g1"], p["be1"], p["m1"], p["v1"]))
    y = jax.nn.relu(bn(conv(y, p["w2"], p["b2"], 2, 1),
                       p["g2"], p["be2"], p["m2"], p["v2"]))
    y = conv(y, p["w3"], p["b3"], patch_size, 0)
    B, E, h, w = y.shape
    y = jnp.transpose(y, (0, 2, 3, 1)).reshape(B, h * w, E)
    return y + p["pos"][None, :, :]


# ---------------------------------------------------------------------------

if __name__ == "__main__":
    # Small shapes consistent with the module:
    #   in_channels=4, patch_size=4, emb_size=32, img_size=32, batch=2
    in_channels, patch_size, emb_size, img_size, batch = 4, 4, 32, 32, 2

    key = jax.random.PRNGKey(0)
    kx, kp = jax.random.split(key)
    x = jax.random.normal(kx, (batch, in_channels, img_size, img_size), jnp.float32)
    params = init_params(kp, in_channels, patch_size, emb_size, img_size)

    folded = fold_and_pad_params(params)
    qparams = prepare_kernel_params(folded)

    ref_m = _reference_matched(x, folded, patch_size, emb_size)
    ref_f = _reference_f32(x, params, patch_size)

    def run(fuse):
        fn = jax.jit(functools.partial(patch_embedding_forward,
                                       patch_size=patch_size, emb_size=emb_size,
                                       fuse_convs=fuse))
        out = fn(x, qparams)
        jax.block_until_ready(out)
        return out

    try:
        out = run(True)
        if not bool(jnp.allclose(out, ref_m, rtol=1e-2, atol=1e-2)):
            raise ValueError("fused conv path numerical mismatch")
    except Exception:
        # TODO(synk): if this jax/Mosaic build rejects the fused-tap conv
        # kernel, fall back to the im2col + Pallas-matmul path.
        out = run(False)

    n_pos = (img_size // 4 // patch_size) ** 2
    assert out.shape == (batch, n_pos, emb_size), out.shape

    # Tight check vs. the same bf16 / folded-BN math path (lax.conv).
    assert jnp.allclose(out, ref_m, rtol=1e-2, atol=1e-2), \
        float(jnp.max(jnp.abs(out - ref_m)))

    # Loose check vs. the original full-precision module semantics.
    assert jnp.allclose(out, ref_f, rtol=1e-1, atol=1e-1), \
        float(jnp.max(jnp.abs(out - ref_f)))

    print("KERNEL_OK")
</pallas_src>

<mosaic_0001>
module attributes {stable_mosaic.version = 11 : i64} {
  func.func @_conv3x3_s2_relu_kernel(%arg0: i32, %arg1: memref<1x17x17x4xbf16, #tpu.memory_space<vmem>>, %arg2: memref<1x17x17x4xbf16, #tpu.memory_space<vmem>>, %arg3: memref<1x17x17x4xbf16, #tpu.memory_space<vmem>>, %arg4: memref<1x17x17x4xbf16, #tpu.memory_space<vmem>>, %arg5: memref<9x4x128xbf16, #tpu.memory_space<vmem>>, %arg6: memref<1x128xf32, #tpu.memory_space<vmem>>, %arg7: memref<1x16x16x128xbf16, #tpu.memory_space<vmem>>) attributes {dimension_semantics = [#tpu.dimension_semantics<parallel>], iteration_bounds = array<i64: 2>, scalar_prefetch = 0 : i64, scratch_operands = 0 : i64, tpu.core_type = #tpu.core_type<tc>, window_params = [{transform_indices = @transform_0, window_bounds = array<i64: 1, 17, 17, 4>}, {transform_indices = @transform_1, window_bounds = array<i64: 1, 17, 17, 4>}, {transform_indices = @transform_2, window_bounds = array<i64: 1, 17, 17, 4>}, {transform_indices = @transform_3, window_bounds = array<i64: 1, 17, 17, 4>}, {pipeline_mode = #tpu.pipeline_mode<synchronous>, transform_indices = @transform_4, window_bounds = array<i64: 9, 4, 128>}, {pipeline_mode = #tpu.pipeline_mode<synchronous>, transform_indices = @transform_5, window_bounds = array<i64: 1, 128>}, {transform_indices = @transform_6, window_bounds = array<i64: 1, 16, 16, 128>}]} {
    %cst = arith.constant 0.000000e+00 : f32
    %0 = vector.broadcast %cst : f32 to vector<256x128xf32>
    %c0 = arith.constant 0 : index
    %c0_0 = arith.constant 0 : index
    %c0_1 = arith.constant 0 : index
    %c0_2 = arith.constant 0 : index
    %1 = vector.load %arg1[%c0, %c0_0, %c0_1, %c0_2] : memref<1x17x17x4xbf16, #tpu.memory_space<vmem>>, vector<1x16x16x4xbf16>
    %2 = vector.shape_cast %1 : vector<1x16x16x4xbf16> to vector<16x16x4xbf16>
    %3 = vector.shape_cast %2 : vector<16x16x4xbf16> to vector<256x4xbf16>
    %c0_3 = arith.constant 0 : index
    %c0_4 = arith.constant 0 : index
    %c0_5 = arith.constant 0 : index
    %4 = vector.load %arg5[%c0_3, %c0_4, %c0_5] : memref<9x4x128xbf16, #tpu.memory_space<vmem>>, vector<1x4x128xbf16>
    %5 = vector.shape_cast %4 : vector<1x4x128xbf16> to vector<4x128xbf16>
    %cst_6 = arith.constant dense<0.000000e+00> : vector<256x128xf32>
    %6 = tpu.matmul %3, %5, %cst_6 {dimension_numbers = #tpu.dot_dimension_numbers<[1], [0], [0], [1], [0, 0, 1, 1], [], []>} : vector<256x4xbf16>, vector<4x128xbf16>, vector<256x128xf32> -> vector<256x128xf32>
    %7 = arith.addf %0, %6 : vector<256x128xf32>
    %c0_7 = arith.constant 0 : index
    %c0_8 = arith.constant 0 : index
    %c0_9 = arith.constant 0 : index
    %c0_10 = arith.constant 0 : index
    %8 = vector.load %arg2[%c0_7, %c0_8, %c0_9, %c0_10] : memref<1x17x17x4xbf16, #tpu.memory_space<vmem>>, vector<1x16x16x4xbf16>
    %9 = vector.shape_cast %8 : vector<1x16x16x4xbf16> to vector<16x16x4xbf16>
    %10 = vector.shape_cast %9 : vector<16x16x4xbf16> to vector<256x4xbf16>
    %c1 = arith.constant 1 : index
    %c0_11 = arith.constant 0 : index
    %c0_12 = arith.constant 0 : index
    %11 = vector.load %arg5[%c1, %c0_11, %c0_12] : memref<9x4x128xbf16, #tpu.memory_space<vmem>>, vector<1x4x128xbf16>
    %12 = vector.shape_cast %11 : vector<1x4x128xbf16> to vector<4x128xbf16>
    %cst_13 = arith.constant dense<0.000000e+00> : vector<256x128xf32>
    %13 = tpu.matmul %10, %12, %cst_13 {dimension_numbers = #tpu.dot_dimension_numbers<[1], [0], [0], [1], [0, 0, 1, 1], [], []>} : vector<256x4xbf16>, vector<4x128xbf16>, vector<256x128xf32> -> vector<256x128xf32>
    %14 = arith.addf %7, %13 : vector<256x128xf32>
    %c0_14 = arith.constant 0 : index
    %c0_15 = arith.constant 0 : index
    %c1_16 = arith.constant 1 : index
    %c0_17 = arith.constant 0 : index
    %15 = vector.load %arg1[%c0_14, %c0_15, %c1_16, %c0_17] : memref<1x17x17x4xbf16, #tpu.memory_space<vmem>>, vector<1x16x16x4xbf16>
    %16 = vector.shape_cast %15 : vector<1x16x16x4xbf16> to vector<16x16x4xbf16>
    %17 = vector.shape_cast %16 : vector<16x16x4xbf16> to vector<256x4xbf16>
    %c2 = arith.constant 2 : index
    %c0_18 = arith.constant 0 : index
    %c0_19 = arith.constant 0 : index
    %18 = vector.load %arg5[%c2, %c0_18, %c0_19] : memref<9x4x128xbf16, #tpu.memory_space<vmem>>, vector<1x4x128xbf16>
    %19 = vector.shape_cast %18 : vector<1x4x128xbf16> to vector<4x128xbf16>
    %cst_20 = arith.constant dense<0.000000e+00> : vector<256x128xf32>
    %20 = tpu.matmul %17, %19, %cst_20 {dimension_numbers = #tpu.dot_dimension_numbers<[1], [0], [0], [1], [0, 0, 1, 1], [], []>} : vector<256x4xbf16>, vector<4x128xbf16>, vector<256x128xf32> -> vector<256x128xf32>
    %21 = arith.addf %14, %20 : vector<256x128xf32>
    %c0_21 = arith.constant 0 : index
    %c0_22 = arith.constant 0 : index
    %c0_23 = arith.constant 0 : index
    %c0_24 = arith.constant 0 : index
    %22 = vector.load %arg3[%c0_21, %c0_22, %c0_23, %c0_24] : memref<1x17x17x4xbf16, #tpu.memory_space<vmem>>, vector<1x16x16x4xbf16>
    %23 = vector.shape_cast %22 : vector<1x16x16x4xbf16> to vector<16x16x4xbf16>
    %24 = vector.shape_cast %23 : vector<16x16x4xbf16> to vector<256x4xbf16>
    %c3 = arith.constant 3 : index
    %c0_25 = arith.constant 0 : index
    %c0_26 = arith.constant 0 : index
    %25 = vector.load %arg5[%c3, %c0_25, %c0_26] : memref<9x4x128xbf16, #tpu.memory_space<vmem>>, vector<1x4x128xbf16>
    %26 = vector.shape_cast %25 : vector<1x4x128xbf16> to vector<4x128xbf16>
    %cst_27 = arith.constant dense<0.000000e+00> : vector<256x128xf32>
    %27 = tpu.matmul %24, %26, %cst_27 {dimension_numbers = #tpu.dot_dimension_numbers<[1], [0], [0], [1], [0, 0, 1, 1], [], []>} : vector<256x4xbf16>, vector<4x128xbf16>, vector<256x128xf32> -> vector<256x128xf32>
    %28 = arith.addf %21, %27 : vector<256x128xf32>
    %c0_28 = arith.constant 0 : index
    %c0_29 = arith.constant 0 : index
    %c0_30 = arith.constant 0 : index
    %c0_31 = arith.constant 0 : index
    %29 = vector.load %arg4[%c0_28, %c0_29, %c0_30, %c0_31] : memref<1x17x17x4xbf16, #tpu.memory_space<vmem>>, vector<1x16x16x4xbf16>
    %30 = vector.shape_cast %29 : vector<1x16x16x4xbf16> to vector<16x16x4xbf16>
    %31 = vector.shape_cast %30 : vector<16x16x4xbf16> to vector<256x4xbf16>
    %c4 = arith.constant 4 : index
    %c0_32 = arith.constant 0 : index
    %c0_33 = arith.constant 0 : index
    %32 = vector.load %arg5[%c4, %c0_32, %c0_33] : memref<9x4x128xbf16, #tpu.memory_space<vmem>>, vector<1x4x128xbf16>
    %33 = vector.shape_cast %32 : vector<1x4x128xbf16> to vector<4x128xbf16>
    %cst_34 = arith.constant dense<0.000000e+00> : vector<256x128xf32>
    %34 = tpu.matmul %31, %33, %cst_34 {dimension_numbers = #tpu.dot_dimension_numbers<[1], [0], [0], [1], [0, 0, 1, 1], [], []>} : vector<256x4xbf16>, vector<4x128xbf16>, vector<256x128xf32> -> vector<256x128xf32>
    %35 = arith.addf %28, %34 : vector<256x128xf32>
    %c0_35 = arith.constant 0 : index
    %c0_36 = arith.constant 0 : index
    %c1_37 = arith.constant 1 : index
    %c0_38 = arith.constant 0 : index
    %36 = vector.load %arg3[%c0_35, %c0_36, %c1_37, %c0_38] : memref<1x17x17x4xbf16, #tpu.memory_space<vmem>>, vector<1x16x16x4xbf16>
    %37 = vector.shape_cast %36 : vector<1x16x16x4xbf16> to vector<16x16x4xbf16>
    %38 = vector.shape_cast %37 : vector<16x16x4xbf16> to vector<256x4xbf16>
    %c5 = arith.constant 5 : index
    %c0_39 = arith.constant 0 : index
    %c0_40 = arith.constant 0 : index
    %39 = vector.load %arg5[%c5, %c0_39, %c0_40] : memref<9x4x128xbf16, #tpu.memory_space<vmem>>, vector<1x4x128xbf16>
    %40 = vector.shape_cast %39 : vector<1x4x128xbf16> to vector<4x128xbf16>
    %cst_41 = arith.constant dense<0.000000e+00> : vector<256x128xf32>
    %41 = tpu.matmul %38, %40, %cst_41 {dimension_numbers = #tpu.dot_dimension_numbers<[1], [0], [0], [1], [0, 0, 1, 1], [], []>} : vector<256x4xbf16>, vector<4x128xbf16>, vector<256x128xf32> -> vector<256x128xf32>
    %42 = arith.addf %35, %41 : vector<256x128xf32>
    %c0_42 = arith.constant 0 : index
    %c1_43 = arith.constant 1 : index
    %c0_44 = arith.constant 0 : index
    %c0_45 = arith.constant 0 : index
    %43 = vector.load %arg1[%c0_42, %c1_43, %c0_44, %c0_45] : memref<1x17x17x4xbf16, #tpu.memory_space<vmem>>, vector<1x16x16x4xbf16>
    %44 = vector.shape_cast %43 : vector<1x16x16x4xbf16> to vector<16x16x4xbf16>
    %45 = vector.shape_cast %44 : vector<16x16x4xbf16> to vector<256x4xbf16>
    %c6 = arith.constant 6 : index
    %c0_46 = arith.constant 0 : index
    %c0_47 = arith.constant 0 : index
    %46 = vector.load %arg5[%c6, %c0_46, %c0_47] : memref<9x4x128xbf16, #tpu.memory_space<vmem>>, vector<1x4x128xbf16>
    %47 = vector.shape_cast %46 : vector<1x4x128xbf16> to vector<4x128xbf16>
    %cst_48 = arith.constant dense<0.000000e+00> : vector<256x128xf32>
    %48 = tpu.matmul %45, %47, %cst_48 {dimension_numbers = #tpu.dot_dimension_numbers<[1], [0], [0], [1], [0, 0, 1, 1], [], []>} : vector<256x4xbf16>, vector<4x128xbf16>, vector<256x128xf32> -> vector<256x128xf32>
    %49 = arith.addf %42, %48 : vector<256x128xf32>
    %c0_49 = arith.constant 0 : index
    %c1_50 = arith.constant 1 : index
    %c0_51 = arith.constant 0 : index
    %c0_52 = arith.constant 0 : index
    %50 = vector.load %arg2[%c0_49, %c1_50, %c0_51, %c0_52] : memref<1x17x17x4xbf16, #tpu.memory_space<vmem>>, vector<1x16x16x4xbf16>
    %51 = vector.shape_cast %50 : vector<1x16x16x4xbf16> to vector<16x16x4xbf16>
    %52 = vector.shape_cast %51 : vector<16x16x4xbf16> to vector<256x4xbf16>
    %c7 = arith.constant 7 : index
    %c0_53 = arith.constant 0 : index
    %c0_54 = arith.constant 0 : index
    %53 = vector.load %arg5[%c7, %c0_53, %c0_54] : memref<9x4x128xbf16, #tpu.memory_space<vmem>>, vector<1x4x128xbf16>
    %54 = vector.shape_cast %53 : vector<1x4x128xbf16> to vector<4x128xbf16>
    %cst_55 = arith.constant dense<0.000000e+00> : vector<256x128xf32>
    %55 = tpu.matmul %52, %54, %cst_55 {dimension_numbers = #tpu.dot_dimension_numbers<[1], [0], [0], [1], [0, 0, 1, 1], [], []>} : vector<256x4xbf16>, vector<4x128xbf16>, vector<256x128xf32> -> vector<256x128xf32>
    %56 = arith.addf %49, %55 : vector<256x128xf32>
    %c0_56 = arith.constant 0 : index
    %c1_57 = arith.constant 1 : index
    %c1_58 = arith.constant 1 : index
    %c0_59 = arith.constant 0 : index
    %57 = vector.load %arg1[%c0_56, %c1_57, %c1_58, %c0_59] : memref<1x17x17x4xbf16, #tpu.memory_space<vmem>>, vector<1x16x16x4xbf16>
    %58 = vector.shape_cast %57 : vector<1x16x16x4xbf16> to vector<16x16x4xbf16>
    %59 = vector.shape_cast %58 : vector<16x16x4xbf16> to vector<256x4xbf16>
    %c8 = arith.constant 8 : index
    %c0_60 = arith.constant 0 : index
    %c0_61 = arith.constant 0 : index
    %60 = vector.load %arg5[%c8, %c0_60, %c0_61] : memref<9x4x128xbf16, #tpu.memory_space<vmem>>, vector<1x4x128xbf16>
    %61 = vector.shape_cast %60 : vector<1x4x128xbf16> to vector<4x128xbf16>
    %cst_62 = arith.constant dense<0.000000e+00> : vector<256x128xf32>
    %62 = tpu.matmul %59, %61, %cst_62 {dimension_numbers = #tpu.dot_dimension_numbers<[1], [0], [0], [1], [0, 0, 1, 1], [], []>} : vector<256x4xbf16>, vector<4x128xbf16>, vector<256x128xf32> -> vector<256x128xf32>
    %63 = arith.addf %56, %62 : vector<256x128xf32>
    %c0_63 = arith.constant 0 : index
    %c0_64 = arith.constant 0 : index
    %64 = vector.load %arg6[%c0_63, %c0_64] : memref<1x128xf32, #tpu.memory_space<vmem>>, vector<1x128xf32>
    %65 = vector.broadcast %64 : vector<1x128xf32> to vector<256x128xf32>
    %66 = arith.addf %63, %65 : vector<256x128xf32>
    %cst_65 = arith.constant 0.000000e+00 : f32
    %67 = vector.broadcast %cst_65 : f32 to vector<256x128xf32>
    %68 = arith.maximumf %66, %67 : vector<256x128xf32>
    %69 = vector.shape_cast %68 : vector<256x128xf32> to vector<16x16x128xf32>
    %70 = arith.truncf %69 : vector<16x16x128xf32> to vector<16x16x128xbf16>
    %c0_66 = arith.constant 0 : index
    %c0_67 = arith.constant 0 : index
    %c0_68 = arith.constant 0 : index
    %c0_69 = arith.constant 0 : index
    %71 = vector.load %arg7[%c0_66, %c0_67, %c0_68, %c0_69] : memref<1x16x16x128xbf16, #tpu.memory_space<vmem>>, vector<1x16x16x128xbf16>
    %72 = vector.shape_cast %71 : vector<1x16x16x128xbf16> to vector<16x16x128xbf16>
    %73 = vector.shape_cast %70 : vector<16x16x128xbf16> to vector<1x16x16x128xbf16>
    tpu.vector_store %arg7[%c0_66, %c0_67, %c0_68, %c0_69], %73 {strides = array<i32>} : memref<1x16x16x128xbf16, #tpu.memory_space<vmem>>, vector<1x16x16x128xbf16>,
    return
  }
  func.func @transform_0(%arg0: i32) -> (i32, i32, i32, i32) {
    %c0_i32 = arith.constant 0 : i32
    %c0_i32_0 = arith.constant 0 : i32
    %c0_i32_1 = arith.constant 0 : i32
    %c0_i32_2 = arith.constant 0 : i32
    return %arg0, %c0_i32, %c0_i32_0, %c0_i32_1 : i32, i32, i32, i32
  }
  func.func @transform_1(%arg0: i32) -> (i32, i32, i32, i32) {
    %c0_i32 = arith.constant 0 : i32
    %c0_i32_0 = arith.constant 0 : i32
    %c0_i32_1 = arith.constant 0 : i32
    %c0_i32_2 = arith.constant 0 : i32
    return %arg0, %c0_i32, %c0_i32_0, %c0_i32_1 : i32, i32, i32, i32
  }
  func.func @transform_2(%arg0: i32) -> (i32, i32, i32, i32) {
    %c0_i32 = arith.constant 0 : i32
    %c0_i32_0 = arith.constant 0 : i32
    %c0_i32_1 = arith.constant 0 : i32
    %c0_i32_2 = arith.constant 0 : i32
    return %arg0, %c0_i32, %c0_i32_0, %c0_i32_1 : i32, i32, i32, i32
  }
  func.func @transform_3(%arg0: i32) -> (i32, i32, i32, i32) {
    %c0_i32 = arith.constant 0 : i32
    %c0_i32_0 = arith.constant 0 : i32
    %c0_i32_1 = arith.constant 0 : i32
    %c0_i32_2 = arith.constant 0 : i32
    return %arg0, %c0_i32, %c0_i32_0, %c0_i32_1 : i32, i32, i32, i32
  }
  func.func @transform_4(%arg0: i32) -> (i32, i32, i32) {
    %c0_i32 = arith.constant 0 : i32
    %c0_i32_0 = arith.constant 0 : i32
    %c0_i32_1 = arith.constant 0 : i32
    %c0_i32_2 = arith.constant 0 : i32
    return %c0_i32, %c0_i32_0, %c0_i32_1 : i32, i32, i32
  }
  func.func @transform_5(%arg0: i32) -> (i32, i32) {
    %c0_i32 = arith.constant 0 : i32
    %c0_i32_0 = arith.constant 0 : i32
    %c0_i32_1 = arith.constant 0 : i32
    return %c0_i32, %c0_i32_0 : i32, i32
  }
  func.func @transform_6(%arg0: i32) -> (i32, i32, i32, i32) {
    %c0_i32 = arith.constant 0 : i32
    %c0_i32_0 = arith.constant 0 : i32
    %c0_i32_1 = arith.constant 0 : i32
    %c0_i32_2 = arith.constant 0 : i32
    return %arg0, %c0_i32, %c0_i32_0, %c0_i32_1 : i32, i32, i32, i32
  }
}

module attributes {stable_mosaic.version = 11 : i64} {
  func.func @_conv3x3_s2_relu_kernel(%arg0: i32, %arg1: memref<1x9x9x128xbf16, #tpu.memory_space<vmem>>, %arg2: memref<1x9x9x128xbf16, #tpu.memory_space<vmem>>, %arg3: memref<1x9x9x128xbf16, #tpu.memory_space<vmem>>, %arg4: memref<1x9x9x128xbf16, #tpu.memory_space<vmem>>, %arg5: memref<9x128x128xbf16, #tpu.memory_space<vmem>>, %arg6: memref<1x128xf32, #tpu.memory_space<vmem>>, %arg7: memref<1x8x8x128xbf16, #tpu.memory_space<vmem>>) attributes {dimension_semantics = [#tpu.dimension_semantics<parallel>], iteration_bounds = array<i64: 2>, scalar_prefetch = 0 : i64, scratch_operands = 0 : i64, tpu.core_type = #tpu.core_type<tc>, window_params = [{transform_indices = @transform_0, window_bounds = array<i64: 1, 9, 9, 128>}, {transform_indices = @transform_1, window_bounds = array<i64: 1, 9, 9, 128>}, {transform_indices = @transform_2, window_bounds = array<i64: 1, 9, 9, 128>}, {transform_indices = @transform_3, window_bounds = array<i64: 1, 9, 9, 128>}, {pipeline_mode = #tpu.pipeline_mode<synchronous>, transform_indices = @transform_4, window_bounds = array<i64: 9, 128, 128>}, {pipeline_mode = #tpu.pipeline_mode<synchronous>, transform_indices = @transform_5, window_bounds = array<i64: 1, 128>}, {transform_indices = @transform_6, window_bounds = array<i64: 1, 8, 8, 128>}]} {
    %cst = arith.constant 0.000000e+00 : f32
    %0 = vector.broadcast %cst : f32 to vector<64x128xf32>
    %c0 = arith.constant 0 : index
    %c0_0 = arith.constant 0 : index
    %c0_1 = arith.constant 0 : index
    %c0_2 = arith.constant 0 : index
    %1 = vector.load %arg1[%c0, %c0_0, %c0_1, %c0_2] : memref<1x9x9x128xbf16, #tpu.memory_space<vmem>>, vector<1x8x8x128xbf16>
    %2 = vector.shape_cast %1 : vector<1x8x8x128xbf16> to vector<8x8x128xbf16>
    %3 = vector.shape_cast %2 : vector<8x8x128xbf16> to vector<64x128xbf16>
    %c0_3 = arith.constant 0 : index
    %c0_4 = arith.constant 0 : index
    %c0_5 = arith.constant 0 : index
    %4 = vector.load %arg5[%c0_3, %c0_4, %c0_5] : memref<9x128x128xbf16, #tpu.memory_space<vmem>>, vector<1x128x128xbf16>
    %5 = vector.shape_cast %4 : vector<1x128x128xbf16> to vector<128x128xbf16>
    %cst_6 = arith.constant dense<0.000000e+00> : vector<64x128xf32>
    %6 = tpu.matmul %3, %5, %cst_6 {dimension_numbers = #tpu.dot_dimension_numbers<[1], [0], [0], [1], [0, 0, 1, 1], [], []>} : vector<64x128xbf16>, vector<128x128xbf16>, vector<64x128xf32> -> vector<64x128xf32>
    %7 = arith.addf %0, %6 : vector<64x128xf32>
    %c0_7 = arith.constant 0 : index
    %c0_8 = arith.constant 0 : index
    %c0_9 = arith.constant 0 : index
    %c0_10 = arith.constant 0 : index
    %8 = vector.load %arg2[%c0_7, %c0_8, %c0_9, %c0_10] : memref<1x9x9x128xbf16, #tpu.memory_space<vmem>>, vector<1x8x8x128xbf16>
    %9 = vector.shape_cast %8 : vector<1x8x8x128xbf16> to vector<8x8x128xbf16>
    %10 = vector.shape_cast %9 : vector<8x8x128xbf16> to vector<64x128xbf16>
    %c1 = arith.constant 1 : index
    %c0_11 = arith.constant 0 : index
    %c0_12 = arith.constant 0 : index
    %11 = vector.load %arg5[%c1, %c0_11, %c0_12] : memref<9x128x128xbf16, #tpu.memory_space<vmem>>, vector<1x128x128xbf16>
    %12 = vector.shape_cast %11 : vector<1x128x128xbf16> to vector<128x128xbf16>
    %cst_13 = arith.constant dense<0.000000e+00> : vector<64x128xf32>
    %13 = tpu.matmul %10, %12, %cst_13 {dimension_numbers = #tpu.dot_dimension_numbers<[1], [0], [0], [1], [0, 0, 1, 1], [], []>} : vector<64x128xbf16>, vector<128x128xbf16>, vector<64x128xf32> -> vector<64x128xf32>
    %14 = arith.addf %7, %13 : vector<64x128xf32>
    %c0_14 = arith.constant 0 : index
    %c0_15 = arith.constant 0 : index
    %c1_16 = arith.constant 1 : index
    %c0_17 = arith.constant 0 : index
    %15 = vector.load %arg1[%c0_14, %c0_15, %c1_16, %c0_17] : memref<1x9x9x128xbf16, #tpu.memory_space<vmem>>, vector<1x8x8x128xbf16>
    %16 = vector.shape_cast %15 : vector<1x8x8x128xbf16> to vector<8x8x128xbf16>
    %17 = vector.shape_cast %16 : vector<8x8x128xbf16> to vector<64x128xbf16>
    %c2 = arith.constant 2 : index
    %c0_18 = arith.constant 0 : index
    %c0_19 = arith.constant 0 : index
    %18 = vector.load %arg5[%c2, %c0_18, %c0_19] : memref<9x128x128xbf16, #tpu.memory_space<vmem>>, vector<1x128x128xbf16>
    %19 = vector.shape_cast %18 : vector<1x128x128xbf16> to vector<128x128xbf16>
    %cst_20 = arith.constant dense<0.000000e+00> : vector<64x128xf32>
    %20 = tpu.matmul %17, %19, %cst_20 {dimension_numbers = #tpu.dot_dimension_numbers<[1], [0], [0], [1], [0, 0, 1, 1], [], []>} : vector<64x128xbf16>, vector<128x128xbf16>, vector<64x128xf32> -> vector<64x128xf32>
    %21 = arith.addf %14, %20 : vector<64x128xf32>
    %c0_21 = arith.constant 0 : index
    %c0_22 = arith.constant 0 : index
    %c0_23 = arith.constant 0 : index
    %c0_24 = arith.constant 0 : index
    %22 = vector.load %arg3[%c0_21, %c0_22, %c0_23, %c0_24] : memref<1x9x9x128xbf16, #tpu.memory_space<vmem>>, vector<1x8x8x128xbf16>
    %23 = vector.shape_cast %22 : vector<1x8x8x128xbf16> to vector<8x8x128xbf16>
    %24 = vector.shape_cast %23 : vector<8x8x128xbf16> to vector<64x128xbf16>
    %c3 = arith.constant 3 : index
    %c0_25 = arith.constant 0 : index
    %c0_26 = arith.constant 0 : index
    %25 = vector.load %arg5[%c3, %c0_25, %c0_26] : memref<9x128x128xbf16, #tpu.memory_space<vmem>>, vector<1x128x128xbf16>
    %26 = vector.shape_cast %25 : vector<1x128x128xbf16> to vector<128x128xbf16>
    %cst_27 = arith.constant dense<0.000000e+00> : vector<64x128xf32>
    %27 = tpu.matmul %24, %26, %cst_27 {dimension_numbers = #tpu.dot_dimension_numbers<[1], [0], [0], [1], [0, 0, 1, 1], [], []>} : vector<64x128xbf16>, vector<128x128xbf16>, vector<64x128xf32> -> vector<64x128xf32>
    %28 = arith.addf %21, %27 : vector<64x128xf32>
    %c0_28 = arith.constant 0 : index
    %c0_29 = arith.constant 0 : index
    %c0_30 = arith.constant 0 : index
    %c0_31 = arith.constant 0 : index
    %29 = vector.load %arg4[%c0_28, %c0_29, %c0_30, %c0_31] : memref<1x9x9x128xbf16, #tpu.memory_space<vmem>>, vector<1x8x8x128xbf16>
    %30 = vector.shape_cast %29 : vector<1x8x8x128xbf16> to vector<8x8x128xbf16>
    %31 = vector.shape_cast %30 : vector<8x8x128xbf16> to vector<64x128xbf16>
    %c4 = arith.constant 4 : index
    %c0_32 = arith.constant 0 : index
    %c0_33 = arith.constant 0 : index
    %32 = vector.load %arg5[%c4, %c0_32, %c0_33] : memref<9x128x128xbf16, #tpu.memory_space<vmem>>, vector<1x128x128xbf16>
    %33 = vector.shape_cast %32 : vector<1x128x128xbf16> to vector<128x128xbf16>
    %cst_34 = arith.constant dense<0.000000e+00> : vector<64x128xf32>
    %34 = tpu.matmul %31, %33, %cst_34 {dimension_numbers = #tpu.dot_dimension_numbers<[1], [0], [0], [1], [0, 0, 1, 1], [], []>} : vector<64x128xbf16>, vector<128x128xbf16>, vector<64x128xf32> -> vector<64x128xf32>
    %35 = arith.addf %28, %34 : vector<64x128xf32>
    %c0_35 = arith.constant 0 : index
    %c0_36 = arith.constant 0 : index
    %c1_37 = arith.constant 1 : index
    %c0_38 = arith.constant 0 : index
    %36 = vector.load %arg3[%c0_35, %c0_36, %c1_37, %c0_38] : memref<1x9x9x128xbf16, #tpu.memory_space<vmem>>, vector<1x8x8x128xbf16>
    %37 = vector.shape_cast %36 : vector<1x8x8x128xbf16> to vector<8x8x128xbf16>
    %38 = vector.shape_cast %37 : vector<8x8x128xbf16> to vector<64x128xbf16>
    %c5 = arith.constant 5 : index
    %c0_39 = arith.constant 0 : index
    %c0_40 = arith.constant 0 : index
    %39 = vector.load %arg5[%c5, %c0_39, %c0_40] : memref<9x128x128xbf16, #tpu.memory_space<vmem>>, vector<1x128x128xbf16>
    %40 = vector.shape_cast %39 : vector<1x128x128xbf16> to vector<128x128xbf16>
    %cst_41 = arith.constant dense<0.000000e+00> : vector<64x128xf32>
    %41 = tpu.matmul %38, %40, %cst_41 {dimension_numbers = #tpu.dot_dimension_numbers<[1], [0], [0], [1], [0, 0, 1, 1], [], []>} : vector<64x128xbf16>, vector<128x128xbf16>, vector<64x128xf32> -> vector<64x128xf32>
    %42 = arith.addf %35, %41 : vector<64x128xf32>
    %c0_42 = arith.constant 0 : index
    %c1_43 = arith.constant 1 : index
    %c0_44 = arith.constant 0 : index
    %c0_45 = arith.constant 0 : index
    %43 = vector.load %arg1[%c0_42, %c1_43, %c0_44, %c0_45] : memref<1x9x9x128xbf16, #tpu.memory_space<vmem>>, vector<1x8x8x128xbf16>
    %44 = vector.shape_cast %43 : vector<1x8x8x128xbf16> to vector<8x8x128xbf16>
    %45 = vector.shape_cast %44 : vector<8x8x128xbf16> to vector<64x128xbf16>
    %c6 = arith.constant 6 : index
    %c0_46 = arith.constant 0 : index
    %c0_47 = arith.constant 0 : index
    %46 = vector.load %arg5[%c6, %c0_46, %c0_47] : memref<9x128x128xbf16, #tpu.memory_space<vmem>>, vector<1x128x128xbf16>
    %47 = vector.shape_cast %46 : vector<1x128x128xbf16> to vector<128x128xbf16>
    %cst_48 = arith.constant dense<0.000000e+00> : vector<64x128xf32>
    %48 = tpu.matmul %45, %47, %cst_48 {dimension_numbers = #tpu.dot_dimension_numbers<[1], [0], [0], [1], [0, 0, 1, 1], [], []>} : vector<64x128xbf16>, vector<128x128xbf16>, vector<64x128xf32> -> vector<64x128xf32>
    %49 = arith.addf %42, %48 : vector<64x128xf32>
    %c0_49 = arith.constant 0 : index
    %c1_50 = arith.constant 1 : index
    %c0_51 = arith.constant 0 : index
    %c0_52 = arith.constant 0 : index
    %50 = vector.load %arg2[%c0_49, %c1_50, %c0_51, %c0_52] : memref<1x9x9x128xbf16, #tpu.memory_space<vmem>>, vector<1x8x8x128xbf16>
    %51 = vector.shape_cast %50 : vector<1x8x8x128xbf16> to vector<8x8x128xbf16>
    %52 = vector.shape_cast %51 : vector<8x8x128xbf16> to vector<64x128xbf16>
    %c7 = arith.constant 7 : index
    %c0_53 = arith.constant 0 : index
    %c0_54 = arith.constant 0 : index
    %53 = vector.load %arg5[%c7, %c0_53, %c0_54] : memref<9x128x128xbf16, #tpu.memory_space<vmem>>, vector<1x128x128xbf16>
    %54 = vector.shape_cast %53 : vector<1x128x128xbf16> to vector<128x128xbf16>
    %cst_55 = arith.constant dense<0.000000e+00> : vector<64x128xf32>
    %55 = tpu.matmul %52, %54, %cst_55 {dimension_numbers = #tpu.dot_dimension_numbers<[1], [0], [0], [1], [0, 0, 1, 1], [], []>} : vector<64x128xbf16>, vector<128x128xbf16>, vector<64x128xf32> -> vector<64x128xf32>
    %56 = arith.addf %49, %55 : vector<64x128xf32>
    %c0_56 = arith.constant 0 : index
    %c1_57 = arith.constant 1 : index
    %c1_58 = arith.constant 1 : index
    %c0_59 = arith.constant 0 : index
    %57 = vector.load %arg1[%c0_56, %c1_57, %c1_58, %c0_59] : memref<1x9x9x128xbf16, #tpu.memory_space<vmem>>, vector<1x8x8x128xbf16>
    %58 = vector.shape_cast %57 : vector<1x8x8x128xbf16> to vector<8x8x128xbf16>
    %59 = vector.shape_cast %58 : vector<8x8x128xbf16> to vector<64x128xbf16>
    %c8 = arith.constant 8 : index
    %c0_60 = arith.constant 0 : index
    %c0_61 = arith.constant 0 : index
    %60 = vector.load %arg5[%c8, %c0_60, %c0_61] : memref<9x128x128xbf16, #tpu.memory_space<vmem>>, vector<1x128x128xbf16>
    %61 = vector.shape_cast %60 : vector<1x128x128xbf16> to vector<128x128xbf16>
    %cst_62 = arith.constant dense<0.000000e+00> : vector<64x128xf32>
    %62 = tpu.matmul %59, %61, %cst_62 {dimension_numbers = #tpu.dot_dimension_numbers<[1], [0], [0], [1], [0, 0, 1, 1], [], []>} : vector<64x128xbf16>, vector<128x128xbf16>, vector<64x128xf32> -> vector<64x128xf32>
    %63 = arith.addf %56, %62 : vector<64x128xf32>
    %c0_63 = arith.constant 0 : index
    %c0_64 = arith.constant 0 : index
    %64 = vector.load %arg6[%c0_63, %c0_64] : memref<1x128xf32, #tpu.memory_space<vmem>>, vector<1x128xf32>
    %65 = vector.broadcast %64 : vector<1x128xf32> to vector<64x128xf32>
    %66 = arith.addf %63, %65 : vector<64x128xf32>
    %cst_65 = arith.constant 0.000000e+00 : f32
    %67 = vector.broadcast %cst_65 : f32 to vector<64x128xf32>
    %68 = arith.maximumf %66, %67 : vector<64x128xf32>
    %69 = vector.shape_cast %68 : vector<64x128xf32> to vector<8x8x128xf32>
    %70 = arith.truncf %69 : vector<8x8x128xf32> to vector<8x8x128xbf16>
    %c0_66 = arith.constant 0 : index
    %c0_67 = arith.constant 0 : index
    %c0_68 = arith.constant 0 : index
    %c0_69 = arith.constant 0 : index
    %71 = vector.load %arg7[%c0_66, %c0_67, %c0_68, %c0_69] : memref<1x8x8x128xbf16, #tpu.memory_space<vmem>>, vector<1x8x8x128xbf16>
    %72 = vector.shape_cast %71 : vector<1x8x8x128xbf16> to vector<8x8x128xbf16>
    %73 = vector.shape_cast %70 : vector<8x8x128xbf16> to vector<1x8x8x128xbf16>
    tpu.vector_store %arg7[%c0_66, %c0_67, %c0_68, %c0_69], %73 {strides = array<i32>} : memref<1x8x8x128xbf16, #tpu.memory_space<vmem>>, vector<1x8x8x128xbf16>,
    return
  }
  func.func @transform_0(%arg0: i32) -> (i32, i32, i32, i32) {
    %c0_i32 = arith.constant 0 : i32
    %c0_i32_0 = arith.constant 0 : i32
    %c0_i32_1 = arith.constant 0 : i32
    %c0_i32_2 = arith.constant 0 : i32
    return %arg0, %c0_i32, %c0_i32_0, %c0_i32_1 : i32, i32, i32, i32
  }
  func.func @transform_1(%arg0: i32) -> (i32, i32, i32, i32) {
    %c0_i32 = arith.constant 0 : i32
    %c0_i32_0 = arith.constant 0 : i32
    %c0_i32_1 = arith.constant 0 : i32
    %c0_i32_2 = arith.constant 0 : i32
    return %arg0, %c0_i32, %c0_i32_0, %c0_i32_1 : i32, i32, i32, i32
  }
  func.func @transform_2(%arg0: i32) -> (i32, i32, i32, i32) {
    %c0_i32 = arith.constant 0 : i32
    %c0_i32_0 = arith.constant 0 : i32
    %c0_i32_1 = arith.constant 0 : i32
    %c0_i32_2 = arith.constant 0 : i32
    return %arg0, %c0_i32, %c0_i32_0, %c0_i32_1 : i32, i32, i32, i32
  }
  func.func @transform_3(%arg0: i32) -> (i32, i32, i32, i32) {
    %c0_i32 = arith.constant 0 : i32
    %c0_i32_0 = arith.constant 0 : i32
    %c0_i32_1 = arith.constant 0 : i32
    %c0_i32_2 = arith.constant 0 : i32
    return %arg0, %c0_i32, %c0_i32_0, %c0_i32_1 : i32, i32, i32, i32
  }
  func.func @transform_4(%arg0: i32) -> (i32, i32, i32) {
    %c0_i32 = arith.constant 0 : i32
    %c0_i32_0 = arith.constant 0 : i32
    %c0_i32_1 = arith.constant 0 : i32
    %c0_i32_2 = arith.constant 0 : i32
    return %c0_i32, %c0_i32_0, %c0_i32_1 : i32, i32, i32
  }
  func.func @transform_5(%arg0: i32) -> (i32, i32) {
    %c0_i32 = arith.constant 0 : i32
    %c0_i32_0 = arith.constant 0 : i32
    %c0_i32_1 = arith.constant 0 : i32
    return %c0_i32, %c0_i32_0 : i32, i32
  }
  func.func @transform_6(%arg0: i32) -> (i32, i32, i32, i32) {
    %c0_i32 = arith.constant 0 : i32
    %c0_i32_0 = arith.constant 0 : i32
    %c0_i32_1 = arith.constant 0 : i32
    %c0_i32_2 = arith.constant 0 : i32
    return %arg0, %c0_i32, %c0_i32_0, %c0_i32_1 : i32, i32, i32, i32
  }
}

module attributes {stable_mosaic.version = 11 : i64} {
  func.func @_mm_bias_act_kernel(%arg0: i32, %arg1: memref<16x2048xbf16, #tpu.memory_space<vmem>>, %arg2: memref<2048x128xbf16, #tpu.memory_space<vmem>>, %arg3: memref<1x128xf32, #tpu.memory_space<vmem>>, %arg4: memref<16x128xf32, #tpu.memory_space<vmem>>) attributes {dimension_semantics = [#tpu.dimension_semantics<parallel>], iteration_bounds = array<i64: 1>, scalar_prefetch = 0 : i64, scratch_operands = 0 : i64, tpu.core_type = #tpu.core_type<tc>, window_params = [{transform_indices = @transform_0, window_bounds = array<i64: 16, 2048>}, {pipeline_mode = #tpu.pipeline_mode<synchronous>, transform_indices = @transform_1, window_bounds = array<i64: 2048, 128>}, {pipeline_mode = #tpu.pipeline_mode<synchronous>, transform_indices = @transform_2, window_bounds = array<i64: 1, 128>}, {transform_indices = @transform_3, window_bounds = array<i64: 16, 128>}]} {
    %c0 = arith.constant 0 : index
    %c0_0 = arith.constant 0 : index
    %0 = vector.load %arg1[%c0, %c0_0] : memref<16x2048xbf16, #tpu.memory_space<vmem>>, vector<16x2048xbf16>
    %c0_1 = arith.constant 0 : index
    %c0_2 = arith.constant 0 : index
    %1 = vector.load %arg2[%c0_1, %c0_2] : memref<2048x128xbf16, #tpu.memory_space<vmem>>, vector<2048x128xbf16>
    %cst = arith.constant dense<0.000000e+00> : vector<16x128xf32>
    %2 = tpu.matmul %0, %1, %cst {dimension_numbers = #tpu.dot_dimension_numbers<[1], [0], [0], [1], [0, 0, 1, 1], [], []>} : vector<16x2048xbf16>, vector<2048x128xbf16>, vector<16x128xf32> -> vector<16x128xf32>
    %c0_3 = arith.constant 0 : index
    %c0_4 = arith.constant 0 : index
    %3 = vector.load %arg3[%c0_3, %c0_4] : memref<1x128xf32, #tpu.memory_space<vmem>>, vector<1x128xf32>
    %4 = vector.broadcast %3 : vector<1x128xf32> to vector<16x128xf32>
    %5 = arith.addf %2, %4 : vector<16x128xf32>
    %c0_5 = arith.constant 0 : index
    %c0_6 = arith.constant 0 : index
    %6 = vector.load %arg4[%c0_5, %c0_6] : memref<16x128xf32, #tpu.memory_space<vmem>>, vector<16x128xf32>
    tpu.vector_store %arg4[%c0_5, %c0_6], %5 {strides = array<i32>} : memref<16x128xf32, #tpu.memory_space<vmem>>, vector<16x128xf32>,
    return
  }
  func.func @transform_0(%arg0: i32) -> (i32, i32) {
    %c0_i32 = arith.constant 0 : i32
    %c0_i32_0 = arith.constant 0 : i32
    return %arg0, %c0_i32 : i32, i32
  }
  func.func @transform_1(%arg0: i32) -> (i32, i32) {
    %c0_i32 = arith.constant 0 : i32
    %c0_i32_0 = arith.constant 0 : i32
    %c0_i32_1 = arith.constant 0 : i32
    return %c0_i32, %c0_i32_0 : i32, i32
  }
  func.func @transform_2(%arg0: i32) -> (i32, i32) {
    %c0_i32 = arith.constant 0 : i32
    %c0_i32_0 = arith.constant 0 : i32
    %c0_i32_1 = arith.constant 0 : i32
    return %c0_i32, %c0_i32_0 : i32, i32
  }
  func.func @transform_3(%arg0: i32) -> (i32, i32) {
    %c0_i32 = arith.constant 0 : i32
    %c0_i32_0 = arith.constant 0 : i32
    return %arg0, %c0_i32 : i32, i32
  }
}

module attributes {stable_mosaic.version = 11 : i64} {
  func.func @_mm_bias_act_kernel(%arg0: i32, %arg1: memref<256x128xbf16, #tpu.memory_space<vmem>>, %arg2: memref<128x128xbf16, #tpu.memory_space<vmem>>, %arg3: memref<1x128xf32, #tpu.memory_space<vmem>>, %arg4: memref<256x128xbf16, #tpu.memory_space<vmem>>) attributes {dimension_semantics = [#tpu.dimension_semantics<parallel>], iteration_bounds = array<i64: 2>, scalar_prefetch = 0 : i64, scratch_operands = 0 : i64, tpu.core_type = #tpu.core_type<tc>, window_params = [{transform_indices = @transform_0, window_bounds = array<i64: 256, 128>}, {pipeline_mode = #tpu.pipeline_mode<synchronous>, transform_indices = @transform_1, window_bounds = array<i64: 128, 128>}, {pipeline_mode = #tpu.pipeline_mode<synchronous>, transform_indices = @transform_2, window_bounds = array<i64: 1, 128>}, {transform_indices = @transform_3, window_bounds = array<i64: 256, 128>}]} {
    %c0 = arith.constant 0 : index
    %c0_0 = arith.constant 0 : index
    %0 = vector.load %arg1[%c0, %c0_0] : memref<256x128xbf16, #tpu.memory_space<vmem>>, vector<256x128xbf16>
    %c0_1 = arith.constant 0 : index
    %c0_2 = arith.constant 0 : index
    %1 = vector.load %arg2[%c0_1, %c0_2] : memref<128x128xbf16, #tpu.memory_space<vmem>>, vector<128x128xbf16>
    %cst = arith.constant dense<0.000000e+00> : vector<256x128xf32>
    %2 = tpu.matmul %0, %1, %cst {dimension_numbers = #tpu.dot_dimension_numbers<[1], [0], [0], [1], [0, 0, 1, 1], [], []>} : vector<256x128xbf16>, vector<128x128xbf16>, vector<256x128xf32> -> vector<256x128xf32>
    %c0_3 = arith.constant 0 : index
    %c0_4 = arith.constant 0 : index
    %3 = vector.load %arg3[%c0_3, %c0_4] : memref<1x128xf32, #tpu.memory_space<vmem>>, vector<1x128xf32>
    %4 = vector.broadcast %3 : vector<1x128xf32> to vector<256x128xf32>
    %5 = arith.addf %2, %4 : vector<256x128xf32>
    %cst_5 = arith.constant 0.000000e+00 : f32
    %6 = vector.broadcast %cst_5 : f32 to vector<256x128xf32>
    %7 = arith.maximumf %5, %6 : vector<256x128xf32>
    %8 = arith.truncf %7 : vector<256x128xf32> to vector<256x128xbf16>
    %c0_6 = arith.constant 0 : index
    %c0_7 = arith.constant 0 : index
    %9 = vector.load %arg4[%c0_6, %c0_7] : memref<256x128xbf16, #tpu.memory_space<vmem>>, vector<256x128xbf16>
    tpu.vector_store %arg4[%c0_6, %c0_7], %8 {strides = array<i32>} : memref<256x128xbf16, #tpu.memory_space<vmem>>, vector<256x128xbf16>,
    return
  }
  func.func @transform_0(%arg0: i32) -> (i32, i32) {
    %c0_i32 = arith.constant 0 : i32
    %c0_i32_0 = arith.constant 0 : i32
    return %arg0, %c0_i32 : i32, i32
  }
  func.func @transform_1(%arg0: i32) -> (i32, i32) {
    %c0_i32 = arith.constant 0 : i32
    %c0_i32_0 = arith.constant 0 : i32
    %c0_i32_1 = arith.constant 0 : i32
    return %c0_i32, %c0_i32_0 : i32, i32
  }
  func.func @transform_2(%arg0: i32) -> (i32, i32) {
    %c0_i32 = arith.constant 0 : i32
    %c0_i32_0 = arith.constant 0 : i32
    %c0_i32_1 = arith.constant 0 : i32
    return %c0_i32, %c0_i32_0 : i32, i32
  }
  func.func @transform_3(%arg0: i32) -> (i32, i32) {
    %c0_i32 = arith.constant 0 : i32
    %c0_i32_0 = arith.constant 0 : i32
    return %arg0, %c0_i32 : i32, i32
  }
}

module attributes {stable_mosaic.version = 11 : i64} {
  func.func @_mm_bias_act_kernel(%arg0: i32, %arg1: memref<64x1152xbf16, #tpu.memory_space<vmem>>, %arg2: memref<1152x128xbf16, #tpu.memory_space<vmem>>, %arg3: memref<1x128xf32, #tpu.memory_space<vmem>>, %arg4: memref<64x128xbf16, #tpu.memory_space<vmem>>) attributes {dimension_semantics = [#tpu.dimension_semantics<parallel>], iteration_bounds = array<i64: 2>, scalar_prefetch = 0 : i64, scratch_operands = 0 : i64, tpu.core_type = #tpu.core_type<tc>, window_params = [{transform_indices = @transform_0, window_bounds = array<i64: 64, 1152>}, {pipeline_mode = #tpu.pipeline_mode<synchronous>, transform_indices = @transform_1, window_bounds = array<i64: 1152, 128>}, {pipeline_mode = #tpu.pipeline_mode<synchronous>, transform_indices = @transform_2, window_bounds = array<i64: 1, 128>}, {transform_indices = @transform_3, window_bounds = array<i64: 64, 128>}]} {
    %c0 = arith.constant 0 : index
    %c0_0 = arith.constant 0 : index
    %0 = vector.load %arg1[%c0, %c0_0] : memref<64x1152xbf16, #tpu.memory_space<vmem>>, vector<64x1152xbf16>
    %c0_1 = arith.constant 0 : index
    %c0_2 = arith.constant 0 : index
    %1 = vector.load %arg2[%c0_1, %c0_2] : memref<1152x128xbf16, #tpu.memory_space<vmem>>, vector<1152x128xbf16>
    %cst = arith.constant dense<0.000000e+00> : vector<64x128xf32>
    %2 = tpu.matmul %0, %1, %cst {dimension_numbers = #tpu.dot_dimension_numbers<[1], [0], [0], [1], [0, 0, 1, 1], [], []>} : vector<64x1152xbf16>, vector<1152x128xbf16>, vector<64x128xf32> -> vector<64x128xf32>
    %c0_3 = arith.constant 0 : index
    %c0_4 = arith.constant 0 : index
    %3 = vector.load %arg3[%c0_3, %c0_4] : memref<1x128xf32, #tpu.memory_space<vmem>>, vector<1x128xf32>
    %4 = vector.broadcast %3 : vector<1x128xf32> to vector<64x128xf32>
    %5 = arith.addf %2, %4 : vector<64x128xf32>
    %cst_5 = arith.constant 0.000000e+00 : f32
    %6 = vector.broadcast %cst_5 : f32 to vector<64x128xf32>
    %7 = arith.maximumf %5, %6 : vector<64x128xf32>
    %8 = arith.truncf %7 : vector<64x128xf32> to vector<64x128xbf16>
    %c0_6 = arith.constant 0 : index
    %c0_7 = arith.constant 0 : index
    %9 = vector.load %arg4[%c0_6, %c0_7] : memref<64x128xbf16, #tpu.memory_space<vmem>>, vector<64x128xbf16>
    tpu.vector_store %arg4[%c0_6, %c0_7], %8 {strides = array<i32>} : memref<64x128xbf16, #tpu.memory_space<vmem>>, vector<64x128xbf16>,
    return
  }
  func.func @transform_0(%arg0: i32) -> (i32, i32) {
    %c0_i32 = arith.constant 0 : i32
    %c0_i32_0 = arith.constant 0 : i32
    return %arg0, %c0_i32 : i32, i32
  }
  func.func @transform_1(%arg0: i32) -> (i32, i32) {
    %c0_i32 = arith.constant 0 : i32
    %c0_i32_0 = arith.constant 0 : i32
    %c0_i32_1 = arith.constant 0 : i32
    return %c0_i32, %c0_i32_0 : i32, i32
  }
  func.func @transform_2(%arg0: i32) -> (i32, i32) {
    %c0_i32 = arith.constant 0 : i32
    %c0_i32_0 = arith.constant 0 : i32
    %c0_i32_1 = arith.constant 0 : i32
    return %c0_i32, %c0_i32_0 : i32, i32
  }
  func.func @transform_3(%arg0: i32) -> (i32, i32) {
    %c0_i32 = arith.constant 0 : i32
    %c0_i32_0 = arith.constant 0 : i32
    return %arg0, %c0_i32 : i32, i32
  }
}

module attributes {stable_mosaic.version = 11 : i64} {
  func.func @_mm_bias_act_kernel(%arg0: i32, %arg1: memref<16x2048xbf16, #tpu.memory_space<vmem>>, %arg2: memref<2048x128xbf16, #tpu.memory_space<vmem>>, %arg3: memref<1x128xf32, #tpu.memory_space<vmem>>, %arg4: memref<16x128xf32, #tpu.memory_space<vmem>>) attributes {dimension_semantics = [#tpu.dimension_semantics<parallel>], iteration_bounds = array<i64: 1>, scalar_prefetch = 0 : i64, scratch_operands = 0 : i64, tpu.core_type = #tpu.core_type<tc>, window_params = [{transform_indices = @transform_0, window_bounds = array<i64: 16, 2048>}, {pipeline_mode = #tpu.pipeline_mode<synchronous>, transform_indices = @transform_1, window_bounds = array<i64: 2048, 128>}, {pipeline_mode = #tpu.pipeline_mode<synchronous>, transform_indices = @transform_2, window_bounds = array<i64: 1, 128>}, {transform_indices = @transform_3, window_bounds = array<i64: 16, 128>}]} {
    %c0 = arith.constant 0 : index
    %c0_0 = arith.constant 0 : index
    %0 = vector.load %arg1[%c0, %c0_0] : memref<16x2048xbf16, #tpu.memory_space<vmem>>, vector<16x2048xbf16>
    %c0_1 = arith.constant 0 : index
    %c0_2 = arith.constant 0 : index
    %1 = vector.load %arg2[%c0_1, %c0_2] : memref<2048x128xbf16, #tpu.memory_space<vmem>>, vector<2048x128xbf16>
    %cst = arith.constant dense<0.000000e+00> : vector<16x128xf32>
    %2 = tpu.matmul %0, %1, %cst {dimension_numbers = #tpu.dot_dimension_numbers<[1], [0], [0], [1], [0, 0, 1, 1], [], []>} : vector<16x2048xbf16>, vector<2048x128xbf16>, vector<16x128xf32> -> vector<16x128xf32>
    %c0_3 = arith.constant 0 : index
    %c0_4 = arith.constant 0 : index
    %3 = vector.load %arg3[%c0_3, %c0_4] : memref<1x128xf32, #tpu.memory_space<vmem>>, vector<1x128xf32>
    %4 = vector.broadcast %3 : vector<1x128xf32> to vector<16x128xf32>
    %5 = arith.addf %2, %4 : vector<16x128xf32>
    %c0_5 = arith.constant 0 : index
    %c0_6 = arith.constant 0 : index
    %6 = vector.load %arg4[%c0_5, %c0_6] : memref<16x128xf32, #tpu.memory_space<vmem>>, vector<16x128xf32>
    tpu.vector_store %arg4[%c0_5, %c0_6], %5 {strides = array<i32>} : memref<16x128xf32, #tpu.memory_space<vmem>>, vector<16x128xf32>,
    return
  }
  func.func @transform_0(%arg0: i32) -> (i32, i32) {
    %c0_i32 = arith.constant 0 : i32
    %c0_i32_0 = arith.constant 0 : i32
    return %arg0, %c0_i32 : i32, i32
  }
  func.func @transform_1(%arg0: i32) -> (i32, i32) {
    %c0_i32 = arith.constant 0 : i32
    %c0_i32_0 = arith.constant 0 : i32
    %c0_i32_1 = arith.constant 0 : i32
    return %c0_i32, %c0_i32_0 : i32, i32
  }
  func.func @transform_2(%arg0: i32) -> (i32, i32) {
    %c0_i32 = arith.constant 0 : i32
    %c0_i32_0 = arith.constant 0 : i32
    %c0_i32_1 = arith.constant 0 : i32
    return %c0_i32, %c0_i32_0 : i32, i32
  }
  func.func @transform_3(%arg0: i32) -> (i32, i32) {
    %c0_i32 = arith.constant 0 : i32
    %c0_i32_0 = arith.constant 0 : i32
    return %arg0, %c0_i32 : i32, i32
  }
}

</mosaic_0001>

<bundles_post_ra>
// kernel: patch_embedding_forward.3
= control target key start
LH: loop header
LB: loop body
LE: loop exit
PB: predicated region body
PF: predicated region fallthrough
CT: control target
= control target key end

     0   :  { %s6361_s21 = smov 0   ;;  %s7319_s0 = inlined_call_operand.vmem [shape: bf16[2,17,17,4], index: 0, kind: input, shape index: {}]   ;;  %s7320_s1 = inlined_call_operand.vmem [shape: bf16[2,17,17,4], index: 1, kind: input, shape index: {}]   ;;  %s7321_s2 = inlined_call_operand.vmem [shape: bf16[2,17,17,4], index: 2, kind: input, shape index: {}]   ;;  %s7322_s3 = inlined_call_operand.vmem [shape: bf16[2,17,17,4], index: 3, kind: input, shape index: {}]   ;;  %s7323_s4 = inlined_call_operand.vmem [shape: bf16[9,4,128], index: 4, kind: input, shape index: {}]   ;;  %s7324_s5 = inlined_call_operand.vmem [shape: f32[1,128], index: 5, kind: input, shape index: {}]   ;;  %s7325_s6 = inlined_call_operand.vmem [shape: bf16[2,16,16,128], index: 6, kind: output, shape index: {}]  }
   0x1 LB: > { %s4903_s22 = sadd.s32 4294967295, %s6324_s21   ;;  %p4907_p0 = scmp.ge.s32.totalorder %s6324_s21, 1  ;;  %s6324_s21 = sphi %s6361_s21, %s16_s21  }
   0x2   : > { %p242_p1 = scmp.lt.s32.totalorder %s6324_s21, 3 }
   0x4   : > { %p243_p2 = pnand %p4907_p0, %p242_p1 }
   0x5   : > { %v4914_v0 = vld [vmem:[%s7323_s4 + $0x2] sm:$0x3] (!%p243_p2)  ;;  %vm509_vm0 = vcmask (!%p243_p2), 1041408   ;;  %v5045_v1 = vld [vmem:[%s7323_s4 + $0x8] sm:$0x3] (!%p243_p2)  ;;  %p287_p3 = scmp.lt.s32.totalorder (!%p243_p2), %s4903_s22, 1 }
   0x6   : > { %246 = sbr.rel (%p243_p2) target bundleno = 524 (0x20c), region = 44  ;;  %6202 = vmatprep.subr.msk.bf16.mxu1 (!%p243_p2), %vm509_vm0, %v4914_v0  ;;  %6206 = vmatprep.subr.msk.bf16.mxu0 (!%p243_p2), %vm509_vm0, %v5045_v1  ;;  %v511_v2 = vsel (!%p243_p2), %vm509_vm0, %v4914_v0, 0  ;;  %v6379_v3 = vsel (!%p243_p2), %vm509_vm0, %v5045_v1, 0  ;;  %v345_v4 = vld [vmem:[%s7323_s4] sm:$0x3] (!%p243_p2)  ;;  %vm460_vm1 = vcmask (!%p243_p2), 31744  }
   0x7   : > { %5639 = vmatpush3.bf16.msra.mxu1 (!%p243_p2), %v511_v2  ;;  %5775 = vmatpush3.bf16.msra.mxu0 (!%p243_p2), %v6379_v3  ;;  %v5078_v5 = vld [vmem:[%s7323_s4 + $0xa] sm:$0x3] (!%p243_p2)  ;;  %v803_v9 = vsel (!%p243_p2), %vm509_vm0, %v345_v4, 0  ;;  %v5143_v10 = vld [vmem:[%s7323_s4 + $0xc] sm:$0x3] (!%p243_p2) }
   0x8   : > { %6203 = vmatprep.subr.msk.bf16.mxu1 (!%p243_p2), %vm509_vm0, %v345_v4  ;;  %6208 = vmatprep.subr.msk.bf16.mxu0 (!%p243_p2), %vm509_vm0, %v5078_v5  ;;  %v2942_v12 = vsel (!%p243_p2), %vm509_vm0, %v5078_v5, 0  ;;  %v4979_v13 = vld [vmem:[%s7323_s4 + $0x4] sm:$0x3] (!%p243_p2)  ;;  %vm1014_vm2 = vsmask.f32 (!%p243_p2), 3328  ;;  %v6448_v24 = vsel (!%p243_p2), %vm509_vm0, %v5143_v10, 0 }
   0x9   : > { %vm1015_vm3 = vsmask.f32 (!%p243_p2), 7440  ;;  %v6455_v34 = vsel (!%p243_p2), %vm509_vm0, %v4979_v13, 0 }
   0xa   : > { %vm6467_vm4 = vmor (!%p243_p2), %vm1014_vm2, %vm1015_vm3 }
   0xd   : > { %s7329_s22 = smov (!%p287_p3, %s4903_s22), 1 }
   0xe   : > { %s6393_s7 = smul.u32 204, %s7329_s22  ;;  %s5357_s12 = sshll.u32 %s7329_s22, 7 }
   0xf   : > { %s7266_s15 = scalar_lea.vmem %s7325_s6, %s5357_s12 }
  0x10   : > { %s6399_s10 = scalar_lea.vmem %s7320_s1, %s6393_s7  ;;  %s6406_s13 = scalar_lea.vmem %s7322_s3, %s6393_s7 }
  0x11   : > { %v6221_v6 = vld [vmem:[%s6399_s10] sm:$0xff]   ;;  %v6223_v8 = vld [vmem:[%s6399_s10 + $0xc] sm:$0xff]   ;;  %v6225_v14 = vld [vmem:[%s6399_s10 + $0x18] sm:$0xff]   ;;  %s6440_s20 = scalar_lea.vmem %s7321_s2, %s6393_s7  ;;  %s6530_s27 = scalar_lea.vmem %s7319_s0, %s6393_s7 }
  0x12   : > { %v6222_v7 = vld [vmem:[%s6406_s13] sm:$0xff]   ;;  %5640 = vmatprep.mubr.msk.bf16.mxu1 %vm460_vm1, %v6221_v6  ;;  %v6224_v11 = vld [vmem:[%s6406_s13 + $0xc] sm:$0xff]   ;;  %v6226_v15 = vld [vmem:[%s6406_s13 + $0x18] sm:$0xff]  }
  0x13   : > { %5776 = vmatprep.mubr.msk.bf16.mxu0 %vm460_vm1, %v6222_v7  ;;  %5641 = vmatmul.mubr.msk.bf16.vlgmr.msra.gmra.mrb[0].mxu1 %vm460_vm1, %v6223_v8  ;;  %v6227_v16 = vld [vmem:[%s6399_s10 + $0x24] sm:$0xff]   ;;  %v6229_v18 = vld [vmem:[%s6399_s10 + $0x30] sm:$0xff]   ;;  %v6231_v20 = vld [vmem:[%s6399_s10 + $0x3c] sm:$0xff]  }
  0x14   : > { %5673 = vmatpush3.bf16.msra.mxu1 %v803_v9  ;;  %5777 = vmatmul.mubr.msk.bf16.vlgmr.msra.gmra.mrb[0].mxu0 %vm460_vm1, %v6224_v11  ;;  %v6228_v17 = vld [vmem:[%s6406_s13 + $0x24] sm:$0xff]   ;;  %v6230_v19 = vld [vmem:[%s6406_s13 + $0x30] sm:$0xff]   ;;  %v6232_v21 = vld [vmem:[%s6406_s13 + $0x3c] sm:$0xff]  }
  0x15   : > { %5809 = vmatpush3.bf16.msra.mxu0 %v2942_v12  ;;  %5644 = vmatprep.mubr.msk.bf16.mxu1 %vm460_vm1, %v6225_v14  ;;  %v6233_v22 = vld [vmem:[%s6399_s10 + $0x48] sm:$0xff]   ;;  %v2411_v25 = vld [vmem:[%s6440_s20] sm:$0xf]  ;;  %v2412_v26 = vld [vmem:[%s6440_s20 + $0x4] sm:$0xf] }
  0x16   : > { %5780 = vmatprep.mubr.msk.bf16.mxu0 %vm460_vm1, %v6226_v15  ;;  %6209 = vmatprep.subr.msk.bf16.mxu0 %vm509_vm0, %v5143_v10  ;;  %v6234_v23 = vld [vmem:[%s6406_s13 + $0x48] sm:$0xff]   ;;  %v2460_v28 = vshrl.u32 %v2411_v25, 16  ;;  %v2463_v29 = vshll.u32 %v2411_v25, 16  ;;  %v2469_v30 = vshll.u32 %v2412_v26, 16  ;;  %v2473_v31 = vshrl.u32 %v2412_v26, 16  ;;  %v6235_v45 = vld [vmem:[%s6399_s10 + $0x54] sm:$0xff]  }
  0x17   : > { %6204 = vmatprep.subr.msk.bf16.mxu1 %vm509_vm0, %v4979_v13  ;;  %v2413_v27 = vld [vmem:[%s6440_s20 + $0x8] sm:$0x1]  ;;  %v2414_v33 = vld [vmem:[%s6440_s20 + $0xc] sm:$0xf]  ;;  %v2415_v39 = vld [vmem:[%s6440_s20 + $0x10] sm:$0xf] }
  0x18   : > { %v2479_v32 = vshll.u32 %v2413_v27, 16  ;;  %v2462_v35 = vrot.slane %v2460_v28, 4  ;;  %v2465_v36 = vrot.slane %v2463_v29, 5  ;;  %v2471_v37 = vrot.slane %v2469_v30, 5  ;;  %v2416_v41 = vld [vmem:[%s6440_s20 + $0x14] sm:$0x1] }
  0x19   : > { %v2475_v38 = vrot.slane %v2473_v31, 4  ;;  %v2484_v42 = vshrl.u32 %v2414_v33, 16  ;;  %v2487_v43 = vshll.u32 %v2414_v33, 16  ;;  %v2493_v44 = vshll.u32 %v2415_v39, 16  ;;  %v6236_v50 = vld [vmem:[%s6406_s13 + $0x54] sm:$0xff]   ;;  %v6237_v61 = vld [vmem:[%s6399_s10 + $0x60] sm:$0xff]  }
  0x1a   : > { %v2481_v40 = vrot.slane %v2479_v32, 5  ;;  %v2466_v46 = vor.u32 %v2465_v36, %v2462_v35  ;;  %v2497_v48 = vshrl.u32 %v2415_v39, 16  ;;  %v2503_v49 = vshll.u32 %v2416_v41, 16  ;;  %v2417_v55 = vld [vmem:[%s6440_s20 + $0x18] sm:$0xf] }
  0x1b   : > { %5645 = vmatmul.mubr.msk.bf16.gmra.mrb[4].mxu1 %vm460_vm1, %v6227_v16  ;;  %v2476_v47 = vor.u32 %v2475_v38, %v2471_v37  ;;  %v2486_v52 = vrot.slane %v2484_v42, 4  ;;  %v2489_v53 = vrot.slane %v2487_v43, 5  ;;  %v2495_v54 = vrot.slane %v2493_v44, 5  ;;  %v2418_v60 = vld [vmem:[%s6440_s20 + $0x1c] sm:$0xf] }
  0x1c   : > { %5781 = vmatmul.mubr.msk.bf16.gmra.mrb[4].mxu0 %vm460_vm1, %v6228_v17  ;;  %5648 = vmatprep.mubr.msk.bf16.mxu1 %vm460_vm1, %v6229_v18  ;;  %v2467_v56 = vrot.slane %v2466_v46, 4  ;;  %v2499_v58 = vrot.slane %v2497_v48, 4  ;;  %v2505_v59 = vrot.slane %v2503_v49, 5  ;;  %v2419_v63 = vld [vmem:[%s6440_s20 + $0x20] sm:$0x1]  ;;  %v2508_v0 = vshrl.u32 %v2417_v55, 16 }
  0x1d   : > { %5784 = vmatprep.mubr.msk.bf16.mxu0 %vm460_vm1, %v6230_v19  ;;  %v2477_v57 = vrot.slane %v2476_v47, 4  ;;  %v2490_v62 = vor.u32 %v2489_v53, %v2486_v52  ;;  %v2511_v1 = vshll.u32 %v2417_v55, 16  ;;  %v2517_v2 = vshll.u32 %v2418_v60, 16  ;;  %v2420_v12 = vld [vmem:[%s6440_s20 + $0x24] sm:$0xf]  ;;  %v6239_v31 = vld [vmem:[%s6399_s10 + $0x78] sm:$0xff]  }
  0x1e   : > { %v2472_v4 = vsel %vm6467_vm4, %v2467_v56, %v2471_v37  ;;  %v2500_v6 = vor.u32 %v2499_v58, %v2495_v54  ;;  %v2521_v7 = vshrl.u32 %v2418_v60, 16  ;;  %v2510_v10 = vrot.slane %v2508_v0, 4  ;;  %v2421_v17 = vld [vmem:[%s6440_s20 + $0x28] sm:$0xf]  ;;  %v2423_v29 = vld [vmem:[%s6440_s20 + $0x30] sm:$0xf] }
  0x1f   : > { %v2482_v5 = vsel %vm6467_vm4, %v2477_v57, %v2481_v40  ;;  %v2491_v9 = vrot.slane %v2490_v62, 4  ;;  %v2513_v11 = vrot.slane %v2511_v1, 5  ;;  %v2519_v14 = vrot.slane %v2517_v2, 5  ;;  %v2424_v36 = vld [vmem:[%s6440_s20 + $0x34] sm:$0xf] }
  0x20   : > { %v5079_v8 = vcombine.low %v2472_v4, %v2482_v5  ;;  %v2501_v13 = vrot.slane %v2500_v6, 4  ;;  %v2523_v15 = vrot.slane %v2521_v7, 4  ;;  %v2527_v16 = vshll.u32 %v2419_v63, 16  ;;  %v2425_v41 = vld [vmem:[%s6440_s20 + $0x38] sm:$0x1]  ;;  %v6240_v4 = vld [vmem:[%s6399_s10 + $0x84] sm:$0xff]  }
  0x21   : > { %v2496_v18 = vsel %vm6467_vm4, %v2491_v9, %v2495_v54  ;;  %v2514_v19 = vor.u32 %v2513_v11, %v2510_v10  ;;  %v2541_v28 = vshll.u32 %v2421_v17, 16  ;;  %v2545_v39 = vshrl.u32 %v2421_v17, 16  ;;  %v6503_v52 = vld [vmem:[%s7323_s4 + $0xe] sm:$0x3]  ;;  %v2427_v57 = vld [vmem:[%s6440_s20 + $0x40] sm:$0xf] }
  0x22   : > { %v2506_v25 = vsel %vm6467_vm4, %v2501_v13, %v2505_v59  ;;  %v2524_v26 = vor.u32 %v2523_v15, %v2519_v14  ;;  %v2529_v27 = vrot.slane %v2527_v16, 5  ;;  %v2556_v44 = vshrl.u32 %v2423_v29, 16  ;;  %v2428_v62 = vld [vmem:[%s6440_s20 + $0x44] sm:$0x1]  ;;  %v2429_v13 = vld [vmem:[%s6440_s20 + $0x48] sm:$0xf] }
  0x23   : > { %5649 = vmatmul.mubr.msk.bf16.gmra.mrb[8].mxu1 %vm460_vm1, %v6231_v20  ;;  %v2422_v20 = vld [vmem:[%s6440_s20 + $0x2c] sm:$0x1]  ;;  %v5080_v30 = vcombine.low %v2496_v18, %v2506_v25  ;;  %v2515_v32 = vrot.slane %v2514_v19, 4  ;;  %v2543_v38 = vrot.slane %v2541_v28, 5  ;;  %v2547_v47 = vrot.slane %v2545_v39, 4  ;;  %v6241_v19 = vld [vmem:[%s6399_s10 + $0x90] sm:$0xff]  }
  0x24   : > { %5785 = vmatmul.mubr.msk.bf16.gmra.mrb[8].mxu0 %vm460_vm1, %v6232_v21  ;;  %5652 = vmatprep.mubr.msk.bf16.mxu1 %vm460_vm1, %v6233_v22  ;;  %v2532_v21 = vshrl.u32 %v2420_v12, 16  ;;  %v2535_v22 = vshll.u32 %v2420_v12, 16  ;;  %v2525_v37 = vrot.slane %v2524_v26, 4  ;;  %v2551_v40 = vshll.u32 %v2422_v20, 16  ;;  %v2430_v17 = vld [vmem:[%s6440_s20 + $0x4c] sm:$0xf] }
  0x25   : > { %5788 = vmatprep.mubr.msk.bf16.mxu0 %vm460_vm1, %v6234_v23  ;;  %v6238_v23 = vld [vmem:[%s6399_s10 + $0x6c] sm:$0xff]   ;;  %v2520_v42 = vsel %vm6467_vm4, %v2515_v32, %v2519_v14  ;;  %v2565_v49 = vshll.u32 %v2424_v36, 16  ;;  %v2558_v55 = vrot.slane %v2556_v44, 4  ;;  %v2548_v58 = vor.u32 %v2547_v47, %v2543_v38  ;;  %v2434_v44 = vld [vmem:[%s6440_s20 + $0x5c] sm:$0x1] }
  0x26   : > { %v2534_v33 = vrot.slane %v2532_v21, 4  ;;  %v2537_v35 = vrot.slane %v2535_v22, 5  ;;  %v2530_v46 = vsel %vm6467_vm4, %v2525_v37, %v2529_v27  ;;  %v2553_v48 = vrot.slane %v2551_v40, 5 }
  0x27   : > { %v5081_v53 = vcombine.low %v2520_v42, %v2530_v46  ;;  %v2567_v59 = vrot.slane %v2565_v49, 5  ;;  %v2569_v60 = vshrl.u32 %v2424_v36, 16  ;;  %v2549_v5 = vrot.slane %v2548_v58, 4  ;;  %v2436_v58 = vld [vmem:[%s6440_s20 + $0x64] sm:$0xf] }
  0x28   : > { %v2538_v43 = vor.u32 %v2537_v35, %v2534_v33  ;;  %v2593_v12 = vshrl.u32 %v2427_v57, 16  ;;  %v2599_v16 = vshll.u32 %v2428_v62, 16  ;;  %v2604_v27 = vshrl.u32 %v2429_v13, 16  ;;  %v2433_v35 = vld [vmem:[%s6440_s20 + $0x58] sm:$0xf] }
  0x29   : > { %v2571_v6 = vrot.slane %v2569_v60, 4  ;;  %v2607_v28 = vshll.u32 %v2429_v13, 16  ;;  %v2613_v32 = vshll.u32 %v2430_v17, 16  ;;  %v2617_v33 = vshrl.u32 %v2430_v17, 16 }
  0x2a   : > { %v2539_v54 = vrot.slane %v2538_v43, 4  ;;  %v2595_v22 = vrot.slane %v2593_v12, 4  ;;  %v2601_v26 = vrot.slane %v2599_v16, 5  ;;  %v2606_v37 = vrot.slane %v2604_v27, 4  ;;  %v2440_v27 = vld [vmem:[%s6440_s20 + $0x74] sm:$0x1] }
  0x2b   : > { %5653 = vmatmul.mubr.msk.bf16.gmra.mrb[12].mxu1 %vm460_vm1, %v6235_v45  ;;  %v2559_v45 = vshll.u32 %v2423_v29, 16  ;;  %v2572_v14 = vor.u32 %v2571_v6, %v2567_v59  ;;  %v2432_v29 = vld [vmem:[%s6440_s20 + $0x54] sm:$0xf]  ;;  %v2615_v43 = vrot.slane %v2613_v32, 5  ;;  %v2619_v47 = vrot.slane %v2617_v33, 4 }
  0x2c   : > { %5789 = vmatmul.mubr.msk.bf16.gmra.mrb[12].mxu0 %vm460_vm1, %v6236_v50  ;;  %5656 = vmatprep.mubr.msk.bf16.mxu1 %vm460_vm1, %v6237_v61  ;;  %v2426_v50 = vld [vmem:[%s6440_s20 + $0x3c] sm:$0xf]  ;;  %v2575_v61 = vshll.u32 %v2425_v41, 16  ;;  %v2544_v63 = vsel %vm6467_vm4, %v2539_v54, %v2543_v38  ;;  %v2609_v38 = vrot.slane %v2607_v28, 5  ;;  %v2628_v49 = vshrl.u32 %v2432_v29, 16  ;;  %v6243_v54 = vld [vmem:[%s6399_s10 + $0xa8] sm:$0xff]  }
  0x2d   : > { %5810 = vmatprep.mubr.msk.bf16.mxu0 %vm460_vm1, %v5079_v8  ;;  %v2561_v56 = vrot.slane %v2559_v45, 5  ;;  %v2580_v1 = vshrl.u32 %v2426_v50, 16  ;;  %v2583_v2 = vshll.u32 %v2426_v50, 16  ;;  %v2589_v8 = vshll.u32 %v2427_v57, 16  ;;  %v6242_v45 = vld [vmem:[%s6399_s10 + $0x9c] sm:$0xff]  }
  0x2e   : > { %v2577_v7 = vrot.slane %v2575_v61, 5  ;;  %v2573_v25 = vrot.slane %v2572_v14, 4  ;;  %v2610_v46 = vor.u32 %v2609_v38, %v2606_v37  ;;  %v2435_v50 = vld [vmem:[%s6440_s20 + $0x60] sm:$0xf]  ;;  %v2641_v57 = vshrl.u32 %v2433_v35, 16 }
  0x2f   : > { %v2562_v0 = vor.u32 %v2561_v56, %v2558_v55  ;;  %v2582_v10 = vrot.slane %v2580_v1, 4  ;;  %v2585_v11 = vrot.slane %v2583_v2, 5  ;;  %v2591_v15 = vrot.slane %v2589_v8, 5 }
  0x30   : > { %v2578_v36 = vsel %vm6467_vm4, %v2573_v25, %v2577_v7  ;;  %v2631_v55 = vshll.u32 %v2432_v29, 16  ;;  %v2637_v56 = vshll.u32 %v2433_v35, 16  ;;  %v2611_v60 = vrot.slane %v2610_v46, 4  ;;  %v2441_v35 = vld [vmem:[%s6440_s20 + $0x78] sm:$0xf] }
  0x31   : > { %v2563_v9 = vrot.slane %v2562_v0, 4  ;;  %v2586_v21 = vor.u32 %v2585_v11, %v2582_v10  ;;  %v2620_v61 = vor.u32 %v2619_v47, %v2615_v43  ;;  %v2630_v62 = vrot.slane %v2628_v49, 4 }
  0x32   : > { %v2639_v0 = vrot.slane %v2637_v56, 5  ;;  %v2643_v1 = vrot.slane %v2641_v57, 4  ;;  %v2647_v2 = vshll.u32 %v2434_v44, 16  ;;  %v2652_v7 = vshrl.u32 %v2435_v50, 16 }
  0x33   : > { %5657 = vmatmul.mubr.msk.bf16.gmra.mrb[16].mxu1 %vm460_vm1, %v6238_v23  ;;  %v2568_v20 = vsel %vm6467_vm4, %v2563_v9, %v2567_v59  ;;  %v2431_v23 = vld [vmem:[%s6440_s20 + $0x50] sm:$0x1]  ;;  %v2621_v6 = vrot.slane %v2620_v61, 4  ;;  %v2655_v8 = vshll.u32 %v2435_v50, 16  ;;  %v2438_v9 = vld [vmem:[%s6440_s20 + $0x6c] sm:$0xf] }
  0x34   : > { %5811 = vmatmul.mubr.msk.bf16.vlgmr.msra.gmra.mrb[0].mxu0 %vm460_vm1, %v5080_v30  ;;  %5660 = vmatprep.mubr.msk.bf16.mxu1 %vm460_vm1, %v6239_v31  ;;  %v2587_v30 = vrot.slane %v2586_v21, 4  ;;  %v2596_v31 = vor.u32 %v2595_v22, %v2591_v15  ;;  %v2623_v39 = vshll.u32 %v2431_v23, 16  ;;  %v5083_v40 = vcombine.low %v2568_v20, %v2578_v36  ;;  %v6244_v22 = vld [vmem:[%s6399_s10 + $0xb4] sm:$0xff]   ;;  %v2444_v50 = vld [vmem:[%s6440_s20 + $0x84] sm:$0xf] }
  0x35   : > { %5843 = vmatpush3.bf16.msra.mxu0 %v6448_v24  ;;  %5814 = vmatprep.mubr.msk.bf16.mxu0 %vm460_vm1, %v5081_v53  ;;  %v2554_v24 = vsel %vm6467_vm4, %v2549_v5, %v2553_v48  ;;  %v2616_v5 = vsel %vm6467_vm4, %v2611_v60, %v2615_v43  ;;  %v2644_v11 = vor.u32 %v2643_v1, %v2639_v0  ;;  %v2649_v12 = vrot.slane %v2647_v2, 5  ;;  %v2445_v1 = vld [vmem:[%s6440_s20 + $0x88] sm:$0xf] }
  0x36   : > { %6210 = vmatprep.subr.msk.bf16.mxu0 %vm509_vm0, %v6503_v52  ;;  %v5082_v18 = vcombine.low %v2544_v63, %v2554_v24  ;;  %v2592_v41 = vsel %vm6467_vm4, %v2587_v30, %v2591_v15  ;;  %v2597_v42 = vrot.slane %v2596_v31, 4  ;;  %v2625_v48 = vrot.slane %v2623_v39, 5  ;;  %v2439_v24 = vld [vmem:[%s6440_s20 + $0x70] sm:$0xf]  ;;  %v6245_v31 = vld [vmem:[%s6530_s27] sm:$0xff]  }
  0x37   : > { %v2633_v63 = vrot.slane %v2631_v55, 5  ;;  %v2661_v13 = vshll.u32 %v2436_v58, 16  ;;  %v2654_v15 = vrot.slane %v2652_v7, 4  ;;  %v2657_v16 = vrot.slane %v2655_v8, 5 }
  0x38   : > { %v2602_v53 = vsel %vm6467_vm4, %v2597_v42, %v2601_v26  ;;  %v2626_v14 = vsel %vm6467_vm4, %v2621_v6, %v2625_v48  ;;  %v2665_v17 = vshrl.u32 %v2436_v58, 16  ;;  %v2645_v20 = vrot.slane %v2644_v11, 4  ;;  %v2446_v6 = vld [vmem:[%s6440_s20 + $0x8c] sm:$0x1] }
  0x39   : > { %v5084_v59 = vcombine.low %v2592_v41, %v2602_v53  ;;  %v2634_v10 = vor.u32 %v2633_v63, %v2630_v62  ;;  %v2663_v21 = vrot.slane %v2661_v13, 5  ;;  %v2658_v23 = vor.u32 %v2657_v16, %v2654_v15  ;;  %v2447_v16 = vld [vmem:[%s6440_s20 + $0x90] sm:$0xf] }
  0x3a   : > { %v2667_v25 = vrot.slane %v2665_v17, 4  ;;  %v2676_v28 = vshrl.u32 %v2438_v9, 16  ;;  %v2650_v30 = vsel %vm6467_vm4, %v2645_v20, %v2649_v12  ;;  %v2679_v32 = vshll.u32 %v2438_v9, 16  ;;  %v6246_v12 = vld [vmem:[%s6530_s27 + $0xc] sm:$0xff]  }
  0x3b   : > { %5661 = vmatmul.mubr.msk.bf16.gmra.mrb[20].mxu1 %vm460_vm1, %v6240_v4  ;;  %v2437_v4 = vld [vmem:[%s6440_s20 + $0x68] sm:$0x1]  ;;  %v2685_v33 = vshll.u32 %v2439_v24, 16  ;;  %v2659_v37 = vrot.slane %v2658_v23, 4  ;;  %v2689_v44 = vshrl.u32 %v2439_v24, 16  ;;  %v2695_v48 = vshll.u32 %v2440_v27, 16 }
  0x3c   : > { %5815 = vmatmul.mubr.msk.bf16.gmra.mrb[4].mxu0 %vm460_vm1, %v5082_v18  ;;  %5664 = vmatprep.mubr.msk.bf16.mxu1 %vm460_vm1, %v6241_v19  ;;  %v5085_v18 = vcombine.low %v2616_v5, %v2626_v14  ;;  %v2635_v19 = vrot.slane %v2634_v10, 4  ;;  %v2671_v26 = vshll.u32 %v2437_v4, 16  ;;  %v2668_v38 = vor.u32 %v2667_v25, %v2663_v21  ;;  %v6247_v25 = vld [vmem:[%s6530_s27 + $0x18] sm:$0xff]  }
  0x3d   : > { %5818 = vmatprep.mubr.msk.bf16.mxu0 %vm460_vm1, %v5083_v40  ;;  %v2442_v40 = vld [vmem:[%s6440_s20 + $0x7c] sm:$0xf]  ;;  %v2678_v41 = vrot.slane %v2676_v28, 4  ;;  %v2681_v42 = vrot.slane %v2679_v32, 5  ;;  %v2687_v43 = vrot.slane %v2685_v33, 5  ;;  %v2664_v46 = vsel %vm6467_vm4, %v2659_v37, %v2663_v21 }
  0x3e   : > { %v2640_v29 = vsel %vm6467_vm4, %v2635_v19, %v2639_v0  ;;  %v2673_v39 = vrot.slane %v2671_v26, 5  ;;  %v2669_v47 = vrot.slane %v2668_v38, 4  ;;  %v2700_v49 = vshrl.u32 %v2441_v35, 16  ;;  %v2448_v21 = vld [vmem:[%s6440_s20 + $0x94] sm:$0xf] }
  0x3f   : > { %v5086_v36 = vcombine.low %v2640_v29, %v2650_v30  ;;  %v2682_v53 = vor.u32 %v2681_v42, %v2678_v41  ;;  %v2703_v55 = vshll.u32 %v2441_v35, 16  ;;  %v2709_v56 = vshll.u32 %v2442_v40, 16  ;;  %v2449_v29 = vld [vmem:[%s6440_s20 + $0x98] sm:$0x1] }
  0x40   : > { %v2674_v57 = vsel %vm6467_vm4, %v2669_v47, %v2673_v39  ;;  %v2697_v58 = vrot.slane %v2695_v48, 5  ;;  %v2713_v60 = vshrl.u32 %v2442_v40, 16  ;;  %v2724_v7 = vshrl.u32 %v2444_v50, 16  ;;  %v2450_v39 = vld [vmem:[%s6440_s20 + $0x9c] sm:$0xf] }
  0x41   : > { %v5087_v61 = vcombine.low %v2664_v46, %v2674_v57  ;;  %v2683_v62 = vrot.slane %v2682_v53, 4  ;;  %v2705_v0 = vrot.slane %v2703_v55, 5  ;;  %v2711_v2 = vrot.slane %v2709_v56, 5  ;;  %v6248_v55 = vld [vmem:[%s6530_s27 + $0x24] sm:$0xff]  }
  0x42   : > { %v2715_v4 = vrot.slane %v2713_v60, 4  ;;  %v2727_v11 = vshll.u32 %v2444_v50, 16  ;;  %v2726_v14 = vrot.slane %v2724_v7, 4  ;;  %v2733_v15 = vshll.u32 %v2445_v1, 16  ;;  %v2453_v60 = vld [vmem:[%s6440_s20 + $0xa8] sm:$0xf] }
  0x43   : > { %5665 = vmatmul.mubr.msk.bf16.gmra.mrb[24].mxu1 %vm460_vm1, %v6242_v45  ;;  %v2443_v45 = vld [vmem:[%s6440_s20 + $0x80] sm:$0x1]  ;;  %v2688_v8 = vsel %vm6467_vm4, %v2683_v62, %v2687_v43  ;;  %v2737_v20 = vshrl.u32 %v2445_v1, 16  ;;  %v2743_v28 = vshll.u32 %v2446_v6, 16  ;;  %v2748_v33 = vshrl.u32 %v2447_v16, 16  ;;  %v6249_v62 = vld [vmem:[%s6530_s27 + $0x30] sm:$0xff]  }
  0x44   : > { %5819 = vmatmul.mubr.msk.bf16.gmra.mrb[8].mxu0 %vm460_vm1, %v5084_v59  ;;  %5668 = vmatprep.mubr.msk.bf16.mxu1 %vm460_vm1, %v6243_v54  ;;  %v2691_v54 = vrot.slane %v2689_v44, 4  ;;  %v2702_v59 = vrot.slane %v2700_v49, 4  ;;  %v2719_v5 = vshll.u32 %v2443_v45, 16  ;;  %v2716_v13 = vor.u32 %v2715_v4, %v2711_v2  ;;  %v2451_v44 = vld [vmem:[%s6440_s20 + $0xa0] sm:$0xf] }
  0x45   : > { %5822 = vmatprep.mubr.msk.bf16.mxu0 %vm460_vm1, %v5085_v18  ;;  %v2729_v19 = vrot.slane %v2727_v11, 5  ;;  %v2735_v27 = vrot.slane %v2733_v15, 5  ;;  %v2739_v32 = vrot.slane %v2737_v20, 4  ;;  %v2751_v37 = vshll.u32 %v2447_v16, 16  ;;  %v2452_v49 = vld [vmem:[%s6440_s20 + $0xa4] sm:$0x1] }
  0x46   : > { %v2692_v63 = vor.u32 %v2691_v54, %v2687_v43  ;;  %v2706_v10 = vor.u32 %v2705_v0, %v2702_v59  ;;  %v2721_v24 = vrot.slane %v2719_v5, 5  ;;  %v2717_v26 = vrot.slane %v2716_v13, 4  ;;  %v2456_v13 = vld [vmem:[%s6440_s20 + $0xb4] sm:$0xf] }
  0x47   : > { %v2757_v38 = vshll.u32 %v2448_v21, 16  ;;  %v2740_v42 = vor.u32 %v2739_v32, %v2735_v27  ;;  %v2750_v43 = vrot.slane %v2748_v33, 4  ;;  %v2753_v45 = vrot.slane %v2751_v37, 5  ;;  %v6250_v33 = vld [vmem:[%s6530_s27 + $0x3c] sm:$0xff]  }
  0x48   : > { %v2693_v9 = vrot.slane %v2692_v63, 4  ;;  %v2707_v18 = vrot.slane %v2706_v10, 4  ;;  %v2722_v35 = vsel %vm6467_vm4, %v2717_v26, %v2721_v24  ;;  %v2761_v47 = vshrl.u32 %v2448_v21, 16 }
  0x49   : > { %v2759_v46 = vrot.slane %v2757_v38, 5  ;;  %v2767_v48 = vshll.u32 %v2449_v29, 16  ;;  %v2741_v50 = vrot.slane %v2740_v42, 4  ;;  %v2772_v53 = vshrl.u32 %v2450_v39, 16 }
  0x4a   : > { %v2698_v17 = vsel %vm6467_vm4, %v2693_v9, %v2697_v58  ;;  %v2712_v30 = vsel %vm6467_vm4, %v2707_v18, %v2711_v2  ;;  %v2775_v54 = vshll.u32 %v2450_v39, 16  ;;  %v2754_v56 = vor.u32 %v2753_v45, %v2750_v43  ;;  %v2454_v2 = vld [vmem:[%s6440_s20 + $0xac] sm:$0xf] }
  0x4b   : > { %5669 = vmatmul.mubr.msk.bf16.gmra.mrb[28].mxu1 %vm460_vm1, %v6244_v22  ;;  %v6590_v22 = vld [vmem:[%s7323_s4 + $0x6] sm:$0x3]  ;;  %v5088_v23 = vcombine.low %v2688_v8, %v2698_v17  ;;  %v5089_v40 = vcombine.low %v2712_v30, %v2722_v35  ;;  %v2763_v57 = vrot.slane %v2761_v47, 4  ;;  %v2769_v58 = vrot.slane %v2767_v48, 5  ;;  %v2455_v8 = vld [vmem:[%s6440_s20 + $0xb0] sm:$0x1] }
  0x4c   : > { %5823 = vmatmul.mubr.msk.bf16.gmra.mrb[12].mxu0 %vm460_vm1, %v5086_v36  ;;  %5674 = vmatprep.mubr.msk.bf16.mxu1 %vm460_vm1, %v6245_v31  ;;  %v2730_v31 = vor.u32 %v2729_v19, %v2726_v14  ;;  %v2745_v36 = vrot.slane %v2743_v28, 5  ;;  %v2781_v59 = vshll.u32 %v2451_v44, 16  ;;  %v2774_v63 = vrot.slane %v2772_v53, 4  ;;  %v2457_v17 = vld [vmem:[%s6440_s20 + $0xb8] sm:$0xf] }
  0x4d   : > { %5826 = vmatprep.mubr.msk.bf16.mxu0 %vm460_vm1, %v5087_v61  ;;  %v2777_v0 = vrot.slane %v2775_v54, 5  ;;  %v2785_v1 = vshrl.u32 %v2451_v44, 16  ;;  %v2755_v5 = vrot.slane %v2754_v56, 4  ;;  %v2764_v6 = vor.u32 %v2763_v57, %v2759_v46  ;;  %v2458_v28 = vld [vmem:[%s6440_s20 + $0xbc] sm:$0x1] }
  0x4e   : > { %v2731_v41 = vrot.slane %v2730_v31, 4  ;;  %v2746_v61 = vsel %vm6467_vm4, %v2741_v50, %v2745_v36  ;;  %v2783_v7 = vrot.slane %v2781_v59, 5  ;;  %v2791_v11 = vshll.u32 %v2452_v49, 16  ;;  %v6252_v59 = vld [vmem:[%s6530_s27 + $0x54] sm:$0xff]  }
  0x4f   : > { %v2778_v9 = vor.u32 %v2777_v0, %v2774_v63  ;;  %v2787_v10 = vrot.slane %v2785_v1, 4  ;;  %v2760_v24 = vsel %vm6467_vm4, %v2755_v5, %v2759_v46  ;;  %v2765_v14 = vrot.slane %v2764_v6, 4  ;;  %v6253_v63 = vld [vmem:[%s6530_s27 + $0x60] sm:$0xff]   ;;  %v6254_v0 = vld [vmem:[%s6530_s27 + $0xc] sm:$0xff]  }
  0x50   : > { %v2799_v15 = vshll.u32 %v2453_v60, 16  ;;  %v2805_v16 = vshll.u32 %v2454_v2, 16  ;;  %v2793_v20 = vrot.slane %v2791_v11, 5  ;;  %v2815_v32 = vshll.u32 %v2455_v8, 16  ;;  %v966_v5 = vld [vmem:[%s6530_s27] sm:$0xf] }
  0x51   : > { %v2779_v18 = vrot.slane %v2778_v9, 4  ;;  %v2788_v19 = vor.u32 %v2787_v10, %v2783_v7  ;;  %v2820_v37 = vshrl.u32 %v2456_v13, 16  ;;  %v2823_v38 = vshll.u32 %v2456_v13, 16  ;;  %v967_v6 = vld [vmem:[%s6530_s27 + $0x4] sm:$0xf]  ;;  %v6255_v9 = vld [vmem:[%s6530_s27 + $0x6c] sm:$0xff]  }
  0x52   : > { %v2807_v26 = vrot.slane %v2805_v16, 5  ;;  %v2829_v42 = vshll.u32 %v2457_v17, 16  ;;  %v2833_v43 = vshrl.u32 %v2457_v17, 16  ;;  %v2839_v50 = vshll.u32 %v2458_v28, 16  ;;  %v6256_v13 = vld [vmem:[%s6530_s27 + $0x18] sm:$0xff]   ;;  %v6258_v16 = vld [vmem:[%s6530_s27 + $0x24] sm:$0xff]  }
  0x53   : > { %5675 = vmatmul.mubr.msk.bf16.vlgmr.msra.gmra.mrb[0].mxu1 %vm460_vm1, %v6246_v12  ;;  %v2796_v12 = vshrl.u32 %v2453_v60, 16  ;;  %v2784_v30 = vsel %vm6467_vm4, %v2779_v18, %v2783_v7  ;;  %v2789_v31 = vrot.slane %v2788_v19, 4  ;;  %v2822_v47 = vrot.slane %v2820_v37, 4  ;;  %v968_v17 = vld [vmem:[%s6530_s27 + $0x8] sm:$0x1] }
  0x54   : > { %5707 = vmatpush3.bf16.msra.mxu1 %v6455_v34  ;;  %5827 = vmatmul.mubr.msk.bf16.gmra.mrb[16].mxu0 %vm460_vm1, %v5088_v23  ;;  %v2736_v34 = vsel %vm6467_vm4, %v2731_v41, %v2735_v27  ;;  %v2770_v23 = vsel %vm6467_vm4, %v2765_v14, %v2769_v58  ;;  %v2809_v27 = vshrl.u32 %v2454_v2, 16  ;;  %v2817_v41 = vrot.slane %v2815_v32, 5  ;;  %v970_v14 = vld [vmem:[%s6530_s27 + $0x10] sm:$0xf]  ;;  %v972_v28 = vld [vmem:[%s6530_s27 + $0x18] sm:$0xf] }
  0x55   : > { %5678 = vmatprep.mubr.msk.bf16.mxu1 %vm460_vm1, %v6247_v25  ;;  %6205 = vmatprep.subr.msk.bf16.mxu1 %vm509_vm0, %v6590_v22  ;;  %v5090_v4 = vcombine.low %v2736_v34, %v2746_v61  ;;  %v2798_v21 = vrot.slane %v2796_v12, 4  ;;  %v2801_v25 = vrot.slane %v2799_v15, 5  ;;  %v5091_v29 = vcombine.low %v2760_v24, %v2770_v23  ;;  %v969_v12 = vld [vmem:[%s6530_s27 + $0xc] sm:$0xf]  ;;  %v6257_v24 = vld [vmem:[%s6530_s27 + $0x78] sm:$0xff]  }
  0x56   : > { %5830 = vmatprep.mubr.msk.bf16.mxu0 %vm460_vm1, %v5089_v40  ;;  %v2811_v36 = vrot.slane %v2809_v27, 4  ;;  %v2794_v39 = vsel %vm6467_vm4, %v2789_v31, %v2793_v20  ;;  %v6251_v40 = vld [vmem:[%s6530_s27 + $0x48] sm:$0xff]   ;;  %v2825_v48 = vrot.slane %v2823_v38, 5  ;;  %v2831_v49 = vrot.slane %v2829_v42, 5 }
  0x57   : > { %v2802_v35 = vor.u32 %v2801_v25, %v2798_v21  ;;  %v5092_v44 = vcombine.low %v2784_v30, %v2794_v39  ;;  %v2835_v34 = vrot.slane %v2833_v43, 4  ;;  %v2841_v57 = vrot.slane %v2839_v50, 5  ;;  %v971_v30 = vld [vmem:[%s6530_s27 + $0x14] sm:$0x1]  ;;  %v975_v39 = vld [vmem:[%s6530_s27 + $0x24] sm:$0xf] }
  0x58   : > { %v2812_v46 = vor.u32 %v2811_v36, %v2807_v26  ;;  %v1018_v7 = vshrl.u32 %v966_v5, 16  ;;  %v1021_v8 = vshll.u32 %v966_v5, 16  ;;  %v1027_v10 = vshll.u32 %v967_v6, 16  ;;  %v6260_v43 = vld [vmem:[%s6530_s27 + $0x30] sm:$0xff]  }
  0x59   : > { %v2803_v45 = vrot.slane %v2802_v35, 4  ;;  %v2836_v56 = vor.u32 %v2835_v34, %v2831_v49  ;;  %v1031_v11 = vshrl.u32 %v967_v6, 16  ;;  %v3660_v15 = vsel %vm509_vm0, %v6503_v52, 0 }
  0x5a   : > { %v2813_v54 = vrot.slane %v2812_v46, 4  ;;  %v1020_v18 = vrot.slane %v1018_v7, 4  ;;  %v1023_v19 = vrot.slane %v1021_v8, 5  ;;  %v1042_v20 = vshrl.u32 %v969_v12, 16 }
  0x5b   : > { %5679 = vmatmul.mubr.msk.bf16.gmra.mrb[4].mxu1 %vm460_vm1, %v6248_v55  ;;  %v2808_v53 = vsel %vm6467_vm4, %v2803_v45, %v2807_v26  ;;  %v2826_v55 = vor.u32 %v2825_v48, %v2822_v47  ;;  %v1045_v21 = vshll.u32 %v969_v12, 16  ;;  %v6664_v23 = vrot.slane %v1027_v10, 5  ;;  %v6262_v45 = vld [vmem:[%s6530_s27 + $0x3c] sm:$0xff]   ;;  %v977_v12 = vld [vmem:[%s6530_s27 + $0x2c] sm:$0x1] }
  0x5c   : > { %5831 = vmatmul.mubr.msk.bf16.gmra.mrb[20].mxu0 %vm460_vm1, %v5090_v4  ;;  %5682 = vmatprep.mubr.msk.bf16.mxu1 %vm460_vm1, %v6249_v62  ;;  %v2818_v58 = vsel %vm6467_vm4, %v2813_v54, %v2817_v41  ;;  %v2837_v62 = vrot.slane %v2836_v56, 4  ;;  %v1033_v25 = vrot.slane %v1031_v11, 4  ;;  %v1051_v26 = vshll.u32 %v970_v14, 16  ;;  %v978_v54 = vld [vmem:[%s6530_s27 + $0x30] sm:$0xf] }
  0x5d   : > { %5834 = vmatprep.mubr.msk.bf16.mxu0 %vm460_vm1, %v5091_v29  ;;  %v5093_v60 = vcombine.low %v2808_v53, %v2818_v58  ;;  %v2827_v61 = vrot.slane %v2826_v55, 4  ;;  %v1055_v27 = vshrl.u32 %v970_v14, 16  ;;  %v1037_v52 = vshll.u32 %v968_v17, 16  ;;  %v6259_v29 = vld [vmem:[%s6530_s27 + $0x84] sm:$0xff]  }
  0x5e   : > { %v2842_v2 = vsel %vm6467_vm4, %v2837_v62, %v2841_v57  ;;  %v1044_v31 = vrot.slane %v1042_v20, 4  ;;  %v1047_v32 = vrot.slane %v1045_v21, 5  ;;  %v1024_v35 = vor.u32 %v1023_v19, %v1020_v18  ;;  %v979_v18 = vld [vmem:[%s6530_s27 + $0x34] sm:$0xf]  ;;  %v980_v19 = vld [vmem:[%s6530_s27 + $0x38] sm:$0x1] }
  0x5f   : > { %v2832_v1 = vsel %vm6467_vm4, %v2827_v61, %v2831_v49  ;;  %v1034_v36 = vor.u32 %v1033_v25, %v6664_v23  ;;  %v6675_v37 = vrot.slane %v1051_v26, 5  ;;  %v1057_v38 = vrot.slane %v1055_v27, 4  ;;  %v974_v61 = vld [vmem:[%s6530_s27 + $0x20] sm:$0x1]  ;;  %v6266_v25 = vld [vmem:[%s6530_s27 + $0x54] sm:$0xff]  }
  0x60   : > { %v5094_v4 = vcombine.low %v2832_v1, %v2842_v2  ;;  %v1066_v41 = vshrl.u32 %v972_v28, 16  ;;  %v1069_v42 = vshll.u32 %v972_v28, 16  ;;  %v6684_v46 = vsel %vm509_vm0, %v6590_v22, 0 }
  0x61   : > { %v1090_v49 = vshrl.u32 %v975_v39, 16  ;;  %v1093_v34 = vshll.u32 %v975_v39, 16  ;;  %v1025_v55 = vrot.slane %v1024_v35, 4  ;;  %v1035_v56 = vrot.slane %v1034_v36, 4  ;;  %v982_v36 = vld [vmem:[%s6530_s27 + $0x40] sm:$0xf] }
  0x62   : > { %v1039_v57 = vrot.slane %v1037_v52, 5  ;;  %v1061_v58 = vshll.u32 %v971_v30, 16  ;;  %v1068_v22 = vrot.slane %v1066_v41, 4  ;;  %v1071_v62 = vrot.slane %v1069_v42, 5 }
  0x63   : > { %5683 = vmatmul.mubr.msk.bf16.gmra.mrb[8].mxu1 %vm460_vm1, %v6250_v33  ;;  %v973_v33 = vld [vmem:[%s6530_s27 + $0x1c] sm:$0xf]  ;;  %v1114_v1 = vshrl.u32 %v978_v54, 16  ;;  %v1117_v2 = vshll.u32 %v978_v54, 16  ;;  %v1092_v5 = vrot.slane %v1090_v49, 4  ;;  %v1095_v6 = vrot.slane %v1093_v34, 5 }
  0x64   : > { %5835 = vmatmul.mubr.msk.bf16.gmra.mrb[24].mxu0 %vm460_vm1, %v5092_v44  ;;  %5686 = vmatprep.mubr.msk.bf16.mxu1 %vm460_vm1, %v6251_v40  ;;  %v976_v40 = vld [vmem:[%s6530_s27 + $0x28] sm:$0xf]  ;;  %v6261_v44 = vld [vmem:[%s6530_s27 + $0x90] sm:$0xff]   ;;  %v1075_v47 = vshll.u32 %v973_v33, 16  ;;  %v1079_v48 = vshrl.u32 %v973_v33, 16  ;;  %v6701_v10 = vrot.slane %v1061_v58, 5  ;;  %v1040_v14 = vsel %vm6467_vm4, %v1035_v56, %v1039_v57 }
  0x65   : > { %5838 = vmatprep.mubr.msk.bf16.mxu0 %vm460_vm1, %v5093_v60  ;;  %v1099_v50 = vshll.u32 %v976_v40, 16  ;;  %v1103_v53 = vshrl.u32 %v976_v40, 16  ;;  %v1058_v60 = vor.u32 %v1057_v38, %v6675_v37  ;;  %v1085_v11 = vshll.u32 %v974_v61, 16  ;;  %v983_v54 = vld [vmem:[%s6530_s27 + $0x44] sm:$0x1]  ;;  %v6269_v57 = vld [vmem:[%s6530_s27 + $0x6c] sm:$0xff]  }
  0x66   : > { %v1072_v17 = vor.u32 %v1071_v62, %v1068_v22  ;;  %v1116_v20 = vrot.slane %v1114_v1, 4  ;;  %v1119_v21 = vrot.slane %v1117_v2, 5  ;;  %v1096_v27 = vor.u32 %v1095_v6, %v1092_v5 }
  0x67   : > { %v6696_v7 = vrot.slane %v1099_v50, 5  ;;  %v1105_v8 = vrot.slane %v1103_v53, 4  ;;  %v1109_v28 = vshll.u32 %v977_v12, 16  ;;  %v6718_v30 = vrot.slane %v1085_v11, 5  ;;  %v6268_v50 = vld [vmem:[%s6530_s27 + $0x60] sm:$0xff]  }
  0x68   : > { %v1073_v33 = vrot.slane %v1072_v17, 4  ;;  %v1133_v35 = vshll.u32 %v980_v19, 16  ;;  %v1120_v42 = vor.u32 %v1119_v21, %v1116_v20  ;;  %v1151_v56 = vshrl.u32 %v982_v36, 16 }
  0x69   : > { %v1106_v52 = vor.u32 %v1105_v8, %v6696_v7  ;;  %v1111_v34 = vrot.slane %v1109_v28, 5  ;;  %v987_v8 = vld [vmem:[%s6530_s27 + $0x54] sm:$0xf]  ;;  %v6270_v28 = vld [vmem:[%s6530_s27 + $0x78] sm:$0xff]  }
  0x6a   : > { %v6741_v22 = vrot.slane %v1120_v42, 4  ;;  %v6743_v62 = vrot.slane %v1133_v35, 5  ;;  %v1153_v12 = vrot.slane %v1151_v56, 4  ;;  %v1189_v19 = vshll.u32 %v987_v8, 16  ;;  %v993_v42 = vld [vmem:[%s6530_s27 + $0x6c] sm:$0xf] }
  0x6b   : > { %5687 = vmatmul.mubr.msk.bf16.gmra.mrb[12].mxu1 %vm460_vm1, %v6252_v59  ;;  %v1048_v59 = vor.u32 %v1047_v32, %v1044_v31  ;;  %v1123_v31 = vshll.u32 %v979_v18, 16  ;;  %v1127_v32 = vshrl.u32 %v979_v18, 16  ;;  %v1107_v49 = vrot.slane %v1106_v52, 4 }
  0x6c   : > { %5839 = vmatmul.mubr.msk.bf16.gmra.mrb[28].mxu0 %vm460_vm1, %v5094_v4  ;;  %5690 = vmatprep.mubr.msk.bf16.mxu1 %vm460_vm1, %v6253_v63  ;;  %v6692_v63 = vrot.slane %v1075_v47, 5  ;;  %v6263_v4 = vld [vmem:[%s6530_s27 + $0x9c] sm:$0xff]   ;;  %v1186_v18 = vshrl.u32 %v987_v8, 16  ;;  %v1237_v56 = vshll.u32 %v993_v42, 16 }
  0x6d   : > { %5844 = vmatprep.mubr.msk.bf16.mxu0 %vm460_vm1, %v6254_v0  ;;  %v1081_v0 = vrot.slane %v1079_v48, 4  ;;  %v1097_v48 = vrot.slane %v1096_v27, 4  ;;  %v6737_v53 = vrot.slane %v1123_v31, 5  ;;  %v1112_v6 = vsel %vm6467_vm4, %v1107_v49, %v1111_v34 }
  0x6e   : > { %v1078_v2 = vsel %vm6467_vm4, %v1073_v33, %v6692_v63  ;;  %v6271_v33 = vld [vmem:[%s6530_s27 + $0x84] sm:$0xff]  }
  0x6f   : > { %v1082_v26 = vor.u32 %v1081_v0, %v6692_v63  ;;  %v1102_v5 = vsel %vm6467_vm4, %v1097_v48, %v6696_v7  ;;  %v986_v7 = vld [vmem:[%s6530_s27 + $0x50] sm:$0x1] }
  0x71   : > { %v1083_v47 = vrot.slane %v1082_v26, 4 }
  0x73   : > { %5691 = vmatmul.mubr.msk.bf16.gmra.mrb[16].mxu1 %vm460_vm1, %v6255_v9  ;;  %v1030_v9 = vsel %vm6467_vm4, %v1025_v55, %v6664_v23  ;;  %v981_v23 = vld [vmem:[%s6530_s27 + $0x3c] sm:$0xf]  ;;  %v1147_v55 = vshll.u32 %v982_v36, 16  ;;  %v1181_v36 = vshll.u32 %v986_v7, 16 }
  0x74   : > { %5845 = vmatmul.mubr.msk.bf16.vlgmr.msra.gmra.mrb[0].mxu0 %vm460_vm1, %v6256_v13  ;;  %5694 = vmatprep.mubr.msk.bf16.mxu1 %vm460_vm1, %v6257_v24  ;;  %v6264_v13 = vld [vmem:[%s6530_s27 + $0x48] sm:$0xff]   ;;  %v1138_v38 = vshrl.u32 %v981_v23, 16  ;;  %v1141_v39 = vshll.u32 %v981_v23, 16  ;;  %v991_v23 = vld [vmem:[%s6530_s27 + $0x64] sm:$0xf]  ;;  %v6273_v7 = vld [vmem:[%s6530_s27 + $0x9c] sm:$0xff]  }
  0x75   : > { %5877 = vmatpush3.bf16.msra.mxu0 %v3660_v15  ;;  %5848 = vmatprep.mubr.msk.bf16.mxu0 %vm460_vm1, %v6258_v16  ;;  %v6265_v24 = vld [vmem:[%s6530_s27 + $0xa8] sm:$0xff]   ;;  %v6708_v15 = vrot.slane %v1048_v59, 4  ;;  %v6710_v16 = vrot.slane %v1058_v60, 4  ;;  %v6764_v11 = vrot.slane %v1147_v55, 5  ;;  %v1234_v55 = vshrl.u32 %v993_v42, 16 }
  0x76   : > { %v1140_v0 = vrot.slane %v1138_v38, 4  ;;  %v1143_v1 = vrot.slane %v1141_v39, 5  ;;  %v1219_v38 = vshll.u32 %v991_v23, 16  ;;  %v1223_v39 = vshrl.u32 %v991_v23, 16 }
  0x77   : > { %v1054_v40 = vsel %vm6467_vm4, %v6708_v15, %v6675_v37  ;;  %v1064_v41 = vsel %vm6467_vm4, %v6710_v16, %v6701_v10  ;;  %v1129_v37 = vrot.slane %v1127_v32, 4  ;;  %v6761_v10 = vld [vmem:[%s7323_s4 + $0x10] sm:$0x3]  ;;  %v1236_v8 = vrot.slane %v1234_v55, 4 }
  0x78   : > { %6211 = vmatprep.subr.msk.bf16.mxu0 %vm509_vm0, %v6761_v10  ;;  %v1144_v32 = vor.u32 %v1143_v1, %v1140_v0  ;;  %v1183_v1 = vrot.slane %v1181_v36, 5  ;;  %v1000_v36 = vld [vmem:[%s6530_s27 + $0x88] sm:$0xf] }
  0x79   : > { %v1130_v63 = vor.u32 %v1129_v37, %v6737_v53 }
  0x7b   : > { %5695 = vmatmul.mubr.msk.bf16.gmra.mrb[20].mxu1 %vm460_vm1, %v6259_v29  ;;  %v4980_v29 = vcombine.low %v1030_v9, %v1040_v14  ;;  %v988_v9 = vld [vmem:[%s6530_s27 + $0x58] sm:$0xf]  ;;  %v1131_v31 = vrot.slane %v1130_v63, 4 }
  0x7c   : > { %5849 = vmatmul.mubr.msk.bf16.gmra.mrb[4].mxu0 %vm460_vm1, %v6260_v43  ;;  %5698 = vmatprep.mubr.msk.bf16.mxu1 %vm460_vm1, %v6261_v44  ;;  %v984_v43 = vld [vmem:[%s6530_s27 + $0x48] sm:$0xf]  ;;  %v985_v44 = vld [vmem:[%s6530_s27 + $0x4c] sm:$0xf]  ;;  %v1195_v20 = vshll.u32 %v988_v9, 16  ;;  %v1199_v21 = vshrl.u32 %v988_v9, 16 }
  0x7d   : > { %5852 = vmatprep.mubr.msk.bf16.mxu0 %vm460_vm1, %v6262_v45  ;;  %v6267_v45 = vld [vmem:[%s6530_s27 + $0xb4] sm:$0xff]   ;;  %v1162_v58 = vshrl.u32 %v984_v43, 16  ;;  %v1165_v59 = vshll.u32 %v984_v43, 16  ;;  %v1171_v60 = vshll.u32 %v985_v44, 16  ;;  %v1175_v61 = vshrl.u32 %v985_v44, 16 }
  0x7e   : > { %v989_v43 = vld [vmem:[%s6530_s27 + $0x5c] sm:$0x1]  ;;  %v1188_v44 = vrot.slane %v1186_v18, 4  ;;  %v1201_v48 = vrot.slane %v1199_v21, 4  ;;  %v1239_v9 = vrot.slane %v1237_v56, 5  ;;  %v6857_v56 = vsel %vm509_vm0, %v6761_v10, 0 }
  0x7f   : > { %v1164_v14 = vrot.slane %v1162_v58, 4  ;;  %v1167_v15 = vrot.slane %v1165_v59, 5  ;;  %v6771_v16 = vrot.slane %v1171_v60, 5  ;;  %v1177_v17 = vrot.slane %v1175_v61, 4  ;;  %v994_v61 = vld [vmem:[%s6530_s27 + $0x70] sm:$0xf] }
  0x80   : > { %v1136_v58 = vsel %vm6467_vm4, %v1131_v31, %v6743_v62  ;;  %v6798_v59 = vrot.slane %v1219_v38, 5  ;;  %v1225_v60 = vrot.slane %v1223_v39, 4  ;;  %v1243_v63 = vshll.u32 %v994_v61, 16  ;;  %v995_v18 = vld [vmem:[%s6530_s27 + $0x74] sm:$0x1] }
  0x81   : > { %v999_v31 = vld [vmem:[%s6530_s27 + $0x84] sm:$0xf]  ;;  %v1253_v38 = vshll.u32 %v995_v18, 16 }
  0x83   : > { %5699 = vmatmul.mubr.msk.bf16.gmra.mrb[24].mxu1 %vm460_vm1, %v6263_v4  ;;  %v1088_v4 = vsel %vm6467_vm4, %v1083_v47, %v6718_v30  ;;  %v6778_v30 = vcombine.low %v1102_v5, %v1112_v6  ;;  %v6787_v47 = vrot.slane %v1195_v20, 5  ;;  %v996_v6 = vld [vmem:[%s6530_s27 + $0x78] sm:$0xf] }
  0x84   : > { %5853 = vmatmul.mubr.msk.bf16.gmra.mrb[8].mxu0 %vm460_vm1, %v6264_v13  ;;  %5702 = vmatprep.mubr.msk.bf16.mxu1 %vm460_vm1, %v6265_v24  ;;  %v1157_v13 = vshll.u32 %v983_v54, 16  ;;  %v990_v24 = vld [vmem:[%s6530_s27 + $0x60] sm:$0xf]  ;;  %v4982_v26 = vcombine.low %v1078_v2, %v1088_v4  ;;  %v992_v54 = vld [vmem:[%s6530_s27 + $0x68] sm:$0x1]  ;;  %v1205_v4 = vshll.u32 %v989_v43, 16 }
  0x85   : > { %5856 = vmatprep.mubr.msk.bf16.mxu0 %vm460_vm1, %v6266_v25  ;;  %v4981_v25 = vcombine.low %v1054_v40, %v1064_v41  ;;  %v1210_v27 = vshrl.u32 %v990_v24, 16  ;;  %v1213_v52 = vshll.u32 %v990_v24, 16  ;;  %v1168_v40 = vor.u32 %v1167_v15, %v1164_v14 }
  0x86   : > { %v6782_v35 = vrot.slane %v1157_v13, 5  ;;  %v1178_v41 = vor.u32 %v1177_v17, %v6771_v16  ;;  %v1229_v5 = vshll.u32 %v992_v54, 16  ;;  %v6317_v13 = vld [vmem:[%s7323_s4 + $0x8] sm:$0x3]  ;;  %v1226_v17 = vor.u32 %v1225_v60, %v6798_v59 }
  0x87   : > { %v1212_v49 = vrot.slane %v1210_v27, 4  ;;  %v1215_v34 = vrot.slane %v1213_v52, 5  ;;  %v1169_v0 = vrot.slane %v1168_v40, 4  ;;  %v6824_v21 = vrot.slane %v1205_v4, 5  ;;  %v1002_v40 = vld [vmem:[%s6530_s27 + $0x90] sm:$0xf] }
  0x88   : > { %v1258_v23 = vshrl.u32 %v996_v6, 16  ;;  %v6833_v52 = vrot.slane %v1229_v5, 5 }
  0x89   : > { %v1216_v62 = vor.u32 %v1215_v34, %v1212_v49  ;;  %v1291_v49 = vshll.u32 %v1000_v36, 16  ;;  %v1295_v34 = vshrl.u32 %v1000_v36, 16 }
  0x8b   : > { %5703 = vmatmul.mubr.msk.bf16.gmra.mrb[28].mxu1 %vm460_vm1, %v6267_v45  ;;  %v1191_v45 = vrot.slane %v1189_v19, 5  ;;  %v997_v19 = vld [vmem:[%s6530_s27 + $0x7c] sm:$0xf]  ;;  %v1297_v10 = vrot.slane %v1295_v34, 4  ;;  %v1011_v34 = vld [vmem:[%s6530_s27 + $0xb4] sm:$0xf] }
  0x8c   : > { %5857 = vmatmul.mubr.msk.bf16.gmra.mrb[12].mxu0 %vm460_vm1, %v6268_v50  ;;  %5708 = vmatprep.mubr.msk.bf16.mxu1 %vm460_vm1, %v4980_v29  ;;  %v1154_v29 = vor.u32 %v1153_v12, %v6764_v11  ;;  %v1145_v50 = vrot.slane %v1144_v32, 4  ;;  %v1247_v12 = vshrl.u32 %v994_v61, 16  ;;  %v6837_v32 = vrot.slane %v1216_v62, 4  ;;  %v1001_v62 = vld [vmem:[%s6530_s27 + $0x8c] sm:$0x1] }
  0x8d   : > { %5860 = vmatprep.mubr.msk.bf16.mxu0 %vm460_vm1, %v6269_v57  ;;  %v1126_v57 = vsel %vm6467_vm4, %v6741_v22, %v6737_v53  ;;  %v1192_v2 = vor.u32 %v1191_v45, %v1188_v44  ;;  %v1179_v53 = vrot.slane %v1178_v41, 4  ;;  %v1202_v22 = vor.u32 %v1201_v48, %v6787_v47 }
  0x8e   : > { %v1155_v37 = vrot.slane %v1154_v29, 4  ;;  %v4984_v24 = vcombine.low %v1126_v57, %v1136_v58  ;;  %v1150_v14 = vsel %vm6467_vm4, %v1145_v50, %v6764_v11  ;;  %v1240_v29 = vor.u32 %v1239_v9, %v1236_v8  ;;  %v1003_v50 = vld [vmem:[%s6530_s27 + $0x94] sm:$0xf] }
  0x8f   : > { %v6822_v20 = vrot.slane %v1192_v2, 4  ;;  %v1184_v11 = vsel %vm6467_vm4, %v1179_v53, %v1183_v1  ;;  %v6831_v27 = vrot.slane %v1202_v22, 4  ;;  %v1267_v39 = vshll.u32 %v997_v19, 16  ;;  %v6275_v1 = vld [vmem:[%s6530_s27 + $0xb4] sm:$0xff]  }
  0x90   : > { %v1160_v15 = vsel %vm6467_vm4, %v1155_v37, %v6782_v35  ;;  %v1249_v35 = vrot.slane %v1247_v12, 4  ;;  %v1271_v42 = vshrl.u32 %v997_v19, 16  ;;  %v1260_v44 = vrot.slane %v1258_v23, 4  ;;  %v6274_v37 = vld [vmem:[%s6530_s27 + $0xa8] sm:$0xff]   ;;  %v1004_v12 = vld [vmem:[%s6530_s27 + $0x98] sm:$0x1] }
  0x91   : > { %v4985_v41 = vcombine.low %v1150_v14, %v1160_v15  ;;  %v1285_v48 = vshll.u32 %v999_v31, 16  ;;  %v6852_v54 = vrot.slane %v1240_v29, 4  ;;  %v6859_v58 = vrot.slane %v1267_v39, 5 }
  0x92   : > { %v1273_v60 = vrot.slane %v1271_v42, 4  ;;  %v1306_v61 = vshrl.u32 %v1002_v40, 16  ;;  %v6862_v2 = vrot.slane %v1253_v38, 5  ;;  %v1315_v53 = vshll.u32 %v1003_v50, 16  ;;  %v1007_v38 = vld [vmem:[%s6530_s27 + $0xa4] sm:$0x1] }
  0x93   : > { %5709 = vmatmul.mubr.msk.bf16.vlgmr.msra.gmra.mrb[0].mxu1 %vm460_vm1, %v4981_v25  ;;  %v1261_v25 = vshll.u32 %v996_v6, 16  ;;  %v1319_v22 = vshrl.u32 %v1003_v50, 16  ;;  %v1287_v6 = vrot.slane %v1285_v48, 5  ;;  %v1198_v8 = vsel %vm6467_vm4, %v6822_v20, %v6787_v47  ;;  %v1006_v20 = vld [vmem:[%s6530_s27 + $0xa0] sm:$0xf] }
  0x94   : > { %5741 = vmatpush3.bf16.msra.mxu1 %v6684_v46  ;;  %5861 = vmatmul.mubr.msk.bf16.gmra.mrb[16].mxu0 %vm460_vm1, %v6270_v28  ;;  %v6272_v46 = vld [vmem:[%s6530_s27 + $0x90] sm:$0xff]   ;;  %v998_v28 = vld [vmem:[%s6530_s27 + $0x80] sm:$0x1]  ;;  %v1308_v14 = vrot.slane %v1306_v61, 4  ;;  %v1222_v15 = vsel %vm6467_vm4, %v6837_v32, %v6798_v59  ;;  %v6893_v18 = vrot.slane %v1315_v53, 5  ;;  %v1339_v42 = vshll.u32 %v1006_v20, 16 }
  0x95   : > { %5712 = vmatprep.mubr.msk.bf16.mxu1 %vm460_vm1, %v4982_v26  ;;  %5864 = vmatprep.mubr.msk.bf16.mxu0 %vm460_vm1, %v6271_v33  ;;  %v1174_v26 = vsel %vm6467_vm4, %v1169_v0, %v6771_v16  ;;  %v6839_v33 = vrot.slane %v1243_v63, 5  ;;  %v6844_v16 = vrot.slane %v1226_v17, 4  ;;  %v1263_v45 = vrot.slane %v1261_v25, 5  ;;  %v6276_v59 = vld [vmem:[%s6530_s27 + $0xc0] sm:$0xff]   ;;  %v1012_v53 = vld [vmem:[%s6530_s27 + $0xb8] sm:$0xf] }
  0x96   : > { %6207 = vmatprep.subr.msk.bf16.mxu1 %vm509_vm0, %v6317_v13  ;;  %v4986_v43 = vcombine.low %v1174_v26, %v1184_v11  ;;  %v1277_v57 = vshll.u32 %v998_v28, 16  ;;  %v1309_v0 = vshll.u32 %v1002_v40, 16  ;;  %v1005_v13 = vld [vmem:[%s6530_s27 + $0x9c] sm:$0xf]  ;;  %v1321_v19 = vrot.slane %v1319_v22, 4 }
  0x97   : > { %v1250_v55 = vor.u32 %v1249_v35, %v6839_v33  ;;  %v1264_v4 = vor.u32 %v1263_v45, %v1260_v44  ;;  %v1232_v17 = vsel %vm6467_vm4, %v6844_v16, %v6833_v52  ;;  %v1301_v26 = vshll.u32 %v1001_v62, 16  ;;  %v1008_v11 = vld [vmem:[%s6530_s27 + $0xa8] sm:$0xf]  ;;  %v1009_v28 = vld [vmem:[%s6530_s27 + $0xac] sm:$0xf]  ;;  %v6278_v22 = vld [vmem:[%s6399_s10 + $0x18] sm:$0xff]  }
  0x98   : > { %v6873_v63 = vrot.slane %v1277_v57, 5  ;;  %v1311_v47 = vrot.slane %v1309_v0, 5  ;;  %v1325_v52 = vshll.u32 %v1004_v12, 16  ;;  %v1330_v35 = vshrl.u32 %v1005_v13, 16 }
  0x99   : > { %v6871_v9 = vrot.slane %v1250_v55, 4  ;;  %v4988_v36 = vcombine.low %v1222_v15, %v1232_v17  ;;  %v1322_v16 = vor.u32 %v1321_v19, %v6893_v18  ;;  %v1333_v39 = vshll.u32 %v1005_v13, 16  ;;  %v1010_v13 = vld [vmem:[%s6530_s27 + $0xb0] sm:$0x1] }
  0x9a   : > { %v1312_v29 = vor.u32 %v1311_v47, %v1308_v14  ;;  %v1343_v44 = vshrl.u32 %v1006_v20, 16  ;;  %v1246_v45 = vsel %vm6467_vm4, %v6852_v54, %v6839_v33  ;;  %v1354_v48 = vshrl.u32 %v1008_v11, 16 }
  0x9b   : > { %5713 = vmatmul.mubr.msk.bf16.gmra.mrb[4].mxu1 %vm460_vm1, %v6778_v30  ;;  %v1282_v30 = vshrl.u32 %v999_v31, 16  ;;  %v6277_v31 = vld [vmem:[%s6399_s10 + $0xc] sm:$0xff]   ;;  %v1332_v55 = vrot.slane %v1330_v35, 4  ;;  %v1363_v57 = vshll.u32 %v1009_v28, 16  ;;  %v1323_v33 = vrot.slane %v1322_v16, 4 }
  0x9c   : > { %5865 = vmatmul.mubr.msk.bf16.gmra.mrb[20].mxu0 %vm460_vm1, %v6272_v46  ;;  %5716 = vmatprep.mubr.msk.bf16.mxu1 %vm460_vm1, %v4984_v24  ;;  %v6865_v46 = vrot.slane %v1291_v49, 5  ;;  %v1208_v24 = vsel %vm6467_vm4, %v6831_v27, %v6824_v21  ;;  %v1265_v21 = vrot.slane %v1264_v4, 4  ;;  %v1357_v49 = vshll.u32 %v1008_v11, 16  ;;  %v1013_v16 = vld [vmem:[%s6530_s27 + $0xbc] sm:$0x1] }
  0x9d   : > { %5868 = vmatprep.mubr.msk.bf16.mxu0 %vm460_vm1, %v6273_v7  ;;  %v1284_v5 = vrot.slane %v1282_v30, 4  ;;  %v1274_v7 = vor.u32 %v1273_v60, %v6859_v58  ;;  %v4987_v27 = vcombine.low %v1198_v8, %v1208_v24  ;;  %v1256_v30 = vsel %vm6467_vm4, %v6871_v9, %v6862_v2 }
  0x9e   : > { %v1298_v25 = vor.u32 %v1297_v10, %v6865_v46  ;;  %v1313_v50 = vrot.slane %v1312_v29, 4  ;;  %v1335_v54 = vrot.slane %v1333_v39, 5  ;;  %v1341_v60 = vrot.slane %v1339_v42, 5  ;;  %v6279_v10 = vld [vmem:[%s6399_s10 + $0x24] sm:$0xff]  }
  0x9f   : > { %v1288_v23 = vor.u32 %v1287_v6, %v1284_v5  ;;  %v1275_v32 = vrot.slane %v1274_v7, 4  ;;  %v1367_v61 = vshrl.u32 %v1009_v28, 16  ;;  %v1270_v0 = vsel %vm6467_vm4, %v1265_v21, %v6859_v58 }
  0xa0   : > { %v1345_v2 = vrot.slane %v1343_v44, 4  ;;  %v1349_v4 = vshll.u32 %v1007_v38, 16  ;;  %v1356_v62 = vrot.slane %v1354_v48, 4  ;;  %v1359_v5 = vrot.slane %v1357_v49, 5 }
  0xa1   : > { %v1289_v40 = vrot.slane %v1288_v23, 4  ;;  %v4989_v6 = vcombine.low %v1246_v45, %v1256_v30  ;;  %v1365_v8 = vrot.slane %v1363_v57, 5  ;;  %v1378_v9 = vshrl.u32 %v1011_v34, 16  ;;  %v6282_v30 = vld [vmem:[%s6399_s10 + $0x48] sm:$0xff]  }
  0xa2   : > { %v1369_v24 = vrot.slane %v1367_v61, 4  ;;  %v1381_v7 = vshll.u32 %v1011_v34, 16  ;;  %v1387_v14 = vshll.u32 %v1012_v53, 16  ;;  %v1391_v58 = vshrl.u32 %v1012_v53, 16  ;;  %v6286_v61 = vld [vmem:[%s6399_s10 + $0x6c] sm:$0xff]  }
  0xa3   : > { %5717 = vmatmul.mubr.msk.bf16.gmra.mrb[8].mxu1 %vm460_vm1, %v4985_v41  ;;  %v1299_v41 = vrot.slane %v1298_v25, 4  ;;  %v1336_v15 = vor.u32 %v1335_v54, %v1332_v55  ;;  %v1346_v17 = vor.u32 %v1345_v2, %v1341_v60  ;;  %v1318_v19 = vsel %vm6467_vm4, %v1313_v50, %v6893_v18  ;;  %v6284_v54 = vld [vmem:[%s6399_s10 + $0x60] sm:$0xff]   ;;  %v6287_v2 = vld [vmem:[%s6440_s20 + $0xc] sm:$0xff]   ;;  %v5244_v53 = vld [vmem:[%s6530_s27 + $0x18] sm:$0xf] }
  0xa4   : > { %5869 = vmatmul.mubr.msk.bf16.gmra.mrb[24].mxu0 %vm460_vm1, %v6274_v37  ;;  %5720 = vmatprep.mubr.msk.bf16.mxu1 %vm460_vm1, %v4986_v43  ;;  %v1303_v43 = vrot.slane %v1301_v26, 5  ;;  %v1327_v37 = vrot.slane %v1325_v52, 5  ;;  %v1370_v21 = vor.u32 %v1369_v24, %v1365_v8  ;;  %v1373_v23 = vshll.u32 %v1010_v13, 16  ;;  %v6280_v26 = vld [vmem:[%s6399_s10 + $0x30] sm:$0xff]   ;;  %v6281_v52 = vld [vmem:[%s6399_s10 + $0x3c] sm:$0xff]  }
  0xa5   : > { %5872 = vmatprep.mubr.msk.bf16.mxu0 %vm460_vm1, %v6275_v1  ;;  %v1280_v1 = vsel %vm6467_vm4, %v1275_v32, %v6873_v63  ;;  %v1294_v63 = vsel %vm6467_vm4, %v1289_v40, %v6865_v46  ;;  %v1360_v46 = vor.u32 %v1359_v5, %v1356_v62  ;;  %v1351_v28 = vrot.slane %v1349_v4, 5  ;;  %v6288_v4 = vld [vmem:[%s6399_s10 + $0x78] sm:$0xff]  }
  0xa6   : > { %v4990_v12 = vcombine.low %v1270_v0, %v1280_v1  ;;  %v1304_v47 = vsel %vm6467_vm4, %v1299_v41, %v1303_v43  ;;  %v1328_v20 = vsel %vm6467_vm4, %v1323_v33, %v1327_v37  ;;  %v1383_v18 = vrot.slane %v1381_v7, 5  ;;  %v6283_v37 = vld [vmem:[%s6399_s10 + $0x54] sm:$0xff]   ;;  %v5241_v0 = vld [vmem:[%s6530_s27 + $0xc] sm:$0xf]  ;;  %v5242_v1 = vld [vmem:[%s6530_s27 + $0x10] sm:$0xf] }
  0xa7   : > { %v4991_v25 = vcombine.low %v1294_v63, %v1304_v47  ;;  %v4992_v11 = vcombine.low %v1318_v19, %v1328_v20  ;;  %v1389_v32 = vrot.slane %v1387_v14, 5  ;;  %v1393_v29 = vrot.slane %v1391_v58, 4  ;;  %v5247_v58 = vld [vmem:[%s6530_s27 + $0x24] sm:$0xf]  ;;  %v5248_v19 = vld [vmem:[%s6530_s27 + $0x28] sm:$0xf] }
  0xa8   : > { %v1361_v35 = vrot.slane %v1360_v46, 4  ;;  %v1397_v41 = vshll.u32 %v1013_v16, 16  ;;  %v3907_v62 = vshll.u32 %v5241_v0, 16  ;;  %v3913_v5 = vshll.u32 %v5242_v1, 16  ;;  %v6291_v46 = vld [vmem:[%s6440_s20 + $0x24] sm:$0xff]  }
  0xa9   : > { %v1394_v40 = vor.u32 %v1393_v29, %v1389_v32  ;;  %v3928_v13 = vshrl.u32 %v5244_v53, 16  ;;  %v3931_v24 = vshll.u32 %v5244_v53, 16  ;;  %v5254_v53 = vld [vmem:[%s6530_s27 + $0x40] sm:$0xf] }
  0xaa   : > { %v1366_v43 = vsel %vm6467_vm4, %v1361_v35, %v1365_v8  ;;  %v1399_v50 = vrot.slane %v1397_v41, 5  ;;  %v6289_v8 = vld [vmem:[%s6440_s20 + $0x18] sm:$0xff]   ;;  %v3909_v47 = vrot.slane %v3907_v62, 5  ;;  %v5250_v35 = vld [vmem:[%s6530_s27 + $0x30] sm:$0xf] }
  0xab   : > { %5721 = vmatmul.mubr.msk.bf16.gmra.mrb[12].mxu1 %vm460_vm1, %v4987_v27  ;;  %v1337_v27 = vrot.slane %v1336_v15, 4  ;;  %v1395_v34 = vrot.slane %v1394_v40, 4  ;;  %v6987_v15 = vrot.slane %v3913_v5, 5  ;;  %v5249_v41 = vld [vmem:[%s6530_s27 + $0x2c] sm:$0x1] }
  0xac   : > { %5873 = vmatmul.mubr.msk.bf16.gmra.mrb[28].mxu0 %vm460_vm1, %v6276_v59  ;;  %5724 = vmatprep.mubr.msk.bf16.mxu1 %vm460_vm1, %v4988_v36  ;;  %v1347_v59 = vrot.slane %v1346_v17, 4  ;;  %v1375_v36 = vrot.slane %v1373_v23, 5  ;;  %v3952_v23 = vshrl.u32 %v5247_v58, 16  ;;  %v5252_v5 = vld [vmem:[%s6530_s27 + $0x38] sm:$0x1] }
  0xad   : > { %5878 = vmatprep.mubr.msk.bf16.mxu0 %vm460_vm1, %v6277_v31  ;;  %v1380_v31 = vrot.slane %v1378_v9, 4  ;;  %v1342_v38 = vsel %vm6467_vm4, %v1337_v27, %v1341_v60  ;;  %v1400_v57 = vsel %vm6467_vm4, %v1395_v34, %v1399_v50  ;;  %v6285_v60 = vld [vmem:[%s6440_s20] sm:$0xff]  }
  0xae   : > { %v1352_v39 = vsel %vm6467_vm4, %v1347_v59, %v1351_v28  ;;  %v6290_v9 = vld [vmem:[%s6399_s10 + $0x84] sm:$0xff]   ;;  %v3961_v59 = vshll.u32 %v5248_v19, 16  ;;  %v3965_v28 = vshrl.u32 %v5248_v19, 16  ;;  %v3954_v16 = vrot.slane %v3952_v23, 4  ;;  %v6295_v34 = vld [vmem:[%s6440_s20 + $0x3c] sm:$0xff]  }
  0xaf   : > { %v1384_v42 = vor.u32 %v1383_v18, %v1380_v31  ;;  %v4993_v45 = vcombine.low %v1342_v38, %v1352_v39  ;;  %v6292_v31 = vld [vmem:[%s6399_s10 + $0x90] sm:$0xff]  }
  0xb0   : > { %v6293_v18 = vld [vmem:[%s6440_s20 + $0x30] sm:$0xff]  }
  0xb1   : > { %v1385_v49 = vrot.slane %v1384_v42, 4  ;;  %v5251_v39 = vld [vmem:[%s6530_s27 + $0x34] sm:$0xf] }
  0xb2   : > { %v3985_v50 = vshll.u32 %v5251_v39, 16 }
  0xb3   : > { %5725 = vmatmul.mubr.msk.bf16.gmra.mrb[16].mxu1 %vm460_vm1, %v4989_v6  ;;  %v1390_v55 = vsel %vm6467_vm4, %v1385_v49, %v1389_v32  ;;  %v3917_v6 = vshrl.u32 %v5242_v1, 16  ;;  %v3979_v49 = vshll.u32 %v5250_v35, 16 }
  0xb4   : > { %5879 = vmatmul.mubr.msk.bf16.vlgmr.msra.gmra.mrb[0].mxu0 %vm460_vm1, %v6278_v22  ;;  %5728 = vmatprep.mubr.msk.bf16.mxu1 %vm460_vm1, %v4990_v12  ;;  %v4995_v33 = vcombine.low %v1390_v55, %v1400_v57  ;;  %v3904_v22 = vshrl.u32 %v5241_v0, 16  ;;  %v5243_v12 = vld [vmem:[%s6530_s27 + $0x14] sm:$0x1]  ;;  %v6296_v55 = vld [vmem:[%s6399_s10 + $0xa8] sm:$0xff]  }
  0xb5   : > { %5911 = vmatpush3.bf16.msra.mxu0 %v6857_v56  ;;  %5882 = vmatprep.mubr.msk.bf16.mxu0 %vm460_vm1, %v6279_v10  ;;  %v1371_v56 = vrot.slane %v1370_v21, 4  ;;  %v5245_v10 = vld [vmem:[%s6530_s27 + $0x1c] sm:$0xf]  ;;  %v3919_v17 = vrot.slane %v3917_v6, 4  ;;  %v3923_v20 = vshll.u32 %v5243_v12, 16  ;;  %v3930_v21 = vrot.slane %v3928_v13, 4 }
  0xb6   : > { %v3937_v7 = vshll.u32 %v5245_v10, 16  ;;  %v3941_v14 = vshrl.u32 %v5245_v10, 16  ;;  %v3906_v63 = vrot.slane %v3904_v22, 4  ;;  %v6297_v57 = vld [vmem:[%s6440_s20 + $0x48] sm:$0xff]   ;;  %v3981_v10 = vrot.slane %v3979_v49, 5 }
  0xb7   : > { %v1376_v44 = vsel %vm6467_vm4, %v1371_v56, %v1375_v36  ;;  %v3920_v29 = vor.u32 %v3919_v17, %v6987_v15  ;;  %v3925_v56 = vrot.slane %v3923_v20, 5  ;;  %v5256_v17 = vld [vmem:[%s6530_s27 + $0x48] sm:$0xf]  ;;  %v5257_v20 = vld [vmem:[%s6530_s27 + $0x4c] sm:$0xf] }
  0xb8   : > { %v4994_v48 = vcombine.low %v1366_v43, %v1376_v44  ;;  %v3943_v27 = vrot.slane %v3941_v14, 4  ;;  %v3910_v32 = vor.u32 %v3909_v47, %v3906_v63  ;;  %v7005_v43 = vrot.slane %v3961_v59, 5 }
  0xb9   : > { %v3967_v44 = vrot.slane %v3965_v28, 4  ;;  %v4009_v14 = vshll.u32 %v5254_v53, 16  ;;  %v3995_v47 = vshll.u32 %v5252_v5, 16  ;;  %v4024_v59 = vshrl.u32 %v5256_v17, 16  ;;  %v5261_v5 = vld [vmem:[%s6530_s27 + $0x5c] sm:$0x1] }
  0xba   : > { %v4027_v28 = vshll.u32 %v5256_v17, 16  ;;  %v4067_v17 = vshll.u32 %v5261_v5, 16  ;;  %v5270_v5 = vld [vmem:[%s6530_s27 + $0x80] sm:$0x1] }
  0xbb   : > { %5729 = vmatmul.mubr.msk.bf16.gmra.mrb[20].mxu1 %vm460_vm1, %v4991_v25  ;;  %v3955_v25 = vshll.u32 %v5247_v58, 16  ;;  %v4013_v58 = vshrl.u32 %v5254_v53, 16  ;;  %v4026_v49 = vrot.slane %v4024_v59, 4 }
  0xbc   : > { %5883 = vmatmul.mubr.msk.bf16.gmra.mrb[4].mxu0 %vm460_vm1, %v6280_v26  ;;  %5732 = vmatprep.mubr.msk.bf16.mxu1 %vm460_vm1, %v4992_v11  ;;  %v5246_v26 = vld [vmem:[%s6530_s27 + $0x20] sm:$0x1]  ;;  %v6994_v11 = vrot.slane %v3937_v7, 5 }
  0xbd   : > { %5886 = vmatprep.mubr.msk.bf16.mxu0 %vm460_vm1, %v6281_v52  ;;  %v6294_v52 = vld [vmem:[%s6399_s10 + $0x9c] sm:$0xff]   ;;  %v3947_v36 = vshll.u32 %v5246_v26, 16  ;;  %v3957_v38 = vrot.slane %v3955_v25, 5  ;;  %v7040_v26 = vrot.slane %v4009_v14, 5 }
  0xbe   : > { %v3944_v40 = vor.u32 %v3943_v27, %v6994_v11  ;;  %v4015_v27 = vrot.slane %v4013_v58, 4 }
  0xc0   : > { %v7017_v1 = vrot.slane %v3944_v40, 4 }
  0xc3   : > { %5733 = vmatmul.mubr.msk.bf16.gmra.mrb[24].mxu1 %vm460_vm1, %v4993_v45  ;;  %v3911_v45 = vrot.slane %v3910_v32, 4  ;;  %v6301_v32 = vld [vmem:[%s6440_s20 + $0x60] sm:$0xff]  }
  0xc4   : > { %5887 = vmatmul.mubr.msk.bf16.gmra.mrb[8].mxu0 %vm460_vm1, %v6282_v30  ;;  %5736 = vmatprep.mubr.msk.bf16.mxu1 %vm460_vm1, %v4994_v48  ;;  %v3921_v30 = vrot.slane %v3920_v29, 4  ;;  %v3976_v48 = vshrl.u32 %v5250_v35, 16  ;;  %v7045_v29 = vrot.slane %v3995_v47, 5  ;;  %v4033_v35 = vshll.u32 %v5257_v20, 16 }
  0xc5   : > { %5890 = vmatprep.mubr.msk.bf16.mxu0 %vm460_vm1, %v6283_v37  ;;  %v3989_v37 = vshrl.u32 %v5251_v39, 16  ;;  %v3916_v22 = vsel %vm6467_vm4, %v3911_v45, %v6987_v15  ;;  %v5255_v15 = vld [vmem:[%s6530_s27 + $0x44] sm:$0x1] }
  0xc6   : > { %v3926_v62 = vsel %vm6467_vm4, %v3921_v30, %v3925_v56  ;;  %v3978_v6 = vrot.slane %v3976_v48, 4  ;;  %v4037_v56 = vshrl.u32 %v5257_v20, 16  ;;  %v5258_v48 = vld [vmem:[%s6530_s27 + $0x50] sm:$0x1] }
  0xc7   : > { %v5290_v19 = vcombine.low %v3916_v22, %v3926_v62  ;;  %v4043_v62 = vshll.u32 %v5258_v48, 16 }
  0xcb   : > { %5737 = vmatmul.mubr.msk.bf16.gmra.mrb[28].mxu1 %vm460_vm1, %v4995_v33  ;;  %v3958_v33 = vor.u32 %v3957_v38, %v3954_v16 }
  0xcc   : > { %5891 = vmatmul.mubr.msk.bf16.gmra.mrb[12].mxu0 %vm460_vm1, %v6284_v54  ;;  %5742 = vmatprep.mubr.msk.bf16.mxu1 %vm460_vm1, %v6285_v60  ;;  %v3971_v54 = vshll.u32 %v5249_v41, 16  ;;  %v5253_v60 = vld [vmem:[%s6530_s27 + $0x3c] sm:$0xf] }
  0xcd   : > { %5894 = vmatprep.mubr.msk.bf16.mxu0 %vm460_vm1, %v6286_v61  ;;  %v6298_v61 = vld [vmem:[%s6399_s10 + $0xb4] sm:$0xff]   ;;  %v4000_v12 = vshrl.u32 %v5253_v60, 16  ;;  %v4003_v13 = vshll.u32 %v5253_v60, 16 }
  0xce   : > { %v3973_v7 = vrot.slane %v3971_v54, 5 }
  0xcf   : > { %v4002_v23 = vrot.slane %v4000_v12, 4  ;;  %v4005_v25 = vrot.slane %v4003_v13, 5 }
  0xd1   : > { %v4006_v41 = vor.u32 %v4005_v25, %v4002_v23 }
  0xd3   : > { %5743 = vmatmul.mubr.msk.bf16.vlgmr.msra.gmra.mrb[0].mxu1 %vm460_vm1, %v6287_v2  ;;  %v7019_v2 = vrot.slane %v3947_v36, 5  ;;  %v4007_v53 = vrot.slane %v4006_v41, 4 }
  0xd4   : > { %5945 = vmatpush3.bf16.msra.mxu1 %v6379_v3  ;;  %5895 = vmatmul.mubr.msk.bf16.gmra.mrb[16].mxu0 %vm460_vm1, %v6288_v4  ;;  %v3933_v3 = vrot.slane %v3931_v24, 5  ;;  %v3968_v4 = vor.u32 %v3967_v44, %v7005_v43  ;;  %v3959_v24 = vrot.slane %v3958_v33, 4 }
  0xd5   : > { %5746 = vmatprep.mubr.msk.bf16.mxu1 %vm460_vm1, %v6289_v8  ;;  %5898 = vmatprep.mubr.msk.bf16.mxu0 %vm460_vm1, %v6290_v9  ;;  %v7029_v8 = vrot.slane %v3985_v50, 5  ;;  %v3991_v9 = vrot.slane %v3989_v37, 4  ;;  %v3950_v16 = vsel %vm6467_vm4, %v7017_v1, %v7019_v2  ;;  %v4039_v50 = vrot.slane %v4037_v56, 4  ;;  %v5262_v1 = vld [vmem:[%s6530_s27 + $0x60] sm:$0xf] }
  0xd6   : > { %v3934_v42 = vor.u32 %v3933_v3, %v3930_v21  ;;  %v3969_v63 = vrot.slane %v3968_v4, 4  ;;  %v3982_v21 = vor.u32 %v3981_v10, %v3978_v6  ;;  %v3964_v38 = vsel %vm6467_vm4, %v3959_v24, %v7005_v43  ;;  %v5263_v2 = vld [vmem:[%s6530_s27 + $0x64] sm:$0xf]  ;;  %v5265_v6 = vld [vmem:[%s6530_s27 + $0x6c] sm:$0xf] }
  0xd7   : > { %v3992_v3 = vor.u32 %v3991_v9, %v7029_v8  ;;  %v7068_v43 = vrot.slane %v4033_v35, 5  ;;  %v6302_v10 = vld [vmem:[%s6440_s20 + $0x6c] sm:$0xff]   ;;  %v4072_v14 = vshrl.u32 %v5262_v1, 16  ;;  %v4075_v58 = vshll.u32 %v5262_v1, 16  ;;  %v5269_v35 = vld [vmem:[%s6530_s27 + $0x7c] sm:$0xf] }
  0xd8   : > { %v7015_v0 = vrot.slane %v3934_v42, 4  ;;  %v3974_v39 = vsel %vm6467_vm4, %v3969_v63, %v3973_v7  ;;  %v5260_v42 = vld [vmem:[%s6530_s27 + $0x58] sm:$0xf]  ;;  %v7061_v40 = vrot.slane %v3982_v21, 4  ;;  %v5266_v24 = vld [vmem:[%s6530_s27 + $0x70] sm:$0xf] }
  0xd9   : > { %v7063_v30 = vrot.slane %v3992_v3, 4  ;;  %v4057_v37 = vshll.u32 %v5260_v42, 16  ;;  %v5292_v54 = vcombine.low %v3964_v38, %v3974_v39  ;;  %v6303_v7 = vld [vmem:[%s6440_s20 + $0x78] sm:$0xff]   ;;  %v4081_v63 = vshll.u32 %v5263_v2, 16  ;;  %v6304_v39 = vld [vmem:[%s6440_s20 + $0x84] sm:$0xff]  }
  0xda   : > { %v3940_v36 = vsel %vm6467_vm4, %v7015_v0, %v6994_v11  ;;  %v4016_v11 = vor.u32 %v4015_v27, %v7040_v26  ;;  %v3988_v60 = vsel %vm6467_vm4, %v7061_v40, %v7029_v8  ;;  %v4040_v8 = vor.u32 %v4039_v50, %v7068_v43  ;;  %v6305_v50 = vld [vmem:[%s6440_s20 + $0x90] sm:$0xff]  }
  0xdb   : > { %5747 = vmatmul.mubr.msk.bf16.gmra.mrb[4].mxu1 %vm460_vm1, %v6291_v46  ;;  %v6299_v46 = vld [vmem:[%s6440_s20 + $0x54] sm:$0xff]   ;;  %v3998_v4 = vsel %vm6467_vm4, %v7063_v30, %v7045_v29  ;;  %v7089_v12 = vrot.slane %v4057_v37, 5  ;;  %v4085_v47 = vshrl.u32 %v5263_v2, 16  ;;  %v4099_v20 = vshll.u32 %v5265_v6, 16 }
  0xdc   : > { %5899 = vmatmul.mubr.msk.bf16.gmra.mrb[20].mxu0 %vm460_vm1, %v6292_v31  ;;  %5750 = vmatprep.mubr.msk.bf16.mxu1 %vm460_vm1, %v6293_v18  ;;  %v5259_v31 = vld [vmem:[%s6530_s27 + $0x54] sm:$0xf]  ;;  %v6300_v18 = vld [vmem:[%s6399_s10 + $0xc0] sm:$0xff]   ;;  %v4017_v9 = vrot.slane %v4016_v11, 4  ;;  %v7096_v21 = vrot.slane %v4043_v62, 5  ;;  %v4105_v3 = vshll.u32 %v5266_v24, 16 }
  0xdd   : > { %5902 = vmatprep.mubr.msk.bf16.mxu0 %vm460_vm1, %v6294_v52  ;;  %v4019_v52 = vshll.u32 %v5255_v15, 16  ;;  %v4048_v44 = vshrl.u32 %v5259_v31, 16  ;;  %v4051_v45 = vshll.u32 %v5259_v31, 16  ;;  %v4109_v23 = vshrl.u32 %v5266_v24, 16  ;;  %v5264_v31 = vld [vmem:[%s6530_s27 + $0x68] sm:$0x1] }
  0xde   : > { %v7104_v59 = vrot.slane %v4040_v8, 4  ;;  %v7111_v29 = vrot.slane %v4081_v63, 5  ;;  %v4101_v38 = vrot.slane %v4099_v20, 5  ;;  %v4091_v30 = vshll.u32 %v5264_v31, 16  ;;  %v5267_v11 = vld [vmem:[%s6530_s27 + $0x74] sm:$0x1] }
  0xdf   : > { %v7072_v33 = vrot.slane %v4019_v52, 5  ;;  %v4053_v0 = vrot.slane %v4051_v45, 5  ;;  %v4087_v52 = vrot.slane %v4085_v47, 4  ;;  %v4111_v40 = vrot.slane %v4109_v23, 4  ;;  %v5273_v23 = vld [vmem:[%s6530_s27 + $0x8c] sm:$0x1] }
  0xe0   : > { %v4129_v48 = vshll.u32 %v5269_v35, 16  ;;  %v4115_v2 = vshll.u32 %v5267_v11, 16  ;;  %v4093_v62 = vrot.slane %v4091_v30, 5  ;;  %v5275_v31 = vld [vmem:[%s6530_s27 + $0x94] sm:$0xf] }
  0xe1   : > { %v4022_v25 = vsel %vm6467_vm4, %v4017_v9, %v7072_v33 }
  0xe2   : > { %v4117_v63 = vrot.slane %v4115_v2, 5 }
  0xe3   : > { %5751 = vmatmul.mubr.msk.bf16.gmra.mrb[8].mxu1 %vm460_vm1, %v6295_v34  ;;  %v4029_v34 = vrot.slane %v4027_v28, 5 }
  0xe4   : > { %5903 = vmatmul.mubr.msk.bf16.gmra.mrb[24].mxu0 %vm460_vm1, %v6296_v55  ;;  %5754 = vmatprep.mubr.msk.bf16.mxu1 %vm460_vm1, %v6297_v57  ;;  %v4061_v55 = vshrl.u32 %v5260_v42, 16  ;;  %v5291_v57 = vcombine.low %v3940_v36, %v3950_v16  ;;  %v4069_v36 = vrot.slane %v4067_v17, 5  ;;  %v7116_v42 = vrot.slane %v4105_v3, 5  ;;  %v5274_v17 = vld [vmem:[%s6530_s27 + $0x90] sm:$0xf] }
  0xe5   : > { %5906 = vmatprep.mubr.msk.bf16.mxu0 %vm460_vm1, %v6298_v61  ;;  %v4050_v61 = vrot.slane %v4048_v44, 4  ;;  %v4030_v22 = vor.u32 %v4029_v34, %v4026_v49  ;;  %v4133_v49 = vshrl.u32 %v5269_v35, 16  ;;  %v5293_v34 = vcombine.low %v3988_v60, %v3998_v4 }
  0xe6   : > { %v4063_v13 = vrot.slane %v4061_v55, 4  ;;  %v4112_v1 = vor.u32 %v4111_v40, %v7116_v42  ;;  %v4171_v35 = vshll.u32 %v5274_v17, 16  ;;  %v4163_v40 = vshll.u32 %v5273_v23, 16 }
  0xe7   : > { %v4054_v15 = vor.u32 %v4053_v0, %v4050_v61  ;;  %v7102_v27 = vrot.slane %v4030_v22, 4  ;;  %v5271_v0 = vld [vmem:[%s6530_s27 + $0x84] sm:$0xf]  ;;  %v5272_v22 = vld [vmem:[%s6530_s27 + $0x88] sm:$0xf] }
  0xe8   : > { %v4064_v28 = vor.u32 %v4063_v13, %v7089_v12  ;;  %v4147_v13 = vshll.u32 %v5271_v0, 16 }
  0xe9   : > { %v4055_v56 = vrot.slane %v4054_v15, 4  ;;  %v4036_v33 = vsel %vm6467_vm4, %v7102_v27, %v7068_v43  ;;  %v4139_v15 = vshll.u32 %v5270_v5, 16  ;;  %v5280_v5 = vld [vmem:[%s6530_s27 + $0xa8] sm:$0xf] }
  0xea   : > { %v4065_v45 = vrot.slane %v4064_v28, 4  ;;  %v4149_v28 = vrot.slane %v4147_v13, 5 }
  0xeb   : > { %5755 = vmatmul.mubr.msk.bf16.gmra.mrb[12].mxu1 %vm460_vm1, %v6299_v46  ;;  %v4012_v46 = vsel %vm6467_vm4, %v4007_v53, %v7040_v26  ;;  %v5268_v26 = vld [vmem:[%s6530_s27 + $0x78] sm:$0xf]  ;;  %v4060_v60 = vsel %vm6467_vm4, %v4055_v56, %v7089_v12  ;;  %v4144_v12 = vshrl.u32 %v5271_v0, 16  ;;  %v5278_v56 = vld [vmem:[%s6530_s27 + $0xa0] sm:$0xf]  ;;  %v4165_v0 = vrot.slane %v4163_v40, 5 }
  0xec   : > { %5907 = vmatmul.mubr.msk.bf16.gmra.mrb[28].mxu0 %vm460_vm1, %v6300_v18  ;;  %5758 = vmatprep.mubr.msk.bf16.mxu1 %vm460_vm1, %v6301_v32  ;;  %v4074_v18 = vrot.slane %v4072_v14, 4  ;;  %v4077_v32 = vrot.slane %v4075_v58, 5  ;;  %v4120_v41 = vshrl.u32 %v5268_v26, 16  ;;  %v4123_v44 = vshll.u32 %v5268_v26, 16  ;;  %v5277_v26 = vld [vmem:[%s6530_s27 + $0x9c] sm:$0xf] }
  0xed   : > { %5912 = vmatprep.mubr.msk.bf16.mxu0 %vm460_vm1, %v5290_v19  ;;  %v4096_v19 = vshrl.u32 %v5265_v6, 16  ;;  %v5294_v37 = vcombine.low %v4012_v46, %v4022_v25  ;;  %v4070_v43 = vsel %vm6467_vm4, %v4065_v45, %v4069_v36  ;;  %v7139_v6 = vrot.slane %v4129_v48, 5  ;;  %v6307_v46 = vld [vmem:[%s6440_s20 + $0xa8] sm:$0xff]   ;;  %v5286_v40 = vld [vmem:[%s6530_s27 + $0xc0] sm:$0xf] }
  0xee   : > { %v4078_v55 = vor.u32 %v4077_v32, %v4074_v18  ;;  %v4122_v4 = vrot.slane %v4120_v41, 4  ;;  %v4125_v53 = vrot.slane %v4123_v44, 5  ;;  %v4157_v14 = vshrl.u32 %v5272_v22, 16 }
  0xef   : > { %v4098_v16 = vrot.slane %v4096_v19, 4  ;;  %v4113_v58 = vrot.slane %v4112_v1, 4  ;;  %v6306_v19 = vld [vmem:[%s6440_s20 + $0x9c] sm:$0xff]   ;;  %v4177_v41 = vshll.u32 %v5275_v31, 16  ;;  %v4181_v44 = vshrl.u32 %v5275_v31, 16  ;;  %v6310_v31 = vld [vmem:[%s6406_s13 + $0x6c] sm:$0xff]  }
  0xf0   : > { %v4079_v9 = vrot.slane %v4078_v55, 4  ;;  %v4126_v47 = vor.u32 %v4125_v53, %v4122_v4  ;;  %v4159_v32 = vrot.slane %v4157_v14, 4  ;;  %v4192_v45 = vshrl.u32 %v5277_v26, 16  ;;  %v5279_v4 = vld [vmem:[%s6530_s27 + $0xa4] sm:$0x1] }
  0xf1   : > { %v4102_v61 = vor.u32 %v4101_v38, %v4098_v16  ;;  %v4141_v38 = vrot.slane %v4139_v15, 5  ;;  %v4201_v30 = vshll.u32 %v5278_v56, 16  ;;  %v4205_v11 = vshrl.u32 %v5278_v56, 16  ;;  %v6311_v56 = vld [vmem:[%s6406_s13 + $0x78] sm:$0xff]  }
  0xf2   : > { %v4084_v25 = vsel %vm6467_vm4, %v4079_v9, %v7111_v29  ;;  %v4127_v16 = vrot.slane %v4126_v47, 4  ;;  %v7177_v1 = vrot.slane %v4177_v41, 5  ;;  %v4183_v2 = vrot.slane %v4181_v44, 4  ;;  %v5284_v47 = vld [vmem:[%s6530_s27 + $0xb8] sm:$0xf] }
  0xf3   : > { %5759 = vmatmul.mubr.msk.bf16.gmra.mrb[16].mxu1 %vm460_vm1, %v6302_v10  ;;  %v4135_v10 = vrot.slane %v4133_v49, 4  ;;  %v4103_v24 = vrot.slane %v4102_v61, 4  ;;  %v4194_v53 = vrot.slane %v4192_v45, 4  ;;  %v4211_v14 = vshll.u32 %v5279_v4, 16  ;;  %v6312_v4 = vld [vmem:[%s6406_s13 + $0x84] sm:$0xff]  }
  0xf4   : > { %5913 = vmatmul.mubr.msk.bf16.vlgmr.msra.gmra.mrb[0].mxu0 %vm460_vm1, %v5291_v57  ;;  %5762 = vmatprep.mubr.msk.bf16.mxu1 %vm460_vm1, %v6303_v7  ;;  %v4088_v57 = vor.u32 %v4087_v52, %v7111_v29  ;;  %v4153_v7 = vshll.u32 %v5272_v22, 16  ;;  %v4168_v52 = vshrl.u32 %v5274_v17, 16  ;;  %v4118_v29 = vsel %vm6467_vm4, %v4113_v58, %v4117_v63 }
  0xf5   : > { %5916 = vmatprep.mubr.msk.bf16.mxu0 %vm460_vm1, %v5292_v54  ;;  %v4046_v54 = vsel %vm6467_vm4, %v7104_v59, %v7096_v21  ;;  %v5296_v21 = vcombine.low %v4060_v60, %v4070_v43  ;;  %v4136_v3 = vor.u32 %v4135_v10, %v7139_v6  ;;  %v4146_v59 = vrot.slane %v4144_v12, 4  ;;  %v6309_v60 = vld [vmem:[%s6406_s13 + $0x60] sm:$0xff]   ;;  %v5281_v12 = vld [vmem:[%s6530_s27 + $0xac] sm:$0xf] }
  0xf6   : > { %v4089_v8 = vrot.slane %v4088_v57, 4  ;;  %v5295_v20 = vcombine.low %v4036_v33, %v4046_v54  ;;  %v7156_v18 = vrot.slane %v4153_v7, 5  ;;  %v4108_v36 = vsel %vm6467_vm4, %v4103_v24, %v7116_v42  ;;  %v5276_v54 = vld [vmem:[%s6530_s27 + $0x98] sm:$0x1]  ;;  %v5283_v24 = vld [vmem:[%s6530_s27 + $0xb4] sm:$0xf] }
  0xf7   : > { %v4195_v42 = vshll.u32 %v5277_v26, 16  ;;  %v4150_v48 = vor.u32 %v4149_v28, %v4146_v59  ;;  %v5298_v57 = vcombine.low %v4108_v36, %v4118_v29  ;;  %v4132_v33 = vsel %vm6467_vm4, %v4127_v16, %v7139_v6 }
  0xf8   : > { %v4094_v27 = vsel %vm6467_vm4, %v4089_v8, %v4093_v62  ;;  %v4160_v49 = vor.u32 %v4159_v32, %v7156_v18  ;;  %v7180_v43 = vrot.slane %v4201_v30, 5  ;;  %v4207_v62 = vrot.slane %v4205_v11, 4  ;;  %v5287_v30 = vld [vmem:[%s6530_s27 + $0xc4] sm:$0xf] }
  0xf9   : > { %v5297_v55 = vcombine.low %v4084_v25, %v4094_v27  ;;  %v4197_v22 = vrot.slane %v4195_v42, 5  ;;  %v4151_v6 = vrot.slane %v4150_v48, 4  ;;  %v4187_v8 = vshll.u32 %v5276_v54, 16 }
  0xfa   : > { %v4161_v10 = vrot.slane %v4160_v49, 4  ;;  %v4184_v7 = vor.u32 %v4183_v2, %v7177_v1  ;;  %v4216_v58 = vshrl.u32 %v5280_v5, 16  ;;  %v4219_v63 = vshll.u32 %v5280_v5, 16 }
  0xfb   : > { %5763 = vmatmul.mubr.msk.bf16.gmra.mrb[20].mxu1 %vm460_vm1, %v6304_v39  ;;  %v4137_v39 = vrot.slane %v4136_v3, 4  ;;  %v4198_v15 = vor.u32 %v4197_v22, %v4194_v53  ;;  %v4208_v17 = vor.u32 %v4207_v62, %v7180_v43  ;;  %v4189_v23 = vrot.slane %v4187_v8, 5  ;;  %v6313_v22 = vld [vmem:[%s6406_s13 + $0x90] sm:$0xff]  }
  0xfc   : > { %5917 = vmatmul.mubr.msk.bf16.gmra.mrb[4].mxu0 %vm460_vm1, %v5293_v34  ;;  %5766 = vmatprep.mubr.msk.bf16.mxu1 %vm460_vm1, %v6305_v50  ;;  %v4170_v34 = vrot.slane %v4168_v52, 4  ;;  %v4173_v50 = vrot.slane %v4171_v35, 5  ;;  %v4240_v25 = vshrl.u32 %v5283_v24, 16  ;;  %v4243_v27 = vshll.u32 %v5283_v24, 16 }
  0xfd   : > { %5920 = vmatprep.mubr.msk.bf16.mxu0 %vm460_vm1, %v5294_v37  ;;  %v6308_v37 = vld [vmem:[%s6440_s20 + $0xb4] sm:$0xff]   ;;  %v4142_v61 = vsel %vm6467_vm4, %v4137_v39, %v4141_v38  ;;  %v4249_v59 = vshll.u32 %v5284_v47, 16  ;;  %v4253_v28 = vshrl.u32 %v5284_v47, 16  ;;  %v4185_v26 = vrot.slane %v4184_v7, 4  ;;  %v5282_v39 = vld [vmem:[%s6530_s27 + $0xb0] sm:$0x1] }
  0xfe   : > { %v4174_v9 = vor.u32 %v4173_v50, %v4170_v34  ;;  %v5299_v13 = vcombine.low %v4132_v33, %v4142_v61  ;;  %v4213_v32 = vrot.slane %v4211_v14, 5  ;;  %v4218_v52 = vrot.slane %v4216_v58, 4  ;;  %v5285_v34 = vld [vmem:[%s6530_s27 + $0xbc] sm:$0x1]  ;;  %v5288_v14 = vld [vmem:[%s6530_s27 + $0xc8] sm:$0x1] }
  0xff   : > { %v4221_v35 = vrot.slane %v4219_v63, 5  ;;  %v4199_v36 = vrot.slane %v4198_v15, 4  ;;  %v4242_v41 = vrot.slane %v4240_v25, 4  ;;  %v4245_v44 = vrot.slane %v4243_v27, 5 }
 0x100   : > { %v4175_v3 = vrot.slane %v4174_v9, 4  ;;  %v4251_v45 = vrot.slane %v4249_v59, 5  ;;  %v4255_v42 = vrot.slane %v4253_v28, 4  ;;  %v4190_v48 = vsel %vm6467_vm4, %v4185_v26, %v4189_v23  ;;  %v6316_v26 = vld [vmem:[%s6406_s13 + $0xb4] sm:$0xff]  }
 0x101   : > { %v4222_v49 = vor.u32 %v4221_v35, %v4218_v52  ;;  %v4204_v50 = vsel %vm6467_vm4, %v4199_v36, %v7180_v43  ;;  %v4264_v33 = vshrl.u32 %v5286_v40, 16  ;;  %v4267_v54 = vshll.u32 %v5286_v40, 16 }
 0x102   : > { %v4180_v11 = vsel %vm6467_vm4, %v4175_v3, %v7177_v1  ;;  %v4277_v61 = vshrl.u32 %v5287_v30, 16  ;;  %v4256_v1 = vor.u32 %v4255_v42, %v4251_v45  ;;  %v4259_v2 = vshll.u32 %v5285_v34, 16  ;;  %v6315_v3 = vld [vmem:[%s6406_s13 + $0xa8] sm:$0xff]  }
 0x103   : > { %5767 = vmatmul.mubr.msk.bf16.gmra.mrb[24].mxu1 %vm460_vm1, %v6306_v19  ;;  %v4225_v19 = vshll.u32 %v5281_v12, 16  ;;  %v5301_v53 = vcombine.low %v4180_v11, %v4190_v48  ;;  %v4223_v43 = vrot.slane %v4222_v49, 4  ;;  %v4269_v9 = vrot.slane %v4267_v54, 5  ;;  %v7256_v48 = vld [vmem:[%s7324_s5] ss:$0 sm:$0xff] }
 0x104   : > { %5921 = vmatmul.mubr.msk.bf16.gmra.mrb[8].mxu0 %vm460_vm1, %v5295_v20  ;;  %5770 = vmatprep.mubr.msk.bf16.mxu1 %vm460_vm1, %v6307_v46  ;;  %v4229_v20 = vshrl.u32 %v5281_v12, 16  ;;  %v4156_v46 = vsel %vm6467_vm4, %v4151_v6, %v7156_v18  ;;  %v4209_v18 = vrot.slane %v4208_v17, 4  ;;  %v4279_v12 = vrot.slane %v4277_v61, 4 }
 0x105   : > { %5924 = vmatprep.mubr.msk.bf16.mxu0 %vm460_vm1, %v5296_v21  ;;  %v4166_v21 = vsel %vm6467_vm4, %v4161_v10, %v4165_v0  ;;  %v4227_v29 = vrot.slane %v4225_v19, 5  ;;  %v4246_v0 = vor.u32 %v4245_v44, %v4242_v41  ;;  %v4266_v10 = vrot.slane %v4264_v33, 4 }
 0x106   : > { %v4231_v16 = vrot.slane %v4229_v20, 4  ;;  %v5300_v38 = vcombine.low %v4156_v46, %v4166_v21  ;;  %v4257_v24 = vrot.slane %v4256_v1, 4  ;;  %v4261_v7 = vrot.slane %v4259_v2, 5  ;;  %v6314_v46 = vld [vmem:[%s6406_s13 + $0x9c] sm:$0xff]  }
 0x107   : > { %v4228_v58 = vsel %vm6467_vm4, %v4223_v43, %v4227_v29  ;;  %v4270_v47 = vor.u32 %v4269_v9, %v4266_v10  ;;  %v4283_v17 = vshll.u32 %v5288_v14, 16 }
 0x108   : > { %v4262_v20 = vsel %vm6467_vm4, %v4257_v24, %v4261_v7 }
 0x109   : > { %v4271_v25 = vrot.slane %v4270_v47, 4  ;;  %v4285_v59 = vrot.slane %v4283_v17, 5 }
 0x10b   : > { %5771 = vmatmul.mubr.msk.bf16.gmra.mrb[28].mxu1 %vm460_vm1, %v6308_v37  ;;  %v4214_v37 = vsel %vm6467_vm4, %v4209_v18, %v4213_v32 }
 0x10c   : > { %5925 = vmatmul.mubr.msk.bf16.gmra.mrb[12].mxu0 %vm460_vm1, %v5297_v55  ;;  %5792 = vmatprep.mubr.msk.bf16.mxu1 %vm460_vm1, %v6309_v60  ;;  %v4232_v55 = vor.u32 %v4231_v16, %v4227_v29  ;;  %v4273_v60 = vshll.u32 %v5287_v30, 16  ;;  %v5302_v62 = vcombine.low %v4204_v50, %v4214_v37 }
 0x10d   : > { %5928 = vmatprep.mubr.msk.bf16.mxu0 %vm460_vm1, %v5298_v57  ;;  %v4235_v57 = vshll.u32 %v5282_v39, 16 }
 0x10e   : > { %v4233_v5 = vrot.slane %v4232_v55, 4  ;;  %v4275_v8 = vrot.slane %v4273_v60, 5 }
 0x10f   : > { %v4237_v6 = vrot.slane %v4235_v57, 5 }
 0x110   : > { %v4280_v15 = vor.u32 %v4279_v12, %v4275_v8  ;;  %v4276_v28 = vsel %vm6467_vm4, %v4271_v25, %v4275_v8 }
 0x111   : > { %v4238_v63 = vsel %vm6467_vm4, %v4233_v5, %v4237_v6 }
 0x112   : > { %v5303_v21 = vcombine.low %v4228_v58, %v4238_v63  ;;  %v4281_v27 = vrot.slane %v4280_v15, 4 }
 0x113   : > { %5793 = vmatmul.mubr.msk.bf16.vlgmr.msra.gmra.mrb[16].mxu1 %vm460_vm1, %v6310_v31 }
 0x114   : > { %5929 = vmatmul.mubr.msk.bf16.gmra.mrb[16].mxu0 %vm460_vm1, %v5299_v13  ;;  %5796 = vmatprep.mubr.msk.bf16.mxu1 %vm460_vm1, %v6311_v56  ;;  %v4247_v13 = vrot.slane %v4246_v0, 4  ;;  %v4286_v31 = vsel %vm6467_vm4, %v4281_v27, %v4285_v59 }
 0x115   : > { %5932 = vmatprep.mubr.msk.bf16.mxu0 %vm460_vm1, %v5300_v38  ;;  %v5305_v32 = vcombine.low %v4276_v28, %v4286_v31 }
 0x116   : > { %v4252_v19 = vsel %vm6467_vm4, %v4247_v13, %v4251_v45 }
 0x117   : > { %v5304_v23 = vcombine.low %v4252_v19, %v4262_v20 }
 0x11b   : > { %5797 = vmatmul.mubr.msk.bf16.gmra.mrb[20].mxu1 %vm460_vm1, %v6312_v4 }
 0x11c   : > { %5933 = vmatmul.mubr.msk.bf16.gmra.mrb[20].mxu0 %vm460_vm1, %v5301_v53  ;;  %5800 = vmatprep.mubr.msk.bf16.mxu1 %vm460_vm1, %v6313_v22 }
 0x11d   : > { %5936 = vmatprep.mubr.msk.bf16.mxu0 %vm460_vm1, %v5302_v62 }
 0x123   : > { %5801 = vmatmul.mubr.msk.bf16.gmra.mrb[24].mxu1 %vm460_vm1, %v6314_v46 }
 0x124   : > { %5937 = vmatmul.mubr.msk.bf16.gmra.mrb[24].mxu0 %vm460_vm1, %v5303_v21  ;;  %5804 = vmatprep.mubr.msk.bf16.mxu1 %vm460_vm1, %v6315_v3 }
 0x125   : > { %5940 = vmatprep.mubr.msk.bf16.mxu0 %vm460_vm1, %v5304_v23 }
 0x12b   : > { %5805 = vmatmul.mubr.msk.bf16.gmra.mrb[28].mxu1 %vm460_vm1, %v6316_v26 }
 0x12c   : > { %5941 = vmatmul.mubr.msk.bf16.gmra.mrb[28].mxu0 %vm460_vm1, %v5305_v32 }
 0x1a6   : > { %v5744_v52 = vpop.f32.mrb[0].mxu1 }
 0x1a7   : > { %v1894_v35 = vpop.f32.mrb[1].mxu1 }
 0x1a8   : > { %v5745_v56 = vpop.f32.mrb[2].mxu1 }
 0x1a9   : > { %v1897_v36 = vpop.f32.mrb[3].mxu1 }
 0x1ae   : > { %v5748_v18 = vpop.f32.mrb[4].mxu1 }
 0x1af   : > { %v1910_v29 = vpop.f32.mrb[5].mxu1 }
 0x1b0   : > { %v5749_v16 = vpop.f32.mrb[6].mxu1 }
 0x1b1   : > { %v1913_v38 = vpop.f32.mrb[7].mxu1 }
 0x1b6   : > { %v5752_v39 = vpop.f32.mrb[8].mxu1 }
 0x1b7   : > { %v1926_v40 = vpop.f32.mrb[9].mxu1 }
 0x1b8   : > { %v5753_v41 = vpop.f32.mrb[10].mxu1 }
 0x1b9   : > { %v1929_v44 = vpop.f32.mrb[11].mxu1 }
 0x1be   : > { %v7245_v51 = vpop.f32.mrb[12].mxu1 }
 0x1bf   : > { %v7247_v45 = vpop.f32.mrb[13].mxu1 }
 0x1c0   : > { %v7249_v42 = vpop.f32.mrb[14].mxu1 }
 0x1c1   : > { %v7251_v30 = vpop.f32.mrb[15].mxu1 }
 0x1c7   : > { %v5914_v11 = vpop.f32.mrb[0].mxu0 }
 0x1c8   : > { %v5946_v49 = vadd.f32 %v5914_v11, %v5744_v52  ;;  %v4422_v34 = vpop.f32.mrb[1].mxu0 }
 0x1c9   : > { %v5947_v50 = vadd.f32 %v4422_v34, %v1894_v35  ;;  %v5915_v37 = vpop.f32.mrb[2].mxu0 }
 0x1ca   : > { %v4590_v55 = vadd.f32 %v5946_v49, %v7256_v48  ;;  %v5948_v57 = vadd.f32 %v5915_v37, %v5745_v56  ;;  %v4425_v33 = vpop.f32.mrb[3].mxu0 }
 0x1cb   : > { %v4588_v54 = vadd.f32 %v5947_v50, %v7256_v48  ;;  %v5949_v60 = vadd.f32 %v4425_v33, %v1897_v36 }
 0x1cc   : > { %v4591_v61 = vadd.f32 %v5948_v57, %v7256_v48  ;;  %v4622_v1 = vmax.f32 %v4590_v55, 0.0 }
 0x1cd   : > { %v4589_v0 = vadd.f32 %v5949_v60, %v7256_v48  ;;  %v4620_v4 = vmax.f32 %v4588_v54, 0.0 }
 0x1ce   : > { %v4623_v2 = vmax.f32 %v4591_v61, 0.0 }
 0x1cf   : > { %v4621_v53 = vmax.f32 %v4589_v0, 0.0  ;;  %v5918_v22 = vpop.f32.mrb[4].mxu0 }
 0x1d0   : > { %v5398_v62 = vpack.c.bf16 %v4623_v2, %v4622_v1  ;;  %v5950_v43 = vadd.f32 %v5918_v22, %v5748_v18  ;;  %v4438_v5 = vpop.f32.mrb[5].mxu0 }
 0x1d1   : > { %v5393_v6 = vpack.c.bf16 %v4621_v53, %v4620_v4  ;;  %v5951_v10 = vadd.f32 %v4438_v5, %v1910_v29  ;;  %v5919_v9 = vpop.f32.mrb[6].mxu0 }
 0x1d2   : > { %5470 = vst [vmem:[%s7266_s15 + $0x8] sm:$0xff] %v5398_v62   ;;  %v4594_v8 = vadd.f32 %v5950_v43, %v7256_v48  ;;  %v5952_v12 = vadd.f32 %v5919_v9, %v5749_v16  ;;  %v4441_v13 = vpop.f32.mrb[7].mxu0 }
 0x1d3   : > { %5394 = vst [vmem:[%s7266_s15] sm:$0xff] %v5393_v6   ;;  %v4592_v24 = vadd.f32 %v5951_v10, %v7256_v48  ;;  %v5953_v7 = vadd.f32 %v4441_v13, %v1913_v38 }
 0x1d4   : > { %v4595_v14 = vadd.f32 %v5952_v12, %v7256_v48  ;;  %v4626_v63 = vmax.f32 %v4594_v8, 0.0 }
 0x1d5   : > { %v4593_v58 = vadd.f32 %v5953_v7, %v7256_v48  ;;  %v4624_v15 = vmax.f32 %v4592_v24, 0.0 }
 0x1d6   : > { %v4627_v47 = vmax.f32 %v4595_v14, 0.0 }
 0x1d7   : > { %v4625_v17 = vmax.f32 %v4593_v58, 0.0  ;;  %v5922_v19 = vpop.f32.mrb[8].mxu0 }
 0x1d8   : > { %v5408_v20 = vpack.c.bf16 %v4627_v47, %v4626_v63  ;;  %v5954_v46 = vadd.f32 %v5922_v19, %v5752_v39  ;;  %v4454_v21 = vpop.f32.mrb[9].mxu0 }
 0x1d9   : > { %v5403_v3 = vpack.c.bf16 %v4625_v17, %v4624_v15  ;;  %v5955_v23 = vadd.f32 %v4454_v21, %v1926_v40  ;;  %v5923_v25 = vpop.f32.mrb[10].mxu0 }
 0x1da   : > { %5472 = vst [vmem:[%s7266_s15 + $0x18] sm:$0xff] %v5408_v20   ;;  %v4598_v27 = vadd.f32 %v5954_v46, %v7256_v48  ;;  %v5956_v59 = vadd.f32 %v5923_v25, %v5753_v41  ;;  %v4457_v28 = vpop.f32.mrb[11].mxu0 }
 0x1db   : > { %5471 = vst [vmem:[%s7266_s15 + $0x10] sm:$0xff] %v5403_v3   ;;  %v4596_v31 = vadd.f32 %v5955_v23, %v7256_v48  ;;  %v5957_v26 = vadd.f32 %v4457_v28, %v1929_v44 }
 0x1dc   : > { %v4599_v32 = vadd.f32 %v5956_v59, %v7256_v48  ;;  %v4630_v35 = vmax.f32 %v4598_v27, 0.0 }
 0x1dd   : > { %v4597_v52 = vadd.f32 %v5957_v26, %v7256_v48  ;;  %v4628_v36 = vmax.f32 %v4596_v31, 0.0 }
 0x1de   : > { %v4631_v56 = vmax.f32 %v4599_v32, 0.0 }
 0x1df   : > { %v4629_v18 = vmax.f32 %v4597_v52, 0.0  ;;  %v5926_v29 = vpop.f32.mrb[12].mxu0 }
 0x1e0   : > { %v5418_v16 = vpack.c.bf16 %v4631_v56, %v4630_v35  ;;  %v5958_v38 = vadd.f32 %v5926_v29, %v7245_v51  ;;  %v4470_v39 = vpop.f32.mrb[13].mxu0 }
 0x1e1   : > { %v5413_v40 = vpack.c.bf16 %v4629_v18, %v4628_v36  ;;  %v5959_v41 = vadd.f32 %v4470_v39, %v7247_v45  ;;  %v5927_v11 = vpop.f32.mrb[14].mxu0 }
 0x1e2   : > { %5474 = vst [vmem:[%s7266_s15 + $0x28] sm:$0xff] %v5418_v16   ;;  %v4602_v44 = vadd.f32 %v5958_v38, %v7256_v48  ;;  %v5960_v49 = vadd.f32 %v5927_v11, %v7249_v42  ;;  %v4473_v34 = vpop.f32.mrb[15].mxu0 }
 0x1e3   : > { %5473 = vst [vmem:[%s7266_s15 + $0x20] sm:$0xff] %v5413_v40   ;;  %v4600_v50 = vadd.f32 %v5959_v41, %v7256_v48  ;;  %v5961_v37 = vadd.f32 %v4473_v34, %v7251_v30 }
 0x1e4   : > { %v4603_v55 = vadd.f32 %v5960_v49, %v7256_v48  ;;  %v4634_v57 = vmax.f32 %v4602_v44, 0.0 }
 0x1e5   : > { %v4601_v51 = vadd.f32 %v5961_v37, %v7256_v48  ;;  %v4632_v54 = vmax.f32 %v4600_v50, 0.0 }
 0x1e6   : > { %v4635_v33 = vmax.f32 %v4603_v55, 0.0  ;;  %v5794_v45 = vpop.f32.mrb[16].mxu1 }
 0x1e7   : > { %v4633_v60 = vmax.f32 %v4601_v51, 0.0  ;;  %v5930_v61 = vpop.f32.mrb[16].mxu0  ;;  %v2316_v0 = vpop.f32.mrb[17].mxu1 }
 0x1e8   : > { %v5428_v42 = vpack.c.bf16 %v4635_v33, %v4634_v57  ;;  %v5962_v1 = vadd.f32 %v5930_v61, %v5794_v45  ;;  %v4486_v2 = vpop.f32.mrb[17].mxu0  ;;  %v5795_v4 = vpop.f32.mrb[18].mxu1 }
 0x1e9   : > { %v5423_v53 = vpack.c.bf16 %v4633_v60, %v4632_v54  ;;  %v5963_v22 = vadd.f32 %v4486_v2, %v2316_v0  ;;  %v5931_v30 = vpop.f32.mrb[18].mxu0  ;;  %v2319_v62 = vpop.f32.mrb[19].mxu1 }
 0x1ea   : > { %5476 = vst [vmem:[%s7266_s15 + $0x38] sm:$0xff] %v5428_v42   ;;  %v4606_v43 = vadd.f32 %v5962_v1, %v7256_v48  ;;  %v5964_v5 = vadd.f32 %v5931_v30, %v5795_v4  ;;  %v4489_v6 = vpop.f32.mrb[19].mxu0 }
 0x1eb   : > { %5475 = vst [vmem:[%s7266_s15 + $0x30] sm:$0xff] %v5423_v53   ;;  %v4604_v10 = vadd.f32 %v5963_v22, %v7256_v48  ;;  %v5965_v9 = vadd.f32 %v4489_v6, %v2319_v62 }
 0x1ec   : > { %v4607_v8 = vadd.f32 %v5964_v5, %v7256_v48  ;;  %v4638_v13 = vmax.f32 %v4606_v43, 0.0 }
 0x1ed   : > { %v4605_v12 = vadd.f32 %v5965_v9, %v7256_v48  ;;  %v4636_v14 = vmax.f32 %v4604_v10, 0.0 }
 0x1ee   : > { %v4639_v24 = vmax.f32 %v4607_v8, 0.0  ;;  %v5798_v7 = vpop.f32.mrb[20].mxu1 }
 0x1ef   : > { %v4637_v58 = vmax.f32 %v4605_v12, 0.0  ;;  %v5934_v63 = vpop.f32.mrb[20].mxu0  ;;  %v2332_v47 = vpop.f32.mrb[21].mxu1 }
 0x1f0   : > { %v5438_v15 = vpack.c.bf16 %v4639_v24, %v4638_v13  ;;  %v5966_v17 = vadd.f32 %v5934_v63, %v5798_v7  ;;  %v4502_v19 = vpop.f32.mrb[21].mxu0  ;;  %v5799_v20 = vpop.f32.mrb[22].mxu1 }
 0x1f1   : > { %v5433_v46 = vpack.c.bf16 %v4637_v58, %v4636_v14  ;;  %v5967_v21 = vadd.f32 %v4502_v19, %v2332_v47  ;;  %v5935_v3 = vpop.f32.mrb[22].mxu0  ;;  %v2335_v23 = vpop.f32.mrb[23].mxu1 }
 0x1f2   : > { %5478 = vst [vmem:[%s7266_s15 + $0x48] sm:$0xff] %v5438_v15   ;;  %v4610_v25 = vadd.f32 %v5966_v17, %v7256_v48  ;;  %v5968_v27 = vadd.f32 %v5935_v3, %v5799_v20  ;;  %v4505_v59 = vpop.f32.mrb[23].mxu0 }
 0x1f3   : > { %5477 = vst [vmem:[%s7266_s15 + $0x40] sm:$0xff] %v5433_v46   ;;  %v4608_v28 = vadd.f32 %v5967_v21, %v7256_v48  ;;  %v5969_v31 = vadd.f32 %v4505_v59, %v2335_v23 }
 0x1f4   : > { %v4611_v26 = vadd.f32 %v5968_v27, %v7256_v48  ;;  %v4642_v52 = vmax.f32 %v4610_v25, 0.0 }
 0x1f5   : > { %v4609_v32 = vadd.f32 %v5969_v31, %v7256_v48  ;;  %v4640_v36 = vmax.f32 %v4608_v28, 0.0 }
 0x1f6   : > { %v4643_v35 = vmax.f32 %v4611_v26, 0.0  ;;  %v5802_v56 = vpop.f32.mrb[24].mxu1 }
 0x1f7   : > { %v4641_v18 = vmax.f32 %v4609_v32, 0.0  ;;  %v5938_v29 = vpop.f32.mrb[24].mxu0  ;;  %v2348_v16 = vpop.f32.mrb[25].mxu1 }
 0x1f8   : > { %v5448_v38 = vpack.c.bf16 %v4643_v35, %v4642_v52  ;;  %v5970_v39 = vadd.f32 %v5938_v29, %v5802_v56  ;;  %v4518_v40 = vpop.f32.mrb[25].mxu0  ;;  %v5803_v41 = vpop.f32.mrb[26].mxu1 }
 0x1f9   : > { %v5443_v11 = vpack.c.bf16 %v4641_v18, %v4640_v36  ;;  %v5971_v44 = vadd.f32 %v4518_v40, %v2348_v16  ;;  %v5939_v49 = vpop.f32.mrb[26].mxu0  ;;  %v2351_v34 = vpop.f32.mrb[27].mxu1 }
 0x1fa   : > { %5480 = vst [vmem:[%s7266_s15 + $0x58] sm:$0xff] %v5448_v38   ;;  %v4614_v50 = vadd.f32 %v5970_v39, %v7256_v48  ;;  %v5972_v37 = vadd.f32 %v5939_v49, %v5803_v41  ;;  %v4521_v55 = vpop.f32.mrb[27].mxu0 }
 0x1fb   : > { %5479 = vst [vmem:[%s7266_s15 + $0x50] sm:$0xff] %v5443_v11   ;;  %v4612_v51 = vadd.f32 %v5971_v44, %v7256_v48  ;;  %v5973_v57 = vadd.f32 %v4521_v55, %v2351_v34 }
 0x1fc   : > { %v4615_v33 = vadd.f32 %v5972_v37, %v7256_v48  ;;  %v4646_v54 = vmax.f32 %v4614_v50, 0.0 }
 0x1fd   : > { %v4613_v45 = vadd.f32 %v5973_v57, %v7256_v48  ;;  %v4644_v0 = vmax.f32 %v4612_v51, 0.0 }
 0x1fe   : > { %v4647_v60 = vmax.f32 %v4615_v33, 0.0  ;;  %v5806_v61 = vpop.f32.mrb[28].mxu1 }
 0x1ff   : > { %v4645_v42 = vmax.f32 %v4613_v45, 0.0  ;;  %v5942_v1 = vpop.f32.mrb[28].mxu0  ;;  %v2364_v2 = vpop.f32.mrb[29].mxu1 }
 0x200   : > { %v5458_v4 = vpack.c.bf16 %v4647_v60, %v4646_v54  ;;  %v5974_v53 = vadd.f32 %v5942_v1, %v5806_v61  ;;  %v4534_v22 = vpop.f32.mrb[29].mxu0  ;;  %v5807_v30 = vpop.f32.mrb[30].mxu1 }
 0x201   : > { %v5453_v62 = vpack.c.bf16 %v4645_v42, %v4644_v0  ;;  %v5975_v43 = vadd.f32 %v4534_v22, %v2364_v2  ;;  %v5943_v5 = vpop.f32.mrb[30].mxu0  ;;  %v2367_v6 = vpop.f32.mrb[31].mxu1 }
 0x202   : > { %5482 = vst [vmem:[%s7266_s15 + $0x68] sm:$0xff] %v5458_v4   ;;  %v4618_v10 = vadd.f32 %v5974_v53, %v7256_v48  ;;  %v5976_v9 = vadd.f32 %v5943_v5, %v5807_v30  ;;  %v4537_v8 = vpop.f32.mrb[31].mxu0 }
 0x203   : > { %5481 = vst [vmem:[%s7266_s15 + $0x60] sm:$0xff] %v5453_v62   ;;  %v4616_v12 = vadd.f32 %v5975_v43, %v7256_v48  ;;  %v5977_v13 = vadd.f32 %v4537_v8, %v2367_v6 }
 0x204   : > { %v4619_v24 = vadd.f32 %v5976_v9, %v7256_v48  ;;  %v4650_v14 = vmax.f32 %v4618_v10, 0.0 }
 0x205   : > { %v4617_v7 = vadd.f32 %v5977_v13, %v7256_v48  ;;  %v4648_v63 = vmax.f32 %v4616_v12, 0.0 }
 0x206   : > { %v4651_v58 = vmax.f32 %v4619_v24, 0.0 }
 0x207   : > { %v4649_v47 = vmax.f32 %v4617_v7, 0.0 }
 0x208   : > { %v5468_v15 = vpack.c.bf16 %v4651_v58, %v4650_v14 }
 0x209   : > { %v5463_v17 = vpack.c.bf16 %v4649_v47, %v4648_v63 }
 0x20a   : > { %5484 = vst [vmem:[%s7266_s15 + $0x78] sm:$0xff] %v5468_v15  }
 0x20b   : > { %5483 = vst [vmem:[%s7266_s15 + $0x70] sm:$0xff] %v5463_v17  }
 0x20c PF: > { %s16_s21 = sadd.s32 1, %s6324_s21  }
 0x20d   : > { %p13_p4 = scmp.ge.s32.totalorder %s16_s21, 4  }
 0x20f   :  { %15 = sbr.rel (!%p13_p4) target bundleno = 1 (0x1), region = 93 }

// kernel: patch_embedding_forward.4
= control target key start
LH: loop header
LB: loop body
LE: loop exit
PB: predicated region body
PF: predicated region fallthrough
CT: control target
= control target key end

     0   :  { %s3155_s21 = smov 0   ;;  %s3544_s0 = inlined_call_operand.vmem [shape: bf16[2,9,9,128], index: 0, kind: input, shape index: {}]   ;;  %s3545_s1 = inlined_call_operand.vmem [shape: bf16[2,9,9,128], index: 1, kind: input, shape index: {}]   ;;  %s3546_s2 = inlined_call_operand.vmem [shape: bf16[2,9,9,128], index: 2, kind: input, shape index: {}]   ;;  %s3547_s3 = inlined_call_operand.vmem [shape: bf16[2,9,9,128], index: 3, kind: input, shape index: {}]   ;;  %s3548_s4 = inlined_call_operand.vmem [shape: bf16[9,128,128], index: 4, kind: input, shape index: {}]   ;;  %s3549_s5 = inlined_call_operand.vmem [shape: f32[1,128], index: 5, kind: input, shape index: {}]   ;;  %s3550_s6 = inlined_call_operand.vmem [shape: bf16[2,8,8,128], index: 6, kind: output, shape index: {}]  }
   0x1 LB: > { %s2297_s22 = sadd.s32 4294967295, %s3118_s21   ;;  %p2301_p0 = scmp.ge.s32.totalorder %s3118_s21, 1  ;;  %s3118_s21 = sphi %s3155_s21, %s16_s21  }
   0x2   : > { %p242_p1 = scmp.lt.s32.totalorder %s3118_s21, 3 }
   0x4   : > { %p243_p2 = pnand %p2301_p0, %p242_p1 }
   0x5   : > { %v3016_v0 = vld [vmem:[%s3548_s4 + $0x40] sm:$0xff] (!%p243_p2)   ;;  %p287_p3 = scmp.lt.s32.totalorder (!%p243_p2), %s2297_s22, 1  ;;  %v3018_v2 = vld [vmem:[%s3548_s4 + $0x48] sm:$0xff] (!%p243_p2)   ;;  %v3020_v4 = vld [vmem:[%s3548_s4 + $0x50] sm:$0xff] (!%p243_p2)   ;;  %vm652_vm0 = vsmask.f32 (!%p243_p2), 3328 }
   0x6   : > { %246 = sbr.rel (%p243_p2) target bundleno = 391 (0x187), region = 44  ;;  %v3017_v1 = vld [vmem:[%s3548_s4 + $0x100] sm:$0xff] (!%p243_p2)   ;;  %2711 = vmatprep.subr.bf16.mxu1 (!%p243_p2), %v3016_v0  ;;  %v3019_v3 = vld [vmem:[%s3548_s4 + $0x108] sm:$0xff] (!%p243_p2)   ;;  %v3021_v5 = vld [vmem:[%s3548_s4 + $0x110] sm:$0xff] (!%p243_p2)   ;;  %vm653_vm1 = vsmask.f32 (!%p243_p2), 7440 }
   0x7   : > { %2807 = vmatprep.subr.bf16.mxu0 (!%p243_p2), %v3017_v1  ;;  %2712 = vmatpush3.bf16.msra.mxu1 (!%p243_p2), %v3016_v0  ;;  %v3022_v6 = vld [vmem:[%s3548_s4 + $0x58] sm:$0xff] (!%p243_p2)   ;;  %v3024_v8 = vld [vmem:[%s3548_s4 + $0x60] sm:$0xff] (!%p243_p2)   ;;  %v3026_v10 = vld [vmem:[%s3548_s4 + $0x68] sm:$0xff] (!%p243_p2)  }
   0x8   : > { %2808 = vmatpush3.bf16.msra.mxu0 (!%p243_p2), %v3017_v1  ;;  %2713 = vmatprep.subr.bf16.mxu1 (!%p243_p2), %v3018_v2  ;;  %v3023_v7 = vld [vmem:[%s3548_s4 + $0x118] sm:$0xff] (!%p243_p2)   ;;  %v3025_v9 = vld [vmem:[%s3548_s4 + $0x120] sm:$0xff] (!%p243_p2)   ;;  %v3027_v12 = vld [vmem:[%s3548_s4 + $0x128] sm:$0xff] (!%p243_p2)  }
   0x9   : > { %2809 = vmatprep.subr.bf16.mxu0 (!%p243_p2), %v3019_v3  ;;  %v3028_v14 = vld [vmem:[%s3548_s4 + $0x70] sm:$0xff] (!%p243_p2)   ;;  %v3030_v16 = vld [vmem:[%s3548_s4 + $0x78] sm:$0xff] (!%p243_p2)   ;;  %v3033_v18 = vld [vmem:[%s3548_s4] sm:$0xff] (!%p243_p2)  }
   0xa   : > { %v3029_v15 = vld [vmem:[%s3548_s4 + $0x130] sm:$0xff] (!%p243_p2)   ;;  %v3031_v17 = vld [vmem:[%s3548_s4 + $0x138] sm:$0xff] (!%p243_p2)   ;;  %v3035_v19 = vld [vmem:[%s3548_s4 + $0x140] sm:$0xff] (!%p243_p2)  }
   0xb   : > { %2714 = vmatpush3.bf16.msra.mxu1 (!%p243_p2), %v3018_v2  ;;  %v3038_v22 = vld [vmem:[%s3548_s4 + $0x8] sm:$0xff] (!%p243_p2)   ;;  %v3040_v26 = vld [vmem:[%s3548_s4 + $0x10] sm:$0xff] (!%p243_p2)   ;;  %v3042_v28 = vld [vmem:[%s3548_s4 + $0x18] sm:$0xff] (!%p243_p2)  }
   0xc   : > { %2810 = vmatpush3.bf16.msra.mxu0 (!%p243_p2), %v3019_v3  ;;  %2715 = vmatprep.subr.bf16.mxu1 (!%p243_p2), %v3020_v4  ;;  %v3039_v23 = vld [vmem:[%s3548_s4 + $0x148] sm:$0xff] (!%p243_p2)   ;;  %v3041_v27 = vld [vmem:[%s3548_s4 + $0x150] sm:$0xff] (!%p243_p2)   ;;  %v3043_v31 = vld [vmem:[%s3548_s4 + $0x158] sm:$0xff] (!%p243_p2)  }
   0xd   : > { %s3554_s22 = smov (!%p287_p3, %s2297_s22), 1  ;;  %2811 = vmatprep.subr.bf16.mxu0 %v3021_v5  ;;  %v3044_v38 = vld [vmem:[%s3548_s4 + $0x20] sm:$0xff]   ;;  %v3046_v47 = vld [vmem:[%s3548_s4 + $0x28] sm:$0xff]   ;;  %vm3291_vm2 = vmor %vm652_vm0, %vm653_vm1 }
   0xe   : > { %s3190_s15 = smul.u32 72, %s3554_s22  ;;  %v3045_v43 = vld [vmem:[%s3548_s4 + $0x160] sm:$0xff]   ;;  %v3047_v50 = vld [vmem:[%s3548_s4 + $0x168] sm:$0xff]   ;;  %v3049_v2 = vld [vmem:[%s3548_s4 + $0x30] sm:$0xff]  }
   0xf   : > { %2716 = vmatpush3.bf16.msra.mxu1 %v3020_v4 }
  0x10   : > { %2812 = vmatpush3.bf16.msra.mxu0 %v3021_v5  ;;  %2717 = vmatprep.subr.bf16.mxu1 %v3022_v6  ;;  %s3202_s24 = scalar_lea.vmem %s3545_s1, %s3190_s15  ;;  %s3211_s29 = scalar_lea.vmem %s3547_s3, %s3190_s15 }
  0x11   : > { %2813 = vmatprep.subr.bf16.mxu0 %v3023_v7  ;;  %v3032_v11 = vld [vmem:[%s3202_s24] ss:$8 sps:$4 sm:$0xff]   ;;  %v3036_v20 = vld [vmem:[%s3202_s24 + $0x10] ss:$8 sps:$4 sm:$0xff]   ;;  %s3256_s11 = scalar_lea.vmem %s3544_s0, %s3190_s15  ;;  %s3266_s17 = scalar_lea.vmem %s3546_s2, %s3190_s15 }
  0x12   : > { %2727 = vmatprep.mubr.bf16.mxu1 %v3032_v11  ;;  %v3034_v13 = vld [vmem:[%s3211_s29] ss:$8 sps:$4 sm:$0xff]   ;;  %v3037_v21 = vld [vmem:[%s3211_s29 + $0x10] ss:$8 sps:$4 sm:$0xff]   ;;  %v1262_v34 = vld [vmem:[%s3266_s17 + $0x4] sm:$0x1] }
  0x13   : > { %2718 = vmatpush3.bf16.msra.mxu1 %v3022_v6  ;;  %2823 = vmatprep.mubr.bf16.mxu0 %v3034_v13  ;;  %v3048_v24 = vld [vmem:[%s3202_s24 + $0x20] ss:$8 sps:$4 sm:$0xff]   ;;  %v3052_v29 = vld [vmem:[%s3202_s24 + $0x30] ss:$8 sps:$4 sm:$0xff]   ;;  %v1264_v39 = vld [vmem:[%s3266_s17 + $0xc] sm:$0x1] }
  0x14   : > { %2814 = vmatpush3.bf16.msra.mxu0 %v3023_v7  ;;  %2719 = vmatprep.subr.bf16.mxu1 %v3024_v8  ;;  %v3050_v25 = vld [vmem:[%s3211_s29 + $0x20] ss:$8 sps:$4 sm:$0xff]   ;;  %v3053_v30 = vld [vmem:[%s3211_s29 + $0x30] ss:$8 sps:$4 sm:$0xff]   ;;  %v1287_v40 = vshll.u32 %v1262_v34, 16  ;;  %v1301_v46 = vshll.u32 %v1264_v39, 16 }
  0x15   : > { %2815 = vmatprep.subr.bf16.mxu0 %v3025_v9  ;;  %v3056_v32 = vld [vmem:[%s3256_s11] ss:$8 sps:$4 sm:$0xff]   ;;  %v1265_v56 = vld [vmem:[%s3266_s17 + $0x10] sm:$0xf]  ;;  %v1266_v57 = vld [vmem:[%s3266_s17 + $0x14] sm:$0x1] }
  0x16   : > { %v1261_v33 = vld [vmem:[%s3266_s17] sm:$0xf]  ;;  %v1263_v35 = vld [vmem:[%s3266_s17 + $0x8] sm:$0xf]  ;;  %v1289_v52 = vrot.slane %v1287_v40, 5  ;;  %v1303_v55 = vrot.slane %v1301_v46, 5 }
  0x17   : > { %2720 = vmatpush3.bf16.msra.mxu1 %v3024_v8  ;;  %v1278_v36 = vshrl.u32 %v1261_v33, 16  ;;  %v1281_v37 = vshll.u32 %v1261_v33, 16  ;;  %v1292_v41 = vshrl.u32 %v1263_v35, 16  ;;  %v1295_v42 = vshll.u32 %v1263_v35, 16  ;;  %v1267_v59 = vld [vmem:[%s3266_s17 + $0x18] sm:$0xf] }
  0x18   : > { %2816 = vmatpush3.bf16.msra.mxu0 %v3025_v9  ;;  %2721 = vmatprep.subr.bf16.mxu1 %v3026_v10  ;;  %v1268_v60 = vld [vmem:[%s3266_s17 + $0x1c] sm:$0x1]  ;;  %v1306_v61 = vshrl.u32 %v1265_v56, 16  ;;  %v1309_v63 = vshll.u32 %v1265_v56, 16  ;;  %v1315_v0 = vshll.u32 %v1266_v57, 16  ;;  %v1320_v1 = vshrl.u32 %v1267_v59, 16 }
  0x19   : > { %2817 = vmatprep.subr.bf16.mxu0 %v3027_v12  ;;  %v1280_v44 = vrot.slane %v1278_v36, 4  ;;  %v1283_v45 = vrot.slane %v1281_v37, 5  ;;  %v1294_v48 = vrot.slane %v1292_v41, 4  ;;  %v1297_v49 = vrot.slane %v1295_v42, 5  ;;  %v3051_v6 = vld [vmem:[%s3548_s4 + $0x170] sm:$0xff]   ;;  %s2579_s15 = sshll.u32 %s3554_s22, 5 }
  0x1a   : > { %v1308_v4 = vrot.slane %v1306_v61, 4  ;;  %v1323_v5 = vshll.u32 %v1267_v59, 16  ;;  %v1311_v8 = vrot.slane %v1309_v63, 5  ;;  %v1322_v9 = vrot.slane %v1320_v1, 4  ;;  %v3070_v37 = vld [vmem:[%s3256_s11 + $0x20] ss:$8 sps:$4 sm:$0xff]   ;;  %s311_s23 = scalar_lea.vmem %s3550_s6, %s2579_s15 }
  0x1b   : > { %2722 = vmatpush3.bf16.msra.mxu1 %v3026_v10  ;;  %v1284_v51 = vor.u32 %v1283_v45, %v1280_v44  ;;  %v1298_v54 = vor.u32 %v1297_v49, %v1294_v48  ;;  %v1329_v10 = vshll.u32 %v1268_v60, 16  ;;  %v3073_v48 = vld [vmem:[%s3256_s11 + $0x30] ss:$8 sps:$4 sm:$0xff]  }
  0x1c   : > { %2818 = vmatpush3.bf16.msra.mxu0 %v3027_v12  ;;  %2723 = vmatprep.subr.bf16.mxu1 %v3028_v14  ;;  %v1317_v12 = vrot.slane %v1315_v0, 5  ;;  %v1325_v13 = vrot.slane %v1323_v5, 5  ;;  %v1273_v49 = vld [vmem:[%s3266_s17 + $0x30] sm:$0xf]  ;;  %v3064_v59 = vld [vmem:[%s3548_s4 + $0x98] sm:$0xff]  }
  0x1d   : > { %2819 = vmatprep.subr.bf16.mxu0 %v3029_v15  ;;  %v1285_v58 = vrot.slane %v1284_v51, 4  ;;  %v1299_v62 = vrot.slane %v1298_v54, 4  ;;  %v1275_v51 = vld [vmem:[%s3266_s17 + $0x38] sm:$0xf]  ;;  %v1362_v56 = vshrl.u32 %v1273_v49, 16  ;;  %v1365_v57 = vshll.u32 %v1273_v49, 16 }
  0x1e   : > { %v1376_v61 = vshrl.u32 %v1275_v51, 16 }
  0x1f   : > { %2724 = vmatpush3.bf16.msra.mxu1 %v3028_v14  ;;  %v1290_v3 = vsel %vm3291_vm2, %v1285_v58, %v1289_v52  ;;  %v1304_v7 = vsel %vm3291_vm2, %v1299_v62, %v1303_v55  ;;  %v3054_v14 = vld [vmem:[%s3548_s4 + $0x38] sm:$0xff]   ;;  %v3063_v52 = vld [vmem:[%s3548_s4 + $0x190] sm:$0xff]   ;;  %v1379_v62 = vshll.u32 %v1275_v51, 16  ;;  %v1364_v1 = vrot.slane %v1362_v56, 4 }
  0x20   : > { %2820 = vmatpush3.bf16.msra.mxu0 %v3029_v15  ;;  %2725 = vmatprep.subr.bf16.mxu1 %v3030_v16  ;;  %v2448_v11 = vcombine.low %v1290_v3, %v1304_v7  ;;  %v1312_v15 = vor.u32 %v1311_v8, %v1308_v4  ;;  %v1276_v55 = vld [vmem:[%s3266_s17 + $0x3c] sm:$0x1] }
  0x21   : > { %2821 = vmatprep.subr.bf16.mxu0 %v3031_v17  ;;  %v1385_v63 = vshll.u32 %v1276_v55, 16  ;;  %v3065_v4 = vld [vmem:[%s3548_s4 + $0x198] sm:$0xff]   ;;  %v1381_v7 = vrot.slane %v1379_v62, 5 }
  0x23   : > { %2726 = vmatpush3.bf16.msra.mxu1 %v3030_v16  ;;  %v1326_v16 = vor.u32 %v1325_v13, %v1322_v9  ;;  %v1387_v8 = vrot.slane %v1385_v63, 5  ;;  %v3066_v13 = vld [vmem:[%s3548_s4 + $0xa0] sm:$0xff]  }
  0x24   : > { %2822 = vmatpush3.bf16.msra.mxu0 %v3031_v17  ;;  %2735 = vmatprep.subr.bf16.mxu1 %v3033_v18  ;;  %v1313_v17 = vrot.slane %v1312_v15, 4 }
  0x25   : > { %2831 = vmatprep.subr.bf16.mxu0 %v3035_v19 }
  0x26   : > { %2728 = vmatmul.mubr.bf16.vlgmr.msra.gmra.mrb[0].mxu1 %v3036_v20  ;;  %v1327_v20 = vrot.slane %v1326_v16, 4  ;;  %v638_v16 = vld [vmem:[%s3256_s11 + $0x8] sm:$0xf] }
  0x27   : > { %2736 = vmatpush3.bf16.msra.mxu1 %v3033_v18  ;;  %2824 = vmatmul.mubr.bf16.vlgmr.msra.gmra.mrb[0].mxu0 %v3037_v21  ;;  %v1331_v18 = vrot.slane %v1329_v10, 5  ;;  %v3057_v21 = vld [vmem:[%s3548_s4 + $0x80] sm:$0xff]  }
  0x28   : > { %2832 = vmatpush3.bf16.msra.mxu0 %v3035_v19  ;;  %2737 = vmatprep.subr.bf16.mxu1 %v3038_v22  ;;  %v3055_v19 = vld [vmem:[%s3548_s4 + $0x178] sm:$0xff]  }
  0x29   : > { %2833 = vmatprep.subr.bf16.mxu0 %v3039_v23  ;;  %2731 = vmatprep.mubr.bf16.mxu1 %v3048_v24  ;;  %v3058_v24 = vld [vmem:[%s3548_s4 + $0x180] sm:$0xff]  }
  0x2a   : > { %2827 = vmatprep.mubr.bf16.mxu0 %v3050_v25  ;;  %v3059_v25 = vld [vmem:[%s3256_s11 + $0x10] ss:$8 sps:$4 sm:$0xff]  }
  0x2b   : > { %2738 = vmatpush3.bf16.msra.mxu1 %v3038_v22  ;;  %v1318_v22 = vsel %vm3291_vm2, %v1313_v17, %v1317_v12  ;;  %v637_v12 = vld [vmem:[%s3256_s11 + $0x4] sm:$0x1]  ;;  %v639_v17 = vld [vmem:[%s3256_s11 + $0xc] sm:$0x1] }
  0x2c   : > { %2834 = vmatpush3.bf16.msra.mxu0 %v3039_v23  ;;  %2739 = vmatprep.subr.bf16.mxu1 %v3040_v26  ;;  %v1332_v23 = vsel %vm3291_vm2, %v1327_v20, %v1331_v18 }
  0x2d   : > { %2835 = vmatprep.subr.bf16.mxu0 %v3041_v27 }
  0x2e   : > { %2732 = vmatmul.mubr.bf16.gmra.mrb[4].mxu1 %v3052_v29  ;;  %v3061_v29 = vld [vmem:[%s3548_s4 + $0x188] sm:$0xff]  }
  0x2f   : > { %2740 = vmatpush3.bf16.msra.mxu1 %v3040_v26  ;;  %2828 = vmatmul.mubr.bf16.gmra.mrb[4].mxu0 %v3053_v30  ;;  %v3060_v26 = vld [vmem:[%s3548_s4 + $0x88] sm:$0xff]   ;;  %v1270_v30 = vld [vmem:[%s3266_s17 + $0x24] sm:$0x1] }
  0x30   : > { %2836 = vmatpush3.bf16.msra.mxu0 %v3041_v27  ;;  %2741 = vmatprep.subr.bf16.mxu1 %v3042_v28  ;;  %v1269_v27 = vld [vmem:[%s3266_s17 + $0x20] sm:$0xf]  ;;  %v1343_v35 = vshll.u32 %v1270_v30, 16 }
  0x31   : > { %2837 = vmatprep.subr.bf16.mxu0 %v3043_v31  ;;  %2751 = vmatprep.mubr.bf16.mxu1 %v3056_v32  ;;  %v1272_v32 = vld [vmem:[%s3266_s17 + $0x2c] sm:$0x1]  ;;  %v1334_v33 = vshrl.u32 %v1269_v27, 16  ;;  %v1337_v34 = vshll.u32 %v1269_v27, 16  ;;  %v679_v27 = vshll.u32 %v639_v17, 16 }
  0x32   : > { %2847 = vmatprep.mubr.bf16.mxu0 %v2448_v11  ;;  %v1357_v39 = vshll.u32 %v1272_v32, 16  ;;  %v1345_v44 = vrot.slane %v1343_v35, 5  ;;  %v636_v11 = vld [vmem:[%s3256_s11] sm:$0xf]  ;;  %v3068_v32 = vld [vmem:[%s3548_s4 + $0xa8] sm:$0xff]  }
  0x33   : > { %2742 = vmatpush3.bf16.msra.mxu1 %v3042_v28  ;;  %v2449_v28 = vcombine.low %v1318_v22, %v1332_v23  ;;  %v1336_v40 = vrot.slane %v1334_v33, 4  ;;  %v1339_v41 = vrot.slane %v1337_v34, 5  ;;  %v656_v18 = vshrl.u32 %v636_v11, 16  ;;  %v647_v17 = vld [vmem:[%s3256_s11 + $0x2c] sm:$0x1] }
  0x34   : > { %2838 = vmatpush3.bf16.msra.mxu0 %v3043_v31  ;;  %2743 = vmatprep.subr.bf16.mxu1 %v3044_v38  ;;  %v1271_v31 = vld [vmem:[%s3266_s17 + $0x28] sm:$0xf]  ;;  %v1359_v46 = vrot.slane %v1357_v39, 5  ;;  %v670_v22 = vshrl.u32 %v638_v16, 16  ;;  %v673_v23 = vshll.u32 %v638_v16, 16 }
  0x35   : > { %2839 = vmatprep.subr.bf16.mxu0 %v3045_v43  ;;  %v1348_v36 = vshrl.u32 %v1271_v31, 16  ;;  %v646_v16 = vld [vmem:[%s3256_s11 + $0x28] sm:$0xf] }
  0x36   : > { %v672_v30 = vrot.slane %v670_v22, 4  ;;  %v726_v22 = vshrl.u32 %v646_v16, 16 }
  0x37   : > { %2744 = vmatpush3.bf16.msra.mxu1 %v3044_v38  ;;  %v1351_v38 = vshll.u32 %v1271_v31, 16  ;;  %v1350_v42 = vrot.slane %v1348_v36, 4  ;;  %v675_v31 = vrot.slane %v673_v23, 5  ;;  %v681_v36 = vrot.slane %v679_v27, 5 }
  0x38   : > { %2840 = vmatpush3.bf16.msra.mxu0 %v3045_v43  ;;  %2745 = vmatprep.subr.bf16.mxu1 %v3046_v47  ;;  %v3062_v43 = vld [vmem:[%s3548_s4 + $0x90] sm:$0xff]   ;;  %v729_v23 = vshll.u32 %v646_v16, 16  ;;  %v2533_v16 = vld [vmem:[%s3256_s11 + $0xc] sm:$0x1] }
  0x39   : > { %2841 = vmatprep.subr.bf16.mxu0 %v3047_v50  ;;  %v1353_v45 = vrot.slane %v1351_v38, 5  ;;  %v3069_v38 = vld [vmem:[%s3548_s4 + $0x1a8] sm:$0xff]  }
  0x3b   : > { %2746 = vmatpush3.bf16.msra.mxu1 %v3046_v47  ;;  %v1340_v47 = vor.u32 %v1339_v41, %v1336_v40  ;;  %v1354_v54 = vor.u32 %v1353_v45, %v1350_v42  ;;  %v676_v40 = vor.u32 %v675_v31, %v672_v30  ;;  %v640_v41 = vld [vmem:[%s3256_s11 + $0x10] sm:$0xf]  ;;  %v731_v31 = vrot.slane %v729_v23, 5 }
  0x3c   : > { %2842 = vmatpush3.bf16.msra.mxu0 %v3047_v50  ;;  %2747 = vmatprep.subr.bf16.mxu1 %v3049_v2  ;;  %v1274_v50 = vld [vmem:[%s3266_s17 + $0x34] sm:$0x1]  ;;  %v684_v45 = vshrl.u32 %v640_v41, 16  ;;  %v648_v30 = vld [vmem:[%s3256_s11 + $0x30] sm:$0xf] }
  0x3d   : > { %2843 = vmatprep.subr.bf16.mxu0 %v3051_v6  ;;  %v1371_v58 = vshll.u32 %v1274_v50, 16  ;;  %v1341_v60 = vrot.slane %v1340_v47, 4  ;;  %v1355_v0 = vrot.slane %v1354_v54, 4  ;;  %v643_v47 = vld [vmem:[%s3256_s11 + $0x1c] sm:$0x1] }
  0x3f   : > { %2748 = vmatpush3.bf16.msra.mxu1 %v3049_v2  ;;  %v1367_v2 = vrot.slane %v1365_v57, 5  ;;  %v1373_v3 = vrot.slane %v1371_v58, 5  ;;  %v1346_v5 = vsel %vm3291_vm2, %v1341_v60, %v1345_v44  ;;  %v1360_v9 = vsel %vm3291_vm2, %v1355_v0, %v1359_v46  ;;  %v642_v44 = vld [vmem:[%s3256_s11 + $0x18] sm:$0xf]  ;;  %v3072_v60 = vld [vmem:[%s3548_s4 + $0x1b0] sm:$0xff]  }
  0x40   : > { %2844 = vmatpush3.bf16.msra.mxu0 %v3051_v6  ;;  %2749 = vmatprep.subr.bf16.mxu1 %v3054_v14  ;;  %v1378_v6 = vrot.slane %v1376_v61, 4  ;;  %v677_v46 = vrot.slane %v676_v40, 4  ;;  %v698_v50 = vshrl.u32 %v642_v44, 16  ;;  %v701_v54 = vshll.u32 %v642_v44, 16 }
  0x41   : > { %2845 = vmatprep.subr.bf16.mxu0 %v3055_v19  ;;  %v1368_v10 = vor.u32 %v1367_v2, %v1364_v1  ;;  %v707_v58 = vshll.u32 %v643_v47, 16 }
  0x42   : > { %v1382_v15 = vor.u32 %v1381_v7, %v1378_v6  ;;  %v682_v55 = vsel %vm3291_vm2, %v677_v46, %v681_v36  ;;  %v700_v57 = vrot.slane %v698_v50, 4  ;;  %v703_v63 = vrot.slane %v701_v54, 5  ;;  %v3075_v6 = vld [vmem:[%s3548_s4 + $0x1b8] sm:$0xff]   ;;  %v3076_v7 = vld [vmem:[%s3548_s4 + $0xc0] sm:$0xff]  }
  0x43   : > { %2750 = vmatpush3.bf16.msra.mxu1 %v3054_v14  ;;  %v2450_v14 = vcombine.low %v1346_v5, %v1360_v9  ;;  %v1369_v20 = vrot.slane %v1368_v10, 4  ;;  %v3078_v10 = vld [vmem:[%s3548_s4 + $0x1c0] sm:$0xff]   ;;  %v3084_v50 = vld [vmem:[%s3548_s4 + $0xd8] sm:$0xff]  }
  0x44   : > { %2846 = vmatpush3.bf16.msra.mxu0 %v3055_v19  ;;  %2759 = vmatprep.subr.bf16.mxu1 %v3057_v21  ;;  %v659_v19 = vshll.u32 %v636_v11, 16  ;;  %v704_v1 = vor.u32 %v703_v63, %v700_v57  ;;  %v3079_v11 = vld [vmem:[%s3256_s11 + $0x18] ss:$8 sps:$4 sm:$0xff]  }
  0x45   : > { %2855 = vmatprep.subr.bf16.mxu0 %v3058_v24 }
  0x46   : > { %2752 = vmatmul.mubr.bf16.vlgmr.msra.gmra.mrb[0].mxu1 %v3059_v25  ;;  %v658_v25 = vrot.slane %v656_v18, 4  ;;  %v705_v5 = vrot.slane %v704_v1, 4  ;;  %v3081_v18 = vld [vmem:[%s3548_s4 + $0x1c8] sm:$0xff]   ;;  %v3086_v1 = vld [vmem:[%s3548_s4 + $0xe0] sm:$0xff]  }
  0x47   : > { %2760 = vmatpush3.bf16.msra.mxu1 %v3057_v21  ;;  %2848 = vmatmul.mubr.bf16.vlgmr.msra.gmra.mrb[0].mxu0 %v2449_v28  ;;  %v665_v21 = vshll.u32 %v637_v12, 16  ;;  %v3067_v28 = vld [vmem:[%s3548_s4 + $0x1a0] sm:$0xff]  }
  0x48   : > { %2856 = vmatpush3.bf16.msra.mxu0 %v3058_v24  ;;  %2761 = vmatprep.subr.bf16.mxu1 %v3060_v26  ;;  %v1383_v24 = vrot.slane %v1382_v15, 4  ;;  %v644_v12 = vld [vmem:[%s3256_s11 + $0x20] sm:$0xf]  ;;  %v645_v15 = vld [vmem:[%s3256_s11 + $0x24] sm:$0x1] }
  0x49   : > { %2857 = vmatprep.subr.bf16.mxu0 %v3061_v29  ;;  %2755 = vmatprep.mubr.bf16.mxu1 %v3070_v37  ;;  %v667_v35 = vrot.slane %v665_v21, 5  ;;  %v3077_v37 = vld [vmem:[%s3256_s11 + $0x8] ss:$8 sps:$4 sm:$0xff]   ;;  %v721_v21 = vshll.u32 %v645_v15, 16 }
  0x4a   : > { %2851 = vmatprep.mubr.bf16.mxu0 %v2450_v14  ;;  %v1388_v33 = vsel %vm3291_vm2, %v1383_v24, %v1387_v8  ;;  %v3080_v14 = vld [vmem:[%s3548_s4 + $0xc8] sm:$0xff]   ;;  %v735_v24 = vshll.u32 %v647_v17, 16  ;;  %v2534_v17 = vld [vmem:[%s3256_s11 + $0x10] sm:$0xf] }
  0x4b   : > { %2762 = vmatpush3.bf16.msra.mxu1 %v3060_v26  ;;  %v661_v26 = vrot.slane %v659_v19, 5  ;;  %v712_v19 = vshrl.u32 %v644_v12, 16  ;;  %v2532_v15 = vld [vmem:[%s3256_s11 + $0x8] sm:$0xf]  ;;  %v1919_v23 = vshll.u32 %v2534_v17, 16 }
  0x4c   : > { %2858 = vmatpush3.bf16.msra.mxu0 %v3061_v29  ;;  %2763 = vmatprep.subr.bf16.mxu1 %v3062_v43  ;;  %v1374_v29 = vsel %vm3291_vm2, %v1369_v20, %v1373_v3  ;;  %v709_v3 = vrot.slane %v707_v58, 5  ;;  %v715_v20 = vshll.u32 %v644_v12, 16  ;;  %v3092_v58 = vld [vmem:[%s3256_s11 + $0x38] ss:$8 sps:$4 sm:$0xff]  }
  0x4d   : > { %2859 = vmatprep.subr.bf16.mxu0 %v3063_v52  ;;  %v662_v34 = vor.u32 %v661_v26, %v658_v25  ;;  %v2451_v39 = vcombine.low %v1374_v29, %v1388_v33  ;;  %v3090_v25 = vld [vmem:[%s3256_s11 + $0x28] ss:$8 sps:$4 sm:$0xff]   ;;  %v714_v26 = vrot.slane %v712_v19, 4  ;;  %v728_v29 = vrot.slane %v726_v22, 4  ;;  %v649_v33 = vld [vmem:[%s3256_s11 + $0x34] sm:$0x1] }
  0x4e   : > { %2756 = vmatmul.mubr.bf16.gmra.mrb[4].mxu1 %v3073_v48  ;;  %v687_v48 = vshll.u32 %v640_v41, 16  ;;  %v710_v9 = vsel %vm3291_vm2, %v705_v5, %v709_v3  ;;  %v717_v27 = vrot.slane %v715_v20, 5  ;;  %v749_v40 = vshll.u32 %v649_v33, 16  ;;  %v3083_v41 = vld [vmem:[%s3548_s4 + $0x1d0] sm:$0xff]   ;;  %v3087_v5 = vld [vmem:[%s3548_s4 + $0x1e0] sm:$0xff]   ;;  %v3094_v12 = vld [vmem:[%s3548_s4 + $0xf8] sm:$0xff]  }
  0x4f   : > { %2764 = vmatpush3.bf16.msra.mxu1 %v3062_v43  ;;  %v663_v42 = vrot.slane %v662_v34, 4  ;;  %v641_v43 = vld [vmem:[%s3256_s11 + $0x14] sm:$0x1]  ;;  %2852 = vmatmul.mubr.bf16.gmra.mrb[4].mxu0 %v2451_v39  ;;  %v650_v34 = vld [vmem:[%s3256_s11 + $0x38] sm:$0xf]  ;;  %v743_v39 = vshll.u32 %v648_v30, 16 }
  0x50   : > { %2860 = vmatpush3.bf16.msra.mxu0 %v3063_v52  ;;  %2765 = vmatprep.subr.bf16.mxu1 %v3064_v59  ;;  %v693_v49 = vshll.u32 %v641_v43, 16  ;;  %v686_v52 = vrot.slane %v684_v45, 4  ;;  %v689_v56 = vrot.slane %v687_v48, 5  ;;  %v718_v36 = vor.u32 %v717_v27, %v714_v26  ;;  %v2543_v33 = vld [vmem:[%s3256_s11 + $0x34] sm:$0x1] }
  0x51   : > { %2861 = vmatprep.subr.bf16.mxu0 %v3065_v4  ;;  %v668_v51 = vsel %vm3291_vm2, %v663_v42, %v667_v35  ;;  %2871 = vmatprep.mubr.bf16.mxu0 %v3077_v37  ;;  %v3082_v35 = vld [vmem:[%s3548_s4 + $0xd0] sm:$0xff]   ;;  %v651_v37 = vld [vmem:[%s3256_s11 + $0x3c] sm:$0x1]  ;;  %v732_v42 = vor.u32 %v731_v31, %v728_v29  ;;  %v754_v43 = vshrl.u32 %v650_v34, 16  ;;  %v757_v44 = vshll.u32 %v650_v34, 16 }
  0x52   : > { %v2364_v61 = vcombine.low %v668_v51, %v682_v55  ;;  %v695_v62 = vrot.slane %v693_v49, 5  ;;  %v690_v0 = vor.u32 %v689_v56, %v686_v52  ;;  %v763_v45 = vshll.u32 %v651_v37, 16  ;;  %v2542_v29 = vld [vmem:[%s3256_s11 + $0x30] sm:$0xf]  ;;  %v3099_v34 = vld [vmem:[%s3202_s24 + $0x18] ss:$8 sps:$4 sm:$0xff]  }
  0x53   : > { %2766 = vmatpush3.bf16.msra.mxu1 %v3064_v59  ;;  %v3071_v59 = vld [vmem:[%s3548_s4 + $0xb0] sm:$0xff]   ;;  %v719_v46 = vrot.slane %v718_v36, 4  ;;  %v745_v48 = vrot.slane %v743_v39, 5  ;;  %v751_v49 = vrot.slane %v749_v40, 5  ;;  %v733_v51 = vrot.slane %v732_v42, 4  ;;  %v3101_v39 = vld [vmem:[%s3548_s4 + $0x208] sm:$0xff]  }
  0x54   : > { %2862 = vmatpush3.bf16.msra.mxu0 %v3065_v4  ;;  %2767 = vmatprep.subr.bf16.mxu1 %v3066_v13  ;;  %v691_v2 = vrot.slane %v690_v0, 4  ;;  %v3074_v4 = vld [vmem:[%s3548_s4 + $0xb8] sm:$0xff]   ;;  %v756_v52 = vrot.slane %v754_v43, 4  ;;  %v759_v54 = vrot.slane %v757_v44, 5  ;;  %v765_v55 = vrot.slane %v763_v45, 5 }
  0x55   : > { %2863 = vmatprep.subr.bf16.mxu0 %v3067_v28  ;;  %2775 = vmatprep.mubr.bf16.mxu1 %v2364_v61  ;;  %v3085_v61 = vld [vmem:[%s3548_s4 + $0x1d8] sm:$0xff]   ;;  %v1902_v19 = vshrl.u32 %v2532_v15, 16  ;;  %v1905_v20 = vshll.u32 %v2532_v15, 16  ;;  %v1916_v22 = vshrl.u32 %v2534_v17, 16  ;;  %v1975_v42 = vshll.u32 %v2542_v29, 16  ;;  %v3108_v15 = vld [vmem:[%s3548_s4 + $0x220] sm:$0xff]  }
  0x56   : > { %v696_v8 = vsel %vm3291_vm2, %v691_v2, %v695_v62  ;;  %v1981_v43 = vshll.u32 %v2543_v33, 16  ;;  %v3102_v44 = vld [vmem:[%s3266_s17 + $0x20] ss:$8 sps:$4 sm:$0xff]  }
  0x57   : > { %2768 = vmatpush3.bf16.msra.mxu1 %v3066_v13  ;;  %v2365_v13 = vcombine.low %v696_v8, %v710_v9  ;;  %v3088_v8 = vld [vmem:[%s3548_s4 + $0xe8] sm:$0xff]   ;;  %v1904_v26 = vrot.slane %v1902_v19, 4  ;;  %v1907_v27 = vrot.slane %v1905_v20, 5  ;;  %v1918_v31 = vrot.slane %v1916_v22, 4 }
  0x58   : > { %2864 = vmatpush3.bf16.msra.mxu0 %v3067_v28  ;;  %2769 = vmatprep.subr.bf16.mxu1 %v3068_v32  ;;  %v723_v28 = vrot.slane %v721_v21, 5  ;;  %v3089_v9 = vld [vmem:[%s3548_s4 + $0x1e8] sm:$0xff]   ;;  %v1911_v21 = vshll.u32 %v2533_v16, 16 }
  0x59   : > { %2865 = vmatprep.subr.bf16.mxu0 %v3069_v38  ;;  %v3109_v20 = vld [vmem:[%s3548_s4 + $0x228] sm:$0xff]  }
  0x5a   : > { %v724_v56 = vsel %vm3291_vm2, %v719_v46, %v723_v28  ;;  %v2541_v28 = vld [vmem:[%s3256_s11 + $0x2c] sm:$0x1]  ;;  %v1913_v45 = vrot.slane %v1911_v21, 5  ;;  %v2545_v21 = vld [vmem:[%s3256_s11 + $0x3c] sm:$0x1] }
  0x5b   : > { %2770 = vmatpush3.bf16.msra.mxu1 %v3068_v32  ;;  %v737_v32 = vrot.slane %v735_v24, 5 }
  0x5c   : > { %2866 = vmatpush3.bf16.msra.mxu0 %v3069_v38  ;;  %2771 = vmatprep.subr.bf16.mxu1 %v3071_v59  ;;  %v740_v38 = vshrl.u32 %v648_v30, 16  ;;  %v3098_v30 = vld [vmem:[%s3266_s17 + $0x10] ss:$8 sps:$4 sm:$0xff]  }
  0x5d   : > { %2867 = vmatprep.subr.bf16.mxu0 %v3072_v60 }
  0x5e   : > { %v742_v47 = vrot.slane %v740_v38, 4  ;;  %v1967_v38 = vshll.u32 %v2541_v28, 16 }
  0x5f   : > { %2772 = vmatpush3.bf16.msra.mxu1 %v3071_v59  ;;  %v738_v59 = vsel %vm3291_vm2, %v733_v51, %v737_v32  ;;  %v1921_v32 = vrot.slane %v1919_v23, 5 }
  0x60   : > { %2868 = vmatpush3.bf16.msra.mxu0 %v3072_v60  ;;  %2773 = vmatprep.subr.bf16.mxu1 %v3074_v4  ;;  %v746_v57 = vor.u32 %v745_v48, %v742_v47  ;;  %v760_v60 = vor.u32 %v759_v54, %v756_v52  ;;  %v2366_v62 = vcombine.low %v724_v56, %v738_v59  ;;  %v1977_v54 = vrot.slane %v1975_v42, 5 }
  0x61   : > { %2869 = vmatprep.subr.bf16.mxu0 %v3075_v6  ;;  %v1922_v40 = vor.u32 %v1921_v32, %v1918_v31  ;;  %v1969_v56 = vrot.slane %v1967_v38, 5  ;;  %v1983_v59 = vrot.slane %v1981_v43, 5  ;;  %v2537_v31 = vld [vmem:[%s3256_s11 + $0x1c] sm:$0x1]  ;;  %v2539_v32 = vld [vmem:[%s3256_s11 + $0x24] sm:$0x1] }
  0x62   : > { %v747_v63 = vrot.slane %v746_v57, 4  ;;  %v761_v0 = vrot.slane %v760_v60, 4  ;;  %v3106_v57 = vld [vmem:[%s3548_s4 + $0x210] sm:$0xff]  }
  0x63   : > { %2774 = vmatpush3.bf16.msra.mxu1 %v3074_v4  ;;  %v3097_v4 = vld [vmem:[%s3202_s24 + $0x8] ss:$8 sps:$4 sm:$0xff]   ;;  %v1923_v51 = vrot.slane %v1922_v40, 4 }
  0x64   : > { %2870 = vmatpush3.bf16.msra.mxu0 %v3075_v6  ;;  %2783 = vmatprep.subr.bf16.mxu1 %v3076_v7  ;;  %v752_v2 = vsel %vm3291_vm2, %v747_v63, %v751_v49  ;;  %v766_v3 = vsel %vm3291_vm2, %v761_v0, %v765_v55  ;;  %v3103_v49 = vld [vmem:[%s3202_s24 + $0x28] ss:$8 sps:$4 sm:$0xff]  }
  0x65   : > { %2879 = vmatprep.subr.bf16.mxu0 %v3078_v10  ;;  %v2367_v6 = vcombine.low %v752_v2, %v766_v3  ;;  %v3107_v3 = vld [vmem:[%s3548_s4 + $0x218] sm:$0xff]  }
  0x66   : > { %2776 = vmatmul.mubr.bf16.vlgmr.msra.gmra.mrb[0].mxu1 %v2365_v13  ;;  %v3095_v13 = vld [vmem:[%s3548_s4 + $0x1f8] sm:$0xff]  }
  0x67   : > { %2784 = vmatpush3.bf16.msra.mxu1 %v3076_v7  ;;  %2872 = vmatmul.mubr.bf16.vlgmr.msra.gmra.mrb[0].mxu0 %v3079_v11  ;;  %v3096_v7 = vld [vmem:[%s3266_s17] ss:$8 sps:$4 sm:$0xff]   ;;  %v3093_v11 = vld [vmem:[%s3548_s4 + $0x1f0] sm:$0xff]  }
  0x68   : > { %2880 = vmatpush3.bf16.msra.mxu0 %v3078_v10  ;;  %2785 = vmatprep.subr.bf16.mxu1 %v3080_v14  ;;  %v3091_v10 = vld [vmem:[%s3548_s4 + $0xf0] sm:$0xff]  }
  0x69   : > { %2881 = vmatprep.subr.bf16.mxu0 %v3081_v18  ;;  %2875 = vmatprep.mubr.bf16.mxu0 %v3090_v25  ;;  %v2540_v25 = vld [vmem:[%s3256_s11 + $0x28] sm:$0xf] }
  0x6a   : > { %2779 = vmatprep.mubr.bf16.mxu1 %v2366_v62  ;;  %v1958_v36 = vshrl.u32 %v2540_v25, 16  ;;  %v1961_v37 = vshll.u32 %v2540_v25, 16 }
  0x6b   : > { %2786 = vmatpush3.bf16.msra.mxu1 %v3080_v14  ;;  %v3100_v14 = vld [vmem:[%s3548_s4 + $0x200] sm:$0xff]  }
  0x6c   : > { %2882 = vmatpush3.bf16.msra.mxu0 %v3081_v18  ;;  %2787 = vmatprep.subr.bf16.mxu1 %v3082_v35  ;;  %v2535_v18 = vld [vmem:[%s3256_s11 + $0x14] sm:$0x1]  ;;  %v1960_v47 = vrot.slane %v1958_v36, 4  ;;  %v1963_v48 = vrot.slane %v1961_v37, 5 }
  0x6d   : > { %2883 = vmatprep.subr.bf16.mxu0 %v3083_v41  ;;  %v1925_v24 = vshll.u32 %v2535_v18, 16  ;;  %v3110_v37 = vld [vmem:[%s3548_s4 + $0x230] sm:$0xff]  }
  0x6e   : > { %2780 = vmatmul.mubr.bf16.gmra.mrb[4].mxu1 %v2367_v6  ;;  %v1964_v55 = vor.u32 %v1963_v48, %v1960_v47  ;;  %v2546_v6 = vld [vmem:[%s3256_s11 + $0x40] sm:$0xf] }
  0x6f   : > { %2788 = vmatpush3.bf16.msra.mxu1 %v3082_v35  ;;  %2876 = vmatmul.mubr.bf16.gmra.mrb[4].mxu0 %v3092_v58  ;;  %v1908_v35 = vor.u32 %v1907_v27, %v1904_v26  ;;  %v1927_v46 = vrot.slane %v1925_v24, 5 }
  0x70   : > { %2884 = vmatpush3.bf16.msra.mxu0 %v3083_v41  ;;  %2789 = vmatprep.subr.bf16.mxu1 %v3084_v50  ;;  %v1972_v41 = vshrl.u32 %v2542_v29, 16  ;;  %v1965_v60 = vrot.slane %v1964_v55, 4 }
  0x71   : > { %2885 = vmatprep.subr.bf16.mxu0 %v3085_v61  ;;  %2895 = vmatprep.mubr.bf16.mxu0 %v3097_v4  ;;  %v1928_v63 = vsel %vm3291_vm2, %v1923_v51, %v1927_v46  ;;  %v3111_v46 = vld [vmem:[%s3548_s4 + $0x238] sm:$0xff]  }
  0x72   : > { %2799 = vmatprep.mubr.bf16.mxu1 %v3096_v7  ;;  %v1974_v52 = vrot.slane %v1972_v41, 4  ;;  %v1970_v2 = vsel %vm3291_vm2, %v1965_v60, %v1969_v56  ;;  %v1953_v41 = vshll.u32 %v2539_v32, 16 }
  0x73   : > { %2790 = vmatpush3.bf16.msra.mxu1 %v3084_v50  ;;  %v1909_v50 = vrot.slane %v1908_v35, 4 }
  0x74   : > { %2886 = vmatpush3.bf16.msra.mxu0 %v3085_v61  ;;  %2791 = vmatprep.subr.bf16.mxu1 %v3086_v1  ;;  %v1978_v58 = vor.u32 %v1977_v54, %v1974_v52  ;;  %v3104_v61 = vld [vmem:[%s3266_s17 + $0x30] ss:$8 sps:$4 sm:$0xff]  }
  0x75   : > { %2887 = vmatprep.subr.bf16.mxu0 %v3087_v5  ;;  %v1914_v62 = vsel %vm3291_vm2, %v1909_v50, %v1913_v45  ;;  %v1955_v50 = vrot.slane %v1953_v41, 5 }
  0x76   : > { %v1979_v0 = vrot.slane %v1978_v58, 4  ;;  %v2564_v7 = vcombine.low %v1914_v62, %v1928_v63 }
  0x77   : > { %2792 = vmatpush3.bf16.msra.mxu1 %v3086_v1  ;;  %v3105_v1 = vld [vmem:[%s3202_s24 + $0x38] ss:$8 sps:$4 sm:$0xff]  }
  0x78   : > { %2888 = vmatpush3.bf16.msra.mxu0 %v3087_v5  ;;  %2793 = vmatprep.subr.bf16.mxu1 %v3088_v8  ;;  %v1984_v4 = vsel %vm3291_vm2, %v1979_v0, %v1983_v59  ;;  %v2544_v5 = vld [vmem:[%s3256_s11 + $0x38] sm:$0xf] }
  0x79   : > { %2889 = vmatprep.subr.bf16.mxu0 %v3089_v9 }
  0x7b   : > { %2794 = vmatpush3.bf16.msra.mxu1 %v3088_v8  ;;  %v2536_v8 = vld [vmem:[%s3256_s11 + $0x18] sm:$0xf] }
  0x7c   : > { %2890 = vmatpush3.bf16.msra.mxu0 %v3089_v9  ;;  %2795 = vmatprep.subr.bf16.mxu1 %v3091_v10  ;;  %v2538_v9 = vld [vmem:[%s3256_s11 + $0x20] sm:$0xf]  ;;  %v1930_v16 = vshrl.u32 %v2536_v8, 16  ;;  %v1933_v17 = vshll.u32 %v2536_v8, 16 }
  0x7d   : > { %2891 = vmatprep.subr.bf16.mxu0 %v3093_v11  ;;  %v1944_v18 = vshrl.u32 %v2538_v9, 16  ;;  %v1947_v19 = vshll.u32 %v2538_v9, 16  ;;  %v2576_v9 = vld [vmem:[%s3549_s5] ss:$0 sm:$0xff] }
  0x7e   : > { %v1932_v26 = vrot.slane %v1930_v16, 4  ;;  %v1935_v27 = vrot.slane %v1933_v17, 5 }
  0x7f   : > { %2796 = vmatpush3.bf16.msra.mxu1 %v3091_v10  ;;  %v2566_v10 = vcombine.low %v1970_v2, %v1984_v4  ;;  %v1946_v28 = vrot.slane %v1944_v18, 4  ;;  %v1949_v29 = vrot.slane %v1947_v19, 5 }
  0x80   : > { %2892 = vmatpush3.bf16.msra.mxu0 %v3093_v11  ;;  %2797 = vmatprep.subr.bf16.mxu1 %v3094_v12  ;;  %v1986_v11 = vshrl.u32 %v2544_v5, 16  ;;  %v1936_v38 = vor.u32 %v1935_v27, %v1932_v26 }
  0x81   : > { %2893 = vmatprep.subr.bf16.mxu0 %v3095_v13  ;;  %v1950_v40 = vor.u32 %v1949_v29, %v1946_v28 }
  0x82   : > { %v1988_v22 = vrot.slane %v1986_v11, 4  ;;  %v1937_v47 = vrot.slane %v1936_v38, 4 }
  0x83   : > { %2798 = vmatpush3.bf16.msra.mxu1 %v3094_v12  ;;  %v1989_v12 = vshll.u32 %v2544_v5, 16 }
  0x84   : > { %2894 = vmatpush3.bf16.msra.mxu0 %v3095_v13  ;;  %2927 = vmatprep.subr.bf16.mxu1 %v3100_v14  ;;  %v2000_v13 = vshrl.u32 %v2546_v6, 16 }
  0x85   : > { %2903 = vmatprep.subr.bf16.mxu0 %v3100_v14  ;;  %v1991_v23 = vrot.slane %v1989_v12, 5 }
  0x86   : > { %2800 = vmatmul.mubr.bf16.vlgmr.msra.gmra.mrb[0].mxu1 %v3098_v30  ;;  %v2002_v24 = vrot.slane %v2000_v13, 4  ;;  %v2547_v30 = vld [vmem:[%s3256_s11 + $0x44] sm:$0x1] }
  0x87   : > { %2896 = vmatmul.mubr.bf16.vlgmr.msra.gmra.mrb[0].mxu0 %v3099_v34  ;;  %2935 = vmatpush3.bf16.msra.mxu1 %v3100_v14  ;;  %v1992_v33 = vor.u32 %v1991_v23, %v1988_v22  ;;  %v1995_v34 = vshll.u32 %v2545_v21, 16  ;;  %v2009_v36 = vshll.u32 %v2547_v30, 16 }
  0x88   : > { %2904 = vmatpush3.bf16.msra.mxu0 %v3100_v14  ;;  %2928 = vmatprep.subr.bf16.mxu1 %v3101_v39  ;;  %v2003_v14 = vshll.u32 %v2546_v6, 16 }
  0x89   : > { %2905 = vmatprep.subr.bf16.mxu0 %v3101_v39  ;;  %2803 = vmatprep.mubr.bf16.mxu1 %v3102_v44  ;;  %v1993_v42 = vrot.slane %v1992_v33, 4  ;;  %v1997_v43 = vrot.slane %v1995_v34, 5  ;;  %v2011_v45 = vrot.slane %v2009_v36, 5 }
  0x8a   : > { %2899 = vmatprep.mubr.bf16.mxu0 %v3103_v49  ;;  %v2005_v25 = vrot.slane %v2003_v14, 5  ;;  %v1951_v49 = vrot.slane %v1950_v40, 4 }
  0x8b   : > { %2936 = vmatpush3.bf16.msra.mxu1 %v3101_v39  ;;  %v1998_v51 = vsel %vm3291_vm2, %v1993_v42, %v1997_v43 }
  0x8c   : > { %2906 = vmatpush3.bf16.msra.mxu0 %v3101_v39  ;;  %2929 = vmatprep.subr.bf16.mxu1 %v3106_v57  ;;  %v2006_v35 = vor.u32 %v2005_v25, %v2002_v24  ;;  %v1939_v39 = vshll.u32 %v2537_v31, 16  ;;  %v1956_v55 = vsel %vm3291_vm2, %v1951_v49, %v1955_v50 }
  0x8d   : > { %2907 = vmatprep.subr.bf16.mxu0 %v3106_v57 }
  0x8e   : > { %2804 = vmatmul.mubr.bf16.gmra.mrb[4].mxu1 %v3104_v61  ;;  %v2007_v44 = vrot.slane %v2006_v35, 4  ;;  %v1941_v48 = vrot.slane %v1939_v39, 5 }
  0x8f   : > { %2900 = vmatmul.mubr.bf16.gmra.mrb[4].mxu0 %v3105_v1  ;;  %2937 = vmatpush3.bf16.msra.mxu1 %v3106_v57 }
  0x90   : > { %2908 = vmatpush3.bf16.msra.mxu0 %v3106_v57  ;;  %2930 = vmatprep.subr.bf16.mxu1 %v3107_v3  ;;  %v2012_v52 = vsel %vm3291_vm2, %v2007_v44, %v2011_v45  ;;  %v1942_v54 = vsel %vm3291_vm2, %v1937_v47, %v1941_v48 }
  0x91   : > { %2909 = vmatprep.subr.bf16.mxu0 %v3107_v3  ;;  %2919 = vmatprep.mubr.bf16.mxu0 %v2564_v7  ;;  %v2567_v56 = vcombine.low %v1998_v51, %v2012_v52  ;;  %v2565_v57 = vcombine.low %v1942_v54, %v1956_v55 }
  0x92   : > { %2923 = vmatprep.mubr.bf16.mxu1 %v2566_v10 }
  0x93   : > { %2938 = vmatpush3.bf16.msra.mxu1 %v3107_v3 }
  0x94   : > { %2910 = vmatpush3.bf16.msra.mxu0 %v3107_v3  ;;  %2931 = vmatprep.subr.bf16.mxu1 %v3108_v15 }
  0x95   : > { %2911 = vmatprep.subr.bf16.mxu0 %v3108_v15 }
  0x97   : > { %2939 = vmatpush3.bf16.msra.mxu1 %v3108_v15 }
  0x98   : > { %2912 = vmatpush3.bf16.msra.mxu0 %v3108_v15  ;;  %2932 = vmatprep.subr.bf16.mxu1 %v3109_v20 }
  0x99   : > { %2913 = vmatprep.subr.bf16.mxu0 %v3109_v20 }
  0x9b   : > { %2940 = vmatpush3.bf16.msra.mxu1 %v3109_v20 }
  0x9c   : > { %2914 = vmatpush3.bf16.msra.mxu0 %v3109_v20  ;;  %2933 = vmatprep.subr.bf16.mxu1 %v3110_v37 }
  0x9d   : > { %2915 = vmatprep.subr.bf16.mxu0 %v3110_v37 }
  0x9f   : > { %2941 = vmatpush3.bf16.msra.mxu1 %v3110_v37 }
  0xa0   : > { %2916 = vmatpush3.bf16.msra.mxu0 %v3110_v37  ;;  %2934 = vmatprep.subr.bf16.mxu1 %v3111_v46 }
  0xa1   : > { %2917 = vmatprep.subr.bf16.mxu0 %v3111_v46 }
  0xa3   : > { %2942 = vmatpush3.bf16.msra.mxu1 %v3111_v46 }
  0xa4   : > { %2918 = vmatpush3.bf16.msra.mxu0 %v3111_v46 }
  0xa6   : > { %2924 = vmatmul.mubr.bf16.vlgmr.msra.gmra.mrb[8].mxu1 %v2567_v56 }
  0xa7   : > { %2920 = vmatmul.mubr.bf16.vlgmr.msra.gmra.mrb[0].mxu0 %v2565_v57 }
 0x159   : > { %v2801_v58 = vpop.f32.mrb[0].mxu1 }
 0x15a   : > { %v1052_v59 = vpop.f32.mrb[1].mxu1 }
 0x15b   : > { %v2802_v60 = vpop.f32.mrb[2].mxu1 }
 0x15c   : > { %v1055_v61 = vpop.f32.mrb[3].mxu1 }
 0x161   : > { %v2805_v62 = vpop.f32.mrb[4].mxu1 }
 0x162   : > { %v2901_v63 = vpop.f32.mrb[4].mxu0  ;;  %v1068_v0 = vpop.f32.mrb[5].mxu1 }
 0x163   : > { %v2947_v1 = vadd.f32 %v2901_v63, %v2805_v62  ;;  %v1862_v2 = vpop.f32.mrb[5].mxu0  ;;  %v2806_v3 = vpop.f32.mrb[6].mxu1 }
 0x164   : > { %v2949_v4 = vadd.f32 %v1862_v2, %v1068_v0  ;;  %v2902_v53 = vpop.f32.mrb[6].mxu0  ;;  %v1071_v5 = vpop.f32.mrb[7].mxu1 }
 0x165   : > { %v2951_v6 = vadd.f32 %v2902_v53, %v2806_v3  ;;  %v1865_v7 = vpop.f32.mrb[7].mxu0 }
 0x166   : > { %v2953_v8 = vadd.f32 %v1865_v7, %v1071_v5 }
 0x179   : > { %v2925_v10 = vpop.f32.mrb[8].mxu1 }
 0x17a   : > { %v2921_v11 = vpop.f32.mrb[0].mxu0  ;;  %v2948_v12 = vadd.f32 %v2947_v1, %v2925_v10  ;;  %v2144_v13 = vpop.f32.mrb[9].mxu1 }
 0x17b   : > { %v2943_v14 = vadd.f32 %v2921_v11, %v2801_v58  ;;  %v2128_v15 = vpop.f32.mrb[1].mxu0  ;;  %v2950_v16 = vadd.f32 %v2949_v4, %v2144_v13  ;;  %v2926_v17 = vpop.f32.mrb[10].mxu1 }
 0x17c   : > { %v2180_v18 = vadd.f32 %v2948_v12, %v2576_v9  ;;  %v2944_v19 = vadd.f32 %v2128_v15, %v1052_v59  ;;  %v2922_v20 = vpop.f32.mrb[2].mxu0  ;;  %v2952_v21 = vadd.f32 %v2951_v6, %v2926_v17  ;;  %v2147_v22 = vpop.f32.mrb[11].mxu1 }
 0x17d   : > { %v2176_v23 = vadd.f32 %v2943_v14, %v2576_v9  ;;  %v2178_v24 = vadd.f32 %v2950_v16, %v2576_v9  ;;  %v2945_v25 = vadd.f32 %v2922_v20, %v2802_v60  ;;  %v2131_v26 = vpop.f32.mrb[3].mxu0  ;;  %v2954_v27 = vadd.f32 %v2953_v8, %v2147_v22 }
 0x17e   : > { %v2174_v28 = vadd.f32 %v2944_v19, %v2576_v9  ;;  %v2181_v29 = vadd.f32 %v2952_v21, %v2576_v9  ;;  %v2946_v30 = vadd.f32 %v2131_v26, %v1055_v61  ;;  %v2188_v33 = vmax.f32 %v2180_v18, 0.0 }
 0x17f   : > { %v2177_v31 = vadd.f32 %v2945_v25, %v2576_v9  ;;  %v2179_v32 = vadd.f32 %v2954_v27, %v2576_v9  ;;  %v2184_v36 = vmax.f32 %v2176_v23, 0.0  ;;  %v2186_v37 = vmax.f32 %v2178_v24, 0.0 }
 0x180   : > { %v2189_v34 = vmax.f32 %v2181_v29, 0.0  ;;  %v2175_v35 = vadd.f32 %v2946_v30, %v2576_v9  ;;  %v2182_v40 = vmax.f32 %v2174_v28, 0.0 }
 0x181   : > { %v2185_v38 = vmax.f32 %v2177_v31, 0.0  ;;  %v2187_v39 = vmax.f32 %v2179_v32, 0.0 }
 0x182   : > { %v2598_v41 = vpack.c.bf16 %v2189_v34, %v2188_v33  ;;  %v2183_v42 = vmax.f32 %v2175_v35, 0.0 }
 0x183   : > { %v2588_v43 = vpack.c.bf16 %v2185_v38, %v2184_v36  ;;  %v2593_v44 = vpack.c.bf16 %v2187_v39, %v2186_v37 }
 0x184   : > { %2602 = vst [vmem:[%s311_s23 + $0x18] sm:$0xff] %v2598_v41   ;;  %v2583_v45 = vpack.c.bf16 %v2183_v42, %v2182_v40 }
 0x185   : > { %2600 = vst [vmem:[%s311_s23 + $0x8] sm:$0xff] %v2588_v43   ;;  %2601 = vst [vmem:[%s311_s23 + $0x10] sm:$0xff] %v2593_v44  }
 0x186   : > { %2584 = vst [vmem:[%s311_s23] sm:$0xff] %v2583_v45  }
 0x187 PF: > { %s16_s21 = sadd.s32 1, %s3118_s21  }
 0x188   : > { %p13_p4 = scmp.ge.s32.totalorder %s16_s21, 4  }
 0x18a   :  { %15 = sbr.rel (!%p13_p4) target bundleno = 1 (0x1), region = 93 }

// kernel: patch_embedding_forward.5
= control target key start
LH: loop header
LB: loop body
LE: loop exit
PB: predicated region body
PF: predicated region fallthrough
CT: control target
= control target key end

     0   :  { %s2386_s1 = inlined_call_operand.vmem [shape: bf16[2048,128], index: 1, kind: input, shape index: {}]   ;;  %s2387_s0 = inlined_call_operand.vmem [shape: bf16[16,2048], index: 0, kind: input, shape index: {}]   ;;  %s2388_s2 = inlined_call_operand.vmem [shape: f32[1,128], index: 2, kind: input, shape index: {}]   ;;  %s2389_s3 = inlined_call_operand.vmem [shape: f32[16,128], index: 3, kind: output, shape index: {}]  }
   0x1   :  { %v1797_v0 = vld [vmem:[%s2386_s1 + $0x40] sm:$0xff]   ;;  %v1801_v4 = vld [vmem:[%s2386_s1 + $0x48] sm:$0xff]   ;;  %v1805_v8 = vld [vmem:[%s2386_s1 + $0x50] sm:$0xff]  }
   0x2   :  { %v1798_v1 = vld [vmem:[%s2386_s1 + $0xc0] sm:$0xff]   ;;  %1621 = vmatprep.subr.bf16.mxu0 %v1797_v0  ;;  %v1802_v5 = vld [vmem:[%s2386_s1 + $0xc8] sm:$0xff]   ;;  %v1806_v9 = vld [vmem:[%s2386_s1 + $0xd0] sm:$0xff]  }
   0x3   :  { %v1799_v2 = vld [vmem:[%s2386_s1] sm:$0xff]   ;;  %1643 = vmatprep.subr.bf16.mxu1 %v1798_v1  ;;  %v1803_v6 = vld [vmem:[%s2386_s1 + $0x8] sm:$0xff]   ;;  %v1807_v10 = vld [vmem:[%s2386_s1 + $0x10] sm:$0xff]  }
   0x4   :  { %v1800_v3 = vld [vmem:[%s2386_s1 + $0x80] sm:$0xff]   ;;  %1622 = vmatpush3.bf16.msra.mxu0 %v1799_v2  ;;  %v1804_v7 = vld [vmem:[%s2386_s1 + $0x88] sm:$0xff]   ;;  %v1808_v11 = vld [vmem:[%s2386_s1 + $0x90] sm:$0xff]  }
   0x5   :  { %1644 = vmatpush3.bf16.msra.mxu1 %v1800_v3  ;;  %1623 = vmatprep.subr.bf16.mxu0 %v1801_v4  ;;  %v1809_v12 = vld [vmem:[%s2386_s1 + $0x58] sm:$0xff]   ;;  %v1813_v16 = vld [vmem:[%s2386_s1 + $0x60] sm:$0xff]   ;;  %v1817_v20 = vld [vmem:[%s2386_s1 + $0x68] sm:$0xff]  }
   0x6   :  { %1645 = vmatprep.subr.bf16.mxu1 %v1802_v5  ;;  %v1810_v13 = vld [vmem:[%s2386_s1 + $0xd8] sm:$0xff]   ;;  %v1814_v17 = vld [vmem:[%s2386_s1 + $0xe0] sm:$0xff]   ;;  %v1818_v21 = vld [vmem:[%s2386_s1 + $0xe8] sm:$0xff]  }
   0x7   :  { %v1811_v14 = vld [vmem:[%s2386_s1 + $0x18] sm:$0xff]   ;;  %v1815_v18 = vld [vmem:[%s2386_s1 + $0x20] sm:$0xff]   ;;  %v1819_v22 = vld [vmem:[%s2386_s1 + $0x28] sm:$0xff]  }
   0x8   :  { %1624 = vmatpush3.bf16.msra.mxu0 %v1803_v6  ;;  %v1812_v15 = vld [vmem:[%s2386_s1 + $0x98] sm:$0xff]   ;;  %v1816_v19 = vld [vmem:[%s2386_s1 + $0xa0] sm:$0xff]   ;;  %v1820_v23 = vld [vmem:[%s2386_s1 + $0xa8] sm:$0xff]  }
   0x9   :  { %1646 = vmatpush3.bf16.msra.mxu1 %v1804_v7  ;;  %1625 = vmatprep.subr.bf16.mxu0 %v1805_v8  ;;  %v1821_v24 = vld [vmem:[%s2386_s1 + $0x70] sm:$0xff]   ;;  %v1825_v28 = vld [vmem:[%s2386_s1 + $0x78] sm:$0xff]   ;;  %v15_v32 = vld [vmem:[%s2387_s0] sm:$0xff] }
   0xa   :  { %1647 = vmatprep.subr.bf16.mxu1 %v1806_v9  ;;  %v1822_v25 = vld [vmem:[%s2386_s1 + $0xf0] sm:$0xff]   ;;  %v1826_v29 = vld [vmem:[%s2386_s1 + $0xf8] sm:$0xff]   ;;  %v23_v33 = vld [vmem:[%s2387_s0 + $0x40] sm:$0xff] }
   0xb   :  { %v1823_v26 = vld [vmem:[%s2386_s1 + $0x30] sm:$0xff]   ;;  %v1827_v30 = vld [vmem:[%s2386_s1 + $0x38] sm:$0xff]   ;;  %v16_v34 = vld [vmem:[%s2387_s0 + $0x8] sm:$0xff]  ;;  %v1477_v35 = vcombine.low %v15_v32, %v23_v33  ;;  %v1478_v36 = vcombine.high %v15_v32, %v23_v33 }
   0xc   :  { %1626 = vmatpush3.bf16.msra.mxu0 %v1807_v10  ;;  %v1824_v27 = vld [vmem:[%s2386_s1 + $0xb0] sm:$0xff]   ;;  %v1828_v31 = vld [vmem:[%s2386_s1 + $0xb8] sm:$0xff]   ;;  %v24_v37 = vld [vmem:[%s2387_s0 + $0x48] sm:$0xff] }
   0xd   :  { %1648 = vmatpush3.bf16.msra.mxu1 %v1808_v11  ;;  %1627 = vmatprep.subr.bf16.mxu0 %v1809_v12  ;;  %v1479_v38 = vcombine.low %v16_v34, %v24_v37  ;;  %v1480_v39 = vcombine.high %v16_v34, %v24_v37  ;;  %v1829_v40 = vld [vmem:[%s2386_s1 + $0x140] sm:$0xff]   ;;  %v1833_v44 = vld [vmem:[%s2386_s1 + $0x148] sm:$0xff]   ;;  %v1837_v48 = vld [vmem:[%s2386_s1 + $0x150] sm:$0xff]  }
   0xe   :  { %1649 = vmatprep.subr.bf16.mxu1 %v1810_v13  ;;  %1174 = vmatprep.mubr.bf16.mxu0 %v1478_v36  ;;  %v1830_v41 = vld [vmem:[%s2386_s1 + $0x1c0] sm:$0xff]   ;;  %v1834_v45 = vld [vmem:[%s2386_s1 + $0x1c8] sm:$0xff]   ;;  %v1838_v49 = vld [vmem:[%s2386_s1 + $0x1d0] sm:$0xff]  }
   0xf   :  { %1215 = vmatprep.mubr.bf16.mxu1 %v1480_v39  ;;  %v1831_v42 = vld [vmem:[%s2386_s1 + $0x100] sm:$0xff]   ;;  %v1835_v46 = vld [vmem:[%s2386_s1 + $0x108] sm:$0xff]   ;;  %v1839_v50 = vld [vmem:[%s2386_s1 + $0x110] sm:$0xff]  }
  0x10   :  { %1628 = vmatpush3.bf16.msra.mxu0 %v1811_v14  ;;  %v1832_v43 = vld [vmem:[%s2386_s1 + $0x180] sm:$0xff]   ;;  %v1836_v47 = vld [vmem:[%s2386_s1 + $0x188] sm:$0xff]   ;;  %v1840_v51 = vld [vmem:[%s2386_s1 + $0x190] sm:$0xff]  }
  0x11   :  { %1650 = vmatpush3.bf16.msra.mxu1 %v1812_v15  ;;  %1629 = vmatprep.subr.bf16.mxu0 %v1813_v16  ;;  %v1841_v52 = vld [vmem:[%s2386_s1 + $0x158] sm:$0xff]   ;;  %v1845_v56 = vld [vmem:[%s2386_s1 + $0x160] sm:$0xff]   ;;  %v1849_v60 = vld [vmem:[%s2386_s1 + $0x168] sm:$0xff]  }
  0x12   :  { %1651 = vmatprep.subr.bf16.mxu1 %v1814_v17  ;;  %v1842_v53 = vld [vmem:[%s2386_s1 + $0x1d8] sm:$0xff]   ;;  %v1846_v57 = vld [vmem:[%s2386_s1 + $0x1e0] sm:$0xff]   ;;  %v1850_v61 = vld [vmem:[%s2386_s1 + $0x1e8] sm:$0xff]  }
  0x13   :  { %v1843_v54 = vld [vmem:[%s2386_s1 + $0x118] sm:$0xff]   ;;  %v1847_v58 = vld [vmem:[%s2386_s1 + $0x120] sm:$0xff]   ;;  %v1851_v62 = vld [vmem:[%s2386_s1 + $0x128] sm:$0xff]  }
  0x14   :  { %1630 = vmatpush3.bf16.msra.mxu0 %v1815_v18  ;;  %v1844_v55 = vld [vmem:[%s2386_s1 + $0x198] sm:$0xff]   ;;  %v1848_v59 = vld [vmem:[%s2386_s1 + $0x1a0] sm:$0xff]   ;;  %v1852_v63 = vld [vmem:[%s2386_s1 + $0x1a8] sm:$0xff]  }
  0x15   :  { %1652 = vmatpush3.bf16.msra.mxu1 %v1816_v19  ;;  %1631 = vmatprep.subr.bf16.mxu0 %v1817_v20  ;;  %v1853_v0 = vld [vmem:[%s2386_s1 + $0x170] sm:$0xff]   ;;  %v1857_v4 = vld [vmem:[%s2386_s1 + $0x178] sm:$0xff]   ;;  %v1861_v16 = vld [vmem:[%s2386_s1 + $0x240] sm:$0xff]  }
  0x16   :  { %1653 = vmatprep.subr.bf16.mxu1 %v1818_v21  ;;  %v1854_v1 = vld [vmem:[%s2386_s1 + $0x1f0] sm:$0xff]   ;;  %v1858_v5 = vld [vmem:[%s2386_s1 + $0x1f8] sm:$0xff]   ;;  %v1862_v17 = vld [vmem:[%s2386_s1 + $0x2c0] sm:$0xff]  }
  0x17   :  { %v1855_v2 = vld [vmem:[%s2386_s1 + $0x130] sm:$0xff]   ;;  %v1859_v6 = vld [vmem:[%s2386_s1 + $0x138] sm:$0xff]   ;;  %v1863_v18 = vld [vmem:[%s2386_s1 + $0x200] sm:$0xff]  }
  0x18   :  { %1632 = vmatpush3.bf16.msra.mxu0 %v1819_v22  ;;  %v1856_v3 = vld [vmem:[%s2386_s1 + $0x1b0] sm:$0xff]   ;;  %v1860_v7 = vld [vmem:[%s2386_s1 + $0x1b8] sm:$0xff]   ;;  %v1864_v19 = vld [vmem:[%s2386_s1 + $0x280] sm:$0xff]  }
  0x19   :  { %1654 = vmatpush3.bf16.msra.mxu1 %v1820_v23  ;;  %1633 = vmatprep.subr.bf16.mxu0 %v1821_v24  ;;  %v17_v8 = vld [vmem:[%s2387_s0 + $0x10] sm:$0xff]  ;;  %v18_v12 = vld [vmem:[%s2387_s0 + $0x18] sm:$0xff]  ;;  %v1865_v20 = vld [vmem:[%s2386_s1 + $0x248] sm:$0xff]  }
  0x1a   :  { %1655 = vmatprep.subr.bf16.mxu1 %v1822_v25  ;;  %v25_v9 = vld [vmem:[%s2387_s0 + $0x50] sm:$0xff]  ;;  %v26_v13 = vld [vmem:[%s2387_s0 + $0x58] sm:$0xff]  ;;  %v1866_v21 = vld [vmem:[%s2386_s1 + $0x2c8] sm:$0xff]  }
  0x1b   :  { %v1481_v10 = vcombine.low %v17_v8, %v25_v9  ;;  %v1482_v11 = vcombine.high %v17_v8, %v25_v9  ;;  %v1483_v14 = vcombine.low %v18_v12, %v26_v13  ;;  %v1484_v15 = vcombine.high %v18_v12, %v26_v13  ;;  %v1867_v22 = vld [vmem:[%s2386_s1 + $0x208] sm:$0xff]   ;;  %v1869_v24 = vld [vmem:[%s2386_s1 + $0x250] sm:$0xff]   ;;  %v1877_v32 = vld [vmem:[%s2386_s1 + $0x260] sm:$0xff]  }
  0x1c   :  { %1634 = vmatpush3.bf16.msra.mxu0 %v1823_v26  ;;  %v1868_v23 = vld [vmem:[%s2386_s1 + $0x288] sm:$0xff]   ;;  %v1870_v25 = vld [vmem:[%s2386_s1 + $0x2d0] sm:$0xff]   ;;  %v1878_v33 = vld [vmem:[%s2386_s1 + $0x2e0] sm:$0xff]  }
  0x1d   :  { %1656 = vmatpush3.bf16.msra.mxu1 %v1824_v27  ;;  %1635 = vmatprep.subr.bf16.mxu0 %v1825_v28  ;;  %v1871_v26 = vld [vmem:[%s2386_s1 + $0x210] sm:$0xff]   ;;  %v1873_v28 = vld [vmem:[%s2386_s1 + $0x258] sm:$0xff]   ;;  %v1879_v34 = vld [vmem:[%s2386_s1 + $0x220] sm:$0xff]  }
  0x1e   :  { %1657 = vmatprep.subr.bf16.mxu1 %v1826_v29  ;;  %v1872_v27 = vld [vmem:[%s2386_s1 + $0x290] sm:$0xff]   ;;  %v1874_v29 = vld [vmem:[%s2386_s1 + $0x2d8] sm:$0xff]   ;;  %v1881_v36 = vld [vmem:[%s2386_s1 + $0x268] sm:$0xff]  }
  0x1f   :  { %v1882_v37 = vld [vmem:[%s2386_s1 + $0x2e8] sm:$0xff]   ;;  %v1909_v8 = vld [vmem:[%s2386_s1 + $0x360] sm:$0xff]  }
  0x20   :  { %1636 = vmatpush3.bf16.msra.mxu0 %v1827_v30  ;;  %v1875_v30 = vld [vmem:[%s2386_s1 + $0x218] sm:$0xff]   ;;  %v1884_v39 = vld [vmem:[%s2386_s1 + $0x2a8] sm:$0xff]   ;;  %v1910_v9 = vld [vmem:[%s2386_s1 + $0x3e0] sm:$0xff]  }
  0x21   :  { %1658 = vmatpush3.bf16.msra.mxu1 %v1828_v31  ;;  %1665 = vmatprep.subr.bf16.mxu0 %v1829_v40  ;;  %v1876_v31 = vld [vmem:[%s2386_s1 + $0x298] sm:$0xff]   ;;  %v1885_v40 = vld [vmem:[%s2386_s1 + $0x270] sm:$0xff]   ;;  %v1913_v12 = vld [vmem:[%s2386_s1 + $0x368] sm:$0xff]  }
  0x22   :  { %1687 = vmatprep.subr.bf16.mxu1 %v1830_v41  ;;  %v1886_v41 = vld [vmem:[%s2386_s1 + $0x2f0] sm:$0xff]   ;;  %v1914_v13 = vld [vmem:[%s2386_s1 + $0x3e8] sm:$0xff]  }
  0x23   :  { %1175 = vmatmul.mubr.bf16.vlgmr.msra.gmra.mrb[0].mxu0 %v1477_v35  ;;  %v1880_v35 = vld [vmem:[%s2386_s1 + $0x2a0] sm:$0xff]  }
  0x24   :  { %1216 = vmatmul.mubr.bf16.vlgmr.msra.gmra.mrb[0].mxu1 %v1479_v38  ;;  %1666 = vmatpush3.bf16.msra.mxu0 %v1831_v42  ;;  %v1883_v38 = vld [vmem:[%s2386_s1 + $0x228] sm:$0xff]   ;;  %v1887_v42 = vld [vmem:[%s2386_s1 + $0x230] sm:$0xff]  }
  0x25   :  { %1688 = vmatpush3.bf16.msra.mxu1 %v1832_v43  ;;  %1667 = vmatprep.subr.bf16.mxu0 %v1833_v44  ;;  %v1888_v43 = vld [vmem:[%s2386_s1 + $0x2b0] sm:$0xff]   ;;  %v1889_v44 = vld [vmem:[%s2386_s1 + $0x278] sm:$0xff]  }
  0x26   :  { %1689 = vmatprep.subr.bf16.mxu1 %v1834_v45  ;;  %1256 = vmatprep.mubr.bf16.mxu0 %v1482_v11  ;;  %v1890_v45 = vld [vmem:[%s2386_s1 + $0x2f8] sm:$0xff]   ;;  %v1912_v11 = vld [vmem:[%s2386_s1 + $0x3a0] sm:$0xff]  }
  0x27   :  { %1297 = vmatprep.mubr.bf16.mxu1 %v1484_v15  ;;  %v1916_v15 = vld [vmem:[%s2386_s1 + $0x3a8] sm:$0xff]  }
  0x28   :  { %1668 = vmatpush3.bf16.msra.mxu0 %v1835_v46  ;;  %v1891_v46 = vld [vmem:[%s2386_s1 + $0x238] sm:$0xff]  }
  0x29   :  { %1690 = vmatpush3.bf16.msra.mxu1 %v1836_v47  ;;  %1669 = vmatprep.subr.bf16.mxu0 %v1837_v48  ;;  %v1892_v47 = vld [vmem:[%s2386_s1 + $0x2b8] sm:$0xff]   ;;  %v19_v48 = vld [vmem:[%s2387_s0 + $0x20] sm:$0xff] }
  0x2a   :  { %1691 = vmatprep.subr.bf16.mxu1 %v1838_v49  ;;  %v27_v49 = vld [vmem:[%s2387_s0 + $0x60] sm:$0xff] }
  0x2c   :  { %1670 = vmatpush3.bf16.msra.mxu0 %v1839_v50  ;;  %v20_v50 = vld [vmem:[%s2387_s0 + $0x28] sm:$0xff] }
  0x2d   :  { %1692 = vmatpush3.bf16.msra.mxu1 %v1840_v51  ;;  %1671 = vmatprep.subr.bf16.mxu0 %v1841_v52  ;;  %v28_v51 = vld [vmem:[%s2387_s0 + $0x68] sm:$0xff]  ;;  %v1485_v52 = vcombine.low %v19_v48, %v27_v49 }
  0x2e   :  { %1693 = vmatprep.subr.bf16.mxu1 %v1842_v53  ;;  %v1486_v53 = vcombine.high %v19_v48, %v27_v49 }
  0x30   :  { %1672 = vmatpush3.bf16.msra.mxu0 %v1843_v54  ;;  %v1487_v54 = vcombine.low %v20_v50, %v28_v51 }
  0x31   :  { %1694 = vmatpush3.bf16.msra.mxu1 %v1844_v55  ;;  %1673 = vmatprep.subr.bf16.mxu0 %v1845_v56  ;;  %v1488_v55 = vcombine.high %v20_v50, %v28_v51  ;;  %v1893_v56 = vld [vmem:[%s2386_s1 + $0x340] sm:$0xff]  }
  0x32   :  { %1695 = vmatprep.subr.bf16.mxu1 %v1846_v57  ;;  %v1894_v57 = vld [vmem:[%s2386_s1 + $0x3c0] sm:$0xff]  }
  0x34   :  { %1674 = vmatpush3.bf16.msra.mxu0 %v1847_v58  ;;  %v1895_v58 = vld [vmem:[%s2386_s1 + $0x300] sm:$0xff]  }
  0x35   :  { %1696 = vmatpush3.bf16.msra.mxu1 %v1848_v59  ;;  %1675 = vmatprep.subr.bf16.mxu0 %v1849_v60  ;;  %v1896_v59 = vld [vmem:[%s2386_s1 + $0x380] sm:$0xff]   ;;  %v1897_v60 = vld [vmem:[%s2386_s1 + $0x348] sm:$0xff]  }
  0x36   :  { %1697 = vmatprep.subr.bf16.mxu1 %v1850_v61  ;;  %v1898_v61 = vld [vmem:[%s2386_s1 + $0x3c8] sm:$0xff]  }
  0x38   :  { %1676 = vmatpush3.bf16.msra.mxu0 %v1851_v62  ;;  %v1899_v62 = vld [vmem:[%s2386_s1 + $0x308] sm:$0xff]  }
  0x39   :  { %1698 = vmatpush3.bf16.msra.mxu1 %v1852_v63  ;;  %1677 = vmatprep.subr.bf16.mxu0 %v1853_v0  ;;  %v1900_v63 = vld [vmem:[%s2386_s1 + $0x388] sm:$0xff]   ;;  %v1901_v0 = vld [vmem:[%s2386_s1 + $0x350] sm:$0xff]  }
  0x3a   :  { %1699 = vmatprep.subr.bf16.mxu1 %v1854_v1  ;;  %v1902_v1 = vld [vmem:[%s2386_s1 + $0x3d0] sm:$0xff]  }
  0x3c   :  { %1678 = vmatpush3.bf16.msra.mxu0 %v1855_v2  ;;  %v1903_v2 = vld [vmem:[%s2386_s1 + $0x310] sm:$0xff]  }
  0x3d   :  { %1700 = vmatpush3.bf16.msra.mxu1 %v1856_v3  ;;  %1679 = vmatprep.subr.bf16.mxu0 %v1857_v4  ;;  %v1904_v3 = vld [vmem:[%s2386_s1 + $0x390] sm:$0xff]   ;;  %v1905_v4 = vld [vmem:[%s2386_s1 + $0x358] sm:$0xff]  }
  0x3e   :  { %1701 = vmatprep.subr.bf16.mxu1 %v1858_v5  ;;  %v1906_v5 = vld [vmem:[%s2386_s1 + $0x3d8] sm:$0xff]  }
  0x40   :  { %1680 = vmatpush3.bf16.msra.mxu0 %v1859_v6  ;;  %v1907_v6 = vld [vmem:[%s2386_s1 + $0x318] sm:$0xff]  }
  0x41   :  { %1702 = vmatpush3.bf16.msra.mxu1 %v1860_v7  ;;  %1709 = vmatprep.subr.bf16.mxu0 %v1861_v16  ;;  %v1908_v7 = vld [vmem:[%s2386_s1 + $0x398] sm:$0xff]   ;;  %v1917_v16 = vld [vmem:[%s2386_s1 + $0x370] sm:$0xff]  }
  0x42   :  { %1731 = vmatprep.subr.bf16.mxu1 %v1862_v17  ;;  %v1918_v17 = vld [vmem:[%s2386_s1 + $0x3f0] sm:$0xff]  }
  0x43   :  { %1257 = vmatmul.mubr.bf16.vlgmr.msra.gmra.mrb[4].mxu0 %v1481_v10  ;;  %v1911_v10 = vld [vmem:[%s2386_s1 + $0x320] sm:$0xff]  }
  0x44   :  { %1298 = vmatmul.mubr.bf16.vlgmr.msra.gmra.mrb[4].mxu1 %v1483_v14  ;;  %1710 = vmatpush3.bf16.msra.mxu0 %v1863_v18  ;;  %v1915_v14 = vld [vmem:[%s2386_s1 + $0x328] sm:$0xff]   ;;  %v1919_v18 = vld [vmem:[%s2386_s1 + $0x330] sm:$0xff]  }
  0x45   :  { %1732 = vmatpush3.bf16.msra.mxu1 %v1864_v19  ;;  %1711 = vmatprep.subr.bf16.mxu0 %v1865_v20  ;;  %v1920_v19 = vld [vmem:[%s2386_s1 + $0x3b0] sm:$0xff]   ;;  %v1921_v20 = vld [vmem:[%s2386_s1 + $0x378] sm:$0xff]  }
  0x46   :  { %1733 = vmatprep.subr.bf16.mxu1 %v1866_v21  ;;  %1338 = vmatprep.mubr.bf16.mxu0 %v1486_v53  ;;  %v1922_v21 = vld [vmem:[%s2386_s1 + $0x3f8] sm:$0xff]  }
  0x47   :  { %1379 = vmatprep.mubr.bf16.mxu1 %v1488_v55 }
  0x48   :  { %1712 = vmatpush3.bf16.msra.mxu0 %v1867_v22  ;;  %v1923_v22 = vld [vmem:[%s2386_s1 + $0x338] sm:$0xff]  }
  0x49   :  { %1734 = vmatpush3.bf16.msra.mxu1 %v1868_v23  ;;  %1713 = vmatprep.subr.bf16.mxu0 %v1869_v24  ;;  %v1924_v23 = vld [vmem:[%s2386_s1 + $0x3b8] sm:$0xff]   ;;  %v21_v24 = vld [vmem:[%s2387_s0 + $0x30] sm:$0xff] }
  0x4a   :  { %1735 = vmatprep.subr.bf16.mxu1 %v1870_v25  ;;  %v29_v25 = vld [vmem:[%s2387_s0 + $0x70] sm:$0xff] }
  0x4c   :  { %1714 = vmatpush3.bf16.msra.mxu0 %v1871_v26  ;;  %v22_v26 = vld [vmem:[%s2387_s0 + $0x38] sm:$0xff] }
  0x4d   :  { %1736 = vmatpush3.bf16.msra.mxu1 %v1872_v27  ;;  %1715 = vmatprep.subr.bf16.mxu0 %v1873_v28  ;;  %v1489_v27 = vcombine.low %v21_v24, %v29_v25  ;;  %v1490_v28 = vcombine.high %v21_v24, %v29_v25 }
  0x4e   :  { %1737 = vmatprep.subr.bf16.mxu1 %v1874_v29  ;;  %v30_v29 = vld [vmem:[%s2387_s0 + $0x78] sm:$0xff] }
  0x50   :  { %1716 = vmatpush3.bf16.msra.mxu0 %v1875_v30  ;;  %v1491_v30 = vcombine.low %v22_v26, %v30_v29 }
  0x51   :  { %1738 = vmatpush3.bf16.msra.mxu1 %v1876_v31  ;;  %1717 = vmatprep.subr.bf16.mxu0 %v1877_v32  ;;  %v1492_v31 = vcombine.high %v22_v26, %v30_v29 }
  0x52   :  { %1739 = vmatprep.subr.bf16.mxu1 %v1878_v33 }
  0x54   :  { %1718 = vmatpush3.bf16.msra.mxu0 %v1879_v34  ;;  %v1476_v34 = vld [vmem:[%s2388_s2] ss:$0 sm:$0xff] }
  0x55   :  { %1740 = vmatpush3.bf16.msra.mxu1 %v1880_v35  ;;  %1719 = vmatprep.subr.bf16.mxu0 %v1881_v36 }
  0x56   :  { %1741 = vmatprep.subr.bf16.mxu1 %v1882_v37 }
  0x58   :  { %1720 = vmatpush3.bf16.msra.mxu0 %v1883_v38 }
  0x59   :  { %1742 = vmatpush3.bf16.msra.mxu1 %v1884_v39  ;;  %1721 = vmatprep.subr.bf16.mxu0 %v1885_v40 }
  0x5a   :  { %1743 = vmatprep.subr.bf16.mxu1 %v1886_v41 }
  0x5c   :  { %1722 = vmatpush3.bf16.msra.mxu0 %v1887_v42 }
  0x5d   :  { %1744 = vmatpush3.bf16.msra.mxu1 %v1888_v43  ;;  %1723 = vmatprep.subr.bf16.mxu0 %v1889_v44 }
  0x5e   :  { %1745 = vmatprep.subr.bf16.mxu1 %v1890_v45 }
  0x60   :  { %1724 = vmatpush3.bf16.msra.mxu0 %v1891_v46 }
  0x61   :  { %1746 = vmatpush3.bf16.msra.mxu1 %v1892_v47  ;;  %1753 = vmatprep.subr.bf16.mxu0 %v1893_v56 }
  0x62   :  { %1775 = vmatprep.subr.bf16.mxu1 %v1894_v57 }
  0x63   :  { %1339 = vmatmul.mubr.bf16.vlgmr.msra.gmra.mrb[8].mxu0 %v1485_v52 }
  0x64   :  { %1380 = vmatmul.mubr.bf16.vlgmr.msra.gmra.mrb[8].mxu1 %v1487_v54  ;;  %1754 = vmatpush3.bf16.msra.mxu0 %v1895_v58 }
  0x65   :  { %1776 = vmatpush3.bf16.msra.mxu1 %v1896_v59  ;;  %1755 = vmatprep.subr.bf16.mxu0 %v1897_v60 }
  0x66   :  { %1777 = vmatprep.subr.bf16.mxu1 %v1898_v61  ;;  %1420 = vmatprep.mubr.bf16.mxu0 %v1490_v28 }
  0x67   :  { %1461 = vmatprep.mubr.bf16.mxu1 %v1492_v31 }
  0x68   :  { %1756 = vmatpush3.bf16.msra.mxu0 %v1899_v62 }
  0x69   :  { %1778 = vmatpush3.bf16.msra.mxu1 %v1900_v63  ;;  %1757 = vmatprep.subr.bf16.mxu0 %v1901_v0 }
  0x6a   :  { %1779 = vmatprep.subr.bf16.mxu1 %v1902_v1 }
  0x6c   :  { %1758 = vmatpush3.bf16.msra.mxu0 %v1903_v2 }
  0x6d   :  { %1780 = vmatpush3.bf16.msra.mxu1 %v1904_v3  ;;  %1759 = vmatprep.subr.bf16.mxu0 %v1905_v4 }
  0x6e   :  { %1781 = vmatprep.subr.bf16.mxu1 %v1906_v5 }
  0x70   :  { %1760 = vmatpush3.bf16.msra.mxu0 %v1907_v6 }
  0x71   :  { %1782 = vmatpush3.bf16.msra.mxu1 %v1908_v7  ;;  %1761 = vmatprep.subr.bf16.mxu0 %v1909_v8 }
  0x72   :  { %1783 = vmatprep.subr.bf16.mxu1 %v1910_v9 }
  0x74   :  { %1762 = vmatpush3.bf16.msra.mxu0 %v1911_v10 }
  0x75   :  { %1784 = vmatpush3.bf16.msra.mxu1 %v1912_v11  ;;  %1763 = vmatprep.subr.bf16.mxu0 %v1913_v12 }
  0x76   :  { %1785 = vmatprep.subr.bf16.mxu1 %v1914_v13 }
  0x78   :  { %1764 = vmatpush3.bf16.msra.mxu0 %v1915_v14 }
  0x79   :  { %1786 = vmatpush3.bf16.msra.mxu1 %v1916_v15  ;;  %1765 = vmatprep.subr.bf16.mxu0 %v1917_v16 }
  0x7a   :  { %1787 = vmatprep.subr.bf16.mxu1 %v1918_v17 }
  0x7c   :  { %1766 = vmatpush3.bf16.msra.mxu0 %v1919_v18 }
  0x7d   :  { %1788 = vmatpush3.bf16.msra.mxu1 %v1920_v19  ;;  %1767 = vmatprep.subr.bf16.mxu0 %v1921_v20 }
  0x7e   :  { %1789 = vmatprep.subr.bf16.mxu1 %v1922_v21 }
  0x80   :  { %1768 = vmatpush3.bf16.msra.mxu0 %v1923_v22 }
  0x81   :  { %1790 = vmatpush3.bf16.msra.mxu1 %v1924_v23 }
  0x83   :  { %1421 = vmatmul.mubr.bf16.vlgmr.msra.gmra.mrb[12].mxu0 %v1489_v27 }
  0x84   :  { %1462 = vmatmul.mubr.bf16.vlgmr.msra.gmra.mrb[12].mxu1 %v1491_v30 }
  0xf6   :  { %v1637_v32 = vpop.f32.mrb[0].mxu0 }
  0xf7   :  { %v1659_v33 = vpop.f32.mrb[0].mxu1  ;;  %v1638_v35 = vpop.f32.mrb[1].mxu0 }
  0xf8   :  { %v1639_v36 = vadd.f32 %v1638_v35, %v1637_v32  ;;  %v1660_v37 = vpop.f32.mrb[1].mxu1  ;;  %v1640_v38 = vpop.f32.mrb[2].mxu0 }
  0xf9   :  { %v1661_v39 = vadd.f32 %v1660_v37, %v1659_v33  ;;  %v1662_v40 = vpop.f32.mrb[2].mxu1  ;;  %v1641_v41 = vpop.f32.mrb[3].mxu0 }
  0xfa   :  { %v1177_v42 = vadd.f32 %v1639_v36, %v1476_v34  ;;  %v1642_v43 = vadd.f32 %v1641_v41, %v1640_v38  ;;  %v1663_v44 = vpop.f32.mrb[3].mxu1 }
  0xfb   :  { %v1664_v45 = vadd.f32 %v1663_v44, %v1662_v40 }
  0xfc   :  { %v1218_v46 = vadd.f32 %v1661_v39, %v1177_v42  ;;  %v1180_v47 = vadd.f32 %v1642_v43, %v1476_v34 }
  0xfe   :  { %v1221_v48 = vadd.f32 %v1664_v45, %v1180_v47 }
 0x116   :  { %v1681_v49 = vpop.f32.mrb[4].mxu0 }
 0x117   :  { %v1703_v50 = vpop.f32.mrb[4].mxu1  ;;  %v1682_v51 = vpop.f32.mrb[5].mxu0 }
 0x118   :  { %v1683_v52 = vadd.f32 %v1682_v51, %v1681_v49  ;;  %v1704_v53 = vpop.f32.mrb[5].mxu1  ;;  %v1684_v54 = vpop.f32.mrb[6].mxu0 }
 0x119   :  { %v1705_v55 = vadd.f32 %v1704_v53, %v1703_v50  ;;  %v1706_v56 = vpop.f32.mrb[6].mxu1  ;;  %v1685_v57 = vpop.f32.mrb[7].mxu0 }
 0x11a   :  { %v1259_v58 = vadd.f32 %v1683_v52, %v1218_v46  ;;  %v1686_v59 = vadd.f32 %v1685_v57, %v1684_v54  ;;  %v1707_v60 = vpop.f32.mrb[7].mxu1 }
 0x11b   :  { %v1708_v61 = vadd.f32 %v1707_v60, %v1706_v56 }
 0x11c   :  { %v1300_v62 = vadd.f32 %v1705_v55, %v1259_v58  ;;  %v1262_v63 = vadd.f32 %v1686_v59, %v1221_v48 }
 0x11e   :  { %v1303_v0 = vadd.f32 %v1708_v61, %v1262_v63 }
 0x136   :  { %v1725_v1 = vpop.f32.mrb[8].mxu0 }
 0x137   :  { %v1747_v2 = vpop.f32.mrb[8].mxu1  ;;  %v1726_v3 = vpop.f32.mrb[9].mxu0 }
 0x138   :  { %v1748_v4 = vpop.f32.mrb[9].mxu1  ;;  %v1727_v5 = vadd.f32 %v1726_v3, %v1725_v1  ;;  %v1728_v7 = vpop.f32.mrb[10].mxu0 }
 0x139   :  { %v1749_v6 = vadd.f32 %v1748_v4, %v1747_v2  ;;  %v1750_v8 = vpop.f32.mrb[10].mxu1  ;;  %v1729_v9 = vpop.f32.mrb[11].mxu0 }
 0x13a   :  { %v1751_v10 = vpop.f32.mrb[11].mxu1  ;;  %v1341_v11 = vadd.f32 %v1727_v5, %v1300_v62  ;;  %v1730_v12 = vadd.f32 %v1729_v9, %v1728_v7 }
 0x13b   :  { %v1752_v13 = vadd.f32 %v1751_v10, %v1750_v8 }
 0x13c   :  { %v1382_v14 = vadd.f32 %v1749_v6, %v1341_v11  ;;  %v1344_v15 = vadd.f32 %v1730_v12, %v1303_v0 }
 0x13e   :  { %v1385_v16 = vadd.f32 %v1752_v13, %v1344_v15 }
 0x156   :  { %v1769_v17 = vpop.f32.mrb[12].mxu0 }
 0x157   :  { %v1791_v18 = vpop.f32.mrb[12].mxu1  ;;  %v1770_v19 = vpop.f32.mrb[13].mxu0 }
 0x158   :  { %v1771_v20 = vadd.f32 %v1770_v19, %v1769_v17  ;;  %v1792_v21 = vpop.f32.mrb[13].mxu1  ;;  %v1772_v22 = vpop.f32.mrb[14].mxu0 }
 0x159   :  { %v1793_v23 = vadd.f32 %v1792_v21, %v1791_v18  ;;  %v1794_v24 = vpop.f32.mrb[14].mxu1  ;;  %v1773_v25 = vpop.f32.mrb[15].mxu0 }
 0x15a   :  { %v1423_v26 = vadd.f32 %v1771_v20, %v1382_v14  ;;  %v1774_v27 = vadd.f32 %v1773_v25, %v1772_v22  ;;  %v1795_v28 = vpop.f32.mrb[15].mxu1 }
 0x15b   :  { %v1796_v29 = vadd.f32 %v1795_v28, %v1794_v24 }
 0x15c   :  { %v1464_v30 = vadd.f32 %v1793_v23, %v1423_v26  ;;  %v1426_v31 = vadd.f32 %v1774_v27, %v1385_v16 }
 0x15e   :  { %1470 = vst [vmem:[%s2389_s3] sm:$0xff] %v1464_v30  ;;  %v1467_v32 = vadd.f32 %v1796_v29, %v1426_v31 }
 0x160   :  { %1471 = vst [vmem:[%s2389_s3 + $0x8] sm:$0xff] %v1467_v32 }

// kernel: patch_embedding_forward.3
= control target key start
LH: loop header
LB: loop body
LE: loop exit
PB: predicated region body
PF: predicated region fallthrough
CT: control target
= control target key end

     0   :  { %s1126_s12 = smov 0   ;;  %s1247_s0 = inlined_call_operand.vmem [shape: bf16[512,128], index: 0, kind: input, shape index: {}]   ;;  %s1248_s1 = inlined_call_operand.vmem [shape: bf16[128,128], index: 1, kind: input, shape index: {}]   ;;  %s1249_s2 = inlined_call_operand.vmem [shape: f32[1,128], index: 2, kind: input, shape index: {}]   ;;  %s1250_s3 = inlined_call_operand.vmem [shape: bf16[512,128], index: 3, kind: output, shape index: {}]  }
   0x1 LB: > { %s783_s13 = sadd.s32 4294967295, %s1104_s12   ;;  %p787_p0 = scmp.ge.s32.totalorder %s1104_s12, 1  ;;  %s1104_s12 = sphi %s1126_s12, %s13_s12  }
   0x2   : > { %p138_p1 = scmp.lt.s32.totalorder %s1104_s12, 3 }
   0x4   : > { %p139_p2 = pnand %p787_p0, %p138_p1 }
   0x5   : > { %v1074_v0 = vld [vmem:[%s1248_s1] sm:$0xff] (!%p139_p2)   ;;  %s788_s16 = sshll.u32 (!%p139_p2), %s783_s13, 5  ;;  %v1075_v1 = vld [vmem:[%s1248_s1 + $0x8] sm:$0xff] (!%p139_p2)   ;;  %v1076_v2 = vld [vmem:[%s1248_s1 + $0x10] sm:$0xff] (!%p139_p2)  }
   0x6   : > { %142 = sbr.rel (%p139_p2) target bundleno = 284 (0x11c), region = 32  ;;  %p163_p3 = scmp.lt.s32.totalorder (!%p139_p2), %s788_s16, 63  ;;  %1002 = vmatprep.subr.bf16.mxu0 (!%p139_p2), %v1074_v0  ;;  %1050 = vmatprep.subr.bf16.mxu1 (!%p139_p2), %v1074_v0  ;;  %v1077_v3 = vld [vmem:[%s1248_s1 + $0x18] sm:$0xff] (!%p139_p2)   ;;  %v1078_v6 = vld [vmem:[%s1248_s1 + $0x20] sm:$0xff] (!%p139_p2)   ;;  %v1079_v7 = vld [vmem:[%s1248_s1 + $0x28] sm:$0xff] (!%p139_p2)  }
   0x7   : > { %1003 = vmatpush3.bf16.msra.mxu0 (!%p139_p2), %v1074_v0  ;;  %1058 = vmatpush3.bf16.msra.mxu1 (!%p139_p2), %v1074_v0  ;;  %v1080_v8 = vld [vmem:[%s1248_s1 + $0x30] sm:$0xff] (!%p139_p2)   ;;  %v1081_v9 = vld [vmem:[%s1248_s1 + $0x38] sm:$0xff] (!%p139_p2)   ;;  %v1187_v24 = vld [vmem:[%s1249_s2] ss:$0 sm:$0xff] (!%p139_p2) }
   0x8   : > { %1004 = vmatprep.subr.bf16.mxu0 (!%p139_p2), %v1075_v1  ;;  %1051 = vmatprep.subr.bf16.mxu1 (!%p139_p2), %v1075_v1 }
   0xb   : > { %1005 = vmatpush3.bf16.msra.mxu0 (!%p139_p2), %v1075_v1  ;;  %1059 = vmatpush3.bf16.msra.mxu1 (!%p139_p2), %v1075_v1 }
   0xc   : > { %1006 = vmatprep.subr.bf16.mxu0 (!%p139_p2), %v1076_v2  ;;  %1052 = vmatprep.subr.bf16.mxu1 (!%p139_p2), %v1076_v2 }
   0xd   : > { %s1252_s16 = smov (!%p163_p3, %s788_s16), 63 }
   0xe   : > { %s789_s21 = sshll.u32 %s1252_s16, 2 }
   0xf   : > { %s1151_s24 = scalar_lea.vmem %s1247_s0, %s789_s21  ;;  %1007 = vmatpush3.bf16.msra.mxu0 %v1076_v2  ;;  %1060 = vmatpush3.bf16.msra.mxu1 %v1076_v2  ;;  %s1202_s13 = scalar_lea.vmem %s1250_s3, %s789_s21 }
  0x10   : > { %v1082_v4 = vld [vmem:[%s1151_s24] sm:$0xff]   ;;  %1008 = vmatprep.subr.bf16.mxu0 %v1077_v3  ;;  %1053 = vmatprep.subr.bf16.mxu1 %v1077_v3  ;;  %v1084_v10 = vld [vmem:[%s1151_s24 + $0x8] sm:$0xff]   ;;  %v1086_v12 = vld [vmem:[%s1151_s24 + $0x10] sm:$0xff]  }
  0x11   : > { %v1083_v5 = vld [vmem:[%s1151_s24 + $0x40] sm:$0xff]   ;;  %1018 = vmatprep.mubr.bf16.mxu0 %v1082_v4  ;;  %v1085_v11 = vld [vmem:[%s1151_s24 + $0x48] sm:$0xff]   ;;  %v1087_v13 = vld [vmem:[%s1151_s24 + $0x50] sm:$0xff]  }
  0x12   : > { %1034 = vmatprep.mubr.bf16.mxu1 %v1083_v5  ;;  %v1088_v14 = vld [vmem:[%s1151_s24 + $0x18] sm:$0xff]   ;;  %v1090_v16 = vld [vmem:[%s1151_s24 + $0x20] sm:$0xff]   ;;  %v1092_v18 = vld [vmem:[%s1151_s24 + $0x28] sm:$0xff]  }
  0x13   : > { %1009 = vmatpush3.bf16.msra.mxu0 %v1077_v3  ;;  %1061 = vmatpush3.bf16.msra.mxu1 %v1077_v3  ;;  %v1089_v15 = vld [vmem:[%s1151_s24 + $0x58] sm:$0xff]   ;;  %v1091_v17 = vld [vmem:[%s1151_s24 + $0x60] sm:$0xff]   ;;  %v1093_v19 = vld [vmem:[%s1151_s24 + $0x68] sm:$0xff]  }
  0x14   : > { %1010 = vmatprep.subr.bf16.mxu0 %v1078_v6  ;;  %1054 = vmatprep.subr.bf16.mxu1 %v1078_v6  ;;  %v1094_v20 = vld [vmem:[%s1151_s24 + $0x30] sm:$0xff]   ;;  %v1096_v22 = vld [vmem:[%s1151_s24 + $0x38] sm:$0xff]  }
  0x15   : > { %v1095_v21 = vld [vmem:[%s1151_s24 + $0x70] sm:$0xff]   ;;  %v1097_v23 = vld [vmem:[%s1151_s24 + $0x78] sm:$0xff]  }
  0x17   : > { %1011 = vmatpush3.bf16.msra.mxu0 %v1078_v6  ;;  %1062 = vmatpush3.bf16.msra.mxu1 %v1078_v6 }
  0x18   : > { %1012 = vmatprep.subr.bf16.mxu0 %v1079_v7  ;;  %1055 = vmatprep.subr.bf16.mxu1 %v1079_v7 }
  0x1b   : > { %1013 = vmatpush3.bf16.msra.mxu0 %v1079_v7  ;;  %1063 = vmatpush3.bf16.msra.mxu1 %v1079_v7 }
  0x1c   : > { %1014 = vmatprep.subr.bf16.mxu0 %v1080_v8  ;;  %1056 = vmatprep.subr.bf16.mxu1 %v1080_v8 }
  0x1f   : > { %1015 = vmatpush3.bf16.msra.mxu0 %v1080_v8  ;;  %1064 = vmatpush3.bf16.msra.mxu1 %v1080_v8 }
  0x20   : > { %1016 = vmatprep.subr.bf16.mxu0 %v1081_v9  ;;  %1057 = vmatprep.subr.bf16.mxu1 %v1081_v9 }
  0x23   : > { %1017 = vmatpush3.bf16.msra.mxu0 %v1081_v9  ;;  %1065 = vmatpush3.bf16.msra.mxu1 %v1081_v9 }
  0x26   : > { %1019 = vmatmul.mubr.bf16.vlgmr.msra.gmra.mrb[0].mxu0 %v1084_v10  ;;  %1035 = vmatmul.mubr.bf16.vlgmr.msra.gmra.mrb[0].mxu1 %v1085_v11 }
  0x27   : > { %1022 = vmatprep.mubr.bf16.mxu0 %v1086_v12  ;;  %1038 = vmatprep.mubr.bf16.mxu1 %v1087_v13 }
  0x2e   : > { %1023 = vmatmul.mubr.bf16.gmra.mrb[4].mxu0 %v1088_v14  ;;  %1039 = vmatmul.mubr.bf16.gmra.mrb[4].mxu1 %v1089_v15 }
  0x2f   : > { %1026 = vmatprep.mubr.bf16.mxu0 %v1090_v16  ;;  %1042 = vmatprep.mubr.bf16.mxu1 %v1091_v17 }
  0x36   : > { %1027 = vmatmul.mubr.bf16.gmra.mrb[8].mxu0 %v1092_v18  ;;  %1043 = vmatmul.mubr.bf16.gmra.mrb[8].mxu1 %v1093_v19 }
  0x37   : > { %1030 = vmatprep.mubr.bf16.mxu0 %v1094_v20  ;;  %1046 = vmatprep.mubr.bf16.mxu1 %v1095_v21 }
  0x3e   : > { %1031 = vmatmul.mubr.bf16.gmra.mrb[12].mxu0 %v1096_v22  ;;  %1047 = vmatmul.mubr.bf16.gmra.mrb[12].mxu1 %v1097_v23 }
  0xf9   : > { %v1020_v25 = vpop.f32.mrb[0].mxu0  ;;  %v1036_v26 = vpop.f32.mrb[0].mxu1 }
  0xfa   : > { %v417_v27 = vadd.f32 %v1020_v25, %v1187_v24  ;;  %v481_v28 = vadd.f32 %v1036_v26, %v1187_v24  ;;  %v408_v29 = vpop.f32.mrb[1].mxu0  ;;  %v472_v30 = vpop.f32.mrb[1].mxu1 }
  0xfb   : > { %v409_v31 = vadd.f32 %v1187_v24, %v408_v29  ;;  %v473_v32 = vadd.f32 %v1187_v24, %v472_v30  ;;  %v1021_v33 = vpop.f32.mrb[2].mxu0  ;;  %v1037_v34 = vpop.f32.mrb[2].mxu1 }
  0xfc   : > { %v420_v35 = vadd.f32 %v1021_v33, %v1187_v24  ;;  %v484_v36 = vadd.f32 %v1037_v34, %v1187_v24  ;;  %v411_v37 = vpop.f32.mrb[3].mxu0  ;;  %v475_v38 = vpop.f32.mrb[3].mxu1  ;;  %v537_v41 = vmax.f32 %v417_v27, 0.0  ;;  %v553_v42 = vmax.f32 %v481_v28, 0.0 }
  0xfd   : > { %v412_v39 = vadd.f32 %v1187_v24, %v411_v37  ;;  %v476_v40 = vadd.f32 %v1187_v24, %v475_v38  ;;  %v535_v45 = vmax.f32 %v409_v31, 0.0  ;;  %v551_v46 = vmax.f32 %v473_v32, 0.0 }
  0xfe   : > { %v538_v43 = vmax.f32 %v420_v35, 0.0  ;;  %v554_v44 = vmax.f32 %v484_v36, 0.0 }
  0xff   : > { %v536_v47 = vmax.f32 %v412_v39, 0.0  ;;  %v552_v48 = vmax.f32 %v476_v40, 0.0 }
 0x100   : > { %v891_v49 = vpack.c.bf16 %v538_v43, %v537_v41  ;;  %v931_v50 = vpack.c.bf16 %v554_v44, %v553_v42 }
 0x101   : > { %v886_v51 = vpack.c.bf16 %v536_v47, %v535_v45  ;;  %v926_v52 = vpack.c.bf16 %v552_v48, %v551_v46  ;;  %v1024_v53 = vpop.f32.mrb[4].mxu0  ;;  %v1040_v54 = vpop.f32.mrb[4].mxu1 }
 0x102   : > { %963 = vst [vmem:[%s1202_s13 + $0x8] sm:$0xff] %v891_v49   ;;  %971 = vst [vmem:[%s1202_s13 + $0x48] sm:$0xff] %v931_v50   ;;  %v433_v55 = vadd.f32 %v1024_v53, %v1187_v24  ;;  %v497_v56 = vadd.f32 %v1040_v54, %v1187_v24  ;;  %v424_v57 = vpop.f32.mrb[5].mxu0  ;;  %v488_v58 = vpop.f32.mrb[5].mxu1 }
 0x103   : > { %887 = vst [vmem:[%s1202_s13] sm:$0xff] %v886_v51   ;;  %970 = vst [vmem:[%s1202_s13 + $0x40] sm:$0xff] %v926_v52   ;;  %v425_v59 = vadd.f32 %v1187_v24, %v424_v57  ;;  %v489_v60 = vadd.f32 %v1187_v24, %v488_v58  ;;  %v1025_v61 = vpop.f32.mrb[6].mxu0  ;;  %v1041_v62 = vpop.f32.mrb[6].mxu1 }
 0x104   : > { %v436_v63 = vadd.f32 %v1025_v61, %v1187_v24  ;;  %v500_v0 = vadd.f32 %v1041_v62, %v1187_v24  ;;  %v427_v1 = vpop.f32.mrb[7].mxu0  ;;  %v491_v2 = vpop.f32.mrb[7].mxu1  ;;  %v541_v5 = vmax.f32 %v433_v55, 0.0  ;;  %v557_v6 = vmax.f32 %v497_v56, 0.0 }
 0x105   : > { %v428_v3 = vadd.f32 %v1187_v24, %v427_v1  ;;  %v492_v4 = vadd.f32 %v1187_v24, %v491_v2  ;;  %v539_v9 = vmax.f32 %v425_v59, 0.0  ;;  %v555_v10 = vmax.f32 %v489_v60, 0.0 }
 0x106   : > { %v542_v7 = vmax.f32 %v436_v63, 0.0  ;;  %v558_v8 = vmax.f32 %v500_v0, 0.0 }
 0x107   : > { %v540_v11 = vmax.f32 %v428_v3, 0.0  ;;  %v556_v12 = vmax.f32 %v492_v4, 0.0 }
 0x108   : > { %v901_v13 = vpack.c.bf16 %v542_v7, %v541_v5  ;;  %v941_v14 = vpack.c.bf16 %v558_v8, %v557_v6 }
 0x109   : > { %v896_v15 = vpack.c.bf16 %v540_v11, %v539_v9  ;;  %v936_v16 = vpack.c.bf16 %v556_v12, %v555_v10  ;;  %v1028_v17 = vpop.f32.mrb[8].mxu0  ;;  %v1044_v18 = vpop.f32.mrb[8].mxu1 }
 0x10a   : > { %965 = vst [vmem:[%s1202_s13 + $0x18] sm:$0xff] %v901_v13   ;;  %973 = vst [vmem:[%s1202_s13 + $0x58] sm:$0xff] %v941_v14   ;;  %v449_v19 = vadd.f32 %v1028_v17, %v1187_v24  ;;  %v513_v20 = vadd.f32 %v1044_v18, %v1187_v24  ;;  %v440_v21 = vpop.f32.mrb[9].mxu0  ;;  %v504_v22 = vpop.f32.mrb[9].mxu1 }
 0x10b   : > { %964 = vst [vmem:[%s1202_s13 + $0x10] sm:$0xff] %v896_v15   ;;  %972 = vst [vmem:[%s1202_s13 + $0x50] sm:$0xff] %v936_v16   ;;  %v441_v23 = vadd.f32 %v1187_v24, %v440_v21  ;;  %v505_v25 = vadd.f32 %v1187_v24, %v504_v22  ;;  %v1029_v26 = vpop.f32.mrb[10].mxu0  ;;  %v1045_v27 = vpop.f32.mrb[10].mxu1 }
 0x10c   : > { %v452_v28 = vadd.f32 %v1029_v26, %v1187_v24  ;;  %v516_v29 = vadd.f32 %v1045_v27, %v1187_v24  ;;  %v443_v30 = vpop.f32.mrb[11].mxu0  ;;  %v507_v31 = vpop.f32.mrb[11].mxu1  ;;  %v545_v34 = vmax.f32 %v449_v19, 0.0  ;;  %v561_v35 = vmax.f32 %v513_v20, 0.0 }
 0x10d   : > { %v444_v32 = vadd.f32 %v1187_v24, %v443_v30  ;;  %v508_v33 = vadd.f32 %v1187_v24, %v507_v31  ;;  %v543_v38 = vmax.f32 %v441_v23, 0.0  ;;  %v559_v39 = vmax.f32 %v505_v25, 0.0 }
 0x10e   : > { %v546_v36 = vmax.f32 %v452_v28, 0.0  ;;  %v562_v37 = vmax.f32 %v516_v29, 0.0 }
 0x10f   : > { %v544_v40 = vmax.f32 %v444_v32, 0.0  ;;  %v560_v41 = vmax.f32 %v508_v33, 0.0 }
 0x110   : > { %v911_v42 = vpack.c.bf16 %v546_v36, %v545_v34  ;;  %v951_v43 = vpack.c.bf16 %v562_v37, %v561_v35 }
 0x111   : > { %v906_v44 = vpack.c.bf16 %v544_v40, %v543_v38  ;;  %v946_v45 = vpack.c.bf16 %v560_v41, %v559_v39  ;;  %v1032_v46 = vpop.f32.mrb[12].mxu0  ;;  %v1048_v47 = vpop.f32.mrb[12].mxu1 }
 0x112   : > { %967 = vst [vmem:[%s1202_s13 + $0x28] sm:$0xff] %v911_v42   ;;  %975 = vst [vmem:[%s1202_s13 + $0x68] sm:$0xff] %v951_v43   ;;  %v465_v48 = vadd.f32 %v1032_v46, %v1187_v24  ;;  %v529_v49 = vadd.f32 %v1048_v47, %v1187_v24  ;;  %v456_v50 = vpop.f32.mrb[13].mxu0  ;;  %v520_v51 = vpop.f32.mrb[13].mxu1 }
 0x113   : > { %966 = vst [vmem:[%s1202_s13 + $0x20] sm:$0xff] %v906_v44   ;;  %974 = vst [vmem:[%s1202_s13 + $0x60] sm:$0xff] %v946_v45   ;;  %v457_v52 = vadd.f32 %v1187_v24, %v456_v50  ;;  %v521_v53 = vadd.f32 %v1187_v24, %v520_v51  ;;  %v1033_v54 = vpop.f32.mrb[14].mxu0  ;;  %v1049_v55 = vpop.f32.mrb[14].mxu1 }
 0x114   : > { %v468_v56 = vadd.f32 %v1033_v54, %v1187_v24  ;;  %v532_v57 = vadd.f32 %v1049_v55, %v1187_v24  ;;  %v459_v58 = vpop.f32.mrb[15].mxu0  ;;  %v523_v59 = vpop.f32.mrb[15].mxu1  ;;  %v549_v62 = vmax.f32 %v465_v48, 0.0  ;;  %v565_v63 = vmax.f32 %v529_v49, 0.0 }
 0x115   : > { %v460_v60 = vadd.f32 %v1187_v24, %v459_v58  ;;  %v524_v61 = vadd.f32 %v1187_v24, %v523_v59  ;;  %v547_v2 = vmax.f32 %v457_v52, 0.0  ;;  %v563_v3 = vmax.f32 %v521_v53, 0.0 }
 0x116   : > { %v550_v0 = vmax.f32 %v468_v56, 0.0  ;;  %v566_v1 = vmax.f32 %v532_v57, 0.0 }
 0x117   : > { %v548_v4 = vmax.f32 %v460_v60, 0.0  ;;  %v564_v5 = vmax.f32 %v524_v61, 0.0 }
 0x118   : > { %v921_v6 = vpack.c.bf16 %v550_v0, %v549_v62  ;;  %v961_v7 = vpack.c.bf16 %v566_v1, %v565_v63 }
 0x119   : > { %v916_v8 = vpack.c.bf16 %v548_v4, %v547_v2  ;;  %v956_v9 = vpack.c.bf16 %v564_v5, %v563_v3 }
 0x11a   : > { %969 = vst [vmem:[%s1202_s13 + $0x38] sm:$0xff] %v921_v6   ;;  %977 = vst [vmem:[%s1202_s13 + $0x78] sm:$0xff] %v961_v7  }
 0x11b   : > { %968 = vst [vmem:[%s1202_s13 + $0x30] sm:$0xff] %v916_v8   ;;  %976 = vst [vmem:[%s1202_s13 + $0x70] sm:$0xff] %v956_v9  }
 0x11c PF: > { %s13_s12 = sadd.s32 1, %s1104_s12  }
 0x11d   : > { %p10_p4 = scmp.ge.s32.totalorder %s13_s12, 4  }
 0x11f   :  { %12 = sbr.rel (!%p10_p4) target bundleno = 1 (0x1), region = 62 }

// kernel: patch_embedding_forward.4
= control target key start
LH: loop header
LB: loop body
LE: loop exit
PB: predicated region body
PF: predicated region fallthrough
CT: control target
= control target key end

     0   :  { %s1946_s12 = smov 0   ;;  %s2226_s0 = inlined_call_operand.vmem [shape: bf16[128,1152], index: 0, kind: input, shape index: {}]   ;;  %s2227_s1 = inlined_call_operand.vmem [shape: bf16[1152,128], index: 1, kind: input, shape index: {}]   ;;  %s2228_s2 = inlined_call_operand.vmem [shape: f32[1,128], index: 2, kind: input, shape index: {}]   ;;  %s2229_s3 = inlined_call_operand.vmem [shape: bf16[128,128], index: 3, kind: output, shape index: {}]  }
   0x1 LB: > { %s1414_s13 = sadd.s32 4294967295, %s1924_s12   ;;  %p1418_p0 = scmp.ge.s32.totalorder %s1924_s12, 1  ;;  %s1924_s12 = sphi %s1946_s12, %s13_s12  }
   0x2   : > { %p139_p1 = scmp.lt.s32.totalorder %s1924_s12, 3 }
   0x4   : > { %p140_p2 = pnand %p1418_p0, %p139_p1 }
   0x5   : > { %v1794_v0 = vld [vmem:[%s2227_s1 + $0x40] sm:$0xff] (!%p140_p2)   ;;  %v1798_v4 = vld [vmem:[%s2227_s1 + $0x48] sm:$0xff] (!%p140_p2)   ;;  %v1802_v8 = vld [vmem:[%s2227_s1 + $0x50] sm:$0xff] (!%p140_p2)   ;;  %s1419_s19 = sshll.u32 (!%p140_p2), %s1414_s13, 3 }
   0x6   : > { %143 = sbr.rel (%p140_p2) target bundleno = 327 (0x147), region = 32  ;;  %v1795_v1 = vld [vmem:[%s2227_s1 + $0xc0] sm:$0xff] (!%p140_p2)   ;;  %1573 = vmatprep.subr.bf16.mxu0 (!%p140_p2), %v1794_v0  ;;  %v1799_v5 = vld [vmem:[%s2227_s1 + $0xc8] sm:$0xff] (!%p140_p2)   ;;  %v1803_v9 = vld [vmem:[%s2227_s1 + $0xd0] sm:$0xff] (!%p140_p2)   ;;  %p165_p3 = scmp.lt.s32.totalorder (!%p140_p2), %s1419_s19, 15 }
   0x7   : > { %v1796_v2 = vld [vmem:[%s2227_s1] sm:$0xff] (!%p140_p2)   ;;  %1613 = vmatprep.subr.bf16.mxu1 (!%p140_p2), %v1795_v1  ;;  %v1800_v6 = vld [vmem:[%s2227_s1 + $0x8] sm:$0xff] (!%p140_p2)   ;;  %v1804_v10 = vld [vmem:[%s2227_s1 + $0x10] sm:$0xff] (!%p140_p2)  }
   0x8   : > { %v1797_v3 = vld [vmem:[%s2227_s1 + $0x80] sm:$0xff] (!%p140_p2)   ;;  %1574 = vmatpush3.bf16.msra.mxu0 (!%p140_p2), %v1796_v2  ;;  %v1801_v7 = vld [vmem:[%s2227_s1 + $0x88] sm:$0xff] (!%p140_p2)   ;;  %v1805_v11 = vld [vmem:[%s2227_s1 + $0x90] sm:$0xff] (!%p140_p2)  }
   0x9   : > { %1614 = vmatpush3.bf16.msra.mxu1 (!%p140_p2), %v1797_v3  ;;  %1575 = vmatprep.subr.bf16.mxu0 (!%p140_p2), %v1798_v4  ;;  %v1806_v12 = vld [vmem:[%s2227_s1 + $0x58] sm:$0xff] (!%p140_p2)   ;;  %v1810_v16 = vld [vmem:[%s2227_s1 + $0x60] sm:$0xff] (!%p140_p2)   ;;  %v1814_v20 = vld [vmem:[%s2227_s1 + $0x68] sm:$0xff] (!%p140_p2)  }
   0xa   : > { %1615 = vmatprep.subr.bf16.mxu1 (!%p140_p2), %v1799_v5  ;;  %v1807_v13 = vld [vmem:[%s2227_s1 + $0xd8] sm:$0xff] (!%p140_p2)   ;;  %v1811_v17 = vld [vmem:[%s2227_s1 + $0xe0] sm:$0xff] (!%p140_p2)   ;;  %v1815_v21 = vld [vmem:[%s2227_s1 + $0xe8] sm:$0xff] (!%p140_p2)  }
   0xb   : > { %v1808_v14 = vld [vmem:[%s2227_s1 + $0x18] sm:$0xff] (!%p140_p2)   ;;  %v1812_v18 = vld [vmem:[%s2227_s1 + $0x20] sm:$0xff] (!%p140_p2)   ;;  %v1816_v22 = vld [vmem:[%s2227_s1 + $0x28] sm:$0xff] (!%p140_p2)  }
   0xc   : > { %1576 = vmatpush3.bf16.msra.mxu0 (!%p140_p2), %v1800_v6  ;;  %v1809_v15 = vld [vmem:[%s2227_s1 + $0x98] sm:$0xff] (!%p140_p2)   ;;  %v1813_v19 = vld [vmem:[%s2227_s1 + $0xa0] sm:$0xff] (!%p140_p2)   ;;  %v1817_v23 = vld [vmem:[%s2227_s1 + $0xa8] sm:$0xff] (!%p140_p2)  }
   0xd   : > { %1616 = vmatpush3.bf16.msra.mxu1 %v1801_v7  ;;  %1577 = vmatprep.subr.bf16.mxu0 %v1802_v8  ;;  %s2231_s19 = smov (!%p165_p3, %s1419_s19), 15  ;;  %v1818_v24 = vld [vmem:[%s2227_s1 + $0x70] sm:$0xff]   ;;  %v1822_v28 = vld [vmem:[%s2227_s1 + $0x78] sm:$0xff]   ;;  %v1832_v36 = vld [vmem:[%s2227_s1 + $0x140] sm:$0xff]  }
   0xe   : > { %1617 = vmatprep.subr.bf16.mxu1 %v1803_v9  ;;  %v1819_v25 = vld [vmem:[%s2227_s1 + $0xf0] sm:$0xff]   ;;  %s1785_s16 = smul.u32 36, %s2231_s19  ;;  %v1823_v29 = vld [vmem:[%s2227_s1 + $0xf8] sm:$0xff]   ;;  %v1833_v37 = vld [vmem:[%s2227_s1 + $0x1c0] sm:$0xff]  }
   0xf   : > { %v1820_v26 = vld [vmem:[%s2227_s1 + $0x30] sm:$0xff]   ;;  %v1824_v30 = vld [vmem:[%s2227_s1 + $0x38] sm:$0xff]   ;;  %v1834_v38 = vld [vmem:[%s2227_s1 + $0x100] sm:$0xff]  }
  0x10   : > { %1578 = vmatpush3.bf16.msra.mxu0 %v1804_v10  ;;  %v1821_v27 = vld [vmem:[%s2227_s1 + $0xb0] sm:$0xff]   ;;  %s2052_s13 = scalar_lea.vmem %s2226_s0, %s1785_s16  ;;  %v1825_v31 = vld [vmem:[%s2227_s1 + $0xb8] sm:$0xff]   ;;  %v1835_v39 = vld [vmem:[%s2227_s1 + $0x180] sm:$0xff]  }
  0x11   : > { %1618 = vmatpush3.bf16.msra.mxu1 %v1805_v11  ;;  %1579 = vmatprep.subr.bf16.mxu0 %v1806_v12  ;;  %v1826_v32 = vld [vmem:[%s2052_s13] ss:$36 sps:$4 sm:$0xff]   ;;  %v1829_v34 = vld [vmem:[%s2052_s13 + $0x8] ss:$36 sps:$4 sm:$0xff]   ;;  %v1842_v45 = vld [vmem:[%s2052_s13 + $0x54] ss:$36 sps:$4 sm:$0xff]  }
  0x12   : > { %1619 = vmatprep.subr.bf16.mxu1 %v1807_v13  ;;  %v1828_v33 = vld [vmem:[%s2052_s13 + $0x4] ss:$36 sps:$4 sm:$0xff]   ;;  %v1831_v35 = vld [vmem:[%s2052_s13 + $0xc] ss:$36 sps:$4 sm:$0xff]   ;;  %v1850_v52 = vld [vmem:[%s2227_s1 + $0x158] sm:$0xff]  }
  0x13   : > { %1017 = vmatprep.mubr.bf16.mxu0 %v1828_v33  ;;  %1082 = vmatprep.mubr.bf16.mxu1 %v1831_v35  ;;  %v1836_v40 = vld [vmem:[%s2227_s1 + $0x148] sm:$0xff]   ;;  %v1845_v47 = vld [vmem:[%s2052_s13 + $0x50] ss:$36 sps:$4 sm:$0xff]   ;;  %v1851_v53 = vld [vmem:[%s2227_s1 + $0x1d8] sm:$0xff]  }
  0x14   : > { %1580 = vmatpush3.bf16.msra.mxu0 %v1808_v14  ;;  %v1837_v41 = vld [vmem:[%s2227_s1 + $0x1c8] sm:$0xff]   ;;  %v1846_v48 = vld [vmem:[%s2227_s1 + $0x150] sm:$0xff]   ;;  %v1852_v54 = vld [vmem:[%s2227_s1 + $0x118] sm:$0xff]  }
  0x15   : > { %1620 = vmatpush3.bf16.msra.mxu1 %v1809_v15  ;;  %1581 = vmatprep.subr.bf16.mxu0 %v1810_v16  ;;  %v1838_v42 = vld [vmem:[%s2227_s1 + $0x108] sm:$0xff]   ;;  %v1847_v49 = vld [vmem:[%s2227_s1 + $0x1d0] sm:$0xff]   ;;  %v1853_v55 = vld [vmem:[%s2227_s1 + $0x198] sm:$0xff]  }
  0x16   : > { %1621 = vmatprep.subr.bf16.mxu1 %v1811_v17  ;;  %v1839_v43 = vld [vmem:[%s2227_s1 + $0x188] sm:$0xff]   ;;  %v1848_v50 = vld [vmem:[%s2227_s1 + $0x110] sm:$0xff]   ;;  %v1856_v57 = vld [vmem:[%s2052_s13 + $0x9c] ss:$36 sps:$4 sm:$0xff]  }
  0x17   : > { %v1840_v44 = vld [vmem:[%s2052_s13 + $0x4c] ss:$36 sps:$4 sm:$0xff]   ;;  %v1854_v56 = vld [vmem:[%s2052_s13 + $0x94] ss:$36 sps:$4 sm:$0xff]   ;;  %v1860_v60 = vld [vmem:[%s2227_s1 + $0x160] sm:$0xff]  }
  0x18   : > { %1582 = vmatpush3.bf16.msra.mxu0 %v1812_v18  ;;  %v1844_v46 = vld [vmem:[%s2052_s13 + $0x48] ss:$36 sps:$4 sm:$0xff]   ;;  %v1849_v51 = vld [vmem:[%s2227_s1 + $0x190] sm:$0xff]   ;;  %v1859_v59 = vld [vmem:[%s2052_s13 + $0x98] ss:$36 sps:$4 sm:$0xff]  }
  0x19   : > { %1622 = vmatpush3.bf16.msra.mxu1 %v1813_v19  ;;  %1583 = vmatprep.subr.bf16.mxu0 %v1814_v20  ;;  %v1858_v58 = vld [vmem:[%s2052_s13 + $0x90] ss:$36 sps:$4 sm:$0xff]   ;;  %v1861_v61 = vld [vmem:[%s2227_s1 + $0x1e0] sm:$0xff]   ;;  %v1864_v0 = vld [vmem:[%s2227_s1 + $0x168] sm:$0xff]  }
  0x1a   : > { %1623 = vmatprep.subr.bf16.mxu1 %v1815_v21  ;;  %v1862_v62 = vld [vmem:[%s2227_s1 + $0x120] sm:$0xff]   ;;  %v1865_v1 = vld [vmem:[%s2227_s1 + $0x1e8] sm:$0xff]   ;;  %v1872_v6 = vld [vmem:[%s2052_s13 + $0xd8] ss:$36 sps:$4 sm:$0xff]  }
  0x1b   : > { %v1863_v63 = vld [vmem:[%s2227_s1 + $0x1a0] sm:$0xff]   ;;  %v1866_v2 = vld [vmem:[%s2227_s1 + $0x128] sm:$0xff]   ;;  %v1874_v8 = vld [vmem:[%s2227_s1 + $0x170] sm:$0xff]  }
  0x1c   : > { %1584 = vmatpush3.bf16.msra.mxu0 %v1816_v22  ;;  %v1867_v3 = vld [vmem:[%s2227_s1 + $0x1a8] sm:$0xff]   ;;  %v1868_v4 = vld [vmem:[%s2052_s13 + $0xdc] ss:$36 sps:$4 sm:$0xff]   ;;  %v1875_v9 = vld [vmem:[%s2227_s1 + $0x1f0] sm:$0xff]  }
  0x1d   : > { %1624 = vmatpush3.bf16.msra.mxu1 %v1817_v23  ;;  %1585 = vmatprep.subr.bf16.mxu0 %v1818_v24  ;;  %v1870_v5 = vld [vmem:[%s2052_s13 + $0xe4] ss:$36 sps:$4 sm:$0xff]   ;;  %v1876_v10 = vld [vmem:[%s2227_s1 + $0x130] sm:$0xff]   ;;  %v1878_v12 = vld [vmem:[%s2227_s1 + $0x178] sm:$0xff]  }
  0x1e   : > { %1625 = vmatprep.subr.bf16.mxu1 %v1819_v25  ;;  %v1873_v7 = vld [vmem:[%s2052_s13 + $0xe0] ss:$36 sps:$4 sm:$0xff]   ;;  %v1877_v11 = vld [vmem:[%s2227_s1 + $0x1b0] sm:$0xff]   ;;  %v1879_v13 = vld [vmem:[%s2227_s1 + $0x1f8] sm:$0xff]  }
  0x1f   : > { %v1880_v14 = vld [vmem:[%s2227_s1 + $0x138] sm:$0xff]   ;;  %v1882_v16 = vld [vmem:[%s2052_s13 + $0x10] ss:$36 sps:$4 sm:$0xff]   ;;  %v1888_v20 = vld [vmem:[%s2227_s1 + $0x200] sm:$0xff]  }
  0x20   : > { %1586 = vmatpush3.bf16.msra.mxu0 %v1820_v26  ;;  %v1881_v15 = vld [vmem:[%s2227_s1 + $0x1b8] sm:$0xff]   ;;  %v1889_v21 = vld [vmem:[%s2227_s1 + $0x208] sm:$0xff]   ;;  %v1895_v25 = vld [vmem:[%s2052_s13 + $0x60] ss:$36 sps:$4 sm:$0xff]  }
  0x21   : > { %1626 = vmatpush3.bf16.msra.mxu1 %v1821_v27  ;;  %1587 = vmatprep.subr.bf16.mxu0 %v1822_v28  ;;  %v1884_v17 = vld [vmem:[%s2052_s13 + $0x14] ss:$36 sps:$4 sm:$0xff]   ;;  %v1887_v19 = vld [vmem:[%s2052_s13 + $0x1c] ss:$36 sps:$4 sm:$0xff]   ;;  %v1892_v23 = vld [vmem:[%s2052_s13 + $0x64] ss:$36 sps:$4 sm:$0xff]  }
  0x22   : > { %1627 = vmatprep.subr.bf16.mxu1 %v1823_v29  ;;  %v1885_v18 = vld [vmem:[%s2052_s13 + $0x18] ss:$36 sps:$4 sm:$0xff]   ;;  %v1896_v26 = vld [vmem:[%s2227_s1 + $0x210] sm:$0xff]   ;;  %v1898_v27 = vld [vmem:[%s2052_s13 + $0xa4] ss:$36 sps:$4 sm:$0xff]  }
  0x23   : > { %v1890_v22 = vld [vmem:[%s2052_s13 + $0x5c] ss:$36 sps:$4 sm:$0xff]   ;;  %v1900_v28 = vld [vmem:[%s2052_s13 + $0xac] ss:$36 sps:$4 sm:$0xff]  }
  0x24   : > { %1588 = vmatpush3.bf16.msra.mxu0 %v1824_v30  ;;  %v1894_v24 = vld [vmem:[%s2052_s13 + $0x58] ss:$36 sps:$4 sm:$0xff]   ;;  %v1902_v30 = vld [vmem:[%s2052_s13 + $0xa0] ss:$36 sps:$4 sm:$0xff]   ;;  %v1906_v33 = vld [vmem:[%s2052_s13 + $0xec] ss:$36 sps:$4 sm:$0xff]  }
  0x25   : > { %1628 = vmatpush3.bf16.msra.mxu1 %v1825_v31  ;;  %1653 = vmatprep.subr.bf16.mxu0 %v1832_v36  ;;  %v1897_v29 = vld [vmem:[%s2227_s1 + $0x218] sm:$0xff]   ;;  %v1903_v31 = vld [vmem:[%s2052_s13 + $0xa8] ss:$36 sps:$4 sm:$0xff]  }
  0x26   : > { %1693 = vmatprep.subr.bf16.mxu1 %v1833_v37  ;;  %v1905_v35 = vld [vmem:[%s2227_s1 + $0x228] sm:$0xff]   ;;  %v1912_v37 = vld [vmem:[%s2227_s1 + $0x230] sm:$0xff]  }
  0x27   : > { %1018 = vmatmul.mubr.bf16.vlgmr.msra.gmra.mrb[0].mxu0 %v1826_v32  ;;  %v1904_v32 = vld [vmem:[%s2227_s1 + $0x220] sm:$0xff]   ;;  %v1910_v36 = vld [vmem:[%s2052_s13 + $0xe8] ss:$36 sps:$4 sm:$0xff]  }
  0x28   : > { %1083 = vmatmul.mubr.bf16.vlgmr.msra.gmra.mrb[0].mxu1 %v1829_v34  ;;  %1654 = vmatpush3.bf16.msra.mxu0 %v1834_v38  ;;  %v1908_v34 = vld [vmem:[%s2052_s13 + $0xf4] ss:$36 sps:$4 sm:$0xff]  }
  0x29   : > { %1694 = vmatpush3.bf16.msra.mxu1 %v1835_v39  ;;  %1655 = vmatprep.subr.bf16.mxu0 %v1836_v40  ;;  %v1911_v38 = vld [vmem:[%s2052_s13 + $0xf0] ss:$36 sps:$4 sm:$0xff]   ;;  %v1914_v39 = vld [vmem:[%s2052_s13 + $0x20] ss:$36 sps:$4 sm:$0xff]  }
  0x2a   : > { %1695 = vmatprep.subr.bf16.mxu1 %v1837_v41  ;;  %1025 = vmatprep.mubr.bf16.mxu0 %v1840_v44  ;;  %v1915_v40 = vld [vmem:[%s2052_s13 + $0xb0] ss:$36 sps:$4 sm:$0xff]   ;;  %v1913_v41 = vld [vmem:[%s2227_s1 + $0x238] sm:$0xff]  }
  0x2b   : > { %1090 = vmatprep.mubr.bf16.mxu1 %v1842_v45 }
  0x2c   : > { %1656 = vmatpush3.bf16.msra.mxu0 %v1838_v42  ;;  %v1916_v42 = vld [vmem:[%s2052_s13 + $0x68] ss:$36 sps:$4 sm:$0xff]  }
  0x2d   : > { %1696 = vmatpush3.bf16.msra.mxu1 %v1839_v43  ;;  %1657 = vmatprep.subr.bf16.mxu0 %v1846_v48  ;;  %v1917_v43 = vld [vmem:[%s2052_s13 + $0xf8] ss:$36 sps:$4 sm:$0xff]   ;;  %s1422_s13 = sshll.u32 %s2231_s19, 2 }
  0x2e   : > { %1697 = vmatprep.subr.bf16.mxu1 %v1847_v49  ;;  %s175_s20 = scalar_lea.vmem %s2229_s3, %s1422_s13 }
  0x2f   : > { %1026 = vmatmul.mubr.bf16.gmra.mrb[4].mxu0 %v1844_v46  ;;  %v1423_v46 = vld [vmem:[%s2228_s2] ss:$0 sm:$0xff] }
  0x30   : > { %1091 = vmatmul.mubr.bf16.gmra.mrb[4].mxu1 %v1845_v47  ;;  %1658 = vmatpush3.bf16.msra.mxu0 %v1848_v50 }
  0x31   : > { %1698 = vmatpush3.bf16.msra.mxu1 %v1849_v51  ;;  %1659 = vmatprep.subr.bf16.mxu0 %v1850_v52 }
  0x32   : > { %1699 = vmatprep.subr.bf16.mxu1 %v1851_v53  ;;  %1033 = vmatprep.mubr.bf16.mxu0 %v1854_v56 }
  0x33   : > { %1098 = vmatprep.mubr.bf16.mxu1 %v1856_v57 }
  0x34   : > { %1660 = vmatpush3.bf16.msra.mxu0 %v1852_v54 }
  0x35   : > { %1700 = vmatpush3.bf16.msra.mxu1 %v1853_v55  ;;  %1661 = vmatprep.subr.bf16.mxu0 %v1860_v60 }
  0x36   : > { %1701 = vmatprep.subr.bf16.mxu1 %v1861_v61 }
  0x37   : > { %1034 = vmatmul.mubr.bf16.gmra.mrb[8].mxu0 %v1858_v58 }
  0x38   : > { %1099 = vmatmul.mubr.bf16.gmra.mrb[8].mxu1 %v1859_v59  ;;  %1662 = vmatpush3.bf16.msra.mxu0 %v1862_v62 }
  0x39   : > { %1702 = vmatpush3.bf16.msra.mxu1 %v1863_v63  ;;  %1663 = vmatprep.subr.bf16.mxu0 %v1864_v0 }
  0x3a   : > { %1703 = vmatprep.subr.bf16.mxu1 %v1865_v1  ;;  %1041 = vmatprep.mubr.bf16.mxu0 %v1868_v4 }
  0x3b   : > { %1106 = vmatprep.mubr.bf16.mxu1 %v1870_v5 }
  0x3c   : > { %1664 = vmatpush3.bf16.msra.mxu0 %v1866_v2 }
  0x3d   : > { %1704 = vmatpush3.bf16.msra.mxu1 %v1867_v3  ;;  %1665 = vmatprep.subr.bf16.mxu0 %v1874_v8 }
  0x3e   : > { %1705 = vmatprep.subr.bf16.mxu1 %v1875_v9 }
  0x3f   : > { %1042 = vmatmul.mubr.bf16.gmra.mrb[12].mxu0 %v1872_v6 }
  0x40   : > { %1107 = vmatmul.mubr.bf16.gmra.mrb[12].mxu1 %v1873_v7  ;;  %1666 = vmatpush3.bf16.msra.mxu0 %v1876_v10 }
  0x41   : > { %1706 = vmatpush3.bf16.msra.mxu1 %v1877_v11  ;;  %1667 = vmatprep.subr.bf16.mxu0 %v1878_v12 }
  0x42   : > { %1707 = vmatprep.subr.bf16.mxu1 %v1879_v13  ;;  %1147 = vmatprep.mubr.bf16.mxu0 %v1884_v17 }
  0x43   : > { %1212 = vmatprep.mubr.bf16.mxu1 %v1887_v19 }
  0x44   : > { %1668 = vmatpush3.bf16.msra.mxu0 %v1880_v14 }
  0x45   : > { %1708 = vmatpush3.bf16.msra.mxu1 %v1881_v15  ;;  %1745 = vmatprep.subr.bf16.mxu0 %v1888_v20 }
  0x46   : > { %1769 = vmatprep.subr.bf16.mxu1 %v1888_v20 }
  0x47   : > { %1148 = vmatmul.mubr.bf16.vlgmr.msra.gmra.mrb[16].mxu0 %v1882_v16 }
  0x48   : > { %1213 = vmatmul.mubr.bf16.vlgmr.msra.gmra.mrb[16].mxu1 %v1885_v18  ;;  %1746 = vmatpush3.bf16.msra.mxu0 %v1888_v20 }
  0x49   : > { %1777 = vmatpush3.bf16.msra.mxu1 %v1888_v20  ;;  %1747 = vmatprep.subr.bf16.mxu0 %v1889_v21 }
  0x4a   : > { %1770 = vmatprep.subr.bf16.mxu1 %v1889_v21  ;;  %1155 = vmatprep.mubr.bf16.mxu0 %v1890_v22 }
  0x4b   : > { %1220 = vmatprep.mubr.bf16.mxu1 %v1892_v23 }
  0x4c   : > { %1748 = vmatpush3.bf16.msra.mxu0 %v1889_v21 }
  0x4d   : > { %1778 = vmatpush3.bf16.msra.mxu1 %v1889_v21  ;;  %1749 = vmatprep.subr.bf16.mxu0 %v1896_v26 }
  0x4e   : > { %1771 = vmatprep.subr.bf16.mxu1 %v1896_v26 }
  0x4f   : > { %1156 = vmatmul.mubr.bf16.gmra.mrb[20].mxu0 %v1894_v24 }
  0x50   : > { %1221 = vmatmul.mubr.bf16.gmra.mrb[20].mxu1 %v1895_v25  ;;  %1163 = vmatprep.mubr.bf16.mxu0 %v1898_v27 }
  0x51   : > { %1750 = vmatpush3.bf16.msra.mxu0 %v1896_v26  ;;  %1228 = vmatprep.mubr.bf16.mxu1 %v1900_v28 }
  0x52   : > { %1779 = vmatpush3.bf16.msra.mxu1 %v1896_v26  ;;  %1751 = vmatprep.subr.bf16.mxu0 %v1897_v29 }
  0x53   : > { %1772 = vmatprep.subr.bf16.mxu1 %v1897_v29 }
  0x55   : > { %1752 = vmatpush3.bf16.msra.mxu0 %v1897_v29 }
  0x56   : > { %1780 = vmatpush3.bf16.msra.mxu1 %v1897_v29  ;;  %1753 = vmatprep.subr.bf16.mxu0 %v1904_v32 }
  0x57   : > { %1164 = vmatmul.mubr.bf16.gmra.mrb[24].mxu0 %v1902_v30  ;;  %1773 = vmatprep.subr.bf16.mxu1 %v1904_v32 }
  0x58   : > { %1229 = vmatmul.mubr.bf16.gmra.mrb[24].mxu1 %v1903_v31  ;;  %1171 = vmatprep.mubr.bf16.mxu0 %v1906_v33 }
  0x59   : > { %1754 = vmatpush3.bf16.msra.mxu0 %v1904_v32  ;;  %1236 = vmatprep.mubr.bf16.mxu1 %v1908_v34 }
  0x5a   : > { %1781 = vmatpush3.bf16.msra.mxu1 %v1904_v32  ;;  %1755 = vmatprep.subr.bf16.mxu0 %v1905_v35 }
  0x5b   : > { %1774 = vmatprep.subr.bf16.mxu1 %v1905_v35 }
  0x5d   : > { %1756 = vmatpush3.bf16.msra.mxu0 %v1905_v35 }
  0x5e   : > { %1782 = vmatpush3.bf16.msra.mxu1 %v1905_v35  ;;  %1757 = vmatprep.subr.bf16.mxu0 %v1912_v37 }
  0x5f   : > { %1172 = vmatmul.mubr.bf16.gmra.mrb[28].mxu0 %v1910_v36  ;;  %1775 = vmatprep.subr.bf16.mxu1 %v1912_v37 }
  0x60   : > { %1237 = vmatmul.mubr.bf16.gmra.mrb[28].mxu1 %v1911_v38  ;;  %1761 = vmatprep.mubr.bf16.mxu0 %v1914_v39 }
  0x61   : > { %1758 = vmatpush3.bf16.msra.mxu0 %v1912_v37  ;;  %1765 = vmatprep.mubr.bf16.mxu1 %v1915_v40 }
  0x62   : > { %1783 = vmatpush3.bf16.msra.mxu1 %v1912_v37  ;;  %1759 = vmatprep.subr.bf16.mxu0 %v1913_v41 }
  0x63   : > { %1776 = vmatprep.subr.bf16.mxu1 %v1913_v41 }
  0x65   : > { %1760 = vmatpush3.bf16.msra.mxu0 %v1913_v41 }
  0x66   : > { %1784 = vmatpush3.bf16.msra.mxu1 %v1913_v41 }
  0x68   : > { %1762 = vmatmul.mubr.bf16.vlgmr.msra.gmra.mrb[32].mxu0 %v1916_v42 }
  0x69   : > { %1766 = vmatmul.mubr.bf16.vlgmr.msra.gmra.mrb[32].mxu1 %v1917_v43 }
  0xfa   : > { %v1589_v44 = vpop.f32.mrb[0].mxu0 }
  0xfb   : > { %v1629_v45 = vpop.f32.mrb[0].mxu1  ;;  %v1590_v47 = vpop.f32.mrb[1].mxu0 }
  0xfc   : > { %v1591_v48 = vadd.f32 %v1590_v47, %v1589_v44  ;;  %v1630_v49 = vpop.f32.mrb[1].mxu1  ;;  %v1592_v50 = vpop.f32.mrb[2].mxu0 }
  0xfd   : > { %v1631_v51 = vadd.f32 %v1630_v49, %v1629_v45  ;;  %v1632_v52 = vpop.f32.mrb[2].mxu1  ;;  %v1593_v53 = vpop.f32.mrb[3].mxu0 }
  0xfe   : > { %v1020_v54 = vadd.f32 %v1591_v48, %v1423_v46  ;;  %v1594_v55 = vadd.f32 %v1593_v53, %v1592_v50  ;;  %v1633_v56 = vpop.f32.mrb[3].mxu1 }
  0xff   : > { %v1634_v57 = vadd.f32 %v1633_v56, %v1632_v52 }
 0x100   : > { %v1085_v58 = vadd.f32 %v1631_v51, %v1020_v54  ;;  %v1023_v59 = vadd.f32 %v1594_v55, %v1423_v46 }
 0x102   : > { %v1088_v60 = vadd.f32 %v1634_v57, %v1023_v59  ;;  %v1595_v61 = vpop.f32.mrb[4].mxu0 }
 0x103   : > { %v1635_v62 = vpop.f32.mrb[4].mxu1  ;;  %v1596_v63 = vpop.f32.mrb[5].mxu0 }
 0x104   : > { %v1597_v0 = vadd.f32 %v1596_v63, %v1595_v61  ;;  %v1636_v1 = vpop.f32.mrb[5].mxu1  ;;  %v1598_v2 = vpop.f32.mrb[6].mxu0 }
 0x105   : > { %v1637_v3 = vadd.f32 %v1636_v1, %v1635_v62  ;;  %v1638_v4 = vpop.f32.mrb[6].mxu1  ;;  %v1599_v5 = vpop.f32.mrb[7].mxu0 }
 0x106   : > { %v1028_v6 = vadd.f32 %v1597_v0, %v1423_v46  ;;  %v1600_v7 = vadd.f32 %v1599_v5, %v1598_v2  ;;  %v1639_v8 = vpop.f32.mrb[7].mxu1 }
 0x107   : > { %v1640_v9 = vadd.f32 %v1639_v8, %v1638_v4 }
 0x108   : > { %v1093_v10 = vadd.f32 %v1637_v3, %v1028_v6  ;;  %v1031_v11 = vadd.f32 %v1600_v7, %v1423_v46 }
 0x10a   : > { %v1096_v12 = vadd.f32 %v1640_v9, %v1031_v11  ;;  %v1601_v13 = vpop.f32.mrb[8].mxu0 }
 0x10b   : > { %v1641_v14 = vpop.f32.mrb[8].mxu1  ;;  %v1602_v15 = vpop.f32.mrb[9].mxu0 }
 0x10c   : > { %v1603_v16 = vadd.f32 %v1602_v15, %v1601_v13  ;;  %v1642_v17 = vpop.f32.mrb[9].mxu1  ;;  %v1604_v18 = vpop.f32.mrb[10].mxu0 }
 0x10d   : > { %v1643_v19 = vadd.f32 %v1642_v17, %v1641_v14  ;;  %v1644_v20 = vpop.f32.mrb[10].mxu1  ;;  %v1605_v21 = vpop.f32.mrb[11].mxu0 }
 0x10e   : > { %v1036_v22 = vadd.f32 %v1603_v16, %v1423_v46  ;;  %v1606_v23 = vadd.f32 %v1605_v21, %v1604_v18  ;;  %v1645_v24 = vpop.f32.mrb[11].mxu1 }
 0x10f   : > { %v1646_v25 = vadd.f32 %v1645_v24, %v1644_v20 }
 0x110   : > { %v1101_v26 = vadd.f32 %v1643_v19, %v1036_v22  ;;  %v1039_v27 = vadd.f32 %v1606_v23, %v1423_v46 }
 0x112   : > { %v1104_v28 = vadd.f32 %v1646_v25, %v1039_v27  ;;  %v1607_v29 = vpop.f32.mrb[12].mxu0 }
 0x113   : > { %v1647_v30 = vpop.f32.mrb[12].mxu1  ;;  %v1608_v31 = vpop.f32.mrb[13].mxu0 }
 0x114   : > { %v1648_v32 = vpop.f32.mrb[13].mxu1  ;;  %v1609_v33 = vadd.f32 %v1608_v31, %v1607_v29  ;;  %v1610_v35 = vpop.f32.mrb[14].mxu0 }
 0x115   : > { %v1649_v34 = vadd.f32 %v1648_v32, %v1647_v30  ;;  %v1650_v36 = vpop.f32.mrb[14].mxu1  ;;  %v1611_v37 = vpop.f32.mrb[15].mxu0 }
 0x116   : > { %v1651_v38 = vpop.f32.mrb[15].mxu1  ;;  %v1044_v39 = vadd.f32 %v1609_v33, %v1423_v46  ;;  %v1612_v40 = vadd.f32 %v1611_v37, %v1610_v35 }
 0x117   : > { %v1652_v41 = vadd.f32 %v1651_v38, %v1650_v36 }
 0x118   : > { %v1109_v42 = vadd.f32 %v1649_v34, %v1044_v39  ;;  %v1047_v43 = vadd.f32 %v1612_v40, %v1423_v46 }
 0x11a   : > { %v1112_v44 = vadd.f32 %v1652_v41, %v1047_v43  ;;  %v1669_v45 = vpop.f32.mrb[16].mxu0 }
 0x11b   : > { %v1670_v47 = vpop.f32.mrb[17].mxu0  ;;  %v1709_v48 = vpop.f32.mrb[16].mxu1 }
 0x11c   : > { %v1671_v49 = vadd.f32 %v1670_v47, %v1669_v45  ;;  %v1672_v50 = vpop.f32.mrb[18].mxu0  ;;  %v1710_v51 = vpop.f32.mrb[17].mxu1 }
 0x11d   : > { %v1673_v52 = vpop.f32.mrb[19].mxu0  ;;  %v1711_v54 = vadd.f32 %v1710_v51, %v1709_v48  ;;  %v1712_v55 = vpop.f32.mrb[18].mxu1 }
 0x11e   : > { %v1150_v53 = vadd.f32 %v1671_v49, %v1085_v58  ;;  %v1674_v56 = vadd.f32 %v1673_v52, %v1672_v50  ;;  %v1713_v57 = vpop.f32.mrb[19].mxu1 }
 0x11f   : > { %v1714_v61 = vadd.f32 %v1713_v57, %v1712_v55 }
 0x120   : > { %v1153_v59 = vadd.f32 %v1674_v56, %v1088_v60  ;;  %v1215_v62 = vadd.f32 %v1711_v54, %v1150_v53 }
 0x122   : > { %v1675_v63 = vpop.f32.mrb[20].mxu0  ;;  %v1218_v0 = vadd.f32 %v1714_v61, %v1153_v59 }
 0x123   : > { %v1676_v1 = vpop.f32.mrb[21].mxu0  ;;  %v1715_v46 = vpop.f32.mrb[20].mxu1 }
 0x124   : > { %v1677_v2 = vadd.f32 %v1676_v1, %v1675_v63  ;;  %v1678_v3 = vpop.f32.mrb[22].mxu0  ;;  %v1716_v4 = vpop.f32.mrb[21].mxu1 }
 0x125   : > { %v1679_v5 = vpop.f32.mrb[23].mxu0  ;;  %v1717_v7 = vadd.f32 %v1716_v4, %v1715_v46  ;;  %v1718_v8 = vpop.f32.mrb[22].mxu1 }
 0x126   : > { %v1158_v6 = vadd.f32 %v1677_v2, %v1093_v10  ;;  %v1680_v9 = vadd.f32 %v1679_v5, %v1678_v3  ;;  %v1719_v58 = vpop.f32.mrb[23].mxu1 }
 0x127   : > { %v1720_v13 = vadd.f32 %v1719_v58, %v1718_v8 }
 0x128   : > { %v1161_v11 = vadd.f32 %v1680_v9, %v1096_v12  ;;  %v1223_v14 = vadd.f32 %v1717_v7, %v1158_v6 }
 0x12a   : > { %v1681_v15 = vpop.f32.mrb[24].mxu0  ;;  %v1226_v60 = vadd.f32 %v1720_v13, %v1161_v11 }
 0x12b   : > { %v1682_v16 = vpop.f32.mrb[25].mxu0  ;;  %v1721_v17 = vpop.f32.mrb[24].mxu1 }
 0x12c   : > { %v1683_v18 = vadd.f32 %v1682_v16, %v1681_v15  ;;  %v1684_v19 = vpop.f32.mrb[26].mxu0  ;;  %v1722_v20 = vpop.f32.mrb[25].mxu1 }
 0x12d   : > { %v1685_v21 = vpop.f32.mrb[27].mxu0  ;;  %v1723_v23 = vadd.f32 %v1722_v20, %v1721_v17  ;;  %v1724_v24 = vpop.f32.mrb[26].mxu1 }
 0x12e   : > { %v1166_v22 = vadd.f32 %v1683_v18, %v1101_v26  ;;  %v1686_v25 = vadd.f32 %v1685_v21, %v1684_v19  ;;  %v1725_v10 = vpop.f32.mrb[27].mxu1 }
 0x12f   : > { %v1726_v29 = vadd.f32 %v1725_v10, %v1724_v24 }
 0x130   : > { %v1169_v27 = vadd.f32 %v1686_v25, %v1104_v28  ;;  %v1231_v30 = vadd.f32 %v1723_v23, %v1166_v22 }
 0x132   : > { %v1687_v31 = vpop.f32.mrb[28].mxu0  ;;  %v1234_v12 = vadd.f32 %v1726_v29, %v1169_v27 }
 0x133   : > { %v1688_v32 = vpop.f32.mrb[29].mxu0  ;;  %v1727_v33 = vpop.f32.mrb[28].mxu1 }
 0x134   : > { %v1689_v34 = vadd.f32 %v1688_v32, %v1687_v31  ;;  %v1690_v35 = vpop.f32.mrb[30].mxu0  ;;  %v1728_v36 = vpop.f32.mrb[29].mxu1 }
 0x135   : > { %v1691_v37 = vpop.f32.mrb[31].mxu0  ;;  %v1729_v39 = vadd.f32 %v1728_v36, %v1727_v33  ;;  %v1730_v40 = vpop.f32.mrb[30].mxu1 }
 0x136   : > { %v1174_v38 = vadd.f32 %v1689_v34, %v1109_v42  ;;  %v1692_v26 = vadd.f32 %v1691_v37, %v1690_v35  ;;  %v1731_v41 = vpop.f32.mrb[31].mxu1 }
 0x137   : > { %v1732_v45 = vadd.f32 %v1731_v41, %v1730_v40 }
 0x138   : > { %v1177_v43 = vadd.f32 %v1692_v26, %v1112_v44  ;;  %v1239_v47 = vadd.f32 %v1729_v39, %v1174_v38 }
 0x13a   : > { %v1242_v28 = vadd.f32 %v1732_v45, %v1177_v43 }
 0x13b   : > { %v1763_v48 = vpop.f32.mrb[32].mxu0 }
 0x13c   : > { %v1288_v49 = vadd.f32 %v1763_v48, %v1223_v14  ;;  %v1767_v50 = vpop.f32.mrb[32].mxu1  ;;  %v1279_v51 = vpop.f32.mrb[33].mxu0 }
 0x13d   : > { %v1304_v52 = vadd.f32 %v1767_v50, %v1239_v47  ;;  %v1280_v53 = vadd.f32 %v1279_v51, %v1215_v62  ;;  %v1295_v54 = vpop.f32.mrb[33].mxu1  ;;  %v1764_v55 = vpop.f32.mrb[34].mxu0 }
 0x13e   : > { %v1296_v56 = vadd.f32 %v1295_v54, %v1231_v30  ;;  %v1291_v42 = vadd.f32 %v1764_v55, %v1226_v60  ;;  %v1768_v57 = vpop.f32.mrb[34].mxu1  ;;  %v1282_v59 = vpop.f32.mrb[35].mxu0  ;;  %v1312_v44 = vmax.f32 %v1288_v49, 0.0 }
 0x13f   : > { %v1307_v61 = vadd.f32 %v1768_v57, %v1242_v28  ;;  %v1283_v63 = vadd.f32 %v1282_v59, %v1218_v0  ;;  %v1298_v1 = vpop.f32.mrb[35].mxu1  ;;  %v1316_v3 = vmax.f32 %v1304_v52, 0.0  ;;  %v1310_v4 = vmax.f32 %v1280_v53, 0.0 }
 0x140   : > { %v1313_v46 = vmax.f32 %v1291_v42, 0.0  ;;  %v1299_v2 = vadd.f32 %v1298_v1, %v1234_v12  ;;  %v1314_v6 = vmax.f32 %v1296_v56, 0.0 }
 0x141   : > { %v1317_v62 = vmax.f32 %v1307_v61, 0.0  ;;  %v1311_v5 = vmax.f32 %v1283_v63, 0.0 }
 0x142   : > { %v1558_v7 = vpack.c.bf16 %v1313_v46, %v1312_v44  ;;  %v1315_v8 = vmax.f32 %v1299_v2, 0.0 }
 0x143   : > { %v1568_v9 = vpack.c.bf16 %v1317_v62, %v1316_v3  ;;  %v1553_v58 = vpack.c.bf16 %v1311_v5, %v1310_v4 }
 0x144   : > { %1570 = vst [vmem:[%s175_s20 + $0x8] sm:$0xff] %v1558_v7   ;;  %v1563_v11 = vpack.c.bf16 %v1315_v8, %v1314_v6 }
 0x145   : > { %1572 = vst [vmem:[%s175_s20 + $0x18] sm:$0xff] %v1568_v9   ;;  %1554 = vst [vmem:[%s175_s20] sm:$0xff] %v1553_v58  }
 0x146   : > { %1571 = vst [vmem:[%s175_s20 + $0x10] sm:$0xff] %v1563_v11  }
 0x147 PF: > { %s13_s12 = sadd.s32 1, %s1924_s12  }
 0x148   : > { %p10_p4 = scmp.ge.s32.totalorder %s13_s12, 4  }
 0x14a   :  { %12 = sbr.rel (!%p10_p4) target bundleno = 1 (0x1), region = 62 }

// kernel: patch_embedding_forward.5
= control target key start
LH: loop header
LB: loop body
LE: loop exit
PB: predicated region body
PF: predicated region fallthrough
CT: control target
= control target key end

     0   :  { %s2386_s1 = inlined_call_operand.vmem [shape: bf16[2048,128], index: 1, kind: input, shape index: {}]   ;;  %s2387_s0 = inlined_call_operand.vmem [shape: bf16[16,2048], index: 0, kind: input, shape index: {}]   ;;  %s2388_s2 = inlined_call_operand.vmem [shape: f32[1,128], index: 2, kind: input, shape index: {}]   ;;  %s2389_s3 = inlined_call_operand.vmem [shape: f32[16,128], index: 3, kind: output, shape index: {}]  }
   0x1   :  { %v1797_v0 = vld [vmem:[%s2386_s1 + $0x40] sm:$0xff]   ;;  %v1801_v4 = vld [vmem:[%s2386_s1 + $0x48] sm:$0xff]   ;;  %v1805_v8 = vld [vmem:[%s2386_s1 + $0x50] sm:$0xff]  }
   0x2   :  { %v1798_v1 = vld [vmem:[%s2386_s1 + $0xc0] sm:$0xff]   ;;  %1621 = vmatprep.subr.bf16.mxu0 %v1797_v0  ;;  %v1802_v5 = vld [vmem:[%s2386_s1 + $0xc8] sm:$0xff]   ;;  %v1806_v9 = vld [vmem:[%s2386_s1 + $0xd0] sm:$0xff]  }
   0x3   :  { %v1799_v2 = vld [vmem:[%s2386_s1] sm:$0xff]   ;;  %1643 = vmatprep.subr.bf16.mxu1 %v1798_v1  ;;  %v1803_v6 = vld [vmem:[%s2386_s1 + $0x8] sm:$0xff]   ;;  %v1807_v10 = vld [vmem:[%s2386_s1 + $0x10] sm:$0xff]  }
   0x4   :  { %v1800_v3 = vld [vmem:[%s2386_s1 + $0x80] sm:$0xff]   ;;  %1622 = vmatpush3.bf16.msra.mxu0 %v1799_v2  ;;  %v1804_v7 = vld [vmem:[%s2386_s1 + $0x88] sm:$0xff]   ;;  %v1808_v11 = vld [vmem:[%s2386_s1 + $0x90] sm:$0xff]  }
   0x5   :  { %1644 = vmatpush3.bf16.msra.mxu1 %v1800_v3  ;;  %1623 = vmatprep.subr.bf16.mxu0 %v1801_v4  ;;  %v1809_v12 = vld [vmem:[%s2386_s1 + $0x58] sm:$0xff]   ;;  %v1813_v16 = vld [vmem:[%s2386_s1 + $0x60] sm:$0xff]   ;;  %v1817_v20 = vld [vmem:[%s2386_s1 + $0x68] sm:$0xff]  }
   0x6   :  { %1645 = vmatprep.subr.bf16.mxu1 %v1802_v5  ;;  %v1810_v13 = vld [vmem:[%s2386_s1 + $0xd8] sm:$0xff]   ;;  %v1814_v17 = vld [vmem:[%s2386_s1 + $0xe0] sm:$0xff]   ;;  %v1818_v21 = vld [vmem:[%s2386_s1 + $0xe8] sm:$0xff]  }
   0x7   :  { %v1811_v14 = vld [vmem:[%s2386_s1 + $0x18] sm:$0xff]   ;;  %v1815_v18 = vld [vmem:[%s2386_s1 + $0x20] sm:$0xff]   ;;  %v1819_v22 = vld [vmem:[%s2386_s1 + $0x28] sm:$0xff]  }
   0x8   :  { %1624 = vmatpush3.bf16.msra.mxu0 %v1803_v6  ;;  %v1812_v15 = vld [vmem:[%s2386_s1 + $0x98] sm:$0xff]   ;;  %v1816_v19 = vld [vmem:[%s2386_s1 + $0xa0] sm:$0xff]   ;;  %v1820_v23 = vld [vmem:[%s2386_s1 + $0xa8] sm:$0xff]  }
   0x9   :  { %1646 = vmatpush3.bf16.msra.mxu1 %v1804_v7  ;;  %1625 = vmatprep.subr.bf16.mxu0 %v1805_v8  ;;  %v1821_v24 = vld [vmem:[%s2386_s1 + $0x70] sm:$0xff]   ;;  %v1825_v28 = vld [vmem:[%s2386_s1 + $0x78] sm:$0xff]   ;;  %v15_v32 = vld [vmem:[%s2387_s0] sm:$0xff] }
   0xa   :  { %1647 = vmatprep.subr.bf16.mxu1 %v1806_v9  ;;  %v1822_v25 = vld [vmem:[%s2386_s1 + $0xf0] sm:$0xff]   ;;  %v1826_v29 = vld [vmem:[%s2386_s1 + $0xf8] sm:$0xff]   ;;  %v23_v33 = vld [vmem:[%s2387_s0 + $0x40] sm:$0xff] }
   0xb   :  { %v1823_v26 = vld [vmem:[%s2386_s1 + $0x30] sm:$0xff]   ;;  %v1827_v30 = vld [vmem:[%s2386_s1 + $0x38] sm:$0xff]   ;;  %v16_v34 = vld [vmem:[%s2387_s0 + $0x8] sm:$0xff]  ;;  %v1477_v35 = vcombine.low %v15_v32, %v23_v33  ;;  %v1478_v36 = vcombine.high %v15_v32, %v23_v33 }
   0xc   :  { %1626 = vmatpush3.bf16.msra.mxu0 %v1807_v10  ;;  %v1824_v27 = vld [vmem:[%s2386_s1 + $0xb0] sm:$0xff]   ;;  %v1828_v31 = vld [vmem:[%s2386_s1 + $0xb8] sm:$0xff]   ;;  %v24_v37 = vld [vmem:[%s2387_s0 + $0x48] sm:$0xff] }
   0xd   :  { %1648 = vmatpush3.bf16.msra.mxu1 %v1808_v11  ;;  %1627 = vmatprep.subr.bf16.mxu0 %v1809_v12  ;;  %v1479_v38 = vcombine.low %v16_v34, %v24_v37  ;;  %v1480_v39 = vcombine.high %v16_v34, %v24_v37  ;;  %v1829_v40 = vld [vmem:[%s2386_s1 + $0x140] sm:$0xff]   ;;  %v1833_v44 = vld [vmem:[%s2386_s1 + $0x148] sm:$0xff]   ;;  %v1837_v48 = vld [vmem:[%s2386_s1 + $0x150] sm:$0xff]  }
   0xe   :  { %1649 = vmatprep.subr.bf16.mxu1 %v1810_v13  ;;  %1174 = vmatprep.mubr.bf16.mxu0 %v1478_v36  ;;  %v1830_v41 = vld [vmem:[%s2386_s1 + $0x1c0] sm:$0xff]   ;;  %v1834_v45 = vld [vmem:[%s2386_s1 + $0x1c8] sm:$0xff]   ;;  %v1838_v49 = vld [vmem:[%s2386_s1 + $0x1d0] sm:$0xff]  }
   0xf   :  { %1215 = vmatprep.mubr.bf16.mxu1 %v1480_v39  ;;  %v1831_v42 = vld [vmem:[%s2386_s1 + $0x100] sm:$0xff]   ;;  %v1835_v46 = vld [vmem:[%s2386_s1 + $0x108] sm:$0xff]   ;;  %v1839_v50 = vld [vmem:[%s2386_s1 + $0x110] sm:$0xff]  }
  0x10   :  { %1628 = vmatpush3.bf16.msra.mxu0 %v1811_v14  ;;  %v1832_v43 = vld [vmem:[%s2386_s1 + $0x180] sm:$0xff]   ;;  %v1836_v47 = vld [vmem:[%s2386_s1 + $0x188] sm:$0xff]   ;;  %v1840_v51 = vld [vmem:[%s2386_s1 + $0x190] sm:$0xff]  }
  0x11   :  { %1650 = vmatpush3.bf16.msra.mxu1 %v1812_v15  ;;  %1629 = vmatprep.subr.bf16.mxu0 %v1813_v16  ;;  %v1841_v52 = vld [vmem:[%s2386_s1 + $0x158] sm:$0xff]   ;;  %v1845_v56 = vld [vmem:[%s2386_s1 + $0x160] sm:$0xff]   ;;  %v1849_v60 = vld [vmem:[%s2386_s1 + $0x168] sm:$0xff]  }
  0x12   :  { %1651 = vmatprep.subr.bf16.mxu1 %v1814_v17  ;;  %v1842_v53 = vld [vmem:[%s2386_s1 + $0x1d8] sm:$0xff]   ;;  %v1846_v57 = vld [vmem:[%s2386_s1 + $0x1e0] sm:$0xff]   ;;  %v1850_v61 = vld [vmem:[%s2386_s1 + $0x1e8] sm:$0xff]  }
  0x13   :  { %v1843_v54 = vld [vmem:[%s2386_s1 + $0x118] sm:$0xff]   ;;  %v1847_v58 = vld [vmem:[%s2386_s1 + $0x120] sm:$0xff]   ;;  %v1851_v62 = vld [vmem:[%s2386_s1 + $0x128] sm:$0xff]  }
  0x14   :  { %1630 = vmatpush3.bf16.msra.mxu0 %v1815_v18  ;;  %v1844_v55 = vld [vmem:[%s2386_s1 + $0x198] sm:$0xff]   ;;  %v1848_v59 = vld [vmem:[%s2386_s1 + $0x1a0] sm:$0xff]   ;;  %v1852_v63 = vld [vmem:[%s2386_s1 + $0x1a8] sm:$0xff]  }
  0x15   :  { %1652 = vmatpush3.bf16.msra.mxu1 %v1816_v19  ;;  %1631 = vmatprep.subr.bf16.mxu0 %v1817_v20  ;;  %v1853_v0 = vld [vmem:[%s2386_s1 + $0x170] sm:$0xff]   ;;  %v1857_v4 = vld [vmem:[%s2386_s1 + $0x178] sm:$0xff]   ;;  %v1861_v16 = vld [vmem:[%s2386_s1 + $0x240] sm:$0xff]  }
  0x16   :  { %1653 = vmatprep.subr.bf16.mxu1 %v1818_v21  ;;  %v1854_v1 = vld [vmem:[%s2386_s1 + $0x1f0] sm:$0xff]   ;;  %v1858_v5 = vld [vmem:[%s2386_s1 + $0x1f8] sm:$0xff]   ;;  %v1862_v17 = vld [vmem:[%s2386_s1 + $0x2c0] sm:$0xff]  }
  0x17   :  { %v1855_v2 = vld [vmem:[%s2386_s1 + $0x130] sm:$0xff]   ;;  %v1859_v6 = vld [vmem:[%s2386_s1 + $0x138] sm:$0xff]   ;;  %v1863_v18 = vld [vmem:[%s2386_s1 + $0x200] sm:$0xff]  }
  0x18   :  { %1632 = vmatpush3.bf16.msra.mxu0 %v1819_v22  ;;  %v1856_v3 = vld [vmem:[%s2386_s1 + $0x1b0] sm:$0xff]   ;;  %v1860_v7 = vld [vmem:[%s2386_s1 + $0x1b8] sm:$0xff]   ;;  %v1864_v19 = vld [vmem:[%s2386_s1 + $0x280] sm:$0xff]  }
  0x19   :  { %1654 = vmatpush3.bf16.msra.mxu1 %v1820_v23  ;;  %1633 = vmatprep.subr.bf16.mxu0 %v1821_v24  ;;  %v17_v8 = vld [vmem:[%s2387_s0 + $0x10] sm:$0xff]  ;;  %v18_v12 = vld [vmem:[%s2387_s0 + $0x18] sm:$0xff]  ;;  %v1865_v20 = vld [vmem:[%s2386_s1 + $0x248] sm:$0xff]  }
  0x1a   :  { %1655 = vmatprep.subr.bf16.mxu1 %v1822_v25  ;;  %v25_v9 = vld [vmem:[%s2387_s0 + $0x50] sm:$0xff]  ;;  %v26_v13 = vld [vmem:[%s2387_s0 + $0x58] sm:$0xff]  ;;  %v1866_v21 = vld [vmem:[%s2386_s1 + $0x2c8] sm:$0xff]  }
  0x1b   :  { %v1481_v10 = vcombine.low %v17_v8, %v25_v9  ;;  %v1482_v11 = vcombine.high %v17_v8, %v25_v9  ;;  %v1483_v14 = vcombine.low %v18_v12, %v26_v13  ;;  %v1484_v15 = vcombine.high %v18_v12, %v26_v13  ;;  %v1867_v22 = vld [vmem:[%s2386_s1 + $0x208] sm:$0xff]   ;;  %v1869_v24 = vld [vmem:[%s2386_s1 + $0x250] sm:$0xff]   ;;  %v1877_v32 = vld [vmem:[%s2386_s1 + $0x260] sm:$0xff]  }
  0x1c   :  { %1634 = vmatpush3.bf16.msra.mxu0 %v1823_v26  ;;  %v1868_v23 = vld [vmem:[%s2386_s1 + $0x288] sm:$0xff]   ;;  %v1870_v25 = vld [vmem:[%s2386_s1 + $0x2d0] sm:$0xff]   ;;  %v1878_v33 = vld [vmem:[%s2386_s1 + $0x2e0] sm:$0xff]  }
  0x1d   :  { %1656 = vmatpush3.bf16.msra.mxu1 %v1824_v27  ;;  %1635 = vmatprep.subr.bf16.mxu0 %v1825_v28  ;;  %v1871_v26 = vld [vmem:[%s2386_s1 + $0x210] sm:$0xff]   ;;  %v1873_v28 = vld [vmem:[%s2386_s1 + $0x258] sm:$0xff]   ;;  %v1879_v34 = vld [vmem:[%s2386_s1 + $0x220] sm:$0xff]  }
  0x1e   :  { %1657 = vmatprep.subr.bf16.mxu1 %v1826_v29  ;;  %v1872_v27 = vld [vmem:[%s2386_s1 + $0x290] sm:$0xff]   ;;  %v1874_v29 = vld [vmem:[%s2386_s1 + $0x2d8] sm:$0xff]   ;;  %v1881_v36 = vld [vmem:[%s2386_s1 + $0x268] sm:$0xff]  }
  0x1f   :  { %v1882_v37 = vld [vmem:[%s2386_s1 + $0x2e8] sm:$0xff]   ;;  %v1909_v8 = vld [vmem:[%s2386_s1 + $0x360] sm:$0xff]  }
  0x20   :  { %1636 = vmatpush3.bf16.msra.mxu0 %v1827_v30  ;;  %v1875_v30 = vld [vmem:[%s2386_s1 + $0x218] sm:$0xff]   ;;  %v1884_v39 = vld [vmem:[%s2386_s1 + $0x2a8] sm:$0xff]   ;;  %v1910_v9 = vld [vmem:[%s2386_s1 + $0x3e0] sm:$0xff]  }
  0x21   :  { %1658 = vmatpush3.bf16.msra.mxu1 %v1828_v31  ;;  %1665 = vmatprep.subr.bf16.mxu0 %v1829_v40  ;;  %v1876_v31 = vld [vmem:[%s2386_s1 + $0x298] sm:$0xff]   ;;  %v1885_v40 = vld [vmem:[%s2386_s1 + $0x270] sm:$0xff]   ;;  %v1913_v12 = vld [vmem:[%s2386_s1 + $0x368] sm:$0xff]  }
  0x22   :  { %1687 = vmatprep.subr.bf16.mxu1 %v1830_v41  ;;  %v1886_v41 = vld [vmem:[%s2386_s1 + $0x2f0] sm:$0xff]   ;;  %v1914_v13 = vld [vmem:[%s2386_s1 + $0x3e8] sm:$0xff]  }
  0x23   :  { %1175 = vmatmul.mubr.bf16.vlgmr.msra.gmra.mrb[0].mxu0 %v1477_v35  ;;  %v1880_v35 = vld [vmem:[%s2386_s1 + $0x2a0] sm:$0xff]  }
  0x24   :  { %1216 = vmatmul.mubr.bf16.vlgmr.msra.gmra.mrb[0].mxu1 %v1479_v38  ;;  %1666 = vmatpush3.bf16.msra.mxu0 %v1831_v42  ;;  %v1883_v38 = vld [vmem:[%s2386_s1 + $0x228] sm:$0xff]   ;;  %v1887_v42 = vld [vmem:[%s2386_s1 + $0x230] sm:$0xff]  }
  0x25   :  { %1688 = vmatpush3.bf16.msra.mxu1 %v1832_v43  ;;  %1667 = vmatprep.subr.bf16.mxu0 %v1833_v44  ;;  %v1888_v43 = vld [vmem:[%s2386_s1 + $0x2b0] sm:$0xff]   ;;  %v1889_v44 = vld [vmem:[%s2386_s1 + $0x278] sm:$0xff]  }
  0x26   :  { %1689 = vmatprep.subr.bf16.mxu1 %v1834_v45  ;;  %1256 = vmatprep.mubr.bf16.mxu0 %v1482_v11  ;;  %v1890_v45 = vld [vmem:[%s2386_s1 + $0x2f8] sm:$0xff]   ;;  %v1912_v11 = vld [vmem:[%s2386_s1 + $0x3a0] sm:$0xff]  }
  0x27   :  { %1297 = vmatprep.mubr.bf16.mxu1 %v1484_v15  ;;  %v1916_v15 = vld [vmem:[%s2386_s1 + $0x3a8] sm:$0xff]  }
  0x28   :  { %1668 = vmatpush3.bf16.msra.mxu0 %v1835_v46  ;;  %v1891_v46 = vld [vmem:[%s2386_s1 + $0x238] sm:$0xff]  }
  0x29   :  { %1690 = vmatpush3.bf16.msra.mxu1 %v1836_v47  ;;  %1669 = vmatprep.subr.bf16.mxu0 %v1837_v48  ;;  %v1892_v47 = vld [vmem:[%s2386_s1 + $0x2b8] sm:$0xff]   ;;  %v19_v48 = vld [vmem:[%s2387_s0 + $0x20] sm:$0xff] }
  0x2a   :  { %1691 = vmatprep.subr.bf16.mxu1 %v1838_v49  ;;  %v27_v49 = vld [vmem:[%s2387_s0 + $0x60] sm:$0xff] }
  0x2c   :  { %1670 = vmatpush3.bf16.msra.mxu0 %v1839_v50  ;;  %v20_v50 = vld [vmem:[%s2387_s0 + $0x28] sm:$0xff] }
  0x2d   :  { %1692 = vmatpush3.bf16.msra.mxu1 %v1840_v51  ;;  %1671 = vmatprep.subr.bf16.mxu0 %v1841_v52  ;;  %v28_v51 = vld [vmem:[%s2387_s0 + $0x68] sm:$0xff]  ;;  %v1485_v52 = vcombine.low %v19_v48, %v27_v49 }
  0x2e   :  { %1693 = vmatprep.subr.bf16.mxu1 %v1842_v53  ;;  %v1486_v53 = vcombine.high %v19_v48, %v27_v49 }
  0x30   :  { %1672 = vmatpush3.bf16.msra.mxu0 %v1843_v54  ;;  %v1487_v54 = vcombine.low %v20_v50, %v28_v51 }
  0x31   :  { %1694 = vmatpush3.bf16.msra.mxu1 %v1844_v55  ;;  %1673 = vmatprep.subr.bf16.mxu0 %v1845_v56  ;;  %v1488_v55 = vcombine.high %v20_v50, %v28_v51  ;;  %v1893_v56 = vld [vmem:[%s2386_s1 + $0x340] sm:$0xff]  }
  0x32   :  { %1695 = vmatprep.subr.bf16.mxu1 %v1846_v57  ;;  %v1894_v57 = vld [vmem:[%s2386_s1 + $0x3c0] sm:$0xff]  }
  0x34   :  { %1674 = vmatpush3.bf16.msra.mxu0 %v1847_v58  ;;  %v1895_v58 = vld [vmem:[%s2386_s1 + $0x300] sm:$0xff]  }
  0x35   :  { %1696 = vmatpush3.bf16.msra.mxu1 %v1848_v59  ;;  %1675 = vmatprep.subr.bf16.mxu0 %v1849_v60  ;;  %v1896_v59 = vld [vmem:[%s2386_s1 + $0x380] sm:$0xff]   ;;  %v1897_v60 = vld [vmem:[%s2386_s1 + $0x348] sm:$0xff]  }
  0x36   :  { %1697 = vmatprep.subr.bf16.mxu1 %v1850_v61  ;;  %v1898_v61 = vld [vmem:[%s2386_s1 + $0x3c8] sm:$0xff]  }
  0x38   :  { %1676 = vmatpush3.bf16.msra.mxu0 %v1851_v62  ;;  %v1899_v62 = vld [vmem:[%s2386_s1 + $0x308] sm:$0xff]  }
  0x39   :  { %1698 = vmatpush3.bf16.msra.mxu1 %v1852_v63  ;;  %1677 = vmatprep.subr.bf16.mxu0 %v1853_v0  ;;  %v1900_v63 = vld [vmem:[%s2386_s1 + $0x388] sm:$0xff]   ;;  %v1901_v0 = vld [vmem:[%s2386_s1 + $0x350] sm:$0xff]  }
  0x3a   :  { %1699 = vmatprep.subr.bf16.mxu1 %v1854_v1  ;;  %v1902_v1 = vld [vmem:[%s2386_s1 + $0x3d0] sm:$0xff]  }
  0x3c   :  { %1678 = vmatpush3.bf16.msra.mxu0 %v1855_v2  ;;  %v1903_v2 = vld [vmem:[%s2386_s1 + $0x310] sm:$0xff]  }
  0x3d   :  { %1700 = vmatpush3.bf16.msra.mxu1 %v1856_v3  ;;  %1679 = vmatprep.subr.bf16.mxu0 %v1857_v4  ;;  %v1904_v3 = vld [vmem:[%s2386_s1 + $0x390] sm:$0xff]   ;;  %v1905_v4 = vld [vmem:[%s2386_s1 + $0x358] sm:$0xff]  }
  0x3e   :  { %1701 = vmatprep.subr.bf16.mxu1 %v1858_v5  ;;  %v1906_v5 = vld [vmem:[%s2386_s1 + $0x3d8] sm:$0xff]  }
  0x40   :  { %1680 = vmatpush3.bf16.msra.mxu0 %v1859_v6  ;;  %v1907_v6 = vld [vmem:[%s2386_s1 + $0x318] sm:$0xff]  }
  0x41   :  { %1702 = vmatpush3.bf16.msra.mxu1 %v1860_v7  ;;  %1709 = vmatprep.subr.bf16.mxu0 %v1861_v16  ;;  %v1908_v7 = vld [vmem:[%s2386_s1 + $0x398] sm:$0xff]   ;;  %v1917_v16 = vld [vmem:[%s2386_s1 + $0x370] sm:$0xff]  }
  0x42   :  { %1731 = vmatprep.subr.bf16.mxu1 %v1862_v17  ;;  %v1918_v17 = vld [vmem:[%s2386_s1 + $0x3f0] sm:$0xff]  }
  0x43   :  { %1257 = vmatmul.mubr.bf16.vlgmr.msra.gmra.mrb[4].mxu0 %v1481_v10  ;;  %v1911_v10 = vld [vmem:[%s2386_s1 + $0x320] sm:$0xff]  }
  0x44   :  { %1298 = vmatmul.mubr.bf16.vlgmr.msra.gmra.mrb[4].mxu1 %v1483_v14  ;;  %1710 = vmatpush3.bf16.msra.mxu0 %v1863_v18  ;;  %v1915_v14 = vld [vmem:[%s2386_s1 + $0x328] sm:$0xff]   ;;  %v1919_v18 = vld [vmem:[%s2386_s1 + $0x330] sm:$0xff]  }
  0x45   :  { %1732 = vmatpush3.bf16.msra.mxu1 %v1864_v19  ;;  %1711 = vmatprep.subr.bf16.mxu0 %v1865_v20  ;;  %v1920_v19 = vld [vmem:[%s2386_s1 + $0x3b0] sm:$0xff]   ;;  %v1921_v20 = vld [vmem:[%s2386_s1 + $0x378] sm:$0xff]  }
  0x46   :  { %1733 = vmatprep.subr.bf16.mxu1 %v1866_v21  ;;  %1338 = vmatprep.mubr.bf16.mxu0 %v1486_v53  ;;  %v1922_v21 = vld [vmem:[%s2386_s1 + $0x3f8] sm:$0xff]  }
  0x47   :  { %1379 = vmatprep.mubr.bf16.mxu1 %v1488_v55 }
  0x48   :  { %1712 = vmatpush3.bf16.msra.mxu0 %v1867_v22  ;;  %v1923_v22 = vld [vmem:[%s2386_s1 + $0x338] sm:$0xff]  }
  0x49   :  { %1734 = vmatpush3.bf16.msra.mxu1 %v1868_v23  ;;  %1713 = vmatprep.subr.bf16.mxu0 %v1869_v24  ;;  %v1924_v23 = vld [vmem:[%s2386_s1 + $0x3b8] sm:$0xff]   ;;  %v21_v24 = vld [vmem:[%s2387_s0 + $0x30] sm:$0xff] }
  0x4a   :  { %1735 = vmatprep.subr.bf16.mxu1 %v1870_v25  ;;  %v29_v25 = vld [vmem:[%s2387_s0 + $0x70] sm:$0xff] }
  0x4c   :  { %1714 = vmatpush3.bf16.msra.mxu0 %v1871_v26  ;;  %v22_v26 = vld [vmem:[%s2387_s0 + $0x38] sm:$0xff] }
  0x4d   :  { %1736 = vmatpush3.bf16.msra.mxu1 %v1872_v27  ;;  %1715 = vmatprep.subr.bf16.mxu0 %v1873_v28  ;;  %v1489_v27 = vcombine.low %v21_v24, %v29_v25  ;;  %v1490_v28 = vcombine.high %v21_v24, %v29_v25 }
  0x4e   :  { %1737 = vmatprep.subr.bf16.mxu1 %v1874_v29  ;;  %v30_v29 = vld [vmem:[%s2387_s0 + $0x78] sm:$0xff] }
  0x50   :  { %1716 = vmatpush3.bf16.msra.mxu0 %v1875_v30  ;;  %v1491_v30 = vcombine.low %v22_v26, %v30_v29 }
  0x51   :  { %1738 = vmatpush3.bf16.msra.mxu1 %v1876_v31  ;;  %1717 = vmatprep.subr.bf16.mxu0 %v1877_v32  ;;  %v1492_v31 = vcombine.high %v22_v26, %v30_v29 }
  0x52   :  { %1739 = vmatprep.subr.bf16.mxu1 %v1878_v33 }
  0x54   :  { %1718 = vmatpush3.bf16.msra.mxu0 %v1879_v34  ;;  %v1476_v34 = vld [vmem:[%s2388_s2] ss:$0 sm:$0xff] }
  0x55   :  { %1740 = vmatpush3.bf16.msra.mxu1 %v1880_v35  ;;  %1719 = vmatprep.subr.bf16.mxu0 %v1881_v36 }
  0x56   :  { %1741 = vmatprep.subr.bf16.mxu1 %v1882_v37 }
  0x58   :  { %1720 = vmatpush3.bf16.msra.mxu0 %v1883_v38 }
  0x59   :  { %1742 = vmatpush3.bf16.msra.mxu1 %v1884_v39  ;;  %1721 = vmatprep.subr.bf16.mxu0 %v1885_v40 }
  0x5a   :  { %1743 = vmatprep.subr.bf16.mxu1 %v1886_v41 }
  0x5c   :  { %1722 = vmatpush3.bf16.msra.mxu0 %v1887_v42 }
  0x5d   :  { %1744 = vmatpush3.bf16.msra.mxu1 %v1888_v43  ;;  %1723 = vmatprep.subr.bf16.mxu0 %v1889_v44 }
  0x5e   :  { %1745 = vmatprep.subr.bf16.mxu1 %v1890_v45 }
  0x60   :  { %1724 = vmatpush3.bf16.msra.mxu0 %v1891_v46 }
  0x61   :  { %1746 = vmatpush3.bf16.msra.mxu1 %v1892_v47  ;;  %1753 = vmatprep.subr.bf16.mxu0 %v1893_v56 }
  0x62   :  { %1775 = vmatprep.subr.bf16.mxu1 %v1894_v57 }
  0x63   :  { %1339 = vmatmul.mubr.bf16.vlgmr.msra.gmra.mrb[8].mxu0 %v1485_v52 }
  0x64   :  { %1380 = vmatmul.mubr.bf16.vlgmr.msra.gmra.mrb[8].mxu1 %v1487_v54  ;;  %1754 = vmatpush3.bf16.msra.mxu0 %v1895_v58 }
  0x65   :  { %1776 = vmatpush3.bf16.msra.mxu1 %v1896_v59  ;;  %1755 = vmatprep.subr.bf16.mxu0 %v1897_v60 }
  0x66   :  { %1777 = vmatprep.subr.bf16.mxu1 %v1898_v61  ;;  %1420 = vmatprep.mubr.bf16.mxu0 %v1490_v28 }
  0x67   :  { %1461 = vmatprep.mubr.bf16.mxu1 %v1492_v31 }
  0x68   :  { %1756 = vmatpush3.bf16.msra.mxu0 %v1899_v62 }
  0x69   :  { %1778 = vmatpush3.bf16.msra.mxu1 %v1900_v63  ;;  %1757 = vmatprep.subr.bf16.mxu0 %v1901_v0 }
  0x6a   :  { %1779 = vmatprep.subr.bf16.mxu1 %v1902_v1 }
  0x6c   :  { %1758 = vmatpush3.bf16.msra.mxu0 %v1903_v2 }
  0x6d   :  { %1780 = vmatpush3.bf16.msra.mxu1 %v1904_v3  ;;  %1759 = vmatprep.subr.bf16.mxu0 %v1905_v4 }
  0x6e   :  { %1781 = vmatprep.subr.bf16.mxu1 %v1906_v5 }
  0x70   :  { %1760 = vmatpush3.bf16.msra.mxu0 %v1907_v6 }
  0x71   :  { %1782 = vmatpush3.bf16.msra.mxu1 %v1908_v7  ;;  %1761 = vmatprep.subr.bf16.mxu0 %v1909_v8 }
  0x72   :  { %1783 = vmatprep.subr.bf16.mxu1 %v1910_v9 }
  0x74   :  { %1762 = vmatpush3.bf16.msra.mxu0 %v1911_v10 }
  0x75   :  { %1784 = vmatpush3.bf16.msra.mxu1 %v1912_v11  ;;  %1763 = vmatprep.subr.bf16.mxu0 %v1913_v12 }
  0x76   :  { %1785 = vmatprep.subr.bf16.mxu1 %v1914_v13 }
  0x78   :  { %1764 = vmatpush3.bf16.msra.mxu0 %v1915_v14 }
  0x79   :  { %1786 = vmatpush3.bf16.msra.mxu1 %v1916_v15  ;;  %1765 = vmatprep.subr.bf16.mxu0 %v1917_v16 }
  0x7a   :  { %1787 = vmatprep.subr.bf16.mxu1 %v1918_v17 }
  0x7c   :  { %1766 = vmatpush3.bf16.msra.mxu0 %v1919_v18 }
  0x7d   :  { %1788 = vmatpush3.bf16.msra.mxu1 %v1920_v19  ;;  %1767 = vmatprep.subr.bf16.mxu0 %v1921_v20 }
  0x7e   :  { %1789 = vmatprep.subr.bf16.mxu1 %v1922_v21 }
  0x80   :  { %1768 = vmatpush3.bf16.msra.mxu0 %v1923_v22 }
  0x81   :  { %1790 = vmatpush3.bf16.msra.mxu1 %v1924_v23 }
  0x83   :  { %1421 = vmatmul.mubr.bf16.vlgmr.msra.gmra.mrb[12].mxu0 %v1489_v27 }
  0x84   :  { %1462 = vmatmul.mubr.bf16.vlgmr.msra.gmra.mrb[12].mxu1 %v1491_v30 }
  0xf6   :  { %v1637_v32 = vpop.f32.mrb[0].mxu0 }
  0xf7   :  { %v1659_v33 = vpop.f32.mrb[0].mxu1  ;;  %v1638_v35 = vpop.f32.mrb[1].mxu0 }
  0xf8   :  { %v1639_v36 = vadd.f32 %v1638_v35, %v1637_v32  ;;  %v1660_v37 = vpop.f32.mrb[1].mxu1  ;;  %v1640_v38 = vpop.f32.mrb[2].mxu0 }
  0xf9   :  { %v1661_v39 = vadd.f32 %v1660_v37, %v1659_v33  ;;  %v1662_v40 = vpop.f32.mrb[2].mxu1  ;;  %v1641_v41 = vpop.f32.mrb[3].mxu0 }
  0xfa   :  { %v1177_v42 = vadd.f32 %v1639_v36, %v1476_v34  ;;  %v1642_v43 = vadd.f32 %v1641_v41, %v1640_v38  ;;  %v1663_v44 = vpop.f32.mrb[3].mxu1 }
  0xfb   :  { %v1664_v45 = vadd.f32 %v1663_v44, %v1662_v40 }
  0xfc   :  { %v1218_v46 = vadd.f32 %v1661_v39, %v1177_v42  ;;  %v1180_v47 = vadd.f32 %v1642_v43, %v1476_v34 }
  0xfe   :  { %v1221_v48 = vadd.f32 %v1664_v45, %v1180_v47 }
 0x116   :  { %v1681_v49 = vpop.f32.mrb[4].mxu0 }
 0x117   :  { %v1703_v50 = vpop.f32.mrb[4].mxu1  ;;  %v1682_v51 = vpop.f32.mrb[5].mxu0 }
 0x118   :  { %v1683_v52 = vadd.f32 %v1682_v51, %v1681_v49  ;;  %v1704_v53 = vpop.f32.mrb[5].mxu1  ;;  %v1684_v54 = vpop.f32.mrb[6].mxu0 }
 0x119   :  { %v1705_v55 = vadd.f32 %v1704_v53, %v1703_v50  ;;  %v1706_v56 = vpop.f32.mrb[6].mxu1  ;;  %v1685_v57 = vpop.f32.mrb[7].mxu0 }
 0x11a   :  { %v1259_v58 = vadd.f32 %v1683_v52, %v1218_v46  ;;  %v1686_v59 = vadd.f32 %v1685_v57, %v1684_v54  ;;  %v1707_v60 = vpop.f32.mrb[7].mxu1 }
 0x11b   :  { %v1708_v61 = vadd.f32 %v1707_v60, %v1706_v56 }
 0x11c   :  { %v1300_v62 = vadd.f32 %v1705_v55, %v1259_v58  ;;  %v1262_v63 = vadd.f32 %v1686_v59, %v1221_v48 }
 0x11e   :  { %v1303_v0 = vadd.f32 %v1708_v61, %v1262_v63 }
 0x136   :  { %v1725_v1 = vpop.f32.mrb[8].mxu0 }
 0x137   :  { %v1747_v2 = vpop.f32.mrb[8].mxu1  ;;  %v1726_v3 = vpop.f32.mrb[9].mxu0 }
 0x138   :  { %v1748_v4 = vpop.f32.mrb[9].mxu1  ;;  %v1727_v5 = vadd.f32 %v1726_v3, %v1725_v1  ;;  %v1728_v7 = vpop.f32.mrb[10].mxu0 }
 0x139   :  { %v1749_v6 = vadd.f32 %v1748_v4, %v1747_v2  ;;  %v1750_v8 = vpop.f32.mrb[10].mxu1  ;;  %v1729_v9 = vpop.f32.mrb[11].mxu0 }
 0x13a   :  { %v1751_v10 = vpop.f32.mrb[11].mxu1  ;;  %v1341_v11 = vadd.f32 %v1727_v5, %v1300_v62  ;;  %v1730_v12 = vadd.f32 %v1729_v9, %v1728_v7 }
 0x13b   :  { %v1752_v13 = vadd.f32 %v1751_v10, %v1750_v8 }
 0x13c   :  { %v1382_v14 = vadd.f32 %v1749_v6, %v1341_v11  ;;  %v1344_v15 = vadd.f32 %v1730_v12, %v1303_v0 }
 0x13e   :  { %v1385_v16 = vadd.f32 %v1752_v13, %v1344_v15 }
 0x156   :  { %v1769_v17 = vpop.f32.mrb[12].mxu0 }
 0x157   :  { %v1791_v18 = vpop.f32.mrb[12].mxu1  ;;  %v1770_v19 = vpop.f32.mrb[13].mxu0 }
 0x158   :  { %v1771_v20 = vadd.f32 %v1770_v19, %v1769_v17  ;;  %v1792_v21 = vpop.f32.mrb[13].mxu1  ;;  %v1772_v22 = vpop.f32.mrb[14].mxu0 }
 0x159   :  { %v1793_v23 = vadd.f32 %v1792_v21, %v1791_v18  ;;  %v1794_v24 = vpop.f32.mrb[14].mxu1  ;;  %v1773_v25 = vpop.f32.mrb[15].mxu0 }
 0x15a   :  { %v1423_v26 = vadd.f32 %v1771_v20, %v1382_v14  ;;  %v1774_v27 = vadd.f32 %v1773_v25, %v1772_v22  ;;  %v1795_v28 = vpop.f32.mrb[15].mxu1 }
 0x15b   :  { %v1796_v29 = vadd.f32 %v1795_v28, %v1794_v24 }
 0x15c   :  { %v1464_v30 = vadd.f32 %v1793_v23, %v1423_v26  ;;  %v1426_v31 = vadd.f32 %v1774_v27, %v1385_v16 }
 0x15e   :  { %1470 = vst [vmem:[%s2389_s3] sm:$0xff] %v1464_v30  ;;  %v1467_v32 = vadd.f32 %v1796_v29, %v1426_v31 }
 0x160   :  { %1471 = vst [vmem:[%s2389_s3 + $0x8] sm:$0xff] %v1467_v32 }

</bundles_post_ra>
